<compile_context>
chip_gen: v5e
topology: v5e:2x2
jax: 0.10.0
libtpu: 0.0.40
codegen_flags: <defaults>
</compile_context>

<pallas_src>
import jax
import jax.numpy as jnp
from jax.experimental import pallas as pl
from jax.experimental.pallas import tpu as pltpu

DIR_T_SIZE = 78
DIR_PAD = 128          # dir_T padded to a full lane tile
INPUT_FEATURE = 32
GLOBAL_SIZE = 128
HIDDEN = 512
N_OUT = 3
OUT_PAD = 128          # final layer padded to a full lane tile


def _round_up(x, m):
    return ((x + m - 1) // m) * m


def _pad_rows(a, rows):
    return jnp.pad(a, ((0, rows - a.shape[0]), (0, 0)))


def _pad_cols(a, cols):
    return jnp.pad(a, ((0, 0), (0, cols - a.shape[1])))


def nerf_kernel(
    dir_ref, feat_ref, glob_ref,
    wf_ref, bf_ref, wh_ref, bh_ref,
    w1h_ref, w1d_ref, w1f_ref, b1_ref,
    w2_ref, b2_ref, w3_ref, b3_ref, w4_ref, b4_ref,
    w8x_ref, w8h_ref, w8d_ref, w8f_ref, b8_ref,
    w9_ref, b9_ref, w10_ref, b10_ref,
    w11_ref, b11_ref,
    out_ref,
):
    def dot(a, w_ref):
        return jnp.dot(a, w_ref[...], preferred_element_type=jnp.float32)

    def act(z):  # bias already added in f32; relu, then bf16 for the next MXU pass
        return jnp.maximum(z, 0.0).astype(jnp.bfloat16)

    d = dir_ref[...]                                            # [TM, 128] bf16
    f = act(dot(feat_ref[...], wf_ref) + bf_ref[...])           # [TM, 128]
    h = act(dot(glob_ref[...], wh_ref) + bh_ref[...])           # [TM, 128]

    # fc_1 on cat([h, dir_T, f]) -> three lane-aligned dots, no concat.
    x = act(dot(h, w1h_ref) + dot(d, w1d_ref) + dot(f, w1f_ref) + b1_ref[...])
    x = act(dot(x, w2_ref) + b2_ref[...])
    x = act(dot(x, w3_ref) + b3_ref[...])
    x = act(dot(x, w4_ref) + b4_ref[...])

    # fc_8 on cat([x, h, dir_T, f]) -> four lane-aligned dots, no concat.
    x = act(dot(x, w8x_ref) + dot(h, w8h_ref) + dot(d, w8d_ref)
            + dot(f, w8f_ref) + b8_ref[...])
    x = act(dot(x, w9_ref) + b9_ref[...])
    x = act(dot(x, w10_ref) + b10_ref[...])

    logits = dot(x, w11_ref) + b11_ref[...]                     # [TM, 128] f32
    out_ref[...] = jax.nn.sigmoid(logits).astype(out_ref.dtype)  # sigmoid -> EUP


def _prepare_params(p):
    """Split / pad / bf16-cast the f32 parameter dict into kernel-arg order."""
    bf16 = jnp.bfloat16
    w1, w8 = p["w1"], p["w8"]
    # w1 rows: [h (128) | dir (78) | f (128)]  -> pad the dir rows to 128.
    w1h = w1[:128]
    w1d = _pad_rows(w1[128:128 + DIR_T_SIZE], DIR_PAD)
    w1f = w1[128 + DIR_T_SIZE:]
    # w8 rows: [x (512) | h (128) | dir (78) | f (128)]
    w8x = w8[:HIDDEN]
    w8h = w8[HIDDEN:HIDDEN + 128]
    w8d = _pad_rows(w8[HIDDEN + 128:HIDDEN + 128 + DIR_T_SIZE], DIR_PAD)
    w8f = w8[HIDDEN + 128 + DIR_T_SIZE:]

    return [
        p["wf"].astype(bf16), p["bf"],
        p["wh"].astype(bf16), p["bh"],
        w1h.astype(bf16), w1d.astype(bf16), w1f.astype(bf16), p["b1"],
        p["w2"].astype(bf16), p["b2"],
        p["w3"].astype(bf16), p["b3"],
        p["w4"].astype(bf16), p["b4"],
        w8x.astype(bf16), w8h.astype(bf16), w8d.astype(bf16), w8f.astype(bf16),
        p["b8"],
        p["w9"].astype(bf16), p["b9"],
        p["w10"].astype(bf16), p["b10"],
        _pad_cols(p["w11"], OUT_PAD).astype(bf16),
        _pad_cols(p["b11"], OUT_PAD),
    ]


def nerf_forward(dir_T, input_feature, global_feature, params, *, tm=512):
    """Fused NeRF MLP forward.

    `tm` is the batch tile: sweep 256-1024 on v6e/v7x, ~128-256 on v5e.  On
    v7x pick tm so that n // tm >= 2 for megacore sharding.  Ragged batches
    are zero-padded here and the padded rows are sliced away at the end.
    """
    n = dir_T.shape[0]

    # Clamp the tile for tiny batches; keep it a multiple of 8 sublanes.
    tm_eff = _round_up(min(tm, max(8, _round_up(n, 8))), 8)
    n_pad = _round_up(n, tm_eff)

    def pad_batch(a):
        if a.shape[0] == n_pad:
            return a
        return jnp.pad(a, ((0, n_pad - a.shape[0]), (0, 0)))

    bf16 = jnp.bfloat16
    dir_p = pad_batch(_pad_cols(dir_T, DIR_PAD)).astype(bf16)
    feat_p = pad_batch(input_feature).astype(bf16)
    glob_p = pad_batch(global_feature).astype(bf16)

    weight_args = _prepare_params(params)

    def batched(width):
        return pl.BlockSpec((tm_eff, width), lambda i: (i, 0))

    def const_spec(shape):
        idx = lambda i: (0,) * len(shape)
        try:
            # Constant index_map across the grid -> one buffer is enough.
            return pl.BlockSpec(shape, idx, pipeline_mode=pl.Buffered(1))
        except TypeError:  # older jax without the pipeline_mode kwarg
            return pl.BlockSpec(shape, idx)

    weight_specs = [const_spec(a.shape) for a in weight_args]

    grid_spec = pltpu.PrefetchScalarGridSpec(
        num_scalar_prefetch=0,
        grid=(n_pad // tm_eff,),
        in_specs=[batched(DIR_PAD), batched(INPUT_FEATURE), batched(GLOBAL_SIZE)]
        + weight_specs,
        out_specs=pl.BlockSpec((tm_eff, OUT_PAD), lambda i: (i, 0)),
    )

    # VMEM budget: weights (counted x2 in case the compiler still double
    # buffers), double-buffered activation/output tiles, plus headroom for the
    # (tm, 512) intermediates.  Capped at 48 MiB -> safe on v7x (64 MiB/TC).
    weight_bytes = sum(int(a.size) * a.dtype.itemsize for a in weight_args)
    io_bytes = 2 * tm_eff * (2 * (DIR_PAD + INPUT_FEATURE + GLOBAL_SIZE)
                             + 4 * OUT_PAD)
    vmem_limit = int(min(48 << 20, 2 * weight_bytes + io_bytes + (24 << 20)))

    out = pl.pallas_call(
        nerf_kernel,
        out_shape=jax.ShapeDtypeStruct((n_pad, OUT_PAD), jnp.float32),
        grid_spec=grid_spec,
        compiler_params=pltpu.CompilerParams(
            dimension_semantics=("parallel",),
            vmem_limit_bytes=vmem_limit,
        ),
    )(dir_p, feat_p, glob_p, *weight_args)

    # Drop batch padding and the zero-padded output lanes (sigmoid(0)=0.5).
    return out[:n, :N_OUT]


def init_params(key):
    """Deterministic init mimicking nn.Linear's U(-1/sqrt(fan_in), 1/sqrt(fan_in))."""
    shapes = {
        "wf": (INPUT_FEATURE, 128), "bf": (1, 128),
        "wh": (GLOBAL_SIZE, 128), "bh": (1, 128),
        "w1": (256 + DIR_T_SIZE, HIDDEN), "b1": (1, HIDDEN),
        "w2": (HIDDEN, HIDDEN), "b2": (1, HIDDEN),
        "w3": (HIDDEN, HIDDEN), "b3": (1, HIDDEN),
        "w4": (HIDDEN, HIDDEN), "b4": (1, HIDDEN),
        "w8": (HIDDEN + 256 + DIR_T_SIZE, HIDDEN), "b8": (1, HIDDEN),
        "w9": (HIDDEN, HIDDEN), "b9": (1, HIDDEN),
        "w10": (HIDDEN, HIDDEN), "b10": (1, HIDDEN),
        "w11": (HIDDEN, N_OUT), "b11": (1, N_OUT),
    }
    params = {}
    keys = jax.random.split(key, len(shapes))
    for k_rng, (name, shp) in zip(keys, sorted(shapes.items())):
        fan_in = shp[0] if name.startswith("w") else shapes["w" + name[1:]][0]
        bound = 1.0 / jnp.sqrt(jnp.float32(fan_in))
        params[name] = jax.random.uniform(
            k_rng, shp, dtype=jnp.float32, minval=-bound, maxval=bound
        )
    return params


def nerf_reference(dir_T, input_feature, global_feature, p):
    """Plain-JAX f32 reference mirroring the PyTorch forward."""
    f = jax.nn.relu(input_feature @ p["wf"] + p["bf"])
    h = jax.nn.relu(global_feature @ p["wh"] + p["bh"])
    f = jnp.concatenate([dir_T, f], axis=-1)
    f = jnp.concatenate([h, f], axis=-1)
    x = jax.nn.relu(f @ p["w1"] + p["b1"])
    x = jax.nn.relu(x @ p["w2"] + p["b2"])
    x = jax.nn.relu(x @ p["w3"] + p["b3"])
    x = jax.nn.relu(x @ p["w4"] + p["b4"])
    x = jnp.concatenate([x, f], axis=-1)
    x = jax.nn.relu(x @ p["w8"] + p["b8"])
    x = jax.nn.relu(x @ p["w9"] + p["b9"])
    x = jax.nn.relu(x @ p["w10"] + p["b10"])
    return jax.nn.sigmoid(x @ p["w11"] + p["b11"])


if __name__ == "__main__":
    key = jax.random.PRNGKey(0)
    k_params, k_dir, k_feat, k_glob = jax.random.split(key, 4)

    params = init_params(k_params)

    batch = 16  # small demo batch; wrapper clamps the tile and pads as needed
    dir_T = jax.random.normal(k_dir, (batch, DIR_T_SIZE), dtype=jnp.float32)
    input_feature = jax.random.normal(k_feat, (batch, INPUT_FEATURE), dtype=jnp.float32)
    global_feature = jax.random.normal(k_glob, (batch, GLOBAL_SIZE), dtype=jnp.float32)

    out = nerf_forward(dir_T, input_feature, global_feature, params)
    out = jax.block_until_ready(out)

    ref = nerf_reference(dir_T, input_feature, global_feature, params)
    assert out.shape == (batch, N_OUT)
    # Kernel uses bf16 weights/activations with f32 accumulation vs. an f32
    # reference -> loosened tolerance.
    max_err = jnp.max(jnp.abs(out - ref))
    assert jnp.allclose(out, ref, atol=2e-2, rtol=0.0), (
        f"mismatch vs reference: max abs diff = {max_err}")
    print("KERNEL_OK")
</pallas_src>

<mosaic_0001>
module attributes {stable_mosaic.version = 11 : i64} {
  func.func @nerf_kernel(%arg0: i32, %arg1: memref<16x128xbf16, #tpu.memory_space<vmem>>, %arg2: memref<16x32xbf16, #tpu.memory_space<vmem>>, %arg3: memref<16x128xbf16, #tpu.memory_space<vmem>>, %arg4: memref<32x128xbf16, #tpu.memory_space<vmem>>, %arg5: memref<1x128xf32, #tpu.memory_space<vmem>>, %arg6: memref<128x128xbf16, #tpu.memory_space<vmem>>, %arg7: memref<1x128xf32, #tpu.memory_space<vmem>>, %arg8: memref<128x512xbf16, #tpu.memory_space<vmem>>, %arg9: memref<128x512xbf16, #tpu.memory_space<vmem>>, %arg10: memref<128x512xbf16, #tpu.memory_space<vmem>>, %arg11: memref<1x512xf32, #tpu.memory_space<vmem>>, %arg12: memref<512x512xbf16, #tpu.memory_space<vmem>>, %arg13: memref<1x512xf32, #tpu.memory_space<vmem>>, %arg14: memref<512x512xbf16, #tpu.memory_space<vmem>>, %arg15: memref<1x512xf32, #tpu.memory_space<vmem>>, %arg16: memref<512x512xbf16, #tpu.memory_space<vmem>>, %arg17: memref<1x512xf32, #tpu.memory_space<vmem>>, %arg18: memref<512x512xbf16, #tpu.memory_space<vmem>>, %arg19: memref<128x512xbf16, #tpu.memory_space<vmem>>, %arg20: memref<128x512xbf16, #tpu.memory_space<vmem>>, %arg21: memref<128x512xbf16, #tpu.memory_space<vmem>>, %arg22: memref<1x512xf32, #tpu.memory_space<vmem>>, %arg23: memref<512x512xbf16, #tpu.memory_space<vmem>>, %arg24: memref<1x512xf32, #tpu.memory_space<vmem>>, %arg25: memref<512x512xbf16, #tpu.memory_space<vmem>>, %arg26: memref<1x512xf32, #tpu.memory_space<vmem>>, %arg27: memref<512x128xbf16, #tpu.memory_space<vmem>>, %arg28: memref<1x128xf32, #tpu.memory_space<vmem>>, %arg29: memref<16x128xf32, #tpu.memory_space<vmem>>) attributes {dimension_semantics = [#tpu.dimension_semantics<parallel>], iteration_bounds = array<i64: 1>, scalar_prefetch = 0 : i64, scratch_operands = 0 : i64, tpu.core_type = #tpu.core_type<tc>, window_params = [{transform_indices = @transform_0, window_bounds = array<i64: 16, 128>}, {transform_indices = @transform_1, window_bounds = array<i64: 16, 32>}, {transform_indices = @transform_2, window_bounds = array<i64: 16, 128>}, {pipeline_mode = #tpu.pipeline_mode<synchronous>, transform_indices = @transform_3, window_bounds = array<i64: 32, 128>}, {pipeline_mode = #tpu.pipeline_mode<synchronous>, transform_indices = @transform_4, window_bounds = array<i64: 1, 128>}, {pipeline_mode = #tpu.pipeline_mode<synchronous>, transform_indices = @transform_5, window_bounds = array<i64: 128, 128>}, {pipeline_mode = #tpu.pipeline_mode<synchronous>, transform_indices = @transform_6, window_bounds = array<i64: 1, 128>}, {pipeline_mode = #tpu.pipeline_mode<synchronous>, transform_indices = @transform_7, window_bounds = array<i64: 128, 512>}, {pipeline_mode = #tpu.pipeline_mode<synchronous>, transform_indices = @transform_8, window_bounds = array<i64: 128, 512>}, {pipeline_mode = #tpu.pipeline_mode<synchronous>, transform_indices = @transform_9, window_bounds = array<i64: 128, 512>}, {pipeline_mode = #tpu.pipeline_mode<synchronous>, transform_indices = @transform_10, window_bounds = array<i64: 1, 512>}, {pipeline_mode = #tpu.pipeline_mode<synchronous>, transform_indices = @transform_11, window_bounds = array<i64: 512, 512>}, {pipeline_mode = #tpu.pipeline_mode<synchronous>, transform_indices = @transform_12, window_bounds = array<i64: 1, 512>}, {pipeline_mode = #tpu.pipeline_mode<synchronous>, transform_indices = @transform_13, window_bounds = array<i64: 512, 512>}, {pipeline_mode = #tpu.pipeline_mode<synchronous>, transform_indices = @transform_14, window_bounds = array<i64: 1, 512>}, {pipeline_mode = #tpu.pipeline_mode<synchronous>, transform_indices = @transform_15, window_bounds = array<i64: 512, 512>}, {pipeline_mode = #tpu.pipeline_mode<synchronous>, transform_indices = @transform_16, window_bounds = array<i64: 1, 512>}, {pipeline_mode = #tpu.pipeline_mode<synchronous>, transform_indices = @transform_17, window_bounds = array<i64: 512, 512>}, {pipeline_mode = #tpu.pipeline_mode<synchronous>, transform_indices = @transform_18, window_bounds = array<i64: 128, 512>}, {pipeline_mode = #tpu.pipeline_mode<synchronous>, transform_indices = @transform_19, window_bounds = array<i64: 128, 512>}, {pipeline_mode = #tpu.pipeline_mode<synchronous>, transform_indices = @transform_20, window_bounds = array<i64: 128, 512>}, {pipeline_mode = #tpu.pipeline_mode<synchronous>, transform_indices = @transform_21, window_bounds = array<i64: 1, 512>}, {pipeline_mode = #tpu.pipeline_mode<synchronous>, transform_indices = @transform_22, window_bounds = array<i64: 512, 512>}, {pipeline_mode = #tpu.pipeline_mode<synchronous>, transform_indices = @transform_23, window_bounds = array<i64: 1, 512>}, {pipeline_mode = #tpu.pipeline_mode<synchronous>, transform_indices = @transform_24, window_bounds = array<i64: 512, 512>}, {pipeline_mode = #tpu.pipeline_mode<synchronous>, transform_indices = @transform_25, window_bounds = array<i64: 1, 512>}, {pipeline_mode = #tpu.pipeline_mode<synchronous>, transform_indices = @transform_26, window_bounds = array<i64: 512, 128>}, {pipeline_mode = #tpu.pipeline_mode<synchronous>, transform_indices = @transform_27, window_bounds = array<i64: 1, 128>}, {transform_indices = @transform_28, window_bounds = array<i64: 16, 128>}]} {
    %c0 = arith.constant 0 : index
    %c0_0 = arith.constant 0 : index
    %0 = vector.load %arg1[%c0, %c0_0] : memref<16x128xbf16, #tpu.memory_space<vmem>>, vector<16x128xbf16>
    %c0_1 = arith.constant 0 : index
    %c0_2 = arith.constant 0 : index
    %1 = vector.load %arg2[%c0_1, %c0_2] : memref<16x32xbf16, #tpu.memory_space<vmem>>, vector<16x32xbf16>
    %c0_3 = arith.constant 0 : index
    %c0_4 = arith.constant 0 : index
    %2 = vector.load %arg4[%c0_3, %c0_4] : memref<32x128xbf16, #tpu.memory_space<vmem>>, vector<32x128xbf16>
    %cst = arith.constant dense<0.000000e+00> : vector<16x128xf32>
    %3 = tpu.matmul %1, %2, %cst {dimension_numbers = #tpu.dot_dimension_numbers<[1], [0], [0], [1], [0, 0, 1, 1], [], []>} : vector<16x32xbf16>, vector<32x128xbf16>, vector<16x128xf32> -> vector<16x128xf32>
    %c0_5 = arith.constant 0 : index
    %c0_6 = arith.constant 0 : index
    %4 = vector.load %arg5[%c0_5, %c0_6] : memref<1x128xf32, #tpu.memory_space<vmem>>, vector<1x128xf32>
    %5 = vector.broadcast %4 : vector<1x128xf32> to vector<16x128xf32>
    %6 = arith.addf %3, %5 : vector<16x128xf32>
    %cst_7 = arith.constant 0.000000e+00 : f32
    %7 = vector.broadcast %cst_7 : f32 to vector<16x128xf32>
    %8 = arith.maximumf %6, %7 : vector<16x128xf32>
    %9 = arith.truncf %8 : vector<16x128xf32> to vector<16x128xbf16>
    %c0_8 = arith.constant 0 : index
    %c0_9 = arith.constant 0 : index
    %10 = vector.load %arg3[%c0_8, %c0_9] : memref<16x128xbf16, #tpu.memory_space<vmem>>, vector<16x128xbf16>
    %c0_10 = arith.constant 0 : index
    %c0_11 = arith.constant 0 : index
    %11 = vector.load %arg6[%c0_10, %c0_11] : memref<128x128xbf16, #tpu.memory_space<vmem>>, vector<128x128xbf16>
    %cst_12 = arith.constant dense<0.000000e+00> : vector<16x128xf32>
    %12 = tpu.matmul %10, %11, %cst_12 {dimension_numbers = #tpu.dot_dimension_numbers<[1], [0], [0], [1], [0, 0, 1, 1], [], []>} : vector<16x128xbf16>, vector<128x128xbf16>, vector<16x128xf32> -> vector<16x128xf32>
    %c0_13 = arith.constant 0 : index
    %c0_14 = arith.constant 0 : index
    %13 = vector.load %arg7[%c0_13, %c0_14] : memref<1x128xf32, #tpu.memory_space<vmem>>, vector<1x128xf32>
    %14 = vector.broadcast %13 : vector<1x128xf32> to vector<16x128xf32>
    %15 = arith.addf %12, %14 : vector<16x128xf32>
    %cst_15 = arith.constant 0.000000e+00 : f32
    %16 = vector.broadcast %cst_15 : f32 to vector<16x128xf32>
    %17 = arith.maximumf %15, %16 : vector<16x128xf32>
    %18 = arith.truncf %17 : vector<16x128xf32> to vector<16x128xbf16>
    %c0_16 = arith.constant 0 : index
    %c0_17 = arith.constant 0 : index
    %19 = vector.load %arg8[%c0_16, %c0_17] : memref<128x512xbf16, #tpu.memory_space<vmem>>, vector<128x512xbf16>
    %cst_18 = arith.constant dense<0.000000e+00> : vector<16x512xf32>
    %20 = tpu.matmul %18, %19, %cst_18 {dimension_numbers = #tpu.dot_dimension_numbers<[1], [0], [0], [1], [0, 0, 1, 1], [], []>} : vector<16x128xbf16>, vector<128x512xbf16>, vector<16x512xf32> -> vector<16x512xf32>
    %c0_19 = arith.constant 0 : index
    %c0_20 = arith.constant 0 : index
    %21 = vector.load %arg9[%c0_19, %c0_20] : memref<128x512xbf16, #tpu.memory_space<vmem>>, vector<128x512xbf16>
    %cst_21 = arith.constant dense<0.000000e+00> : vector<16x512xf32>
    %22 = tpu.matmul %0, %21, %cst_21 {dimension_numbers = #tpu.dot_dimension_numbers<[1], [0], [0], [1], [0, 0, 1, 1], [], []>} : vector<16x128xbf16>, vector<128x512xbf16>, vector<16x512xf32> -> vector<16x512xf32>
    %23 = arith.addf %20, %22 : vector<16x512xf32>
    %c0_22 = arith.constant 0 : index
    %c0_23 = arith.constant 0 : index
    %24 = vector.load %arg10[%c0_22, %c0_23] : memref<128x512xbf16, #tpu.memory_space<vmem>>, vector<128x512xbf16>
    %cst_24 = arith.constant dense<0.000000e+00> : vector<16x512xf32>
    %25 = tpu.matmul %9, %24, %cst_24 {dimension_numbers = #tpu.dot_dimension_numbers<[1], [0], [0], [1], [0, 0, 1, 1], [], []>} : vector<16x128xbf16>, vector<128x512xbf16>, vector<16x512xf32> -> vector<16x512xf32>
    %26 = arith.addf %23, %25 : vector<16x512xf32>
    %c0_25 = arith.constant 0 : index
    %c0_26 = arith.constant 0 : index
    %27 = vector.load %arg11[%c0_25, %c0_26] : memref<1x512xf32, #tpu.memory_space<vmem>>, vector<1x512xf32>
    %28 = vector.broadcast %27 : vector<1x512xf32> to vector<16x512xf32>
    %29 = arith.addf %26, %28 : vector<16x512xf32>
    %cst_27 = arith.constant 0.000000e+00 : f32
    %30 = vector.broadcast %cst_27 : f32 to vector<16x512xf32>
    %31 = arith.maximumf %29, %30 : vector<16x512xf32>
    %32 = arith.truncf %31 : vector<16x512xf32> to vector<16x512xbf16>
    %c0_28 = arith.constant 0 : index
    %c0_29 = arith.constant 0 : index
    %33 = vector.load %arg12[%c0_28, %c0_29] : memref<512x512xbf16, #tpu.memory_space<vmem>>, vector<512x512xbf16>
    %cst_30 = arith.constant dense<0.000000e+00> : vector<16x512xf32>
    %34 = tpu.matmul %32, %33, %cst_30 {dimension_numbers = #tpu.dot_dimension_numbers<[1], [0], [0], [1], [0, 0, 1, 1], [], []>} : vector<16x512xbf16>, vector<512x512xbf16>, vector<16x512xf32> -> vector<16x512xf32>
    %c0_31 = arith.constant 0 : index
    %c0_32 = arith.constant 0 : index
    %35 = vector.load %arg13[%c0_31, %c0_32] : memref<1x512xf32, #tpu.memory_space<vmem>>, vector<1x512xf32>
    %36 = vector.broadcast %35 : vector<1x512xf32> to vector<16x512xf32>
    %37 = arith.addf %34, %36 : vector<16x512xf32>
    %cst_33 = arith.constant 0.000000e+00 : f32
    %38 = vector.broadcast %cst_33 : f32 to vector<16x512xf32>
    %39 = arith.maximumf %37, %38 : vector<16x512xf32>
    %40 = arith.truncf %39 : vector<16x512xf32> to vector<16x512xbf16>
    %c0_34 = arith.constant 0 : index
    %c0_35 = arith.constant 0 : index
    %41 = vector.load %arg14[%c0_34, %c0_35] : memref<512x512xbf16, #tpu.memory_space<vmem>>, vector<512x512xbf16>
    %cst_36 = arith.constant dense<0.000000e+00> : vector<16x512xf32>
    %42 = tpu.matmul %40, %41, %cst_36 {dimension_numbers = #tpu.dot_dimension_numbers<[1], [0], [0], [1], [0, 0, 1, 1], [], []>} : vector<16x512xbf16>, vector<512x512xbf16>, vector<16x512xf32> -> vector<16x512xf32>
    %c0_37 = arith.constant 0 : index
    %c0_38 = arith.constant 0 : index
    %43 = vector.load %arg15[%c0_37, %c0_38] : memref<1x512xf32, #tpu.memory_space<vmem>>, vector<1x512xf32>
    %44 = vector.broadcast %43 : vector<1x512xf32> to vector<16x512xf32>
    %45 = arith.addf %42, %44 : vector<16x512xf32>
    %cst_39 = arith.constant 0.000000e+00 : f32
    %46 = vector.broadcast %cst_39 : f32 to vector<16x512xf32>
    %47 = arith.maximumf %45, %46 : vector<16x512xf32>
    %48 = arith.truncf %47 : vector<16x512xf32> to vector<16x512xbf16>
    %c0_40 = arith.constant 0 : index
    %c0_41 = arith.constant 0 : index
    %49 = vector.load %arg16[%c0_40, %c0_41] : memref<512x512xbf16, #tpu.memory_space<vmem>>, vector<512x512xbf16>
    %cst_42 = arith.constant dense<0.000000e+00> : vector<16x512xf32>
    %50 = tpu.matmul %48, %49, %cst_42 {dimension_numbers = #tpu.dot_dimension_numbers<[1], [0], [0], [1], [0, 0, 1, 1], [], []>} : vector<16x512xbf16>, vector<512x512xbf16>, vector<16x512xf32> -> vector<16x512xf32>
    %c0_43 = arith.constant 0 : index
    %c0_44 = arith.constant 0 : index
    %51 = vector.load %arg17[%c0_43, %c0_44] : memref<1x512xf32, #tpu.memory_space<vmem>>, vector<1x512xf32>
    %52 = vector.broadcast %51 : vector<1x512xf32> to vector<16x512xf32>
    %53 = arith.addf %50, %52 : vector<16x512xf32>
    %cst_45 = arith.constant 0.000000e+00 : f32
    %54 = vector.broadcast %cst_45 : f32 to vector<16x512xf32>
    %55 = arith.maximumf %53, %54 : vector<16x512xf32>
    %56 = arith.truncf %55 : vector<16x512xf32> to vector<16x512xbf16>
    %c0_46 = arith.constant 0 : index
    %c0_47 = arith.constant 0 : index
    %57 = vector.load %arg18[%c0_46, %c0_47] : memref<512x512xbf16, #tpu.memory_space<vmem>>, vector<512x512xbf16>
    %cst_48 = arith.constant dense<0.000000e+00> : vector<16x512xf32>
    %58 = tpu.matmul %56, %57, %cst_48 {dimension_numbers = #tpu.dot_dimension_numbers<[1], [0], [0], [1], [0, 0, 1, 1], [], []>} : vector<16x512xbf16>, vector<512x512xbf16>, vector<16x512xf32> -> vector<16x512xf32>
    %c0_49 = arith.constant 0 : index
    %c0_50 = arith.constant 0 : index
    %59 = vector.load %arg19[%c0_49, %c0_50] : memref<128x512xbf16, #tpu.memory_space<vmem>>, vector<128x512xbf16>
    %cst_51 = arith.constant dense<0.000000e+00> : vector<16x512xf32>
    %60 = tpu.matmul %18, %59, %cst_51 {dimension_numbers = #tpu.dot_dimension_numbers<[1], [0], [0], [1], [0, 0, 1, 1], [], []>} : vector<16x128xbf16>, vector<128x512xbf16>, vector<16x512xf32> -> vector<16x512xf32>
    %61 = arith.addf %58, %60 : vector<16x512xf32>
    %c0_52 = arith.constant 0 : index
    %c0_53 = arith.constant 0 : index
    %62 = vector.load %arg20[%c0_52, %c0_53] : memref<128x512xbf16, #tpu.memory_space<vmem>>, vector<128x512xbf16>
    %cst_54 = arith.constant dense<0.000000e+00> : vector<16x512xf32>
    %63 = tpu.matmul %0, %62, %cst_54 {dimension_numbers = #tpu.dot_dimension_numbers<[1], [0], [0], [1], [0, 0, 1, 1], [], []>} : vector<16x128xbf16>, vector<128x512xbf16>, vector<16x512xf32> -> vector<16x512xf32>
    %64 = arith.addf %61, %63 : vector<16x512xf32>
    %c0_55 = arith.constant 0 : index
    %c0_56 = arith.constant 0 : index
    %65 = vector.load %arg21[%c0_55, %c0_56] : memref<128x512xbf16, #tpu.memory_space<vmem>>, vector<128x512xbf16>
    %cst_57 = arith.constant dense<0.000000e+00> : vector<16x512xf32>
    %66 = tpu.matmul %9, %65, %cst_57 {dimension_numbers = #tpu.dot_dimension_numbers<[1], [0], [0], [1], [0, 0, 1, 1], [], []>} : vector<16x128xbf16>, vector<128x512xbf16>, vector<16x512xf32> -> vector<16x512xf32>
    %67 = arith.addf %64, %66 : vector<16x512xf32>
    %c0_58 = arith.constant 0 : index
    %c0_59 = arith.constant 0 : index
    %68 = vector.load %arg22[%c0_58, %c0_59] : memref<1x512xf32, #tpu.memory_space<vmem>>, vector<1x512xf32>
    %69 = vector.broadcast %68 : vector<1x512xf32> to vector<16x512xf32>
    %70 = arith.addf %67, %69 : vector<16x512xf32>
    %cst_60 = arith.constant 0.000000e+00 : f32
    %71 = vector.broadcast %cst_60 : f32 to vector<16x512xf32>
    %72 = arith.maximumf %70, %71 : vector<16x512xf32>
    %73 = arith.truncf %72 : vector<16x512xf32> to vector<16x512xbf16>
    %c0_61 = arith.constant 0 : index
    %c0_62 = arith.constant 0 : index
    %74 = vector.load %arg23[%c0_61, %c0_62] : memref<512x512xbf16, #tpu.memory_space<vmem>>, vector<512x512xbf16>
    %cst_63 = arith.constant dense<0.000000e+00> : vector<16x512xf32>
    %75 = tpu.matmul %73, %74, %cst_63 {dimension_numbers = #tpu.dot_dimension_numbers<[1], [0], [0], [1], [0, 0, 1, 1], [], []>} : vector<16x512xbf16>, vector<512x512xbf16>, vector<16x512xf32> -> vector<16x512xf32>
    %c0_64 = arith.constant 0 : index
    %c0_65 = arith.constant 0 : index
    %76 = vector.load %arg24[%c0_64, %c0_65] : memref<1x512xf32, #tpu.memory_space<vmem>>, vector<1x512xf32>
    %77 = vector.broadcast %76 : vector<1x512xf32> to vector<16x512xf32>
    %78 = arith.addf %75, %77 : vector<16x512xf32>
    %cst_66 = arith.constant 0.000000e+00 : f32
    %79 = vector.broadcast %cst_66 : f32 to vector<16x512xf32>
    %80 = arith.maximumf %78, %79 : vector<16x512xf32>
    %81 = arith.truncf %80 : vector<16x512xf32> to vector<16x512xbf16>
    %c0_67 = arith.constant 0 : index
    %c0_68 = arith.constant 0 : index
    %82 = vector.load %arg25[%c0_67, %c0_68] : memref<512x512xbf16, #tpu.memory_space<vmem>>, vector<512x512xbf16>
    %cst_69 = arith.constant dense<0.000000e+00> : vector<16x512xf32>
    %83 = tpu.matmul %81, %82, %cst_69 {dimension_numbers = #tpu.dot_dimension_numbers<[1], [0], [0], [1], [0, 0, 1, 1], [], []>} : vector<16x512xbf16>, vector<512x512xbf16>, vector<16x512xf32> -> vector<16x512xf32>
    %c0_70 = arith.constant 0 : index
    %c0_71 = arith.constant 0 : index
    %84 = vector.load %arg26[%c0_70, %c0_71] : memref<1x512xf32, #tpu.memory_space<vmem>>, vector<1x512xf32>
    %85 = vector.broadcast %84 : vector<1x512xf32> to vector<16x512xf32>
    %86 = arith.addf %83, %85 : vector<16x512xf32>
    %cst_72 = arith.constant 0.000000e+00 : f32
    %87 = vector.broadcast %cst_72 : f32 to vector<16x512xf32>
    %88 = arith.maximumf %86, %87 : vector<16x512xf32>
    %89 = arith.truncf %88 : vector<16x512xf32> to vector<16x512xbf16>
    %c0_73 = arith.constant 0 : index
    %c0_74 = arith.constant 0 : index
    %90 = vector.load %arg27[%c0_73, %c0_74] : memref<512x128xbf16, #tpu.memory_space<vmem>>, vector<512x128xbf16>
    %cst_75 = arith.constant dense<0.000000e+00> : vector<16x128xf32>
    %91 = tpu.matmul %89, %90, %cst_75 {dimension_numbers = #tpu.dot_dimension_numbers<[1], [0], [0], [1], [0, 0, 1, 1], [], []>} : vector<16x512xbf16>, vector<512x128xbf16>, vector<16x128xf32> -> vector<16x128xf32>
    %c0_76 = arith.constant 0 : index
    %c0_77 = arith.constant 0 : index
    %92 = vector.load %arg28[%c0_76, %c0_77] : memref<1x128xf32, #tpu.memory_space<vmem>>, vector<1x128xf32>
    %93 = vector.broadcast %92 : vector<1x128xf32> to vector<16x128xf32>
    %94 = arith.addf %91, %93 : vector<16x128xf32>
    %95 = arith.negf %94 : vector<16x128xf32>
    %96 = math.exp %95 : vector<16x128xf32>
    %cst_78 = arith.constant 1.000000e+00 : f32
    %97 = vector.broadcast %cst_78 : f32 to vector<16x128xf32>
    %98 = arith.addf %97, %96 : vector<16x128xf32>
    %99 = arith.divf %97, %98 : vector<16x128xf32>
    %c0_79 = arith.constant 0 : index
    %c0_80 = arith.constant 0 : index
    %100 = vector.load %arg29[%c0_79, %c0_80] : memref<16x128xf32, #tpu.memory_space<vmem>>, vector<16x128xf32>
    tpu.vector_store %arg29[%c0_79, %c0_80], %99 {strides = array<i32>} : memref<16x128xf32, #tpu.memory_space<vmem>>, vector<16x128xf32>,
    return
  }
  func.func @transform_0(%arg0: i32) -> (i32, i32) {
    %c0_i32 = arith.constant 0 : i32
    %c0_i32_0 = arith.constant 0 : i32
    return %arg0, %c0_i32 : i32, i32
  }
  func.func @transform_1(%arg0: i32) -> (i32, i32) {
    %c0_i32 = arith.constant 0 : i32
    %c0_i32_0 = arith.constant 0 : i32
    return %arg0, %c0_i32 : i32, i32
  }
  func.func @transform_2(%arg0: i32) -> (i32, i32) {
    %c0_i32 = arith.constant 0 : i32
    %c0_i32_0 = arith.constant 0 : i32
    return %arg0, %c0_i32 : i32, i32
  }
  func.func @transform_3(%arg0: i32) -> (i32, i32) {
    %c0_i32 = arith.constant 0 : i32
    %c0_i32_0 = arith.constant 0 : i32
    %c0_i32_1 = arith.constant 0 : i32
    return %c0_i32, %c0_i32_0 : i32, i32
  }
  func.func @transform_4(%arg0: i32) -> (i32, i32) {
    %c0_i32 = arith.constant 0 : i32
    %c0_i32_0 = arith.constant 0 : i32
    %c0_i32_1 = arith.constant 0 : i32
    return %c0_i32, %c0_i32_0 : i32, i32
  }
  func.func @transform_5(%arg0: i32) -> (i32, i32) {
    %c0_i32 = arith.constant 0 : i32
    %c0_i32_0 = arith.constant 0 : i32
    %c0_i32_1 = arith.constant 0 : i32
    return %c0_i32, %c0_i32_0 : i32, i32
  }
  func.func @transform_6(%arg0: i32) -> (i32, i32) {
    %c0_i32 = arith.constant 0 : i32
    %c0_i32_0 = arith.constant 0 : i32
    %c0_i32_1 = arith.constant 0 : i32
    return %c0_i32, %c0_i32_0 : i32, i32
  }
  func.func @transform_7(%arg0: i32) -> (i32, i32) {
    %c0_i32 = arith.constant 0 : i32
    %c0_i32_0 = arith.constant 0 : i32
    %c0_i32_1 = arith.constant 0 : i32
    return %c0_i32, %c0_i32_0 : i32, i32
  }
  func.func @transform_8(%arg0: i32) -> (i32, i32) {
    %c0_i32 = arith.constant 0 : i32
    %c0_i32_0 = arith.constant 0 : i32
    %c0_i32_1 = arith.constant 0 : i32
    return %c0_i32, %c0_i32_0 : i32, i32
  }
  func.func @transform_9(%arg0: i32) -> (i32, i32) {
    %c0_i32 = arith.constant 0 : i32
    %c0_i32_0 = arith.constant 0 : i32
    %c0_i32_1 = arith.constant 0 : i32
    return %c0_i32, %c0_i32_0 : i32, i32
  }
  func.func @transform_10(%arg0: i32) -> (i32, i32) {
    %c0_i32 = arith.constant 0 : i32
    %c0_i32_0 = arith.constant 0 : i32
    %c0_i32_1 = arith.constant 0 : i32
    return %c0_i32, %c0_i32_0 : i32, i32
  }
  func.func @transform_11(%arg0: i32) -> (i32, i32) {
    %c0_i32 = arith.constant 0 : i32
    %c0_i32_0 = arith.constant 0 : i32
    %c0_i32_1 = arith.constant 0 : i32
    return %c0_i32, %c0_i32_0 : i32, i32
  }
  func.func @transform_12(%arg0: i32) -> (i32, i32) {
    %c0_i32 = arith.constant 0 : i32
    %c0_i32_0 = arith.constant 0 : i32
    %c0_i32_1 = arith.constant 0 : i32
    return %c0_i32, %c0_i32_0 : i32, i32
  }
  func.func @transform_13(%arg0: i32) -> (i32, i32) {
    %c0_i32 = arith.constant 0 : i32
    %c0_i32_0 = arith.constant 0 : i32
    %c0_i32_1 = arith.constant 0 : i32
    return %c0_i32, %c0_i32_0 : i32, i32
  }
  func.func @transform_14(%arg0: i32) -> (i32, i32) {
    %c0_i32 = arith.constant 0 : i32
    %c0_i32_0 = arith.constant 0 : i32
    %c0_i32_1 = arith.constant 0 : i32
    return %c0_i32, %c0_i32_0 : i32, i32
  }
  func.func @transform_15(%arg0: i32) -> (i32, i32) {
    %c0_i32 = arith.constant 0 : i32
    %c0_i32_0 = arith.constant 0 : i32
    %c0_i32_1 = arith.constant 0 : i32
    return %c0_i32, %c0_i32_0 : i32, i32
  }
  func.func @transform_16(%arg0: i32) -> (i32, i32) {
    %c0_i32 = arith.constant 0 : i32
    %c0_i32_0 = arith.constant 0 : i32
    %c0_i32_1 = arith.constant 0 : i32
    return %c0_i32, %c0_i32_0 : i32, i32
  }
  func.func @transform_17(%arg0: i32) -> (i32, i32) {
    %c0_i32 = arith.constant 0 : i32
    %c0_i32_0 = arith.constant 0 : i32
    %c0_i32_1 = arith.constant 0 : i32
    return %c0_i32, %c0_i32_0 : i32, i32
  }
  func.func @transform_18(%arg0: i32) -> (i32, i32) {
    %c0_i32 = arith.constant 0 : i32
    %c0_i32_0 = arith.constant 0 : i32
    %c0_i32_1 = arith.constant 0 : i32
    return %c0_i32, %c0_i32_0 : i32, i32
  }
  func.func @transform_19(%arg0: i32) -> (i32, i32) {
    %c0_i32 = arith.constant 0 : i32
    %c0_i32_0 = arith.constant 0 : i32
    %c0_i32_1 = arith.constant 0 : i32
    return %c0_i32, %c0_i32_0 : i32, i32
  }
  func.func @transform_20(%arg0: i32) -> (i32, i32) {
    %c0_i32 = arith.constant 0 : i32
    %c0_i32_0 = arith.constant 0 : i32
    %c0_i32_1 = arith.constant 0 : i32
    return %c0_i32, %c0_i32_0 : i32, i32
  }
  func.func @transform_21(%arg0: i32) -> (i32, i32) {
    %c0_i32 = arith.constant 0 : i32
    %c0_i32_0 = arith.constant 0 : i32
    %c0_i32_1 = arith.constant 0 : i32
    return %c0_i32, %c0_i32_0 : i32, i32
  }
  func.func @transform_22(%arg0: i32) -> (i32, i32) {
    %c0_i32 = arith.constant 0 : i32
    %c0_i32_0 = arith.constant 0 : i32
    %c0_i32_1 = arith.constant 0 : i32
    return %c0_i32, %c0_i32_0 : i32, i32
  }
  func.func @transform_23(%arg0: i32) -> (i32, i32) {
    %c0_i32 = arith.constant 0 : i32
    %c0_i32_0 = arith.constant 0 : i32
    %c0_i32_1 = arith.constant 0 : i32
    return %c0_i32, %c0_i32_0 : i32, i32
  }
  func.func @transform_24(%arg0: i32) -> (i32, i32) {
    %c0_i32 = arith.constant 0 : i32
    %c0_i32_0 = arith.constant 0 : i32
    %c0_i32_1 = arith.constant 0 : i32
    return %c0_i32, %c0_i32_0 : i32, i32
  }
  func.func @transform_25(%arg0: i32) -> (i32, i32) {
    %c0_i32 = arith.constant 0 : i32
    %c0_i32_0 = arith.constant 0 : i32
    %c0_i32_1 = arith.constant 0 : i32
    return %c0_i32, %c0_i32_0 : i32, i32
  }
  func.func @transform_26(%arg0: i32) -> (i32, i32) {
    %c0_i32 = arith.constant 0 : i32
    %c0_i32_0 = arith.constant 0 : i32
    %c0_i32_1 = arith.constant 0 : i32
    return %c0_i32, %c0_i32_0 : i32, i32
  }
  func.func @transform_27(%arg0: i32) -> (i32, i32) {
    %c0_i32 = arith.constant 0 : i32
    %c0_i32_0 = arith.constant 0 : i32
    %c0_i32_1 = arith.constant 0 : i32
    return %c0_i32, %c0_i32_0 : i32, i32
  }
  func.func @transform_28(%arg0: i32) -> (i32, i32) {
    %c0_i32 = arith.constant 0 : i32
    %c0_i32_0 = arith.constant 0 : i32
    return %arg0, %c0_i32 : i32, i32
  }
}

</mosaic_0001>

<bundles_post_ra>
// kernel: tpu_custom_call.1
= control target key start
LH: loop header
LB: loop body
LE: loop exit
PB: predicated region body
PF: predicated region fallthrough
CT: control target
= control target key end

     0   :  { %s14896_s0 = inlined_call_operand.hbm [shape: bf16[16,128], index: 0, kind: input, shape index: {}]   ;;  %s14897_s1 = inlined_call_operand.hbm [shape: bf16[16,32], index: 1, kind: input, shape index: {}]   ;;  %s14898_s2 = inlined_call_operand.hbm [shape: bf16[16,128], index: 2, kind: input, shape index: {}]   ;;  %s14899_s3 = inlined_call_operand.hbm [shape: bf16[32,128], index: 3, kind: input, shape index: {}]   ;;  %s14900_s4 = inlined_call_operand.hbm [shape: f32[1,128], index: 4, kind: input, shape index: {}]   ;;  %s14901_s5 = inlined_call_operand.hbm [shape: bf16[128,128], index: 5, kind: input, shape index: {}]   ;;  %s14902_s6 = inlined_call_operand.hbm [shape: f32[1,128], index: 6, kind: input, shape index: {}]   ;;  %s14903_s7 = inlined_call_operand.hbm [shape: bf16[128,512], index: 7, kind: input, shape index: {}]   ;;  %s14904_s8 = inlined_call_operand.hbm [shape: bf16[128,512], index: 8, kind: input, shape index: {}]   ;;  %s14905_s9 = inlined_call_operand.hbm [shape: bf16[128,512], index: 9, kind: input, shape index: {}]   ;;  %s14906_s10 = inlined_call_operand.vmem [shape: f32[1,512], index: 10, kind: input, shape index: {}]   ;;  %s14907_s11 = inlined_call_operand.hbm [shape: bf16[512,512], index: 11, kind: input, shape index: {}]   ;;  %s14908_s12 = inlined_call_operand.vmem [shape: f32[1,512], index: 12, kind: input, shape index: {}]   ;;  %s14909_s13 = inlined_call_operand.hbm [shape: bf16[512,512], index: 13, kind: input, shape index: {}]   ;;  %s14910_s14 = inlined_call_operand.vmem [shape: f32[1,512], index: 14, kind: input, shape index: {}]   ;;  %s14911_s15 = inlined_call_operand.hbm [shape: bf16[512,512], index: 15, kind: input, shape index: {}]   ;;  %s14912_s16 = inlined_call_operand.hbm [shape: f32[1,512], index: 16, kind: input, shape index: {}]   ;;  %s14913_s17 = inlined_call_operand.hbm [shape: bf16[512,512], index: 17, kind: input, shape index: {}]   ;;  %s14914_s18 = inlined_call_operand.hbm [shape: bf16[128,512], index: 18, kind: input, shape index: {}]   ;;  %s14915_s19 = inlined_call_operand.hbm [shape: bf16[128,512], index: 19, kind: input, shape index: {}]   ;;  %s14916_s20 = inlined_call_operand.hbm [shape: bf16[128,512], index: 20, kind: input, shape index: {}]   ;;  %s14917_s21 = inlined_call_operand.vmem [shape: f32[1,512], index: 21, kind: input, shape index: {}]   ;;  %s14918_s22 = inlined_call_operand.hbm [shape: bf16[512,512], index: 22, kind: input, shape index: {}]   ;;  %s14919_s23 = inlined_call_operand.vmem [shape: f32[1,512], index: 23, kind: input, shape index: {}]   ;;  %s14920_s24 = inlined_call_operand.hbm [shape: bf16[512,512], index: 24, kind: input, shape index: {}]   ;;  %s14921_s25 = inlined_call_operand.vmem [shape: f32[1,512], index: 25, kind: input, shape index: {}]   ;;  %s14922_s26 = inlined_call_operand.hbm [shape: bf16[512,128], index: 26, kind: input, shape index: {}]   ;;  %s14923_s27 = inlined_call_operand.vmem [shape: f32[1,128], index: 27, kind: input, shape index: {}]   ;;  %s14924_s28 = inlined_call_operand.hbm [shape: f32[16,128], index: 28, kind: output, shape index: {}]  }
   0x1   :  { %14925 = sst [smem:[#allocation48_spill]] %s14896_s0 }
   0x2   :  { %14926 = sst [smem:[#allocation49_spill]] %s14897_s1 }
   0x3   :  { %14927 = sst [smem:[#allocation50_spill]] %s14898_s2 }
   0x4   :  { %14928 = sst [smem:[#allocation51_spill]] %s14899_s3 }
   0x5   :  { %14929 = sst [smem:[#allocation52_spill]] %s14900_s4 }
   0x6   :  { %14930 = sst [smem:[#allocation53_spill]] %s14901_s5 }
   0x7   :  { %14931 = sst [smem:[#allocation54_spill]] %s14902_s6 }
   0x8   :  { %14932 = sst [smem:[#allocation55_spill]] %s14903_s7 }
   0x9   :  { %14933 = sst [smem:[#allocation56_spill]] %s14904_s8 }
   0xa   :  { %14934 = sst [smem:[#allocation57_spill]] %s14905_s9 }
   0xb   :  { %14935 = sst [smem:[#allocation58_spill]] %s14906_s10 }
   0xc   :  { %14936 = sst [smem:[#allocation59_spill]] %s14907_s11 }
   0xd   :  { %14937 = sst [smem:[#allocation60_spill]] %s14908_s12 }
   0xe   :  { %14938 = sst [smem:[#allocation61_spill]] %s14923_s27 }
   0xf   :  { %14939 = sst [smem:[#allocation62_spill]] %s14924_s28 }
  0x10   :  { %33 = vsyncpa [#allocation3], 0 }
  0x11   :  { %34 = vsyncpa [#allocation6], 0 }
  0x12   :  { %35 = vsyncpa [#allocation9], 0 }
  0x13   :  { %36 = vsyncpa [#allocation12], 0 }
  0x14   :  { %37 = vsyncpa [#allocation15], 0 }
  0x15   :  { %38 = vsyncpa [#allocation18], 0 }
  0x16   :  { %39 = vsyncpa [#allocation21], 0 }
  0x17   :  { %40 = vsyncpa [#allocation24], 0 }
  0x18   :  { %41 = vsyncpa [#allocation27], 0 }
  0x19   :  { %42 = vsyncpa [#allocation30], 0 }
  0x1a   :  { %43 = vsyncpa [#allocation33], 0 }
  0x1b   :  { %44 = vsyncpa [#allocation4], 0  ;;  %s14940_s9 = sld [smem:[#allocation49_spill]]  ;;  %s14199_s3 = smov [#allocation5]  }
  0x1c   :  { %s64_s6 = sshll.u32 %s14199_s3, 4  ;;  %s14941_s11 = sld [smem:[#allocation51_spill]]  ;;  %s65_s6 = int_to_ptr.vmem [resolvable:$true] %s64_s6 }
  0x1d   :  { %s14200_s2 = smov 64   ;;  %s14201_s7 = smov 4  }
  0x1e   :  { %s14202_s12 = smov [#allocation8]   ;;  %s14942_s5 = sld [smem:[#allocation53_spill]] }
  0x1f   :  { %s90_s1 = sshll.u32 %s14202_s12, 4  ;;  %s14943_s0 = sld [smem:[#allocation55_spill]]  ;;  %s91_s1 = int_to_ptr.vmem [resolvable:$true] %s90_s1 }
  0x20   :  { %s14203_s28 = smov [#allocation11]   ;;  %s14205_s12 = smov 256  }
  0x21   :  { %s62_s30 = sshll.u32 %s14940_s9, 4  ;;  %s114_s27 = sshll.u32 %s14203_s28, 4  ;;  %s63_s30 = int_to_ptr.hbm [resolvable:$true] %s62_s30  ;;  %s115_s27 = int_to_ptr.vmem [resolvable:$true] %s114_s27 }
  0x22   :  { %s88_s29 = sshll.u32 %s14941_s11, 4  ;;  %s14206_s4 = smov 16   ;;  %s89_s29 = int_to_ptr.hbm [resolvable:$true] %s88_s29 }
  0x23   :  { %70 = dma.hbm_to_vmem [thread:$0]  %s63_s30, 128, %s65_s6, [#allocation6], %s14200_s2, %s14200_s2, %s14201_s7  }
  0x24   :  { %s112_s9 = sshll.u32 %s14942_s5, 4  ;;  %s14204_s30 = smov [#allocation14]   ;;  %s113_s9 = int_to_ptr.hbm [resolvable:$true] %s112_s9 }
  0x25   :  { %96 = dma.hbm_to_vmem [thread:$0]  %s89_s29, 256, %s91_s1, [#allocation9], %s14200_s2, %s14200_s2, %s14201_s7  }
  0x26   :  { %s136_s11 = sshll.u32 %s14943_s0, 4  ;;  %s138_s6 = sshll.u32 %s14204_s30, 4  ;;  %s137_s11 = int_to_ptr.hbm [resolvable:$true] %s136_s11  ;;  %s139_s6 = int_to_ptr.vmem [resolvable:$true] %s138_s6 }
  0x27   :  { %120 = dma.hbm_to_vmem [thread:$0]  %s113_s9, 1024, %s115_s27, [#allocation12], %s14200_s2, %s14200_s2, %s14201_s7  }
  0x28   :  { %144 = dma.hbm_to_vmem [thread:$0]  %s137_s11, 4096, %s139_s6, [#allocation15], %s14205_s12, %s14205_s12, %s14206_s4  }
  0x29   :  { %s14944_s8 = sld [smem:[#allocation57_spill]]  ;;  %s14207_s28 = smov [#allocation17]  }
  0x2a   :  { %s164_s3 = sshll.u32 %s14207_s28, 4  ;;  %s192_s27 = sshll.u32 %s14909_s13, 4  ;;  %s165_s3 = int_to_ptr.vmem [resolvable:$true] %s164_s3  ;;  %s193_s27 = int_to_ptr.hbm [resolvable:$true] %s192_s27 }
  0x2b   :  { %s14208_s9 = smov [#allocation20]   ;;  %s221_s29 = sshll.u32 %s14912_s16, 4  ;;  %s222_s29 = int_to_ptr.hbm [resolvable:$true] %s221_s29 }
  0x2c   :  { %s194_s30 = sshll.u32 %s14208_s9, 4  ;;  %s244_s13 = sshll.u32 %s14914_s18, 4  ;;  %s195_s30 = int_to_ptr.vmem [resolvable:$true] %s194_s30  ;;  %s245_s13 = int_to_ptr.hbm [resolvable:$true] %s244_s13 }
  0x2d   :  { %200 = dma.hbm_to_vmem [thread:$0]  %s193_s27, 16384, %s195_s30, [#allocation21], %s14205_s12, %s14205_s12, %s14206_s4  }
  0x2e   :  { %s14209_s28 = smov [#allocation23]   ;;  %s270_s16 = sshll.u32 %s14916_s20, 4  ;;  %s271_s16 = int_to_ptr.hbm [resolvable:$true] %s270_s16 }
  0x2f   :  { %s162_s5 = sshll.u32 %s14944_s8, 4  ;;  %s223_s10 = sshll.u32 %s14209_s28, 4  ;;  %s163_s5 = int_to_ptr.hbm [resolvable:$true] %s162_s5  ;;  %s224_s10 = int_to_ptr.vmem [resolvable:$true] %s223_s10 }
  0x30   :  { %170 = dma.hbm_to_vmem [thread:$0]  %s163_s5, 4096, %s165_s3, [#allocation18], %s14205_s12, %s14205_s12, %s14206_s4  }
  0x31   :  { %226 = dma.hbm_to_vmem [thread:$0]  %s222_s29, 64, %s224_s10, [#allocation24]  }
  0x32   :  { %s14210_s5 = smov [#allocation26]   ;;  %s300_s18 = sshll.u32 %s14920_s24, 4  ;;  %s301_s18 = int_to_ptr.hbm [resolvable:$true] %s300_s18 }
  0x33   :  { %s246_s3 = sshll.u32 %s14210_s5, 4  ;;  %s14211_s11 = smov [#allocation29]   ;;  %s247_s3 = int_to_ptr.vmem [resolvable:$true] %s246_s3 }
  0x34   :  { %252 = dma.hbm_to_vmem [thread:$0]  %s245_s13, 4096, %s247_s3, [#allocation27], %s14205_s12, %s14205_s12, %s14206_s4  }
  0x35   :  { %s272_s6 = sshll.u32 %s14211_s11, 4  ;;  %s14212_s29 = smov [#allocation32]   ;;  %s273_s6 = int_to_ptr.vmem [resolvable:$true] %s272_s6 }
  0x36   :  { %278 = dma.hbm_to_vmem [thread:$0]  %s271_s16, 4096, %s273_s6, [#allocation30], %s14205_s12, %s14205_s12, %s14206_s4  }
  0x37   :  { %s302_s20 = sshll.u32 %s14212_s29, 4  ;;  %s14945_s28 = sld [smem:[#allocation48_spill]]  ;;  %s303_s20 = int_to_ptr.vmem [resolvable:$true] %s302_s20 }
  0x38   :  { %308 = dma.hbm_to_vmem [thread:$0]  %s301_s18, 16384, %s303_s20, [#allocation33], %s14205_s12, %s14205_s12, %s14206_s4  }
  0x39   :  { %s14946_s5 = sld [smem:[#allocation50_spill]]  ;;  %s14213_s0 = smov [#allocation2]  }
  0x3a   :  { %s51_s9 = sshll.u32 %s14213_s0, 4  ;;  %s14214_s16 = smov [#allocation7]   ;;  %s52_s9 = int_to_ptr.vmem [resolvable:$true] %s51_s9 }
  0x3b   :  { %s77_s27 = sshll.u32 %s14214_s16, 4  ;;  %s14947_s6 = sld [smem:[#allocation52_spill]]  ;;  %s78_s27 = int_to_ptr.vmem [resolvable:$true] %s77_s27 }
  0x3c   :  { %s14948_s1 = sld [smem:[#allocation54_spill]] }
  0x3d   :  { %s49_s10 = sshll.u32 %s14945_s28, 4  ;;  %s14215_s28 = smov [#allocation10]   ;;  %s50_s10 = int_to_ptr.hbm [resolvable:$true] %s49_s10 }
  0x3e   :  { %57 = dma.hbm_to_vmem [thread:$0]  %s50_s10, 128, %s52_s9, [#allocation3], %s14200_s2, %s14200_s2, %s14201_s7  }
  0x3f   :  { %s75_s3 = sshll.u32 %s14946_s5, 4  ;;  %s104_s24 = sshll.u32 %s14215_s28, 4  ;;  %s76_s3 = int_to_ptr.hbm [resolvable:$true] %s75_s3  ;;  %s105_s24 = int_to_ptr.vmem [resolvable:$true] %s104_s24 }
  0x40   :  { %83 = dma.hbm_to_vmem [thread:$0]  %s76_s3, 128, %s78_s27, [#allocation6], %s14200_s2, %s14200_s2, %s14201_s7  }
  0x41   :  { %s102_s29 = sshll.u32 %s14947_s6, 4  ;;  %s14216_s10 = smov [#allocation13]   ;;  %s103_s29 = int_to_ptr.hbm [resolvable:$true] %s102_s29 }
  0x42   :  { %s126_s8 = sshll.u32 %s14948_s1, 4  ;;  %s128_s13 = sshll.u32 %s14216_s10, 4  ;;  %s127_s8 = int_to_ptr.hbm [resolvable:$true] %s126_s8  ;;  %s129_s13 = int_to_ptr.vmem [resolvable:$true] %s128_s13 }
  0x43   :  { %107 = dma.hbm_to_vmem [thread:$0]  %s103_s29, 16, %s105_s24, [#allocation9]  }
  0x44   :  { %s14949_s9 = sld [smem:[#allocation56_spill]]  ;;  %s14217_s6 = smov [#allocation16]  }
  0x45   :  { %131 = dma.hbm_to_vmem [thread:$0]  %s127_s8, 16, %s129_s13, [#allocation12]  }
  0x46   :  { %s14950_s27 = sld [smem:[#allocation59_spill]]  ;;  %s151_s18 = sshll.u32 %s14217_s6, 4  ;;  %s152_s18 = int_to_ptr.vmem [resolvable:$true] %s151_s18 }
  0x47   :  { %s14218_s29 = smov [#allocation19]   ;;  %s207_s24 = sshll.u32 %s14911_s15, 4  ;;  %s208_s24 = int_to_ptr.hbm [resolvable:$true] %s207_s24 }
  0x48   :  { %s179_s20 = sshll.u32 %s14218_s29, 4  ;;  %s231_s13 = sshll.u32 %s14913_s17, 4  ;;  %s180_s20 = int_to_ptr.vmem [resolvable:$true] %s179_s20  ;;  %s232_s13 = int_to_ptr.hbm [resolvable:$true] %s231_s13 }
  0x49   :  { %s14219_s5 = smov [#allocation22]   ;;  %s257_s3 = sshll.u32 %s14915_s19, 4  ;;  %s258_s3 = int_to_ptr.hbm [resolvable:$true] %s257_s3 }
  0x4a   :  { %s149_s16 = sshll.u32 %s14949_s9, 4  ;;  %s209_s0 = sshll.u32 %s14219_s5, 4  ;;  %s150_s16 = int_to_ptr.hbm [resolvable:$true] %s149_s16  ;;  %s210_s0 = int_to_ptr.vmem [resolvable:$true] %s209_s0 }
  0x4b   :  { %157 = dma.hbm_to_vmem [thread:$0]  %s150_s16, 4096, %s152_s18, [#allocation15], %s14205_s12, %s14205_s12, %s14206_s4  }
  0x4c   :  { %s177_s11 = sshll.u32 %s14950_s27, 4  ;;  %s14220_s9 = smov [#allocation25]   ;;  %s178_s11 = int_to_ptr.hbm [resolvable:$true] %s177_s11 }
  0x4d   :  { %185 = dma.hbm_to_vmem [thread:$0]  %s178_s11, 16384, %s180_s20, [#allocation18], %s14205_s12, %s14205_s12, %s14206_s4  }
  0x4e   :  { %215 = dma.hbm_to_vmem [thread:$0]  %s208_s24, 16384, %s210_s0, [#allocation21], %s14205_s12, %s14205_s12, %s14206_s4  }
  0x4f   :  { %s233_s15 = sshll.u32 %s14220_s9, 4  ;;  %s285_s11 = sshll.u32 %s14918_s22, 4  ;;  %s234_s15 = int_to_ptr.vmem [resolvable:$true] %s233_s15  ;;  %s286_s11 = int_to_ptr.hbm [resolvable:$true] %s285_s11 }
  0x50   :  { %239 = dma.hbm_to_vmem [thread:$0]  %s232_s13, 16384, %s234_s15, [#allocation24], %s14205_s12, %s14205_s12, %s14206_s4  }
  0x51   :  { %s14221_s6 = smov [#allocation28]   ;;  %s14222_s29 = smov [#allocation31]  }
  0x52   :  { %s259_s18 = sshll.u32 %s14221_s6, 4  ;;  %s287_s19 = sshll.u32 %s14222_s29, 4  ;;  %s260_s18 = int_to_ptr.vmem [resolvable:$true] %s259_s18  ;;  %s288_s19 = int_to_ptr.vmem [resolvable:$true] %s287_s19 }
  0x53   :  { %265 = dma.hbm_to_vmem [thread:$0]  %s258_s3, 4096, %s260_s18, [#allocation27], %s14205_s12, %s14205_s12, %s14206_s4  }
  0x54   :  { %s315_s28 = sshll.u32 %s14922_s26, 4  ;;  %s14223_s22 = smov [#allocation34]   ;;  %s316_s28 = int_to_ptr.hbm [resolvable:$true] %s315_s28 }
  0x55   :  { %293 = dma.hbm_to_vmem [thread:$0]  %s286_s11, 16384, %s288_s19, [#allocation30], %s14205_s12, %s14205_s12, %s14206_s4  }
  0x56   :  { %s317_s24 = sshll.u32 %s14223_s22, 4  ;;  %s318_s24 = int_to_ptr.vmem [resolvable:$true] %s317_s24 }
  0x57   :  { %323 = dma.hbm_to_vmem [thread:$0]  %s316_s28, 4096, %s318_s24, [#allocation33], %s14200_s2, %s14200_s2, %s14201_s7  }
  0x58   :  { %14175 = dma.done.wait [#allocation3], 128  }
  0x59   :  { %14176 = vsyncadd [#allocation3], 4294967168 }
  0x5a   :  { %14177 = dma.done.wait [#allocation6], 256  }
  0x5b   :  { %14178 = vsyncadd [#allocation6], 4294967040 }
  0x5c   :  { %14179 = dma.done.wait [#allocation9], 272  }
  0x5d   :  { %14180 = vsyncadd [#allocation9], 4294967024 }
  0x5e   :  { %14181 = dma.done.wait [#allocation12], 1040  }
  0x5f   :  { %14182 = vsyncadd [#allocation12], 4294966256 }
  0x60   :  { %14183 = dma.done.wait [#allocation15], 8192  }
  0x61   :  { %14184 = vsyncadd [#allocation15], 4294959104 }
  0x62   :  { %14185 = dma.done.wait [#allocation18], 20480  }
  0x63   :  { %14186 = vsyncadd [#allocation18], 4294946816 }
  0x64   :  { %14187 = dma.done.wait [#allocation21], 32768  }
  0x65   :  { %14188 = vsyncadd [#allocation21], 4294934528 }
  0x66   :  { %14189 = dma.done.wait [#allocation24], 16448  }
  0x67   :  { %14190 = vsyncadd [#allocation24], 4294950848 }
  0x68   :  { %14191 = dma.done.wait [#allocation27], 8192  }
  0x69   :  { %14192 = vsyncadd [#allocation27], 4294959104 }
  0x6a   :  { %14193 = dma.done.wait [#allocation30], 20480  }
  0x6b   :  { %14194 = vsyncadd [#allocation30], 4294946816 }
  0x6c   :  { %14195 = dma.done.wait [#allocation33], 20480  }
  0x6d   :  { %14196 = vsyncadd [#allocation33], 4294946816  ;;  %v12614_v0 = vld [vmem:[#allocation11 + $0x38] sm:$0xff]  ;;  %v12613_v1 = vld [vmem:[#allocation11 + $0x30] sm:$0xff]  ;;  %vm440_vm0 = vcmask 261120   ;;  %s14951_s7 = sld [smem:[#allocation58_spill]] }
  0x6e   :  { %537 = vmatpush.bf16.msra.mxu1 %v12614_v0  ;;  %v12605_v2 = vld [vmem:[#allocation8 + $0x8] sm:$0xff]  ;;  %v12604_v3 = vld [vmem:[#allocation8] sm:$0xff]  ;;  %v8746_v4 = vld [vmem:[#allocation16 + $0xe0] sm:$0xf]  ;;  %s14952_s8 = sld [smem:[#allocation60_spill]]  ;;  %s14224_s30 = smov [#allocation35]  }
  0x6f   :  { %v12677_v5 = vld [vmem:[#allocation16 + $0xec] sm:$0xf0]  ;;  %v12675_v6 = vld [vmem:[#allocation16 + $0xe4] sm:$0xf]  ;;  %450 = vmatpush.bf16.msra.mxu0 %v12605_v2  ;;  %v8748_v8 = vld [vmem:[#allocation16 + $0xf0] sm:$0xf0] }
  0x70   :  { %v8747_v7 = vor.u32 %v12677_v5, %v8746_v4  ;;  %v8754_v9 = vld [vmem:[#allocation16 + $0xe8] sm:$0xf]  ;;  %v12678_v10 = vld [vmem:[#allocation16 + $0xf4] sm:$0xf0]  ;;  %v8751_v12 = vor.u32 %v12675_v6, %v8748_v8  ;;  %v8730_v14 = vld [vmem:[#allocation16 + $0xc0] sm:$0xf] }
  0x71   :  { %v12612_v11 = vld [vmem:[#allocation11 + $0x28] sm:$0xff]  ;;  %v8755_v13 = vor.u32 %v12678_v10, %v8754_v9  ;;  %v12673_v15 = vld [vmem:[#allocation16 + $0xcc] sm:$0xf0]  ;;  %v8732_v17 = vld [vmem:[#allocation16 + $0xd0] sm:$0xf0]  ;;  %s14953_s16 = sld [smem:[#allocation61_spill]] }
  0x72   :  { %538 = vmatpush.bf16.msra.mxu1 %v12613_v1  ;;  %784 = vmatpush.bf16.msra.mxu2 %v8747_v7  ;;  %v12671_v16 = vld [vmem:[#allocation16 + $0xc4] sm:$0xf]  ;;  %v12603_v18 = vld [vmem:[#allocation5] sm:$0xff]  ;;  %v8731_v19 = vor.u32 %v12673_v15, %v8730_v14  ;;  %v8738_v21 = vld [vmem:[#allocation16 + $0xc8] sm:$0xf]  ;;  %s8554_s3 = sshll.u32 %s14224_s30, 4  ;;  %s8555_s3 = int_to_ptr.vmem [resolvable:$true] %s8554_s3 }
  0x73   :  { %798 = vmatpush.bf16.msra.mxu3 %v8751_v12  ;;  %v8735_v20 = vor.u32 %v12671_v16, %v8732_v17  ;;  %v12674_v22 = vld [vmem:[#allocation16 + $0xd4] sm:$0xf0]  ;;  %451 = vmatpush.bf16.msra.mxu0 %v12604_v3  ;;  %v8714_v23 = vld [vmem:[#allocation16 + $0xa0] sm:$0xf]  ;;  %v12669_v24 = vld [vmem:[#allocation16 + $0xac] sm:$0xf0] }
  0x74   :  { %v12611_v25 = vld [vmem:[#allocation11 + $0x20] sm:$0xff]  ;;  %v8739_v26 = vor.u32 %v12674_v22, %v8738_v21  ;;  %v8716_v28 = vld [vmem:[#allocation16 + $0xb0] sm:$0xf0]  ;;  %v8715_v29 = vor.u32 %v12669_v24, %v8714_v23  ;;  %v8722_v30 = vld [vmem:[#allocation16 + $0xa8] sm:$0xf]  ;;  %s14954_s11 = sld [smem:[#allocation62_spill]] }
  0x75   :  { %v12667_v27 = vld [vmem:[#allocation16 + $0xa4] sm:$0xf]  ;;  %v12670_v31 = vld [vmem:[#allocation16 + $0xb4] sm:$0xf0]  ;;  %v8698_v33 = vld [vmem:[#allocation16 + $0x80] sm:$0xf] }
  0x76   :  { %539 = vmatpush.bf16.msra.mxu1 %v12612_v11  ;;  %785 = vmatpush.bf16.msra.mxu2 %v8731_v19  ;;  %v8719_v32 = vor.u32 %v12667_v27, %v8716_v28  ;;  %v12665_v34 = vld [vmem:[#allocation16 + $0x8c] sm:$0xf0]  ;;  %v12663_v35 = vld [vmem:[#allocation16 + $0x84] sm:$0xf]  ;;  %v8700_v36 = vld [vmem:[#allocation16 + $0x90] sm:$0xf0]  ;;  %v8723_v38 = vor.u32 %v12670_v31, %v8722_v30 }
  0x77   :  { %812 = vmatpush.bf16.msrb.mxu0 %v8755_v13  ;;  %799 = vmatpush.bf16.msra.mxu3 %v8735_v20  ;;  %v12610_v37 = vld [vmem:[#allocation11 + $0x18] sm:$0xff]  ;;  %v8699_v39 = vor.u32 %v12665_v34, %v8698_v33  ;;  %v8706_v40 = vld [vmem:[#allocation16 + $0x88] sm:$0xf]  ;;  %v8703_v42 = vor.u32 %v12663_v35, %v8700_v36  ;;  %v8682_v43 = vld [vmem:[#allocation16 + $0x60] sm:$0xf]  ;;  %s14225_s18 = smov 128  }
  0x78   :  { %8591 = vmatmul.msk.bf16.vlgmr.msra.gmra.mxu0 %vm440_vm0, %v12603_v18  ;;  %v12666_v41 = vld [vmem:[#allocation16 + $0x94] sm:$0xf0]  ;;  %v12661_v44 = vld [vmem:[#allocation16 + $0x6c] sm:$0xf0]  ;;  %v12659_v45 = vld [vmem:[#allocation16 + $0x64] sm:$0xf] }
  0x79   :  { %v8684_v46 = vld [vmem:[#allocation16 + $0x70] sm:$0xf0]  ;;  %v8707_v48 = vor.u32 %v12666_v41, %v8706_v40  ;;  %v8683_v49 = vor.u32 %v12661_v44, %v8682_v43  ;;  %v8690_v50 = vld [vmem:[#allocation16 + $0x68] sm:$0xf]  ;;  %v12662_v51 = vld [vmem:[#allocation16 + $0x74] sm:$0xf0] }
  0x7a   :  { %540 = vmatpush.bf16.msra.mxu1 %v12611_v25  ;;  %786 = vmatpush.bf16.msra.mxu2 %v8715_v29  ;;  %v12609_v47 = vld [vmem:[#allocation11 + $0x10] sm:$0xff]  ;;  %v8687_v52 = vor.u32 %v12659_v45, %v8684_v46  ;;  %v8666_v53 = vld [vmem:[#allocation16 + $0x40] sm:$0xf]  ;;  %v12655_v55 = vld [vmem:[#allocation16 + $0x44] sm:$0xf]  ;;  %v8691_v58 = vor.u32 %v12662_v51, %v8690_v50  ;;  %s8556_s6 = sshll.u32 %s14954_s11, 4  ;;  %s8557_s6 = int_to_ptr.hbm [resolvable:$true] %s8556_s6 }
  0x7b   :  { %813 = vmatpush.bf16.msrb.mxu0 %v8739_v26  ;;  %800 = vmatpush.bf16.msra.mxu3 %v8719_v32  ;;  %v12657_v54 = vld [vmem:[#allocation16 + $0x4c] sm:$0xf0]  ;;  %v8668_v56 = vld [vmem:[#allocation16 + $0x50] sm:$0xf0]  ;;  %v12608_v57 = vld [vmem:[#allocation11 + $0x8] sm:$0xff]  ;;  %s14226_s29 = smov 8  }
  0x7c   :  { %v12676_v59 = vld [vmem:[#allocation16 + $0xec] sm:$0xf]  ;;  %v8667_v60 = vor.u32 %v12657_v54, %v8666_v53  ;;  %v8674_v61 = vld [vmem:[#allocation16 + $0x48] sm:$0xf]  ;;  %v12658_v62 = vld [vmem:[#allocation16 + $0x54] sm:$0xf0]  ;;  %v8671_v0 = vor.u32 %v12655_v55, %v8668_v56 }
  0x7d   :  { %v8756_v63 = vld [vmem:[#allocation16 + $0xf8] sm:$0xf0]  ;;  %v8650_v1 = vld [vmem:[#allocation16 + $0x20] sm:$0xf]  ;;  %v12653_v2 = vld [vmem:[#allocation16 + $0x2c] sm:$0xf0]  ;;  %v8675_v7 = vor.u32 %v12658_v62, %v8674_v61 }
  0x7e   :  { %541 = vmatpush.bf16.msra.mxu1 %v12610_v37  ;;  %787 = vmatpush.bf16.msra.mxu2 %v8699_v39  ;;  %v12651_v3 = vld [vmem:[#allocation16 + $0x24] sm:$0xf]  ;;  %v8652_v4 = vld [vmem:[#allocation16 + $0x30] sm:$0xf0]  ;;  %v12672_v6 = vld [vmem:[#allocation16 + $0xcc] sm:$0xf]  ;;  %v8759_v9 = vor.u32 %v12676_v59, %v8756_v63  ;;  %v8651_v11 = vor.u32 %v12653_v2, %v8650_v1 }
  0x7f   :  { %814 = vmatpush.bf16.msrb.mxu0 %v8723_v38  ;;  %801 = vmatpush.bf16.msra.mxu3 %v8703_v42  ;;  %v12607_v5 = vld [vmem:[#allocation11] sm:$0xff]  ;;  %v8658_v12 = vld [vmem:[#allocation16 + $0x28] sm:$0xf]  ;;  %v12654_v13 = vld [vmem:[#allocation16 + $0x34] sm:$0xf0]  ;;  %v8655_v14 = vor.u32 %v12651_v3, %v8652_v4 }
  0x80   :  { %v12606_v8 = vld [vmem:[#allocation7] sm:$0xff]  ;;  %v8740_v10 = vld [vmem:[#allocation16 + $0xd8] sm:$0xf0]  ;;  %v8634_v15 = vld [vmem:[#allocation16] sm:$0xf]  ;;  %v8659_v21 = vor.u32 %v12654_v13, %v8658_v12 }
  0x81   :  { %v12649_v16 = vld [vmem:[#allocation16 + $0xc] sm:$0xf0]  ;;  %v12647_v17 = vld [vmem:[#allocation16 + $0x4] sm:$0xf]  ;;  %v8636_v18 = vld [vmem:[#allocation16 + $0x10] sm:$0xf0]  ;;  %v8743_v24 = vor.u32 %v12672_v6, %v8740_v10 }
  0x82   :  { %542 = vmatpush.bf16.msra.mxu1 %v12609_v47  ;;  %788 = vmatpush.bf16.msra.mxu2 %v8683_v49  ;;  %v8874_v19 = vld [vmem:[#allocation14 + $0xe0] sm:$0xf]  ;;  %v12645_v20 = vld [vmem:[#allocation14 + $0xec] sm:$0xf0]  ;;  %v12643_v22 = vld [vmem:[#allocation14 + $0xe4] sm:$0xf]  ;;  %v8635_v26 = vor.u32 %v12649_v16, %v8634_v15  ;;  %v8639_v30 = vor.u32 %v12647_v17, %v8636_v18 }
  0x83   :  { %815 = vmatpush.bf16.msrb.mxu0 %v8707_v48  ;;  %802 = vmatpush.bf16.msra.mxu3 %v8687_v52  ;;  %v8876_v23 = vld [vmem:[#allocation14 + $0xf0] sm:$0xf0]  ;;  %v12668_v25 = vld [vmem:[#allocation16 + $0xac] sm:$0xf]  ;;  %v8642_v27 = vld [vmem:[#allocation16 + $0x8] sm:$0xf]  ;;  %v8875_v31 = vor.u32 %v12645_v20, %v8874_v19 }
  0x84   :  { %v12650_v28 = vld [vmem:[#allocation16 + $0x14] sm:$0xf0]  ;;  %v8724_v29 = vld [vmem:[#allocation16 + $0xb8] sm:$0xf0]  ;;  %v8882_v32 = vld [vmem:[#allocation14 + $0xe8] sm:$0xf]  ;;  %v8879_v34 = vor.u32 %v12643_v22, %v8876_v23 }
  0x85   :  { %v12646_v33 = vld [vmem:[#allocation14 + $0xf4] sm:$0xf0]  ;;  %v8858_v35 = vld [vmem:[#allocation14 + $0xc0] sm:$0xf]  ;;  %v12641_v36 = vld [vmem:[#allocation14 + $0xcc] sm:$0xf0]  ;;  %v8643_v37 = vor.u32 %v12650_v28, %v8642_v27  ;;  %v8727_v40 = vor.u32 %v12668_v25, %v8724_v29 }
  0x86   :  { %543 = vmatpush.bf16.msra.mxu1 %v12608_v57  ;;  %789 = vmatpush.bf16.msra.mxu2 %v8667_v60  ;;  %v12639_v38 = vld [vmem:[#allocation14 + $0xc4] sm:$0xf]  ;;  %v8860_v39 = vld [vmem:[#allocation14 + $0xd0] sm:$0xf0]  ;;  %v12664_v41 = vld [vmem:[#allocation16 + $0x8c] sm:$0xf]  ;;  %v8883_v42 = vor.u32 %v12646_v33, %v8882_v32  ;;  %v8859_v44 = vor.u32 %v12641_v36, %v8858_v35 }
  0x87   :  { %816 = vmatpush.bf16.msrb.mxu0 %v8691_v58  ;;  %803 = vmatpush.bf16.msra.mxu3 %v8671_v0  ;;  %v8708_v43 = vld [vmem:[#allocation16 + $0x98] sm:$0xf0]  ;;  %v8866_v45 = vld [vmem:[#allocation14 + $0xc8] sm:$0xf]  ;;  %v12642_v46 = vld [vmem:[#allocation14 + $0xd4] sm:$0xf0]  ;;  %v8863_v47 = vor.u32 %v12639_v38, %v8860_v39 }
  0x88   :  { %v8842_v48 = vld [vmem:[#allocation14 + $0xa0] sm:$0xf]  ;;  %v12637_v49 = vld [vmem:[#allocation14 + $0xac] sm:$0xf0]  ;;  %v12635_v50 = vld [vmem:[#allocation14 + $0xa4] sm:$0xf]  ;;  %v8711_v52 = vor.u32 %v12664_v41, %v8708_v43  ;;  %v8867_v54 = vor.u32 %v12642_v46, %v8866_v45 }
  0x89   :  { %v8844_v51 = vld [vmem:[#allocation14 + $0xb0] sm:$0xf0]  ;;  %v12660_v53 = vld [vmem:[#allocation16 + $0x6c] sm:$0xf]  ;;  %v8692_v55 = vld [vmem:[#allocation16 + $0x78] sm:$0xf0]  ;;  %v8843_v56 = vor.u32 %v12637_v49, %v8842_v48 }
  0x8a   :  { %544 = vmatpush.bf16.msra.mxu1 %v12607_v5  ;;  %790 = vmatpush.bf16.msra.mxu2 %v8651_v11  ;;  %v8850_v57 = vld [vmem:[#allocation14 + $0xa8] sm:$0xf]  ;;  %v12638_v58 = vld [vmem:[#allocation14 + $0xb4] sm:$0xf0]  ;;  %v8847_v59 = vor.u32 %v12635_v50, %v8844_v51  ;;  %v8826_v60 = vld [vmem:[#allocation14 + $0x80] sm:$0xf]  ;;  %v8695_v0 = vor.u32 %v12660_v53, %v8692_v55 }
  0x8b   :  { %817 = vmatpush.bf16.msrb.mxu0 %v8675_v7  ;;  %804 = vmatpush.bf16.msra.mxu3 %v8655_v14  ;;  %v12633_v61 = vld [vmem:[#allocation14 + $0x8c] sm:$0xf0]  ;;  %v12631_v62 = vld [vmem:[#allocation14 + $0x84] sm:$0xf]  ;;  %v8828_v63 = vld [vmem:[#allocation14 + $0x90] sm:$0xf0]  ;;  %v8851_v3 = vor.u32 %v12638_v58, %v8850_v57 }
  0x8c   :  { %v12656_v1 = vld [vmem:[#allocation16 + $0x4c] sm:$0xf]  ;;  %v8676_v2 = vld [vmem:[#allocation16 + $0x58] sm:$0xf0]  ;;  %v8827_v4 = vor.u32 %v12633_v61, %v8826_v60  ;;  %v8834_v5 = vld [vmem:[#allocation14 + $0x88] sm:$0xf] }
  0x8d   :  { %545 = vmatmul.bf16.vlgmr.msra.gmra.mxu1 %v12606_v8  ;;  %v12634_v6 = vld [vmem:[#allocation14 + $0x94] sm:$0xf0]  ;;  %v8831_v8 = vor.u32 %v12631_v62, %v8828_v63  ;;  %v12629_v10 = vld [vmem:[#allocation14 + $0x6c] sm:$0xf0]  ;;  %v12627_v11 = vld [vmem:[#allocation14 + $0x64] sm:$0xf]  ;;  %v8679_v13 = vor.u32 %v12656_v1, %v8676_v2 }
  0x8e   :  { %826 = vmatpush.bf16.msrb.mxu1 %v8759_v9  ;;  %791 = vmatpush.bf16.msra.mxu2 %v8635_v26  ;;  %v14489_v7 = vld [vmem:[#allocation2] sm:$0xff]  ;;  %v8810_v9 = vld [vmem:[#allocation14 + $0x60] sm:$0xf]  ;;  %v12652_v14 = vld [vmem:[#allocation16 + $0x2c] sm:$0xf]  ;;  %v8835_v15 = vor.u32 %v12634_v6, %v8834_v5 }
  0x8f   :  { %818 = vmatpush.bf16.msrb.mxu0 %v8659_v21  ;;  %805 = vmatpush.bf16.msra.mxu3 %v8639_v30  ;;  %v8812_v12 = vld [vmem:[#allocation14 + $0x70] sm:$0xf0]  ;;  %v8660_v16 = vld [vmem:[#allocation16 + $0x38] sm:$0xf0]  ;;  %v8811_v17 = vor.u32 %v12629_v10, %v8810_v9  ;;  %v8818_v18 = vld [vmem:[#allocation14 + $0x68] sm:$0xf] }
  0x90   :  { %v12630_v19 = vld [vmem:[#allocation14 + $0x74] sm:$0xf0]  ;;  %v8815_v20 = vor.u32 %v12627_v11, %v8812_v12  ;;  %v8794_v21 = vld [vmem:[#allocation14 + $0x40] sm:$0xf]  ;;  %v12625_v22 = vld [vmem:[#allocation14 + $0x4c] sm:$0xf0]  ;;  %v8663_v25 = vor.u32 %v12652_v14, %v8660_v16 }
  0x91   :  { %792 = vmatmul.bf16.vlgmr.msra.gmra.mxu2 %v14489_v7  ;;  %v12623_v23 = vld [vmem:[#allocation14 + $0x44] sm:$0xf]  ;;  %v12648_v26 = vld [vmem:[#allocation16 + $0xc] sm:$0xf]  ;;  %v8644_v27 = vld [vmem:[#allocation16 + $0x18] sm:$0xf0]  ;;  %v8819_v28 = vor.u32 %v12630_v19, %v8818_v18  ;;  %v8795_v30 = vor.u32 %v12625_v22, %v8794_v21 }
  0x92   :  { %827 = vmatpush.bf16.msrb.mxu1 %v8743_v24  ;;  %1000 = vmatpush.bf16.msrb.mxu2 %v8875_v31  ;;  %v8796_v24 = vld [vmem:[#allocation14 + $0x50] sm:$0xf0]  ;;  %v12644_v29 = vld [vmem:[#allocation14 + $0xec] sm:$0xf]  ;;  %v8802_v31 = vld [vmem:[#allocation14 + $0x48] sm:$0xf]  ;;  %v8647_v39 = vor.u32 %v12648_v26, %v8644_v27 }
  0x93   :  { %1014 = vmatpush.bf16.msrb.mxu3 %v8879_v34  ;;  %819 = vmatpush.bf16.msrb.mxu0 %v8643_v37  ;;  %v12626_v32 = vld [vmem:[#allocation14 + $0x54] sm:$0xf0]  ;;  %v8884_v33 = vld [vmem:[#allocation14 + $0xf8] sm:$0xf0]  ;;  %v8799_v34 = vor.u32 %v12623_v23, %v8796_v24  ;;  %v8778_v35 = vld [vmem:[#allocation14 + $0x20] sm:$0xf] }
  0x94   :  { %806 = vmatmul.bf16.vlgmr.msra.gmra.mxu3 %v14489_v7  ;;  %v12621_v36 = vld [vmem:[#allocation14 + $0x2c] sm:$0xf0]  ;;  %v12619_v37 = vld [vmem:[#allocation14 + $0x24] sm:$0xf]  ;;  %v8780_v38 = vld [vmem:[#allocation14 + $0x30] sm:$0xf0]  ;;  %v8887_v41 = vor.u32 %v12644_v29, %v8884_v33 }
  0x95   :  { %v8779_v43 = vor.u32 %v12621_v36, %v8778_v35  ;;  %v12622_v45 = vld [vmem:[#allocation14 + $0x34] sm:$0xf0]  ;;  %v8868_v46 = vld [vmem:[#allocation14 + $0xd8] sm:$0xf0]  ;;  %v8762_v48 = vld [vmem:[#allocation14] sm:$0xf] }
  0x96   :  { %828 = vmatpush.bf16.msrb.mxu1 %v8727_v40  ;;  %1001 = vmatpush.bf16.msrb.mxu2 %v8859_v44  ;;  %v8803_v40 = vor.u32 %v12626_v32, %v8802_v31  ;;  %v8786_v44 = vld [vmem:[#allocation14 + $0x28] sm:$0xf]  ;;  %v12617_v49 = vld [vmem:[#allocation14 + $0xc] sm:$0xf0]  ;;  %v12615_v50 = vld [vmem:[#allocation14 + $0x4] sm:$0xf] }
  0x97   :  { %1028 = vmatpush.bf16.msra.mxu0 %v8883_v42  ;;  %1015 = vmatpush.bf16.msrb.mxu3 %v8863_v47  ;;  %v12640_v42 = vld [vmem:[#allocation14 + $0xcc] sm:$0xf]  ;;  %v8783_v47 = vor.u32 %v12619_v37, %v8780_v38  ;;  %v8764_v51 = vld [vmem:[#allocation14 + $0x10] sm:$0xf0]  ;;  %v8770_v55 = vld [vmem:[#allocation14 + $0x8] sm:$0xf] }
  0x98   :  { %820 = vmatmul.bf16.vlgmr.msrb.gmra.mxu0 %v14489_v7  ;;  %v8871_v53 = vor.u32 %v12640_v42, %v8868_v46  ;;  %v12636_v57 = vld [vmem:[#allocation14 + $0xac] sm:$0xf]  ;;  %v8852_v58 = vld [vmem:[#allocation14 + $0xb8] sm:$0xf0]  ;;  %v12709_v14 = vld [vmem:[#allocation17 + $0xec] sm:$0xf0] }
  0x99   :  { %v8855_v61 = vor.u32 %v12636_v57, %v8852_v58  ;;  %v12632_v62 = vld [vmem:[#allocation14 + $0x8c] sm:$0xf]  ;;  %v8836_v63 = vld [vmem:[#allocation14 + $0x98] sm:$0xf0]  ;;  %v9010_v18 = vld [vmem:[#allocation17 + $0xe8] sm:$0xf] }
  0x9a   :  { %829 = vmatpush.bf16.msrb.mxu1 %v8711_v52  ;;  %1002 = vmatpush.bf16.msrb.mxu2 %v8843_v56  ;;  %v8787_v52 = vor.u32 %v12622_v45, %v8786_v44  ;;  %v12618_v56 = vld [vmem:[#allocation14 + $0x14] sm:$0xf0]  ;;  %v12628_v1 = vld [vmem:[#allocation14 + $0x6c] sm:$0xf]  ;;  %v8820_v2 = vld [vmem:[#allocation14 + $0x78] sm:$0xf0] }
  0x9b   :  { %1029 = vmatpush.bf16.msra.mxu0 %v8867_v54  ;;  %1016 = vmatpush.bf16.msrb.mxu3 %v8847_v59  ;;  %v8763_v54 = vor.u32 %v12617_v49, %v8762_v48  ;;  %v8767_v59 = vor.u32 %v12615_v50, %v8764_v51  ;;  %v8771_v60 = vor.u32 %v12618_v56, %v8770_v55  ;;  %v8804_v5 = vld [vmem:[#allocation14 + $0x58] sm:$0xf0]  ;;  %v12616_v10 = vld [vmem:[#allocation14 + $0xc] sm:$0xf]  ;;  %v12710_v19 = vld [vmem:[#allocation17 + $0xf4] sm:$0xf0] }
  0x9c   :  { %v8772_v11 = vld [vmem:[#allocation14 + $0x18] sm:$0xf0]  ;;  %v9011_v21 = vor.u32 %v12710_v19, %v9010_v18  ;;  %v12708_v22 = vld [vmem:[#allocation17 + $0xec] sm:$0xf]  ;;  %v12705_v26 = vld [vmem:[#allocation17 + $0xcc] sm:$0xf0] }
  0x9d   :  { %v8775_v12 = vor.u32 %v12616_v10, %v8772_v11  ;;  %v9012_v23 = vld [vmem:[#allocation17 + $0xf8] sm:$0xf0]  ;;  %v12703_v27 = vld [vmem:[#allocation17 + $0xc4] sm:$0xf]  ;;  %v8988_v29 = vld [vmem:[#allocation17 + $0xd0] sm:$0xf0] }
  0x9e   :  { %830 = vmatpush.bf16.msrb.mxu1 %v8695_v0  ;;  %1003 = vmatpush.bf16.msrb.mxu2 %v8827_v4  ;;  %v8839_v0 = vor.u32 %v12632_v62, %v8836_v63  ;;  %v12624_v4 = vld [vmem:[#allocation14 + $0x4c] sm:$0xf]  ;;  %v9015_v24 = vor.u32 %v12708_v22, %v9012_v23  ;;  %v12706_v31 = vld [vmem:[#allocation17 + $0xd4] sm:$0xf0]  ;;  %v8991_v32 = vor.u32 %v12703_v27, %v8988_v29  ;;  %v8996_v35 = vld [vmem:[#allocation17 + $0xd8] sm:$0xf0] }
  0x9f   :  { %1030 = vmatpush.bf16.msra.mxu0 %v8851_v3  ;;  %1017 = vmatpush.bf16.msrb.mxu3 %v8831_v8  ;;  %v8823_v3 = vor.u32 %v12628_v1, %v8820_v2  ;;  %v8807_v6 = vor.u32 %v12624_v4, %v8804_v5  ;;  %v8788_v8 = vld [vmem:[#allocation14 + $0x38] sm:$0xf0]  ;;  %v8970_v37 = vld [vmem:[#allocation17 + $0xa0] sm:$0xf]  ;;  %v12701_v38 = vld [vmem:[#allocation17 + $0xac] sm:$0xf0] }
  0xa0   :  { %v8978_v42 = vld [vmem:[#allocation17 + $0xa8] sm:$0xf]  ;;  %v12700_v46 = vld [vmem:[#allocation17 + $0xac] sm:$0xf]  ;;  %v8954_v49 = vld [vmem:[#allocation17 + $0x80] sm:$0xf] }
  0xa1   :  { %v12697_v50 = vld [vmem:[#allocation17 + $0x8c] sm:$0xf0]  ;;  %v12695_v51 = vld [vmem:[#allocation17 + $0x84] sm:$0xf]  ;;  %v12698_v55 = vld [vmem:[#allocation17 + $0x94] sm:$0xf0] }
  0xa2   :  { %831 = vmatpush.bf16.msrb.mxu1 %v8679_v13  ;;  %1004 = vmatpush.bf16.msrb.mxu2 %v8811_v17  ;;  %v9002_v13 = vld [vmem:[#allocation17 + $0xe0] sm:$0xf]  ;;  %v9004_v17 = vld [vmem:[#allocation17 + $0xf0] sm:$0xf0]  ;;  %v12696_v58 = vld [vmem:[#allocation17 + $0x8c] sm:$0xf] }
  0xa3   :  { %1031 = vmatpush.bf16.msra.mxu0 %v8835_v15  ;;  %1018 = vmatpush.bf16.msrb.mxu3 %v8815_v20  ;;  %v12707_v15 = vld [vmem:[#allocation17 + $0xe4] sm:$0xf]  ;;  %v9003_v16 = vor.u32 %v12709_v14, %v9002_v13  ;;  %v12693_v62 = vld [vmem:[#allocation17 + $0x6c] sm:$0xf0]  ;;  %v8940_v1 = vld [vmem:[#allocation17 + $0x70] sm:$0xf0] }
  0xa4   :  { %v9007_v20 = vor.u32 %v12707_v15, %v9004_v17  ;;  %v8946_v2 = vld [vmem:[#allocation17 + $0x68] sm:$0xf]  ;;  %v12694_v4 = vld [vmem:[#allocation17 + $0x74] sm:$0xf0]  ;;  %v12692_v5 = vld [vmem:[#allocation17 + $0x6c] sm:$0xf] }
  0xa5   :  { %v12689_v10 = vld [vmem:[#allocation17 + $0x4c] sm:$0xf0]  ;;  %v12687_v11 = vld [vmem:[#allocation17 + $0x44] sm:$0xf]  ;;  %v8924_v13 = vld [vmem:[#allocation17 + $0x50] sm:$0xf0] }
  0xa6   :  { %832 = vmatpush.bf16.msrb.mxu1 %v8663_v25  ;;  %1005 = vmatpush.bf16.msrb.mxu2 %v8795_v30  ;;  %v8986_v25 = vld [vmem:[#allocation17 + $0xc0] sm:$0xf]  ;;  %v8994_v30 = vld [vmem:[#allocation17 + $0xc8] sm:$0xf]  ;;  %v12690_v15 = vld [vmem:[#allocation17 + $0x54] sm:$0xf0] }
  0xa7   :  { %1032 = vmatpush.bf16.msra.mxu0 %v8819_v28  ;;  %1019 = vmatpush.bf16.msrb.mxu3 %v8799_v34  ;;  %v8987_v28 = vor.u32 %v12705_v26, %v8986_v25  ;;  %v8995_v33 = vor.u32 %v12706_v31, %v8994_v30  ;;  %v12704_v34 = vld [vmem:[#allocation17 + $0xcc] sm:$0xf]  ;;  %v8930_v14 = vld [vmem:[#allocation17 + $0x48] sm:$0xf]  ;;  %v8932_v19 = vld [vmem:[#allocation17 + $0x58] sm:$0xf0] }
  0xa8   :  { %v8999_v36 = vor.u32 %v12704_v34, %v8996_v35  ;;  %v8931_v17 = vor.u32 %v12690_v15, %v8930_v14  ;;  %v12688_v18 = vld [vmem:[#allocation17 + $0x4c] sm:$0xf]  ;;  %v12685_v22 = vld [vmem:[#allocation17 + $0x2c] sm:$0xf0]  ;;  %v12683_v23 = vld [vmem:[#allocation17 + $0x24] sm:$0xf] }
  0xa9   :  { %v8914_v26 = vld [vmem:[#allocation17 + $0x28] sm:$0xf]  ;;  %v12686_v27 = vld [vmem:[#allocation17 + $0x34] sm:$0xf0]  ;;  %v8916_v30 = vld [vmem:[#allocation17 + $0x38] sm:$0xf0] }
  0xaa   :  { %833 = vmatpush.bf16.msrb.mxu1 %v8647_v39  ;;  %1006 = vmatpush.bf16.msrb.mxu2 %v8779_v43  ;;  %v12699_v39 = vld [vmem:[#allocation17 + $0xa4] sm:$0xf]  ;;  %v12702_v43 = vld [vmem:[#allocation17 + $0xb4] sm:$0xf0]  ;;  %v8890_v31 = vld [vmem:[#allocation17] sm:$0xf] }
  0xab   :  { %1033 = vmatpush.bf16.msra.mxu0 %v8803_v40  ;;  %1020 = vmatpush.bf16.msrb.mxu3 %v8783_v47  ;;  %v8971_v40 = vor.u32 %v12701_v38, %v8970_v37  ;;  %v8979_v45 = vor.u32 %v12702_v43, %v8978_v42  ;;  %v8980_v47 = vld [vmem:[#allocation17 + $0xb8] sm:$0xf0]  ;;  %v12681_v34 = vld [vmem:[#allocation17 + $0xc] sm:$0xf0]  ;;  %v12679_v35 = vld [vmem:[#allocation17 + $0x4] sm:$0xf] }
  0xac   :  { %v8983_v48 = vor.u32 %v12700_v46, %v8980_v47  ;;  %v8898_v37 = vld [vmem:[#allocation17 + $0x8] sm:$0xf]  ;;  %v12682_v38 = vld [vmem:[#allocation17 + $0x14] sm:$0xf0]  ;;  %v13635_v46 = vld [vmem:[#allocation13] ss:$0 sm:$0xff] }
  0xad   :  { %834 = vmatmul.bf16.vlgmr.msrb.gmra.mxu1 %v14489_v7  ;;  %v12620_v7 = vld [vmem:[#allocation14 + $0x2c] sm:$0xf]  ;;  %v8899_v43 = vor.u32 %v12682_v38, %v8898_v37  ;;  %v12797_v14 = vld [vmem:[#allocation19 + $0x2ac] sm:$0xf0] }
  0xae   :  { %1042 = vmatpush.bf16.msra.mxu1 %v8887_v41  ;;  %1007 = vmatpush.bf16.msrb.mxu2 %v8763_v54  ;;  %v8791_v9 = vor.u32 %v12620_v7, %v8788_v8  ;;  %v8972_v41 = vld [vmem:[#allocation17 + $0xb0] sm:$0xf0]  ;;  %v8962_v54 = vld [vmem:[#allocation17 + $0x88] sm:$0xf]  ;;  %v8947_v7 = vor.u32 %v12694_v4, %v8946_v2  ;;  %v9498_v2 = vld [vmem:[#allocation19 + $0x3c0] sm:$0xf] }
  0xaf   :  { %1034 = vmatpush.bf16.msra.mxu0 %v8787_v52  ;;  %1021 = vmatpush.bf16.msrb.mxu3 %v8767_v59  ;;  %v8975_v44 = vor.u32 %v12699_v39, %v8972_v41  ;;  %v8955_v52 = vor.u32 %v12697_v50, %v8954_v49  ;;  %v8963_v57 = vor.u32 %v12698_v55, %v8962_v54  ;;  %v8964_v59 = vld [vmem:[#allocation17 + $0x98] sm:$0xf0]  ;;  %v12680_v39 = vld [vmem:[#allocation17 + $0xc] sm:$0xf]  ;;  %v12837_v54 = vld [vmem:[#allocation19 + $0x3ec] sm:$0xf0] }
  0xb0   :  { %v8900_v41 = vld [vmem:[#allocation17 + $0x18] sm:$0xf0]  ;;  %v9130_v55 = vld [vmem:[#allocation19 + $0xe0] sm:$0xf]  ;;  %v12761_v37 = vld [vmem:[#allocation19 + $0x18c] sm:$0xf0] }
  0xb2   :  { %1043 = vmatpush.bf16.msra.mxu1 %v8871_v53  ;;  %1248 = vmatpush.bf16.msra.mxu2 %v9003_v16  ;;  %v8956_v53 = vld [vmem:[#allocation17 + $0x90] sm:$0xf0]  ;;  %v8927_v16 = vor.u32 %v12687_v11, %v8924_v13  ;;  %v9354_v13 = vld [vmem:[#allocation19 + $0x2a0] sm:$0xf] }
  0xb3   :  { %1035 = vmatpush.bf16.msra.mxu0 %v8771_v60  ;;  %1262 = vmatpush.bf16.msra.mxu3 %v9007_v20  ;;  %v8959_v56 = vor.u32 %v12695_v51, %v8956_v53  ;;  %v8967_v60 = vor.u32 %v12696_v58, %v8964_v59  ;;  %v8906_v20 = vld [vmem:[#allocation17 + $0x20] sm:$0xf] }
  0xb4   :  { %v8907_v25 = vor.u32 %v12685_v22, %v8906_v20  ;;  %v9386_v51 = vld [vmem:[#allocation19 + $0x2e0] sm:$0xf] }
  0xb5   :  { %v9514_v53 = vld [vmem:[#allocation19 + $0x3e0] sm:$0xf] }
  0xb6   :  { %1044 = vmatpush.bf16.msra.mxu1 %v8855_v61  ;;  %1249 = vmatpush.bf16.msra.mxu2 %v8987_v28  ;;  %v8938_v61 = vld [vmem:[#allocation17 + $0x60] sm:$0xf]  ;;  %v12684_v28 = vld [vmem:[#allocation17 + $0x2c] sm:$0xf] }
  0xb7   :  { %1276 = vmatpush.bf16.msrb.mxu0 %v9011_v21  ;;  %1263 = vmatpush.bf16.msra.mxu3 %v8991_v32  ;;  %v8939_v63 = vor.u32 %v12693_v62, %v8938_v61  ;;  %v8935_v21 = vor.u32 %v12688_v18, %v8932_v19  ;;  %v8915_v32 = vor.u32 %v12686_v27, %v8914_v26  ;;  %v9258_v59 = vld [vmem:[#allocation19 + $0x1e0] sm:$0xf] }
  0xb8   :  { %v9098_v20 = vld [vmem:[#allocation19 + $0xa0] sm:$0xf]  ;;  %v9355_v26 = vor.u32 %v12797_v14, %v9354_v13  ;;  %v12777_v13 = vld [vmem:[#allocation19 + $0x20c] sm:$0xf0] }
  0xb9   :  { %v9226_v22 = vld [vmem:[#allocation19 + $0x1a0] sm:$0xf] }
  0xba   :  { %1045 = vmatpush.bf16.msra.mxu1 %v8839_v0  ;;  %1250 = vmatpush.bf16.msra.mxu2 %v8971_v40  ;;  %v12691_v0 = vld [vmem:[#allocation17 + $0x64] sm:$0xf]  ;;  %v8891_v40 = vor.u32 %v12681_v34, %v8890_v31  ;;  %v12825_v31 = vld [vmem:[#allocation19 + $0x38c] sm:$0xf0]  ;;  %v9082_v34 = vld [vmem:[#allocation19 + $0x80] sm:$0xf] }
  0xbb   :  { %1277 = vmatpush.bf16.msrb.mxu0 %v8995_v33  ;;  %1264 = vmatpush.bf16.msra.mxu3 %v8975_v44  ;;  %v8919_v33 = vor.u32 %v12684_v28, %v8916_v30  ;;  %v8903_v44 = vor.u32 %v12680_v39, %v8900_v41  ;;  %v9338_v28 = vld [vmem:[#allocation19 + $0x280] sm:$0xf] }
  0xbc   :  { %v9466_v30 = vld [vmem:[#allocation19 + $0x380] sm:$0xf] }
  0xbd   :  { %v9467_v41 = vor.u32 %v12825_v31, %v9466_v30  ;;  %v9402_v14 = vld [vmem:[#allocation19 + $0x300] sm:$0xf]  ;;  %v12799_v30 = vld [vmem:[#allocation19 + $0x2c4] sm:$0xf]  ;;  %v9372_v31 = vld [vmem:[#allocation19 + $0x2d0] sm:$0xf0] }
  0xbe   :  { %1046 = vmatpush.bf16.msra.mxu1 %v8823_v3  ;;  %1251 = vmatpush.bf16.msra.mxu2 %v8955_v52  ;;  %v8943_v3 = vor.u32 %v12691_v0, %v8940_v1  ;;  %v12805_v52 = vld [vmem:[#allocation19 + $0x2ec] sm:$0xf0]  ;;  %v9370_v0 = vld [vmem:[#allocation19 + $0x2c0] sm:$0xf] }
  0xbf   :  { %1278 = vmatpush.bf16.msrb.mxu0 %v8979_v45  ;;  %1265 = vmatpush.bf16.msra.mxu3 %v8959_v56  ;;  %v12741_v56 = vld [vmem:[#allocation19 + $0xec] sm:$0xf0]  ;;  %v9387_v62 = vor.u32 %v12805_v52, %v9386_v51 }
  0xc0   :  { %v12801_v1 = vld [vmem:[#allocation19 + $0x2cc] sm:$0xf0]  ;;  %v9131_v4 = vor.u32 %v12741_v56, %v9130_v55  ;;  %v9306_v55 = vld [vmem:[#allocation19 + $0x240] sm:$0xf] }
  0xc1   :  { %v9371_v11 = vor.u32 %v12801_v1, %v9370_v0  ;;  %v12757_v51 = vld [vmem:[#allocation19 + $0x16c] sm:$0xf0]  ;;  %v9290_v0 = vld [vmem:[#allocation19 + $0x220] sm:$0xf] }
  0xc2   :  { %1047 = vmatpush.bf16.msra.mxu1 %v8807_v6  ;;  %v8948_v6 = vld [vmem:[#allocation17 + $0x78] sm:$0xf0]  ;;  %1252 = vmatpush.bf16.msra.mxu2 %v8939_v63  ;;  %v9515_v63 = vor.u32 %v12837_v54, %v9514_v53  ;;  %v12785_v56 = vld [vmem:[#allocation19 + $0x24c] sm:$0xf0] }
  0xc3   :  { %1279 = vmatpush.bf16.msrb.mxu0 %v8963_v57  ;;  %v8951_v8 = vor.u32 %v12692_v5, %v8948_v6  ;;  %1266 = vmatpush.bf16.msra.mxu3 %v8943_v3  ;;  %v12833_v3 = vld [vmem:[#allocation19 + $0x3cc] sm:$0xf0]  ;;  %v9114_v6 = vld [vmem:[#allocation19 + $0xc0] sm:$0xf] }
  0xc4   :  { %v12781_v1 = vld [vmem:[#allocation19 + $0x22c] sm:$0xf0] }
  0xc6   :  { %1048 = vmatpush.bf16.msra.mxu1 %v8791_v9  ;;  %v8922_v9 = vld [vmem:[#allocation17 + $0x40] sm:$0xf] }
  0xc7   :  { %1280 = vmatpush.bf16.msrb.mxu0 %v8947_v7  ;;  %1267 = vmatpush.bf16.msra.mxu3 %v8927_v16  ;;  %v12737_v7 = vld [vmem:[#allocation19 + $0xcc] sm:$0xf0]  ;;  %v9482_v16 = vld [vmem:[#allocation19 + $0x3a0] sm:$0xf] }
  0xc8   :  { %v9115_v18 = vor.u32 %v12737_v7, %v9114_v6  ;;  %v9050_v6 = vld [vmem:[#allocation19 + $0x40] sm:$0xf]  ;;  %v12721_v7 = vld [vmem:[#allocation19 + $0x4c] sm:$0xf0] }
  0xca   :  { %1049 = vmatpush.bf16.msra.mxu1 %v8775_v12  ;;  %v8923_v12 = vor.u32 %v12689_v10, %v8922_v9  ;;  %v12769_v9 = vld [vmem:[#allocation19 + $0x1cc] sm:$0xf0]  ;;  %v13636_v10 = vld [vmem:[#allocation10] ss:$0 sm:$0xff] }
  0xcb   :  { %1281 = vmatpush.bf16.msrb.mxu0 %v8931_v17  ;;  %v12829_v17 = vld [vmem:[#allocation19 + $0x3ac] sm:$0xf0] }
  0xcc   :  { %1253 = vmatpush.bf16.msra.mxu2 %v8923_v12  ;;  %v9499_v12 = vor.u32 %v12833_v3, %v9498_v2  ;;  %v9483_v27 = vor.u32 %v12829_v17, %v9482_v16  ;;  %v9418_v2 = vld [vmem:[#allocation19 + $0x320] sm:$0xf]  ;;  %v12813_v3 = vld [vmem:[#allocation19 + $0x32c] sm:$0xf0]  ;;  %v12803_v17 = vld [vmem:[#allocation19 + $0x2e4] sm:$0xf] }
  0xcd   :  { %v12809_v16 = vld [vmem:[#allocation19 + $0x30c] sm:$0xf0] }
  0xce   :  { %1290 = vmatpush.bf16.msrb.mxu1 %v9015_v24  ;;  %v8908_v24 = vld [vmem:[#allocation17 + $0x30] sm:$0xf0] }
  0xcf   :  { %v8911_v29 = vor.u32 %v12683_v23, %v8908_v24  ;;  %1282 = vmatpush.bf16.msrb.mxu0 %v8915_v32  ;;  %v12765_v23 = vld [vmem:[#allocation19 + $0x1ac] sm:$0xf0] }
  0xd0   :  { %1254 = vmatpush.bf16.msra.mxu2 %v8907_v25 }
  0xd1   :  { %1268 = vmatpush.bf16.msra.mxu3 %v8911_v29  ;;  %v12793_v29 = vld [vmem:[#allocation19 + $0x28c] sm:$0xf0] }
  0xd2   :  { %1291 = vmatpush.bf16.msrb.mxu1 %v8999_v36  ;;  %v8892_v36 = vld [vmem:[#allocation17 + $0x10] sm:$0xf0] }
  0xd3   :  { %v8895_v42 = vor.u32 %v12679_v35, %v8892_v36  ;;  %1283 = vmatpush.bf16.msrb.mxu0 %v8899_v43  ;;  %v12729_v35 = vld [vmem:[#allocation19 + $0x8c] sm:$0xf0]  ;;  %v9210_v36 = vld [vmem:[#allocation19 + $0x180] sm:$0xf] }
  0xd4   :  { %1255 = vmatpush.bf16.msra.mxu2 %v8891_v40  ;;  %v9339_v40 = vor.u32 %v12793_v29, %v9338_v28  ;;  %v12789_v43 = vld [vmem:[#allocation19 + $0x26c] sm:$0xf0] }
  0xd5   :  { %1269 = vmatpush.bf16.msra.mxu3 %v8895_v42  ;;  %v9322_v42 = vld [vmem:[#allocation19 + $0x260] sm:$0xf] }
  0xd6   :  { %1292 = vmatpush.bf16.msrb.mxu1 %v8983_v48  ;;  %v9323_v53 = vor.u32 %v12789_v43, %v9322_v42  ;;  %v9132_v43 = vld [vmem:[#allocation19 + $0xf0] sm:$0xf0] }
  0xda   :  { %1293 = vmatpush.bf16.msrb.mxu1 %v8967_v60  ;;  %v12773_v60 = vld [vmem:[#allocation19 + $0x1ec] sm:$0xf0] }
  0xdb   :  { %v9259_v5 = vor.u32 %v12773_v60, %v9258_v59 }
  0xde   :  { %1294 = vmatpush.bf16.msrb.mxu1 %v8951_v8  ;;  %v9242_v8 = vld [vmem:[#allocation19 + $0x1c0] sm:$0xf] }
  0xdf   :  { %v9243_v19 = vor.u32 %v12769_v9, %v9242_v8  ;;  %v9178_v8 = vld [vmem:[#allocation19 + $0x140] sm:$0xf]  ;;  %v9051_v9 = vor.u32 %v12721_v7, %v9050_v6  ;;  %v12731_v6 = vld [vmem:[#allocation19 + $0xa4] sm:$0xf]  ;;  %v9100_v7 = vld [vmem:[#allocation19 + $0xb0] sm:$0xf0] }
  0xe2   :  { %1295 = vmatpush.bf16.msrb.mxu1 %v8935_v21  ;;  %v12733_v21 = vld [vmem:[#allocation19 + $0xac] sm:$0xf0] }
  0xe3   :  { %v9099_v32 = vor.u32 %v12733_v21, %v9098_v20  ;;  %v12835_v21 = vld [vmem:[#allocation19 + $0x3e4] sm:$0xf] }
  0xe6   :  { %1296 = vmatpush.bf16.msrb.mxu1 %v8919_v33  ;;  %v9227_v33 = vor.u32 %v12765_v23, %v9226_v22  ;;  %v9516_v22 = vld [vmem:[#allocation19 + $0x3f0] sm:$0xf0]  ;;  %v9034_v23 = vld [vmem:[#allocation19 + $0x20] sm:$0xf] }
  0xea   :  { %1297 = vmatpush.bf16.msrb.mxu1 %v8903_v44  ;;  %v9450_v44 = vld [vmem:[#allocation19 + $0x360] sm:$0xf] }
  0xf5   :  { %v453_v48 = vpop.f32.mrf.mxu0 }
  0xf6   :  { %v454_v24 = vadd.f32 %v13636_v10, %v453_v48  ;;  %v9066_v48 = vld [vmem:[#allocation19 + $0x60] sm:$0xf] }
  0xf8   :  { %v458_v38 = vmax.f32 %v454_v24, 0.0  ;;  %v9519_v24 = vor.u32 %v12835_v21, %v9516_v22  ;;  %v9084_v21 = vld [vmem:[#allocation19 + $0x90] sm:$0xf0]  ;;  %v12759_v22 = vld [vmem:[#allocation19 + $0x184] sm:$0xf] }
  0xfd   :  { %v455_v15 = vpop.f32.mrf.mxu0 }
  0xfe   :  { %v456_v25 = vadd.f32 %v13636_v10, %v455_v15  ;;  %v12753_v10 = vld [vmem:[#allocation19 + $0x14c] sm:$0xf0] }
 0x100   :  { %v459_v39 = vmax.f32 %v456_v25, 0.0  ;;  %v12717_v25 = vld [vmem:[#allocation19 + $0x2c] sm:$0xf0] }
 0x101   :  { %v9035_v28 = vor.u32 %v12717_v25, %v9034_v23 }
 0x102   :  { %v14501_v52 = vpack.c.bf16 %v459_v39, %v458_v38  ;;  %v9146_v39 = vld [vmem:[#allocation19 + $0x100] sm:$0xf] }
 0x10a   :  { %v546_v45 = vpop.f32.mrf.mxu1 }
 0x10b   :  { %v547_v47 = vadd.f32 %v13635_v46, %v546_v45  ;;  %v12821_v45 = vld [vmem:[#allocation19 + $0x36c] sm:$0xf0] }
 0x10c   :  { %v9451_v54 = vor.u32 %v12821_v45, %v9450_v44  ;;  %v12771_v44 = vld [vmem:[#allocation19 + $0x1e4] sm:$0xf]  ;;  %v9260_v45 = vld [vmem:[#allocation19 + $0x1f0] sm:$0xf0] }
 0x10d   :  { %v551_v57 = vmax.f32 %v547_v47, 0.0  ;;  %v9211_v47 = vor.u32 %v12761_v37, %v9210_v36  ;;  %v12713_v36 = vld [vmem:[#allocation19 + $0xc] sm:$0xf0] }
 0x112   :  { %v548_v49 = vpop.f32.mrf.mxu1 }
 0x113   :  { %v549_v50 = vadd.f32 %v13635_v46, %v548_v49  ;;  %v9083_v46 = vor.u32 %v12729_v35, %v9082_v34  ;;  %v12725_v49 = vld [vmem:[#allocation19 + $0x6c] sm:$0xf0]  ;;  %v9500_v34 = vld [vmem:[#allocation19 + $0x3d0] sm:$0xf0]  ;;  %v9018_v35 = vld [vmem:[#allocation19] sm:$0xf] }
 0x114   :  { %v9067_v59 = vor.u32 %v12725_v49, %v9066_v48  ;;  %v9019_v38 = vor.u32 %v12713_v36, %v9018_v35  ;;  %v12795_v48 = vld [vmem:[#allocation19 + $0x2a4] sm:$0xf]  ;;  %v9356_v49 = vld [vmem:[#allocation19 + $0x2b0] sm:$0xf0] }
 0x115   :  { %v552_v58 = vmax.f32 %v549_v50, 0.0  ;;  %v9194_v50 = vld [vmem:[#allocation19 + $0x160] sm:$0xf]  ;;  %v9068_v35 = vld [vmem:[#allocation19 + $0x70] sm:$0xf0] }
 0x116   :  { %v9195_v60 = vor.u32 %v12757_v51, %v9194_v50  ;;  %v12827_v50 = vld [vmem:[#allocation19 + $0x3a4] sm:$0xf]  ;;  %v9359_v51 = vor.u32 %v12795_v48, %v9356_v49 }
 0x117   :  { %v14495_v61 = vpack.c.bf16 %v552_v58, %v551_v57  ;;  %v9434_v57 = vld [vmem:[#allocation19 + $0x340] sm:$0xf]  ;;  %v12817_v58 = vld [vmem:[#allocation19 + $0x34c] sm:$0xf0]  ;;  %v12751_v48 = vld [vmem:[#allocation19 + $0x144] sm:$0xf] }
 0x119   :  { %1008 = vmatmul.bf16.vlgmr.msrb.gmra.mxu2 %v14495_v61  ;;  %1022 = vmatmul.bf16.vlgmr.msrb.gmra.mxu3 %v14495_v61 }
 0x11a   :  { %1036 = vmatmul.bf16.vlgmr.msra.gmra.mxu0 %v14495_v61  ;;  %1050 = vmatmul.bf16.vlgmr.msra.gmra.mxu1 %v14495_v61 }
 0x11b   :  { %2148 = vmatpush.bf16.msra.mxu0 %v9387_v62  ;;  %2162 = vmatpush.bf16.msra.mxu1 %v9515_v63  ;;  %v9307_v62 = vor.u32 %v12785_v56, %v9306_v55  ;;  %v9435_v63 = vor.u32 %v12817_v58, %v9434_v57  ;;  %v12735_v55 = vld [vmem:[#allocation19 + $0xc4] sm:$0xf]  ;;  %v9116_v56 = vld [vmem:[#allocation19 + $0xd0] sm:$0xf0]  ;;  %v14507_v58 = vpop.f32.mrf.mxu0 }
 0x11c   :  { %2120 = vmatpush.bf16.msrb.mxu2 %v9131_v4  ;;  %2134 = vmatpush.bf16.msrb.mxu3 %v9259_v5  ;;  %v9291_v4 = vor.u32 %v12781_v1, %v9290_v0  ;;  %v9419_v5 = vor.u32 %v12813_v3, %v9418_v2  ;;  %v12767_v57 = vld [vmem:[#allocation19 + $0x1c4] sm:$0xf]  ;;  %v9340_v1 = vld [vmem:[#allocation19 + $0x290] sm:$0xf0] }
 0x11d   :  { %v12791_v0 = vld [vmem:[#allocation19 + $0x284] sm:$0xf] }
 0x11e   :  { %v12823_v2 = vld [vmem:[#allocation19 + $0x384] sm:$0xf]  ;;  %v9343_v3 = vor.u32 %v12791_v0, %v9340_v1 }
 0x11f   :  { %2149 = vmatpush.bf16.msra.mxu0 %v9371_v11  ;;  %2163 = vmatpush.bf16.msra.mxu1 %v9499_v12  ;;  %v9179_v11 = vor.u32 %v12753_v10, %v9178_v8  ;;  %v9274_v12 = vld [vmem:[#allocation19 + $0x200] sm:$0xf]  ;;  %v12763_v8 = vld [vmem:[#allocation19 + $0x1a4] sm:$0xf]  ;;  %v9228_v10 = vld [vmem:[#allocation19 + $0x1b0] sm:$0xf0] }
 0x120   :  { %2121 = vmatpush.bf16.msrb.mxu2 %v9115_v18  ;;  %2135 = vmatpush.bf16.msrb.mxu3 %v9243_v19  ;;  %v9275_v15 = vor.u32 %v12777_v13, %v9274_v12  ;;  %v9388_v18 = vld [vmem:[#allocation19 + $0x2f0] sm:$0xf0]  ;;  %v9403_v19 = vor.u32 %v12809_v16, %v9402_v14  ;;  %v12787_v12 = vld [vmem:[#allocation19 + $0x264] sm:$0xf] }
 0x121   :  { %v9391_v20 = vor.u32 %v12803_v17, %v9388_v18  ;;  %v9324_v13 = vld [vmem:[#allocation19 + $0x270] sm:$0xf0]  ;;  %v14511_v17 = vpop.f32.mrf.mxu2  ;;  %v14513_v18 = vpop.f32.mrf.mxu3 }
 0x122   :  { %v9327_v14 = vor.u32 %v12787_v12, %v9324_v13  ;;  %v9452_v16 = vld [vmem:[#allocation19 + $0x370] sm:$0xf0]  ;;  %v12743_v13 = vld [vmem:[#allocation19 + $0x104] sm:$0xf] }
 0x123   :  { %2150 = vmatpush.bf16.msra.mxu0 %v9355_v26  ;;  %2164 = vmatpush.bf16.msra.mxu1 %v9483_v27  ;;  %v9162_v26 = vld [vmem:[#allocation19 + $0x120] sm:$0xf]  ;;  %v12749_v27 = vld [vmem:[#allocation19 + $0x12c] sm:$0xf0] }
 0x124   :  { %2122 = vmatpush.bf16.msrb.mxu2 %v9099_v32  ;;  %2136 = vmatpush.bf16.msrb.mxu3 %v9227_v33  ;;  %v9163_v29 = vor.u32 %v12749_v27, %v9162_v26  ;;  %v12831_v32 = vld [vmem:[#allocation19 + $0x3c4] sm:$0xf]  ;;  %v9375_v33 = vor.u32 %v12799_v30, %v9372_v31  ;;  %v9308_v27 = vld [vmem:[#allocation19 + $0x250] sm:$0xf0] }
 0x125   :  { %v9503_v37 = vor.u32 %v12831_v32, %v9500_v34  ;;  %v12783_v26 = vld [vmem:[#allocation19 + $0x244] sm:$0xf]  ;;  %v9436_v32 = vld [vmem:[#allocation19 + $0x350] sm:$0xf0] }
 0x126   :  { %v9311_v31 = vor.u32 %v12783_v26, %v9308_v27  ;;  %v12723_v34 = vld [vmem:[#allocation19 + $0x64] sm:$0xf] }
 0x127   :  { %2151 = vmatpush.bf16.msra.mxu0 %v9339_v40  ;;  %2165 = vmatpush.bf16.msra.mxu1 %v9467_v41  ;;  %v12745_v40 = vld [vmem:[#allocation19 + $0x10c] sm:$0xf0]  ;;  %v12739_v41 = vld [vmem:[#allocation19 + $0xe4] sm:$0xf]  ;;  %v9071_v36 = vor.u32 %v12723_v34, %v9068_v35 }
 0x128   :  { %2123 = vmatpush.bf16.msrb.mxu2 %v9083_v46  ;;  %2137 = vmatpush.bf16.msrb.mxu3 %v9211_v47  ;;  %v9147_v42 = vor.u32 %v12745_v40, %v9146_v39  ;;  %v9135_v46 = vor.u32 %v12739_v41, %v9132_v43  ;;  %v9263_v47 = vor.u32 %v12771_v44, %v9260_v45  ;;  %v12779_v40 = vld [vmem:[#allocation19 + $0x224] sm:$0xf]  ;;  %v9292_v41 = vld [vmem:[#allocation19 + $0x230] sm:$0xf0] }
 0x129   :  { %1256 = vmatmul.bf16.vlgmr.msra.gmra.mxu2 %v14501_v52  ;;  %1270 = vmatmul.bf16.vlgmr.msra.gmra.mxu3 %v14501_v52  ;;  %v9295_v43 = vor.u32 %v12779_v40, %v9292_v41  ;;  %v9420_v44 = vld [vmem:[#allocation19 + $0x330] sm:$0xf0]  ;;  %v9394_v41 = vld [vmem:[#allocation19 + $0x2e8] sm:$0xf] }
 0x12a   :  { %1284 = vmatmul.bf16.vlgmr.msrb.gmra.mxu0 %v14501_v52  ;;  %1298 = vmatmul.bf16.vlgmr.msrb.gmra.mxu1 %v14501_v52 }
 0x12b   :  { %2152 = vmatpush.bf16.msra.mxu0 %v9323_v53  ;;  %2166 = vmatpush.bf16.msra.mxu1 %v9451_v54  ;;  %v9484_v53 = vld [vmem:[#allocation19 + $0x3b0] sm:$0xf0] }
 0x12c   :  { %2124 = vmatpush.bf16.msrb.mxu2 %v9067_v59  ;;  %2138 = vmatpush.bf16.msrb.mxu3 %v9195_v60  ;;  %v9487_v54 = vor.u32 %v12827_v50, %v9484_v53  ;;  %v14509_v59 = vpop.f32.mrf.mxu1  ;;  %v9119_v60 = vor.u32 %v12735_v55, %v9116_v56  ;;  %v9180_v50 = vld [vmem:[#allocation19 + $0x150] sm:$0xf0]  ;;  %v14521_v53 = vpop.f32.mrf.mxu3  ;;  %v12775_v55 = vld [vmem:[#allocation19 + $0x204] sm:$0xf] }
 0x12d   :  { %v9276_v56 = vld [vmem:[#allocation19 + $0x210] sm:$0xf0] }
 0x12f   :  { %2153 = vmatpush.bf16.msra.mxu0 %v9307_v62  ;;  %2167 = vmatpush.bf16.msra.mxu1 %v9435_v63  ;;  %v9244_v62 = vld [vmem:[#allocation19 + $0x1d0] sm:$0xf0] }
 0x130   :  { %2125 = vmatpush.bf16.msrb.mxu2 %v9051_v9  ;;  %2139 = vmatpush.bf16.msrb.mxu3 %v9179_v11  ;;  %v9247_v63 = vor.u32 %v12767_v57, %v9244_v62  ;;  %v9103_v9 = vor.u32 %v12731_v6, %v9100_v7  ;;  %v9231_v11 = vor.u32 %v12763_v8, %v9228_v10  ;;  %v12807_v57 = vld [vmem:[#allocation19 + $0x304] sm:$0xf]  ;;  %v9404_v62 = vld [vmem:[#allocation19 + $0x310] sm:$0xf0] }
 0x131   :  { %v9164_v6 = vld [vmem:[#allocation19 + $0x130] sm:$0xf0]  ;;  %v12711_v8 = vld [vmem:[#allocation19 + $0x4] sm:$0xf] }
 0x133   :  { %2154 = vmatpush.bf16.msra.mxu0 %v9291_v4  ;;  %2168 = vmatpush.bf16.msra.mxu1 %v9419_v5  ;;  %v9468_v4 = vld [vmem:[#allocation19 + $0x390] sm:$0xf0] }
 0x134   :  { %2126 = vmatpush.bf16.msrb.mxu2 %v9035_v28  ;;  %2140 = vmatpush.bf16.msrb.mxu3 %v9163_v29  ;;  %v9471_v5 = vor.u32 %v12823_v2, %v9468_v4  ;;  %v12815_v28 = vld [vmem:[#allocation19 + $0x344] sm:$0xf]  ;;  %v14515_v29 = vpop.f32.mrf.mxu0  ;;  %v14517_v30 = vpop.f32.mrf.mxu1 }
 0x135   :  { %v12715_v2 = vld [vmem:[#allocation19 + $0x24] sm:$0xf] }
 0x136   :  { %v12747_v4 = vld [vmem:[#allocation19 + $0x124] sm:$0xf] }
 0x137   :  { %2155 = vmatpush.bf16.msra.mxu0 %v9275_v15  ;;  %2169 = vmatpush.bf16.msra.mxu1 %v9403_v19  ;;  %v12819_v15 = vld [vmem:[#allocation19 + $0x364] sm:$0xf]  ;;  %v9167_v7 = vor.u32 %v12747_v4, %v9164_v6  ;;  %v12802_v6 = vld [vmem:[#allocation19 + $0x2d4] sm:$0xf0] }
 0x138   :  { %2127 = vmatpush.bf16.msrb.mxu2 %v9019_v38  ;;  %2141 = vmatpush.bf16.msrb.mxu3 %v9147_v42  ;;  %v9455_v19 = vor.u32 %v12819_v15, %v9452_v16  ;;  %v9196_v38 = vld [vmem:[#allocation19 + $0x170] sm:$0xf0]  ;;  %v12811_v42 = vld [vmem:[#allocation19 + $0x324] sm:$0xf] }
 0x139   :  { %v9423_v45 = vor.u32 %v12811_v42, %v9420_v44  ;;  %v12806_v44 = vld [vmem:[#allocation19 + $0x2f4] sm:$0xf0] }
 0x13b   :  { %2204 = vmatpush.bf16.msrb.mxu0 %v9391_v20  ;;  %2218 = vmatpush.bf16.msrb.mxu1 %v9519_v24  ;;  %v12727_v20 = vld [vmem:[#allocation19 + $0x84] sm:$0xf]  ;;  %v9212_v24 = vld [vmem:[#allocation19 + $0x190] sm:$0xf0] }
 0x13c   :  { %2176 = vmatpush.bf16.msra.mxu2 %v9135_v46  ;;  %2190 = vmatpush.bf16.msra.mxu3 %v9263_v47  ;;  %v9087_v23 = vor.u32 %v12727_v20, %v9084_v21  ;;  %v9215_v25 = vor.u32 %v12759_v22, %v9212_v24  ;;  %v12719_v46 = vld [vmem:[#allocation19 + $0x44] sm:$0xf]  ;;  %v9052_v47 = vld [vmem:[#allocation19 + $0x50] sm:$0xf0] }
 0x13d   :  { %v9055_v49 = vor.u32 %v12719_v46, %v9052_v47  ;;  %v1312_v24 = vld [vmem:[%s14951_s7] sm:$0xf]  ;;  %v12838_v46 = vld [vmem:[#allocation19 + $0x3f4] sm:$0xf0] }
 0x13f   :  { %2205 = vmatpush.bf16.msrb.mxu0 %v9375_v33  ;;  %2219 = vmatpush.bf16.msrb.mxu1 %v9503_v37  ;;  %v9439_v33 = vor.u32 %v12815_v28, %v9436_v32  ;;  %v12755_v37 = vld [vmem:[#allocation19 + $0x164] sm:$0xf]  ;;  %v1316_v28 = vperm.slane %v1312_v24, 2  ;;  %v1317_v32 = vperm.slane %v1312_v24, 3 }
 0x140   :  { %2177 = vmatpush.bf16.msra.mxu2 %v9119_v60  ;;  %2191 = vmatpush.bf16.msra.mxu3 %v9247_v63  ;;  %v9199_v39 = vor.u32 %v12755_v37, %v9196_v38  ;;  %v9279_v60 = vor.u32 %v12775_v55, %v9276_v56  ;;  %v9407_v63 = vor.u32 %v12807_v57, %v9404_v62 }
 0x143   :  { %2206 = vmatpush.bf16.msrb.mxu0 %v9359_v51  ;;  %2220 = vmatpush.bf16.msrb.mxu1 %v9487_v54  ;;  %v14519_v51 = vpop.f32.mrf.mxu2  ;;  %v9183_v54 = vor.u32 %v12751_v48, %v9180_v50  ;;  %v1314_v48 = vperm.slane %v1312_v24, 0 }
 0x144   :  { %2178 = vmatpush.bf16.msra.mxu2 %v9103_v9  ;;  %2192 = vmatpush.bf16.msra.mxu3 %v9231_v11  ;;  %v9020_v9 = vld [vmem:[#allocation19 + $0x10] sm:$0xf0] }
 0x145   :  { %v9023_v12 = vor.u32 %v12711_v8, %v9020_v9  ;;  %v12834_v8 = vld [vmem:[#allocation19 + $0x3d4] sm:$0xf0] }
 0x147   :  { %2207 = vmatpush.bf16.msrb.mxu0 %v9343_v3  ;;  %2221 = vmatpush.bf16.msrb.mxu1 %v9471_v5  ;;  %v9036_v3 = vld [vmem:[#allocation19 + $0x30] sm:$0xf0] }
 0x148   :  { %2179 = vmatpush.bf16.msra.mxu2 %v9087_v23  ;;  %2193 = vmatpush.bf16.msra.mxu3 %v9215_v25  ;;  %v9039_v5 = vor.u32 %v12715_v2, %v9036_v3 }
 0x14b   :  { %2208 = vmatpush.bf16.msrb.mxu0 %v9327_v14  ;;  %2222 = vmatpush.bf16.msrb.mxu1 %v9455_v19  ;;  %v9148_v14 = vld [vmem:[#allocation19 + $0x110] sm:$0xf0] }
 0x14c   :  { %2180 = vmatpush.bf16.msra.mxu2 %v9071_v36  ;;  %2194 = vmatpush.bf16.msra.mxu3 %v9199_v39  ;;  %v9151_v15 = vor.u32 %v12743_v13, %v9148_v14  ;;  %v12742_v14 = vld [vmem:[#allocation19 + $0xf4] sm:$0xf0] }
 0x14f   :  { %2209 = vmatpush.bf16.msrb.mxu0 %v9311_v31  ;;  %2223 = vmatpush.bf16.msrb.mxu1 %v9439_v33 }
 0x150   :  { %2181 = vmatpush.bf16.msra.mxu2 %v9055_v49  ;;  %2195 = vmatpush.bf16.msra.mxu3 %v9183_v54  ;;  %v9395_v54 = vor.u32 %v12806_v44, %v9394_v41  ;;  %v9474_v41 = vld [vmem:[#allocation19 + $0x388] sm:$0xf]  ;;  %v12734_v44 = vld [vmem:[#allocation19 + $0xb4] sm:$0xf0] }
 0x153   :  { %2210 = vmatpush.bf16.msrb.mxu0 %v9295_v43  ;;  %2224 = vmatpush.bf16.msrb.mxu1 %v9423_v45  ;;  %v9522_v45 = vld [vmem:[#allocation19 + $0x3e8] sm:$0xf] }
 0x154   :  { %2182 = vmatpush.bf16.msra.mxu2 %v9039_v5  ;;  %2196 = vmatpush.bf16.msra.mxu3 %v9167_v7  ;;  %v9523_v55 = vor.u32 %v12838_v46, %v9522_v45  ;;  %v9506_v7 = vld [vmem:[#allocation19 + $0x3c8] sm:$0xf]  ;;  %v12766_v46 = vld [vmem:[#allocation19 + $0x1b4] sm:$0xf0] }
 0x155   :  { %v9507_v13 = vor.u32 %v12834_v8, %v9506_v7  ;;  %v9234_v45 = vld [vmem:[#allocation19 + $0x1a8] sm:$0xf]  ;;  %v12758_v8 = vld [vmem:[#allocation19 + $0x174] sm:$0xf0] }
 0x156   :  { %v9202_v7 = vld [vmem:[#allocation19 + $0x168] sm:$0xf] }
 0x157   :  { %2211 = vmatpush.bf16.msrb.mxu0 %v9279_v60  ;;  %2225 = vmatpush.bf16.msrb.mxu1 %v9407_v63 }
 0x158   :  { %2183 = vmatpush.bf16.msra.mxu2 %v9023_v12  ;;  %2197 = vmatpush.bf16.msra.mxu3 %v9151_v15  ;;  %v9266_v15 = vld [vmem:[#allocation19 + $0x1e8] sm:$0xf] }
 0x197   :  { %v1037_v0 = vpop.f32.mrf.mxu0  ;;  %v1051_v1 = vpop.f32.mrf.mxu1 }
 0x198   :  { %v1038_v25 = vadd.f32 %v1037_v0, %v14507_v58  ;;  %v1052_v26 = vadd.f32 %v1051_v1, %v14509_v59  ;;  %v9378_v1 = vld [vmem:[#allocation19 + $0x2c8] sm:$0xf] }
 0x199   :  { %v9379_v12 = vor.u32 %v12802_v6, %v9378_v1  ;;  %v9442_v1 = vld [vmem:[#allocation19 + $0x348] sm:$0xf]  ;;  %v12726_v6 = vld [vmem:[#allocation19 + $0x74] sm:$0xf0] }
 0x19c   :  { %v1009_v10 = vpop.f32.mrf.mxu2  ;;  %v1023_v11 = vpop.f32.mrf.mxu3 }
 0x19d   :  { %v1010_v37 = vadd.f32 %v1009_v10, %v14511_v17  ;;  %v1024_v38 = vadd.f32 %v1023_v11, %v14513_v18  ;;  %v9138_v11 = vld [vmem:[#allocation19 + $0xe8] sm:$0xf] }
 0x19f   :  { %v1039_v16 = vpop.f32.mrf.mxu0  ;;  %v1053_v19 = vpop.f32.mrf.mxu1 }
 0x1a0   :  { %v1040_v35 = vadd.f32 %v1039_v16, %v14515_v29  ;;  %v1054_v36 = vadd.f32 %v1053_v19, %v14517_v30  ;;  %v1315_v29 = vperm.slane %v1312_v24, 1  ;;  %v12774_v16 = vld [vmem:[#allocation19 + $0x1f4] sm:$0xf0] }
 0x1a1   :  { %v12798_v24 = vld [vmem:[#allocation19 + $0x2b4] sm:$0xf0] }
 0x1a4   :  { %v1011_v20 = vpop.f32.mrf.mxu2  ;;  %v1025_v21 = vpop.f32.mrf.mxu3 }
 0x1a5   :  { %v1012_v17 = vadd.f32 %v1011_v20, %v14519_v51  ;;  %v1026_v18 = vadd.f32 %v1025_v21, %v14521_v53 }
 0x1a7   :  { %v1285_v22 = vpop.f32.mrf.mxu0  ;;  %v1299_v23 = vpop.f32.mrf.mxu1 }
 0x1a8   :  { %v1306_v27 = vadd.f32 %v1285_v22, %v1038_v25  ;;  %v1307_v31 = vadd.f32 %v1299_v23, %v1052_v26  ;;  %v9362_v23 = vld [vmem:[#allocation19 + $0x2a8] sm:$0xf]  ;;  %v12830_v26 = vld [vmem:[#allocation19 + $0x3b4] sm:$0xf0] }
 0x1a9   :  { %v9490_v25 = vld [vmem:[#allocation19 + $0x3a8] sm:$0xf] }
 0x1aa   :  { %v1324_v58 = vadd.f32 %v1316_v28, %v1306_v27  ;;  %v1325_v42 = vadd.f32 %v1317_v32, %v1307_v31  ;;  %v9139_v31 = vor.u32 %v12742_v14, %v9138_v11  ;;  %v9298_v11 = vld [vmem:[#allocation19 + $0x228] sm:$0xf]  ;;  %v12814_v14 = vld [vmem:[#allocation19 + $0x334] sm:$0xf0] }
 0x1ac   :  { %v1257_v33 = vpop.f32.mrf.mxu2  ;;  %v1271_v34 = vpop.f32.mrf.mxu3  ;;  %v1332_v56 = vmax.f32 %v1324_v58, 0.0  ;;  %v1333_v57 = vmax.f32 %v1325_v42, 0.0  ;;  %v12826_v58 = vld [vmem:[#allocation19 + $0x394] sm:$0xf0] }
 0x1ad   :  { %v1304_v47 = vadd.f32 %v1257_v33, %v1010_v37  ;;  %v1305_v49 = vadd.f32 %v1271_v34, %v1024_v38  ;;  %v9122_v33 = vld [vmem:[#allocation19 + $0xc8] sm:$0xf]  ;;  %v12738_v34 = vld [vmem:[#allocation19 + $0xd4] sm:$0xf0]  ;;  %v9363_v37 = vor.u32 %v12798_v24, %v9362_v23  ;;  %v9491_v38 = vor.u32 %v12830_v26, %v9490_v25 }
 0x1ae   :  { %v9123_v42 = vor.u32 %v12738_v34, %v9122_v33  ;;  %v9282_v25 = vld [vmem:[#allocation19 + $0x208] sm:$0xf]  ;;  %v12778_v26 = vld [vmem:[#allocation19 + $0x214] sm:$0xf0]  ;;  %v12804_v33 = vld [vmem:[#allocation19 + $0x2ec] sm:$0xf] }
 0x1af   :  { %v1287_v39 = vpop.f32.mrf.mxu0  ;;  %v1301_v40 = vpop.f32.mrf.mxu1  ;;  %v1322_v2 = vadd.f32 %v1314_v48, %v1304_v47  ;;  %v1323_v3 = vadd.f32 %v1315_v29, %v1305_v49  ;;  %v9330_v49 = vld [vmem:[#allocation19 + $0x268] sm:$0xf]  ;;  %v9396_v34 = vld [vmem:[#allocation19 + $0x2f8] sm:$0xf0] }
 0x1b0   :  { %v1310_v59 = vadd.f32 %v1287_v39, %v1040_v35  ;;  %v1311_v43 = vadd.f32 %v1301_v40, %v1054_v36  ;;  %v9250_v35 = vld [vmem:[#allocation19 + $0x1c8] sm:$0xf]  ;;  %v12770_v36 = vld [vmem:[#allocation19 + $0x1d4] sm:$0xf0] }
 0x1b1   :  { %v1330_v19 = vmax.f32 %v1322_v2, 0.0  ;;  %v1331_v20 = vmax.f32 %v1323_v3, 0.0  ;;  %v9346_v39 = vld [vmem:[#allocation19 + $0x288] sm:$0xf]  ;;  %v12794_v40 = vld [vmem:[#allocation19 + $0x294] sm:$0xf0] }
 0x1b2   :  { %v1328_v50 = vadd.f32 %v1316_v28, %v1310_v59  ;;  %v1329_v30 = vadd.f32 %v1317_v32, %v1311_v43  ;;  %v9267_v32 = vor.u32 %v12774_v16, %v9266_v15  ;;  %v9251_v59 = vor.u32 %v12770_v36, %v9250_v35  ;;  %v9106_v43 = vld [vmem:[#allocation19 + $0xa8] sm:$0xf]  ;;  %v12818_v2 = vld [vmem:[#allocation19 + $0x354] sm:$0xf0] }
 0x1b3   :  { %v9347_v47 = vor.u32 %v12794_v40, %v9346_v39  ;;  %v9203_v16 = vor.u32 %v12758_v8, %v9202_v7  ;;  %v9042_v39 = vld [vmem:[#allocation19 + $0x28] sm:$0xf]  ;;  %v12718_v40 = vld [vmem:[#allocation19 + $0x34] sm:$0xf0]  ;;  %v12736_v7 = vld [vmem:[#allocation19 + $0xcc] sm:$0xf] }
 0x1b4   :  { %v1336_v60 = vmax.f32 %v1328_v50, 0.0  ;;  %v1337_v62 = vmax.f32 %v1329_v30, 0.0  ;;  %v1259_v63 = vpop.f32.mrf.mxu2  ;;  %v1273_v0 = vpop.f32.mrf.mxu3  ;;  %v9458_v50 = vld [vmem:[#allocation19 + $0x368] sm:$0xf]  ;;  %v12822_v30 = vld [vmem:[#allocation19 + $0x374] sm:$0xf0] }
 0x1b5   :  { %v1308_v4 = vadd.f32 %v1259_v63, %v1012_v17  ;;  %v1309_v5 = vadd.f32 %v1273_v0, %v1026_v18  ;;  %v9107_v17 = vor.u32 %v12734_v44, %v9106_v43  ;;  %v9235_v18 = vor.u32 %v12766_v46, %v9234_v45  ;;  %v9314_v63 = vld [vmem:[#allocation19 + $0x248] sm:$0xf]  ;;  %v12786_v0 = vld [vmem:[#allocation19 + $0x254] sm:$0xf0]  ;;  %v12800_v45 = vld [vmem:[#allocation19 + $0x2cc] sm:$0xf] }
 0x1b6   :  { %v14534_v9 = vpack.c.bf16 %v1336_v60, %v1332_v56  ;;  %v14536_v51 = vpack.c.bf16 %v1337_v62, %v1333_v57  ;;  %v9218_v56 = vld [vmem:[#allocation19 + $0x188] sm:$0xf]  ;;  %v12762_v57 = vld [vmem:[#allocation19 + $0x194] sm:$0xf0]  ;;  %v9459_v62 = vor.u32 %v12822_v30, %v9458_v50  ;;  %v9399_v43 = vor.u32 %v12804_v33, %v9396_v34  ;;  %v9380_v46 = vld [vmem:[#allocation19 + $0x2d8] sm:$0xf0] }
 0x1b7   :  { %v1326_v53 = vadd.f32 %v1314_v48, %v1308_v4  ;;  %v1327_v10 = vadd.f32 %v1315_v29, %v1309_v5  ;;  %v9475_v48 = vor.u32 %v12826_v58, %v9474_v41  ;;  %v12790_v29 = vld [vmem:[#allocation19 + $0x274] sm:$0xf0]  ;;  %v9219_v4 = vor.u32 %v12762_v57, %v9218_v56  ;;  %v9074_v5 = vld [vmem:[#allocation19 + $0x68] sm:$0xf]  ;;  %v12772_v56 = vld [vmem:[#allocation19 + $0x1ec] sm:$0xf] }
 0x1b8   :  { %2156 = vmatmul.bf16.vlgmr.msra.gmra.mxu0 %v14534_v9  ;;  %2170 = vmatmul.bf16.vlgmr.msra.gmra.mxu1 %v14536_v51  ;;  %v9331_v60 = vor.u32 %v12790_v29, %v9330_v49  ;;  %v9075_v15 = vor.u32 %v12726_v6, %v9074_v5  ;;  %v9170_v41 = vld [vmem:[#allocation19 + $0x128] sm:$0xf]  ;;  %v12750_v58 = vld [vmem:[#allocation19 + $0x134] sm:$0xf0]  ;;  %v9508_v29 = vld [vmem:[#allocation19 + $0x3d8] sm:$0xf0] }
 0x1b9   :  { %v1334_v21 = vmax.f32 %v1326_v53, 0.0  ;;  %v1335_v22 = vmax.f32 %v1327_v10, 0.0  ;;  %2260 = vmatpush.bf16.msra.mxu0 %v9395_v54  ;;  %2274 = vmatpush.bf16.msra.mxu1 %v9523_v55  ;;  %v9090_v54 = vld [vmem:[#allocation19 + $0x88] sm:$0xf]  ;;  %v12730_v55 = vld [vmem:[#allocation19 + $0x94] sm:$0xf0]  ;;  %v9315_v53 = vor.u32 %v12786_v0, %v9314_v63  ;;  %v9443_v10 = vor.u32 %v12818_v2, %v9442_v1 }
 0x1ba   :  { %v9091_v3 = vor.u32 %v12730_v55, %v9090_v54  ;;  %v9171_v49 = vor.u32 %v12750_v58, %v9170_v41  ;;  %v9026_v50 = vld [vmem:[#allocation19 + $0x8] sm:$0xf]  ;;  %v12714_v30 = vld [vmem:[#allocation19 + $0x14] sm:$0xf0]  ;;  %v12740_v54 = vld [vmem:[#allocation19 + $0xec] sm:$0xf] }
 0x1bb   :  { %v14540_v27 = vpack.c.bf16 %v1334_v21, %v1330_v19  ;;  %v14542_v28 = vpack.c.bf16 %v1335_v22, %v1331_v20  ;;  %v9058_v19 = vld [vmem:[#allocation19 + $0x48] sm:$0xf]  ;;  %v12722_v20 = vld [vmem:[#allocation19 + $0x54] sm:$0xf0]  ;;  %v9140_v55 = vld [vmem:[#allocation19 + $0xf8] sm:$0xf0]  ;;  %v9027_v0 = vor.u32 %v12714_v30, %v9026_v50 }
 0x1bc   :  { %v9186_v21 = vld [vmem:[#allocation19 + $0x148] sm:$0xf]  ;;  %v12754_v22 = vld [vmem:[#allocation19 + $0x154] sm:$0xf0]  ;;  %v9059_v35 = vor.u32 %v12722_v20, %v9058_v19  ;;  %v9268_v57 = vld [vmem:[#allocation19 + $0x1f8] sm:$0xf0]  ;;  %v9143_v5 = vor.u32 %v12740_v54, %v9140_v55 }
 0x1bd   :  { %2261 = vmatpush.bf16.msra.mxu0 %v9379_v12  ;;  %2275 = vmatpush.bf16.msra.mxu1 %v9507_v13  ;;  %v12782_v12 = vld [vmem:[#allocation19 + $0x234] sm:$0xf0]  ;;  %v9426_v13 = vld [vmem:[#allocation19 + $0x328] sm:$0xf]  ;;  %v9187_v36 = vor.u32 %v12754_v22, %v9186_v21  ;;  %v12796_v63 = vld [vmem:[#allocation19 + $0x2ac] sm:$0xf]  ;;  %v9271_v6 = vor.u32 %v12772_v56, %v9268_v57 }
 0x1be   :  { %2128 = vmatmul.bf16.vlgmr.msrb.gmra.mxu2 %v14540_v27  ;;  %2142 = vmatmul.bf16.vlgmr.msrb.gmra.mxu3 %v14542_v28  ;;  %v9299_v23 = vor.u32 %v12782_v12, %v9298_v11  ;;  %v9427_v24 = vor.u32 %v12814_v14, %v9426_v13  ;;  %v9364_v2 = vld [vmem:[#allocation19 + $0x2b8] sm:$0xf0]  ;;  %v12792_v13 = vld [vmem:[#allocation19 + $0x28c] sm:$0xf] }
 0x1bf   :  { %2232 = vmatpush.bf16.msrb.mxu2 %v9139_v31  ;;  %2246 = vmatpush.bf16.msrb.mxu3 %v9267_v32  ;;  %v9410_v31 = vld [vmem:[#allocation19 + $0x308] sm:$0xf]  ;;  %v12810_v32 = vld [vmem:[#allocation19 + $0x314] sm:$0xf0]  ;;  %v9124_v8 = vld [vmem:[#allocation19 + $0xd8] sm:$0xf0]  ;;  %v9367_v11 = vor.u32 %v12796_v63, %v9364_v2 }
 0x1c0   :  { %v9348_v14 = vld [vmem:[#allocation19 + $0x298] sm:$0xf0]  ;;  %v9127_v19 = vor.u32 %v12736_v7, %v9124_v8  ;;  %v12732_v21 = vld [vmem:[#allocation19 + $0xac] sm:$0xf] }
 0x1c1   :  { %2262 = vmatpush.bf16.msra.mxu0 %v9363_v37  ;;  %2276 = vmatpush.bf16.msra.mxu1 %v9491_v38  ;;  %v12836_v37 = vld [vmem:[#allocation19 + $0x3ec] sm:$0xf]  ;;  %v9524_v38 = vld [vmem:[#allocation19 + $0x3f8] sm:$0xf0] }
 0x1c2   :  { %v9527_v44 = vor.u32 %v12836_v37, %v9524_v38  ;;  %v9108_v22 = vld [vmem:[#allocation19 + $0xb8] sm:$0xf0]  ;;  %v12820_v33 = vld [vmem:[#allocation19 + $0x36c] sm:$0xf] }
 0x1c3   :  { %2233 = vmatpush.bf16.msrb.mxu2 %v9123_v42  ;;  %2247 = vmatpush.bf16.msrb.mxu3 %v9251_v59  ;;  %v9283_v42 = vor.u32 %v12778_v26, %v9282_v25  ;;  %v9411_v59 = vor.u32 %v12810_v32, %v9410_v31  ;;  %v9351_v25 = vor.u32 %v12792_v13, %v9348_v14  ;;  %v12788_v31 = vld [vmem:[#allocation19 + $0x26c] sm:$0xf]  ;;  %v9332_v32 = vld [vmem:[#allocation19 + $0x278] sm:$0xf0] }
 0x1c4   :  { %v9460_v34 = vld [vmem:[#allocation19 + $0x378] sm:$0xf0]  ;;  %v12728_v37 = vld [vmem:[#allocation19 + $0x8c] sm:$0xf]  ;;  %v9335_v41 = vor.u32 %v12788_v31, %v9332_v32 }
 0x1c5   :  { %2263 = vmatpush.bf16.msra.mxu0 %v9347_v47  ;;  %2277 = vmatpush.bf16.msra.mxu1 %v9475_v48  ;;  %v12832_v47 = vld [vmem:[#allocation19 + $0x3cc] sm:$0xf]  ;;  %v9043_v48 = vor.u32 %v12718_v40, %v9042_v39  ;;  %v9092_v38 = vld [vmem:[#allocation19 + $0x98] sm:$0xf0]  ;;  %v9463_v58 = vor.u32 %v12820_v33, %v9460_v34  ;;  %v9626_v34 = vld [vmem:[#allocation20 + $0xc0] sm:$0xf] }
 0x1c6   :  { %v12760_v39 = vld [vmem:[#allocation19 + $0x18c] sm:$0xf]  ;;  %v9220_v40 = vld [vmem:[#allocation19 + $0x198] sm:$0xf0] }
 0x1c7   :  { %2234 = vmatpush.bf16.msrb.mxu2 %v9107_v17  ;;  %2248 = vmatpush.bf16.msrb.mxu3 %v9235_v18  ;;  %v9154_v17 = vld [vmem:[#allocation19 + $0x108] sm:$0xf]  ;;  %v12746_v18 = vld [vmem:[#allocation19 + $0x114] sm:$0xf0]  ;;  %v12812_v54 = vld [vmem:[#allocation19 + $0x32c] sm:$0xf] }
 0x1c8   :  { %2212 = vmatmul.bf16.vlgmr.msrb.gmra.mxu0 %v14534_v9  ;;  %2226 = vmatmul.bf16.vlgmr.msrb.gmra.mxu1 %v14536_v51  ;;  %v9155_v1 = vor.u32 %v12746_v18, %v9154_v17  ;;  %v12780_v17 = vld [vmem:[#allocation19 + $0x22c] sm:$0xf]  ;;  %v9300_v18 = vld [vmem:[#allocation19 + $0x238] sm:$0xf0] }
 0x1c9   :  { %2264 = vmatpush.bf16.msra.mxu0 %v9331_v60  ;;  %2278 = vmatpush.bf16.msra.mxu1 %v9459_v62  ;;  %v9383_v60 = vor.u32 %v12800_v45, %v9380_v46  ;;  %v9511_v62 = vor.u32 %v12832_v47, %v9508_v29  ;;  %v9095_v45 = vor.u32 %v12728_v37, %v9092_v38  ;;  %v12724_v47 = vld [vmem:[#allocation19 + $0x6c] sm:$0xf]  ;;  %v9204_v29 = vld [vmem:[#allocation19 + $0x178] sm:$0xf0]  ;;  %v9754_v37 = vld [vmem:[#allocation20 + $0x1c0] sm:$0xf] }
 0x1ca   :  { %v9223_v46 = vor.u32 %v12760_v39, %v9220_v40  ;;  %v9428_v55 = vld [vmem:[#allocation19 + $0x338] sm:$0xf0]  ;;  %v12752_v63 = vld [vmem:[#allocation19 + $0x14c] sm:$0xf]  ;;  %v12897_v38 = vld [vmem:[#allocation20 + $0x1cc] sm:$0xf0] }
 0x1cb   :  { %2235 = vmatpush.bf16.msrb.mxu2 %v9091_v3  ;;  %2249 = vmatpush.bf16.msrb.mxu3 %v9219_v4  ;;  %v12828_v3 = vld [vmem:[#allocation19 + $0x3ac] sm:$0xf]  ;;  %v9492_v4 = vld [vmem:[#allocation19 + $0x3b8] sm:$0xf0]  ;;  %v9431_v2 = vor.u32 %v12812_v54, %v9428_v55  ;;  %v9610_v40 = vld [vmem:[#allocation20 + $0xa0] sm:$0xf] }
 0x1cc   :  { %v9495_v12 = vor.u32 %v12828_v3, %v9492_v4  ;;  %v12776_v3 = vld [vmem:[#allocation19 + $0x20c] sm:$0xf]  ;;  %v9284_v4 = vld [vmem:[#allocation19 + $0x218] sm:$0xf0]  ;;  %v9722_v54 = vld [vmem:[#allocation20 + $0x180] sm:$0xf] }
 0x1cd   :  { %2265 = vmatpush.bf16.msra.mxu0 %v9315_v53  ;;  %2279 = vmatpush.bf16.msra.mxu1 %v9443_v10  ;;  %v12768_v53 = vld [vmem:[#allocation19 + $0x1cc] sm:$0xf]  ;;  %v9252_v10 = vld [vmem:[#allocation19 + $0x1d8] sm:$0xf0]  ;;  %v9287_v13 = vor.u32 %v12776_v3, %v9284_v4  ;;  %v12933_v3 = vld [vmem:[#allocation20 + $0x2ec] sm:$0xf0] }
 0x1ce   :  { %2184 = vmatmul.bf16.vlgmr.msra.gmra.mxu2 %v14540_v27  ;;  %2198 = vmatmul.bf16.vlgmr.msra.gmra.mxu3 %v14542_v28  ;;  %v9255_v20 = vor.u32 %v12768_v53, %v9252_v10  ;;  %v12716_v53 = vld [vmem:[#allocation19 + $0x2c] sm:$0xf]  ;;  %v9044_v10 = vld [vmem:[#allocation19 + $0x38] sm:$0xf0] }
 0x1cf   :  { %2236 = vmatpush.bf16.msrb.mxu2 %v9075_v15  ;;  %2250 = vmatpush.bf16.msrb.mxu3 %v9203_v16  ;;  %v12824_v15 = vld [vmem:[#allocation19 + $0x38c] sm:$0xf]  ;;  %v9476_v16 = vld [vmem:[#allocation19 + $0x398] sm:$0xf0] }
 0x1d0   :  { %v9479_v26 = vor.u32 %v12824_v15, %v9476_v16  ;;  %v9047_v15 = vor.u32 %v12716_v53, %v9044_v10  ;;  %v9690_v53 = vld [vmem:[#allocation20 + $0x140] sm:$0xf]  ;;  %v12881_v10 = vld [vmem:[#allocation20 + $0x14c] sm:$0xf0] }
 0x1d1   :  { %2266 = vmatpush.bf16.msra.mxu0 %v9299_v23  ;;  %2280 = vmatpush.bf16.msra.mxu1 %v9427_v24  ;;  %v12764_v23 = vld [vmem:[#allocation19 + $0x1ac] sm:$0xf]  ;;  %v9236_v24 = vld [vmem:[#allocation19 + $0x1b8] sm:$0xf0] }
 0x1d3   :  { %2237 = vmatpush.bf16.msrb.mxu2 %v9059_v35  ;;  %2251 = vmatpush.bf16.msrb.mxu3 %v9187_v36  ;;  %v9111_v35 = vor.u32 %v12732_v21, %v9108_v22  ;;  %v9239_v36 = vor.u32 %v12764_v23, %v9236_v24  ;;  %v12744_v21 = vld [vmem:[#allocation19 + $0x10c] sm:$0xf]  ;;  %v9156_v22 = vld [vmem:[#allocation19 + $0x118] sm:$0xf0]  ;;  %v9642_v23 = vld [vmem:[#allocation20 + $0xe0] sm:$0xf] }
 0x1d4   :  { %v12869_v24 = vld [vmem:[#allocation20 + $0xec] sm:$0xf0]  ;;  %v9159_v32 = vor.u32 %v12744_v21, %v9156_v22  ;;  %v9866_v22 = vld [vmem:[#allocation20 + $0x2a0] sm:$0xf] }
 0x1d5   :  { %2267 = vmatpush.bf16.msra.mxu0 %v9283_v42  ;;  %2281 = vmatpush.bf16.msra.mxu1 %v9411_v59  ;;  %v12784_v42 = vld [vmem:[#allocation19 + $0x24c] sm:$0xf]  ;;  %v9316_v59 = vld [vmem:[#allocation19 + $0x258] sm:$0xf0]  ;;  %v9643_v33 = vor.u32 %v12869_v24, %v9642_v23  ;;  %v12877_v21 = vld [vmem:[#allocation20 + $0x12c] sm:$0xf0] }
 0x1d6   :  { %v9319_v50 = vor.u32 %v12784_v42, %v9316_v59  ;;  %v9738_v42 = vld [vmem:[#allocation20 + $0x1a0] sm:$0xf]  ;;  %v12893_v59 = vld [vmem:[#allocation20 + $0x1ac] sm:$0xf0] }
 0x1d7   :  { %2238 = vmatpush.bf16.msrb.mxu2 %v9043_v48  ;;  %2252 = vmatpush.bf16.msrb.mxu3 %v9171_v49  ;;  %v9076_v48 = vld [vmem:[#allocation19 + $0x78] sm:$0xf0]  ;;  %v12756_v49 = vld [vmem:[#allocation19 + $0x16c] sm:$0xf]  ;;  %v12925_v24 = vld [vmem:[#allocation20 + $0x2ac] sm:$0xf0] }
 0x1d8   :  { %2268 = vmatmul.bf16.vlgmr.msra.gmra.mxu0 %v14534_v9  ;;  %2282 = vmatmul.bf16.vlgmr.msra.gmra.mxu1 %v14536_v51  ;;  %v9079_v56 = vor.u32 %v12724_v47, %v9076_v48  ;;  %v9207_v57 = vor.u32 %v12756_v49, %v9204_v29  ;;  %v12853_v47 = vld [vmem:[#allocation20 + $0x6c] sm:$0xf0]  ;;  %v9562_v49 = vld [vmem:[#allocation20 + $0x40] sm:$0xf] }
 0x1d9   :  { %2316 = vmatpush.bf16.msrb.mxu0 %v9399_v43  ;;  %2330 = vmatpush.bf16.msrb.mxu1 %v9527_v44  ;;  %v12816_v43 = vld [vmem:[#allocation19 + $0x34c] sm:$0xf]  ;;  %v9444_v44 = vld [vmem:[#allocation19 + $0x358] sm:$0xf0]  ;;  %v12849_v29 = vld [vmem:[#allocation20 + $0x4c] sm:$0xf0] }
 0x1da   :  { %v9447_v30 = vor.u32 %v12816_v43, %v9444_v44  ;;  %v9594_v43 = vld [vmem:[#allocation20 + $0x80] sm:$0xf]  ;;  %v12857_v44 = vld [vmem:[#allocation20 + $0x8c] sm:$0xf0] }
 0x1db   :  { %2239 = vmatpush.bf16.msrb.mxu2 %v9027_v0  ;;  %2253 = vmatpush.bf16.msrb.mxu3 %v9155_v1  ;;  %v9188_v0 = vld [vmem:[#allocation19 + $0x158] sm:$0xf0]  ;;  %v9303_v1 = vor.u32 %v12780_v17, %v9300_v18  ;;  %v9530_v17 = vld [vmem:[#allocation20] sm:$0xf]  ;;  %v12841_v18 = vld [vmem:[#allocation20 + $0xc] sm:$0xf0] }
 0x1dc   :  { %v9191_v8 = vor.u32 %v12752_v63, %v9188_v0  ;;  %v9531_v55 = vor.u32 %v12841_v18, %v9530_v17  ;;  %v9706_v0 = vld [vmem:[#allocation20 + $0x160] sm:$0xf]  ;;  %v12891_v17 = vld [vmem:[#allocation20 + $0x1a4] sm:$0xf] }
 0x1dd   :  { %2317 = vmatpush.bf16.msrb.mxu0 %v9383_v60  ;;  %2331 = vmatpush.bf16.msrb.mxu1 %v9511_v62  ;;  %v12720_v60 = vld [vmem:[#allocation19 + $0x4c] sm:$0xf]  ;;  %v9060_v62 = vld [vmem:[#allocation19 + $0x58] sm:$0xf0] }
 0x1de   :  { %2240 = vmatmul.bf16.vlgmr.msrb.gmra.mxu2 %v14540_v27  ;;  %2254 = vmatmul.bf16.vlgmr.msrb.gmra.mxu3 %v14542_v28  ;;  %v9063_v7 = vor.u32 %v12720_v60, %v9060_v62  ;;  %v9644_v60 = vld [vmem:[#allocation20 + $0xf0] sm:$0xf0] }
 0x1df   :  { %2288 = vmatpush.bf16.msra.mxu2 %v9143_v5  ;;  %2302 = vmatpush.bf16.msra.mxu3 %v9271_v6  ;;  %v12808_v5 = vld [vmem:[#allocation19 + $0x30c] sm:$0xf]  ;;  %v9412_v6 = vld [vmem:[#allocation19 + $0x318] sm:$0xf0] }
 0x1e0   :  { %v9415_v14 = vor.u32 %v12808_v5, %v9412_v6  ;;  %v12863_v6 = vld [vmem:[#allocation20 + $0xc4] sm:$0xf] }
 0x1e1   :  { %2318 = vmatpush.bf16.msrb.mxu0 %v9367_v11  ;;  %2332 = vmatpush.bf16.msrb.mxu1 %v9495_v12  ;;  %v12748_v11 = vld [vmem:[#allocation19 + $0x12c] sm:$0xf]  ;;  %v9172_v12 = vld [vmem:[#allocation19 + $0x138] sm:$0xf0] }
 0x1e2   :  { %v9175_v16 = vor.u32 %v12748_v11, %v9172_v12  ;;  %v9882_v11 = vld [vmem:[#allocation20 + $0x2c0] sm:$0xf]  ;;  %v9691_v12 = vor.u32 %v12881_v10, %v9690_v53  ;;  %v12883_v53 = vld [vmem:[#allocation20 + $0x164] sm:$0xf]  ;;  %v9708_v10 = vld [vmem:[#allocation20 + $0x170] sm:$0xf0] }
 0x1e3   :  { %2289 = vmatpush.bf16.msra.mxu2 %v9127_v19  ;;  %2303 = vmatpush.bf16.msra.mxu3 %v9255_v20  ;;  %v12712_v19 = vld [vmem:[#allocation19 + $0xc] sm:$0xf]  ;;  %v9028_v20 = vld [vmem:[#allocation19 + $0x18] sm:$0xf0] }
 0x1e4   :  { %v9031_v31 = vor.u32 %v12712_v19, %v9028_v20  ;;  %v9674_v20 = vld [vmem:[#allocation20 + $0x120] sm:$0xf] }
 0x1e5   :  { %2319 = vmatpush.bf16.msrb.mxu0 %v9351_v25  ;;  %2333 = vmatpush.bf16.msrb.mxu1 %v9479_v26  ;;  %v9770_v25 = vld [vmem:[#allocation20 + $0x1e0] sm:$0xf]  ;;  %v12901_v26 = vld [vmem:[#allocation20 + $0x1ec] sm:$0xf0]  ;;  %v9675_v23 = vor.u32 %v12877_v21, %v9674_v20 }
 0x1e6   :  { %v12961_v20 = vld [vmem:[#allocation20 + $0x3cc] sm:$0xf0] }
 0x1e7   :  { %2290 = vmatpush.bf16.msra.mxu2 %v9111_v35  ;;  %2304 = vmatpush.bf16.msra.mxu3 %v9239_v36  ;;  %v9771_v35 = vor.u32 %v12901_v26, %v9770_v25  ;;  %v12865_v36 = vld [vmem:[#allocation20 + $0xcc] sm:$0xf0]  ;;  %v12855_v25 = vld [vmem:[#allocation20 + $0x84] sm:$0xf]  ;;  %v9596_v26 = vld [vmem:[#allocation20 + $0x90] sm:$0xf0] }
 0x1e8   :  { %v9627_v39 = vor.u32 %v12865_v36, %v9626_v34  ;;  %v12873_v34 = vld [vmem:[#allocation20 + $0x10c] sm:$0xf0] }
 0x1e9   :  { %2320 = vmatpush.bf16.msrb.mxu0 %v9335_v41  ;;  %2334 = vmatpush.bf16.msrb.mxu1 %v9463_v58  ;;  %v9755_v41 = vor.u32 %v12897_v38, %v9754_v37  ;;  %v12861_v58 = vld [vmem:[#allocation20 + $0xac] sm:$0xf0]  ;;  %v12851_v38 = vld [vmem:[#allocation20 + $0x64] sm:$0xf] }
 0x1ea   :  { %v12921_v37 = vld [vmem:[#allocation20 + $0x28c] sm:$0xf0] }
 0x1eb   :  { %2291 = vmatpush.bf16.msra.mxu2 %v9095_v45  ;;  %2305 = vmatpush.bf16.msra.mxu3 %v9223_v46  ;;  %v9595_v45 = vor.u32 %v12857_v44, %v9594_v43  ;;  %v9578_v46 = vld [vmem:[#allocation20 + $0x60] sm:$0xf]  ;;  %v12847_v44 = vld [vmem:[#allocation20 + $0x44] sm:$0xf] }
 0x1ec   :  { %v9579_v48 = vor.u32 %v12853_v47, %v9578_v46  ;;  %v12895_v46 = vld [vmem:[#allocation20 + $0x1c4] sm:$0xf] }
 0x1ed   :  { %2321 = vmatpush.bf16.msrb.mxu0 %v9319_v50  ;;  %2335 = vmatpush.bf16.msrb.mxu1 %v9447_v30  ;;  %v9563_v50 = vor.u32 %v12849_v29, %v9562_v49  ;;  %v12845_v30 = vld [vmem:[#allocation20 + $0x2c] sm:$0xf0]  ;;  %v9818_v29 = vld [vmem:[#allocation20 + $0x240] sm:$0xf] }
 0x1ef   :  { %2292 = vmatpush.bf16.msra.mxu2 %v9079_v56  ;;  %2306 = vmatpush.bf16.msra.mxu3 %v9207_v57  ;;  %v12889_v56 = vld [vmem:[#allocation20 + $0x18c] sm:$0xf0]  ;;  %v12867_v57 = vld [vmem:[#allocation20 + $0xe4] sm:$0xf] }
 0x1f0   :  { %v9723_v62 = vor.u32 %v12889_v56, %v9722_v54  ;;  %v9647_v63 = vor.u32 %v12867_v57, %v9644_v60  ;;  %v9740_v54 = vld [vmem:[#allocation20 + $0x1b0] sm:$0xf0]  ;;  %v9802_v56 = vld [vmem:[#allocation20 + $0x220] sm:$0xf]  ;;  %v12909_v57 = vld [vmem:[#allocation20 + $0x22c] sm:$0xf0] }
 0x1f1   :  { %2322 = vmatpush.bf16.msrb.mxu0 %v9303_v1  ;;  %2336 = vmatpush.bf16.msrb.mxu1 %v9431_v2  ;;  %v12885_v1 = vld [vmem:[#allocation20 + $0x16c] sm:$0xf0]  ;;  %v9898_v2 = vld [vmem:[#allocation20 + $0x2e0] sm:$0xf]  ;;  %v9803_v60 = vor.u32 %v12909_v57, %v9802_v56 }
 0x1f2   :  { %v9707_v4 = vor.u32 %v12885_v1, %v9706_v0  ;;  %v9899_v5 = vor.u32 %v12933_v3, %v9898_v2  ;;  %v12887_v0 = vld [vmem:[#allocation20 + $0x184] sm:$0xf]  ;;  %v9724_v2 = vld [vmem:[#allocation20 + $0x190] sm:$0xf0] }
 0x1f3   :  { %2293 = vmatpush.bf16.msra.mxu2 %v9063_v7  ;;  %2307 = vmatpush.bf16.msra.mxu3 %v9191_v8  ;;  %v9628_v7 = vld [vmem:[#allocation20 + $0xd0] sm:$0xf0]  ;;  %v9727_v3 = vor.u32 %v12887_v0, %v9724_v2  ;;  %v12945_v2 = vld [vmem:[#allocation20 + $0x34c] sm:$0xf0] }
 0x1f4   :  { %v9631_v8 = vor.u32 %v12863_v6, %v9628_v7  ;;  %v10026_v6 = vld [vmem:[#allocation20 + $0x3e0] sm:$0xf] }
 0x1f5   :  { %2323 = vmatpush.bf16.msrb.mxu0 %v9287_v13  ;;  %2337 = vmatpush.bf16.msrb.mxu1 %v9415_v14  ;;  %v12929_v13 = vld [vmem:[#allocation20 + $0x2cc] sm:$0xf0] }
 0x1f6   :  { %v9883_v14 = vor.u32 %v12929_v13, %v9882_v11  ;;  %v12931_v13 = vld [vmem:[#allocation20 + $0x2e4] sm:$0xf] }
 0x1f7   :  { %2294 = vmatpush.bf16.msra.mxu2 %v9047_v15  ;;  %2308 = vmatpush.bf16.msra.mxu3 %v9175_v16  ;;  %v12859_v15 = vld [vmem:[#allocation20 + $0xa4] sm:$0xf]  ;;  %v9612_v16 = vld [vmem:[#allocation20 + $0xb0] sm:$0xf0] }
 0x1f8   :  { %2324 = vmatmul.bf16.vlgmr.msrb.gmra.mxu0 %v14534_v9  ;;  %2338 = vmatmul.bf16.vlgmr.msrb.gmra.mxu1 %v14536_v51  ;;  %v9611_v9 = vor.u32 %v12861_v58, %v9610_v40  ;;  %v9739_v51 = vor.u32 %v12893_v59, %v9738_v42  ;;  %v9615_v19 = vor.u32 %v12859_v15, %v9612_v16  ;;  %v12899_v58 = vld [vmem:[#allocation20 + $0x1e4] sm:$0xf]  ;;  %v9772_v42 = vld [vmem:[#allocation20 + $0x1f0] sm:$0xf0] }
 0x1f9   :  { %3162 = vmatpush.bf16.msra.mxu0 %v9899_v5  ;;  %v9775_v59 = vor.u32 %v12899_v58, %v9772_v42  ;;  %v12905_v5 = vld [vmem:[#allocation20 + $0x20c] sm:$0xf0]  ;;  %v14561_v16 = vld [vmem:[%s14952_s8] sm:$0xf] }
 0x1fa   :  { %v9868_v58 = vld [vmem:[#allocation20 + $0x2b0] sm:$0xf0] }
 0x1fb   :  { %2295 = vmatpush.bf16.msra.mxu2 %v9031_v31  ;;  %2309 = vmatpush.bf16.msra.mxu3 %v9159_v32  ;;  %v9867_v31 = vor.u32 %v12925_v24, %v9866_v22  ;;  %v9599_v32 = vor.u32 %v12855_v25, %v9596_v26  ;;  %v12879_v22 = vld [vmem:[#allocation20 + $0x144] sm:$0xf] }
 0x1fc   :  { %v12927_v24 = vld [vmem:[#allocation20 + $0x2c4] sm:$0xf] }
 0x1fd   :  { %3163 = vmatpush.bf16.msra.mxu0 %v9883_v14  ;;  %v9900_v14 = vld [vmem:[#allocation20 + $0x2f0] sm:$0xf0] }
 0x1fe   :  { %2296 = vmatmul.bf16.vlgmr.msra.gmra.mxu2 %v14540_v27  ;;  %2310 = vmatmul.bf16.vlgmr.msra.gmra.mxu3 %v14542_v28  ;;  %v9546_v27 = vld [vmem:[#allocation20 + $0x20] sm:$0xf]  ;;  %v9903_v15 = vor.u32 %v12931_v13, %v9900_v14  ;;  %v12907_v14 = vld [vmem:[#allocation20 + $0x224] sm:$0xf] }
 0x1ff   :  { %3134 = vmatpush.bf16.msrb.mxu2 %v9643_v33  ;;  %3148 = vmatpush.bf16.msrb.mxu3 %v9771_v35  ;;  %v9547_v28 = vor.u32 %v12845_v30, %v9546_v27  ;;  %v9658_v33 = vld [vmem:[#allocation20 + $0x100] sm:$0xf]  ;;  %v12843_v30 = vld [vmem:[#allocation20 + $0x24] sm:$0xf] }
 0x200   :  { %v9850_v35 = vld [vmem:[#allocation20 + $0x280] sm:$0xf]  ;;  %v9659_v36 = vor.u32 %v12873_v34, %v9658_v33  ;;  %v1472_v34 = vperm.slane %v14561_v16, 0 }
 0x201   :  { %3164 = vmatpush.bf16.msra.mxu0 %v9867_v31  ;;  %v9851_v40 = vor.u32 %v12921_v37, %v9850_v35  ;;  %v9884_v31 = vld [vmem:[#allocation20 + $0x2d0] sm:$0xf0]  ;;  %v9994_v35 = vld [vmem:[#allocation20 + $0x3a0] sm:$0xf] }
 0x203   :  { %3135 = vmatpush.bf16.msrb.mxu2 %v9627_v39  ;;  %3149 = vmatpush.bf16.msrb.mxu3 %v9755_v41  ;;  %v9580_v39 = vld [vmem:[#allocation20 + $0x70] sm:$0xf0] }
 0x204   :  { %v9583_v41 = vor.u32 %v12851_v38, %v9580_v39  ;;  %v12875_v38 = vld [vmem:[#allocation20 + $0x124] sm:$0xf]  ;;  %v9676_v39 = vld [vmem:[#allocation20 + $0x130] sm:$0xf0] }
 0x205   :  { %3165 = vmatpush.bf16.msra.mxu0 %v9851_v40  ;;  %v12923_v40 = vld [vmem:[#allocation20 + $0x2a4] sm:$0xf] }
 0x207   :  { %3136 = vmatpush.bf16.msrb.mxu2 %v9611_v9  ;;  %3150 = vmatpush.bf16.msrb.mxu3 %v9739_v51  ;;  %v9834_v9 = vld [vmem:[#allocation20 + $0x260] sm:$0xf]  ;;  %v12917_v51 = vld [vmem:[#allocation20 + $0x26c] sm:$0xf0] }
 0x208   :  { %v9835_v43 = vor.u32 %v12917_v51, %v9834_v9  ;;  %v9871_v9 = vor.u32 %v12923_v40, %v9868_v58  ;;  %v12963_v40 = vld [vmem:[#allocation20 + $0x3e4] sm:$0xf]  ;;  %v9634_v58 = vld [vmem:[#allocation20 + $0xc8] sm:$0xf] }
 0x20a   :  { %3166 = vmatpush.bf16.msra.mxu0 %v9835_v43  ;;  %v9978_v43 = vld [vmem:[#allocation20 + $0x380] sm:$0xf] }
 0x20b   :  { %3137 = vmatpush.bf16.msrb.mxu2 %v9595_v45  ;;  %3151 = vmatpush.bf16.msrb.mxu3 %v9723_v62  ;;  %v9564_v45 = vld [vmem:[#allocation20 + $0x50] sm:$0xf0]  ;;  %v12839_v62 = vld [vmem:[#allocation20 + $0x4] sm:$0xf] }
 0x20c   :  { %v9567_v47 = vor.u32 %v12847_v44, %v9564_v45  ;;  %v12953_v44 = vld [vmem:[#allocation20 + $0x38c] sm:$0xf0] }
 0x20d   :  { %v9979_v45 = vor.u32 %v12953_v44, %v9978_v43 }
 0x20f   :  { %3138 = vmatpush.bf16.msrb.mxu2 %v9579_v48  ;;  %3152 = vmatpush.bf16.msrb.mxu3 %v9707_v4  ;;  %v9756_v48 = vld [vmem:[#allocation20 + $0x1d0] sm:$0xf0]  ;;  %v9786_v4 = vld [vmem:[#allocation20 + $0x200] sm:$0xf] }
 0x210   :  { %v9759_v49 = vor.u32 %v12895_v46, %v9756_v48  ;;  %v9787_v7 = vor.u32 %v12905_v5, %v9786_v4  ;;  %v12871_v46 = vld [vmem:[#allocation20 + $0x104] sm:$0xf]  ;;  %v9820_v5 = vld [vmem:[#allocation20 + $0x250] sm:$0xf0] }
 0x211   :  { %v12919_v48 = vld [vmem:[#allocation20 + $0x284] sm:$0xf] }
 0x212   :  { %v12911_v4 = vld [vmem:[#allocation20 + $0x244] sm:$0xf] }
 0x213   :  { %3139 = vmatpush.bf16.msrb.mxu2 %v9563_v50  ;;  %3153 = vmatpush.bf16.msrb.mxu3 %v9691_v12  ;;  %v12913_v50 = vld [vmem:[#allocation20 + $0x24c] sm:$0xf0]  ;;  %v9711_v12 = vor.u32 %v12883_v53, %v9708_v10  ;;  %v1473_v10 = vperm.slane %v14561_v16, 1 }
 0x214   :  { %v9819_v27 = vor.u32 %v12913_v50, %v9818_v29  ;;  %v9852_v29 = vld [vmem:[#allocation20 + $0x290] sm:$0xf0] }
 0x215   :  { %v9855_v50 = vor.u32 %v12919_v48, %v9852_v29  ;;  %v10012_v48 = vld [vmem:[#allocation20 + $0x3d0] sm:$0xf0] }
 0x216   :  { %3167 = vmatpush.bf16.msra.mxu0 %v9819_v27 }
 0x217   :  { %3140 = vmatpush.bf16.msrb.mxu2 %v9547_v28  ;;  %3154 = vmatpush.bf16.msrb.mxu3 %v9675_v23  ;;  %v9548_v28 = vld [vmem:[#allocation20 + $0x30] sm:$0xf0] }
 0x218   :  { %v9551_v18 = vor.u32 %v12843_v30, %v9548_v28  ;;  %v9692_v23 = vld [vmem:[#allocation20 + $0x150] sm:$0xf0]  ;;  %v9962_v28 = vld [vmem:[#allocation20 + $0x360] sm:$0xf] }
 0x219   :  { %v9695_v26 = vor.u32 %v12879_v22, %v9692_v23  ;;  %v12870_v22 = vld [vmem:[#allocation20 + $0xf4] sm:$0xf0] }
 0x21a   :  { %3168 = vmatpush.bf16.msra.mxu0 %v9803_v60 }
 0x21b   :  { %3141 = vmatpush.bf16.msrb.mxu2 %v9531_v55  ;;  %3155 = vmatpush.bf16.msrb.mxu3 %v9659_v36  ;;  %v9743_v55 = vor.u32 %v12891_v17, %v9740_v54  ;;  %v12957_v36 = vld [vmem:[#allocation20 + $0x3ac] sm:$0xf0]  ;;  %v12915_v54 = vld [vmem:[#allocation20 + $0x264] sm:$0xf] }
 0x21c   :  { %v9995_v37 = vor.u32 %v12957_v36, %v9994_v35  ;;  %v12949_v17 = vld [vmem:[#allocation20 + $0x36c] sm:$0xf0] }
 0x21d   :  { %v12937_v35 = vld [vmem:[#allocation20 + $0x30c] sm:$0xf0] }
 0x21e   :  { %3169 = vmatpush.bf16.msra.mxu0 %v9787_v7  ;;  %v9823_v7 = vor.u32 %v12911_v4, %v9820_v5  ;;  %v12854_v4 = vld [vmem:[#allocation20 + $0x74] sm:$0xf0]  ;;  %v9778_v5 = vld [vmem:[#allocation20 + $0x1e8] sm:$0xf] }
 0x21f   :  { %3190 = vmatpush.bf16.msra.mxu2 %v9647_v63  ;;  %3204 = vmatpush.bf16.msra.mxu3 %v9775_v59  ;;  %v9532_v63 = vld [vmem:[#allocation20 + $0x10] sm:$0xf0] }
 0x220   :  { %v9535_v1 = vor.u32 %v12839_v62, %v9532_v63 }
 0x222   :  { %3218 = vmatpush.bf16.msrb.mxu0 %v9903_v15  ;;  %v9804_v15 = vld [vmem:[#allocation20 + $0x230] sm:$0xf0] }
 0x223   :  { %3191 = vmatpush.bf16.msra.mxu2 %v9631_v8  ;;  %3205 = vmatpush.bf16.msra.mxu3 %v9759_v49  ;;  %v12965_v8 = vld [vmem:[#allocation20 + $0x3ec] sm:$0xf0]  ;;  %v9807_v23 = vor.u32 %v12907_v14, %v9804_v15 }
 0x224   :  { %v10027_v11 = vor.u32 %v12965_v8, %v10026_v6 }
 0x226   :  { %3176 = vmatpush.bf16.msra.mxu1 %v10027_v11  ;;  %v9930_v11 = vld [vmem:[#allocation20 + $0x320] sm:$0xf] }
 0x227   :  { %3192 = vmatpush.bf16.msra.mxu2 %v9615_v19  ;;  %3206 = vmatpush.bf16.msra.mxu3 %v9743_v55  ;;  %v10010_v19 = vld [vmem:[#allocation20 + $0x3c0] sm:$0xf]  ;;  %v9836_v55 = vld [vmem:[#allocation20 + $0x270] sm:$0xf0] }
 0x228   :  { %v10011_v21 = vor.u32 %v12961_v20, %v10010_v19  ;;  %v9839_v57 = vor.u32 %v12915_v54, %v9836_v55 }
 0x22a   :  { %3177 = vmatpush.bf16.msra.mxu1 %v10011_v21  ;;  %v9650_v21 = vld [vmem:[#allocation20 + $0xe8] sm:$0xf] }
 0x22b   :  { %3193 = vmatpush.bf16.msra.mxu2 %v9599_v32  ;;  %3207 = vmatpush.bf16.msra.mxu3 %v9727_v3  ;;  %v9887_v32 = vor.u32 %v12927_v24, %v9884_v31  ;;  %v9651_v36 = vor.u32 %v12870_v22, %v9650_v21  ;;  %v9570_v21 = vld [vmem:[#allocation20 + $0x48] sm:$0xf]  ;;  %v12850_v22 = vld [vmem:[#allocation20 + $0x54] sm:$0xf0] }
 0x22d   :  { %3219 = vmatpush.bf16.msrb.mxu0 %v9887_v32 }
 0x22e   :  { %3178 = vmatpush.bf16.msra.mxu1 %v9995_v37 }
 0x22f   :  { %3194 = vmatpush.bf16.msra.mxu2 %v9583_v41  ;;  %3208 = vmatpush.bf16.msra.mxu3 %v9711_v12  ;;  %v9679_v41 = vor.u32 %v12875_v38, %v9676_v39  ;;  %v12941_v12 = vld [vmem:[#allocation20 + $0x32c] sm:$0xf0]  ;;  %v12903_v38 = vld [vmem:[#allocation20 + $0x204] sm:$0xf]  ;;  %v9788_v39 = vld [vmem:[#allocation20 + $0x210] sm:$0xf0] }
 0x230   :  { %v9931_v13 = vor.u32 %v12941_v12, %v9930_v11 }
 0x231   :  { %3220 = vmatpush.bf16.msrb.mxu0 %v9871_v9  ;;  %v10028_v9 = vld [vmem:[#allocation20 + $0x3f0] sm:$0xf0] }
 0x232   :  { %3179 = vmatpush.bf16.msra.mxu1 %v9979_v45  ;;  %v9618_v45 = vld [vmem:[#allocation20 + $0xa8] sm:$0xf] }
 0x233   :  { %3195 = vmatpush.bf16.msra.mxu2 %v9567_v47  ;;  %3209 = vmatpush.bf16.msra.mxu3 %v9695_v26  ;;  %v9660_v47 = vld [vmem:[#allocation20 + $0x110] sm:$0xf0] }
 0x234   :  { %v9663_v49 = vor.u32 %v12871_v46, %v9660_v47  ;;  %v12862_v46 = vld [vmem:[#allocation20 + $0xb4] sm:$0xf0]  ;;  %v12959_v47 = vld [vmem:[#allocation20 + $0x3c4] sm:$0xf] }
 0x235   :  { %v2157_v25 = vpop.f32.mrf.mxu0  ;;  %v2171_v33 = vpop.f32.mrf.mxu1  ;;  %3221 = vmatpush.bf16.msrb.mxu0 %v9855_v50  ;;  %v10015_v50 = vor.u32 %v12959_v47, %v10012_v48  ;;  %v9538_v47 = vld [vmem:[#allocation20 + $0x8] sm:$0xf]  ;;  %v12842_v48 = vld [vmem:[#allocation20 + $0x14] sm:$0xf0] }
 0x237   :  { %3196 = vmatpush.bf16.msra.mxu2 %v9551_v18  ;;  %3210 = vmatpush.bf16.msra.mxu3 %v9679_v41  ;;  %v9963_v18 = vor.u32 %v12949_v17, %v9962_v28  ;;  %v9619_v17 = vor.u32 %v12862_v46, %v9618_v45 }
 0x239   :  { %3180 = vmatpush.bf16.msra.mxu1 %v9963_v18  ;;  %3222 = vmatpush.bf16.msrb.mxu0 %v9839_v57  ;;  %v9602_v18 = vld [vmem:[#allocation20 + $0x88] sm:$0xf]  ;;  %v12955_v57 = vld [vmem:[#allocation20 + $0x3a4] sm:$0xf] }
 0x23b   :  { %3197 = vmatpush.bf16.msra.mxu2 %v9535_v1  ;;  %3211 = vmatpush.bf16.msra.mxu3 %v9663_v49  ;;  %v9946_v1 = vld [vmem:[#allocation20 + $0x340] sm:$0xf] }
 0x23c   :  { %v9947_v3 = vor.u32 %v12945_v2, %v9946_v1  ;;  %v1474_v1 = vperm.slane %v14561_v16, 2 }
 0x23d   :  { %v2159_v27 = vpop.f32.mrf.mxu0  ;;  %v2173_v56 = vpop.f32.mrf.mxu1  ;;  %3223 = vmatpush.bf16.msrb.mxu0 %v9823_v7  ;;  %v12902_v7 = vld [vmem:[#allocation20 + $0x1f4] sm:$0xf0] }
 0x23e   :  { %3181 = vmatpush.bf16.msra.mxu1 %v9947_v3  ;;  %v9586_v3 = vld [vmem:[#allocation20 + $0x68] sm:$0xf] }
 0x241   :  { %v2129_v42 = vpop.f32.mrf.mxu2  ;;  %v2143_v59 = vpop.f32.mrf.mxu3  ;;  %3224 = vmatpush.bf16.msrb.mxu0 %v9807_v23  ;;  %v9762_v23 = vld [vmem:[#allocation20 + $0x1c8] sm:$0xf] }
 0x242   :  { %v2130_v51 = vadd.f32 %v2129_v42, %v1472_v34  ;;  %3182 = vmatpush.bf16.msra.mxu1 %v9931_v13  ;;  %v12866_v42 = vld [vmem:[#allocation20 + $0xd4] sm:$0xf0] }
 0x243   :  { %v9635_v44 = vor.u32 %v12866_v42, %v9634_v58  ;;  %v12894_v58 = vld [vmem:[#allocation20 + $0x1b4] sm:$0xf0]  ;;  %v12943_v42 = vld [vmem:[#allocation20 + $0x344] sm:$0xf] }
 0x244   :  { %v2144_v30 = vadd.f32 %v2143_v59, %v2130_v51  ;;  %v9791_v59 = vor.u32 %v12903_v38, %v9788_v39  ;;  %v10031_v51 = vor.u32 %v12963_v40, %v10028_v9  ;;  %v9554_v38 = vld [vmem:[#allocation20 + $0x28] sm:$0xf]  ;;  %v12846_v39 = vld [vmem:[#allocation20 + $0x34] sm:$0xf0] }
 0x245   :  { %v2213_v19 = vpop.f32.mrf.mxu0  ;;  %v2227_v31 = vpop.f32.mrf.mxu1  ;;  %v9746_v40 = vld [vmem:[#allocation20 + $0x1a8] sm:$0xf] }
 0x246   :  { %v2158_v63 = vadd.f32 %v2157_v25, %v2144_v30  ;;  %3225 = vmatpush.bf16.msrb.mxu0 %v9791_v59  ;;  %v9948_v59 = vld [vmem:[#allocation20 + $0x350] sm:$0xf0]  ;;  %v9747_v46 = vor.u32 %v12894_v58, %v9746_v40  ;;  %v1475_v40 = vperm.slane %v14561_v16, 3 }
 0x247   :  { %v9951_v9 = vor.u32 %v12943_v42, %v9948_v59 }
 0x248   :  { %v2172_v8 = vadd.f32 %v2171_v33, %v2158_v63 }
 0x249   :  { %v2131_v60 = vpop.f32.mrf.mxu2  ;;  %v2145_v62 = vpop.f32.mrf.mxu3 }
 0x24a   :  { %v2132_v0 = vadd.f32 %v2131_v60, %v1472_v34  ;;  %v2344_v26 = vmax.f32 %v2172_v8, 0.0  ;;  %v9914_v34 = vld [vmem:[#allocation20 + $0x300] sm:$0xf]  ;;  %v9996_v60 = vld [vmem:[#allocation20 + $0x3b0] sm:$0xf0] }
 0x24b   :  { %v9915_v37 = vor.u32 %v12937_v35, %v9914_v34  ;;  %v12951_v8 = vld [vmem:[#allocation20 + $0x384] sm:$0xf] }
 0x24c   :  { %v2146_v6 = vadd.f32 %v2145_v62, %v2132_v0  ;;  %v9999_v62 = vor.u32 %v12955_v57, %v9996_v60 }
 0x24d   :  { %3183 = vmatpush.bf16.msra.mxu1 %v9915_v37  ;;  %v2229_v54 = vpop.f32.mrf.mxu1 }
 0x24e   :  { %v2160_v53 = vadd.f32 %v2159_v27, %v2146_v6  ;;  %v2215_v27 = vpop.f32.mrf.mxu0 }
 0x250   :  { %v2174_v20 = vadd.f32 %v2173_v56, %v2160_v53  ;;  %v12858_v56 = vld [vmem:[#allocation20 + $0x94] sm:$0xf0]  ;;  %v9980_v53 = vld [vmem:[#allocation20 + $0x390] sm:$0xf0] }
 0x251   :  { %v2185_v24 = vpop.f32.mrf.mxu2  ;;  %v2199_v25 = vpop.f32.mrf.mxu3  ;;  %3232 = vmatpush.bf16.msrb.mxu1 %v10031_v51  ;;  %v9603_v2 = vor.u32 %v12858_v56, %v9602_v18  ;;  %v9652_v18 = vld [vmem:[#allocation20 + $0xf8] sm:$0xf0]  ;;  %v9539_v56 = vor.u32 %v12842_v48, %v9538_v47 }
 0x252   :  { %v2348_v32 = vmax.f32 %v2174_v20, 0.0  ;;  %v2186_v33 = vadd.f32 %v2185_v24, %v1473_v10  ;;  %v9779_v20 = vor.u32 %v12902_v7, %v9778_v5  ;;  %v9916_v5 = vld [vmem:[#allocation20 + $0x310] sm:$0xf0]  ;;  %v12934_v7 = vld [vmem:[#allocation20 + $0x2f4] sm:$0xf0] }
 0x254   :  { %v14565_v41 = vpack.c.bf16 %v2348_v32, %v2344_v26  ;;  %v2200_v43 = vadd.f32 %v2199_v25, %v2186_v33  ;;  %v12898_v26 = vld [vmem:[#allocation20 + $0x1d4] sm:$0xf0]  ;;  %v9964_v32 = vld [vmem:[#allocation20 + $0x370] sm:$0xf0] }
 0x255   :  { %3233 = vmatpush.bf16.msrb.mxu1 %v10015_v50  ;;  %v2283_v34 = vpop.f32.mrf.mxu1  ;;  %v9763_v37 = vor.u32 %v12898_v26, %v9762_v23  ;;  %v12890_v50 = vld [vmem:[#allocation20 + $0x194] sm:$0xf0]  ;;  %v9620_v26 = vld [vmem:[#allocation20 + $0xb8] sm:$0xf0] }
 0x256   :  { %3142 = vmatmul.bf16.vlgmr.msrb.gmra.mxu2 %v14565_v41  ;;  %v2214_v30 = vadd.f32 %v2213_v19, %v2200_v43  ;;  %v9587_v19 = vor.u32 %v12854_v4, %v9586_v3  ;;  %v2269_v24 = vpop.f32.mrf.mxu0  ;;  %v9555_v43 = vor.u32 %v12846_v39, %v9554_v38  ;;  %v9906_v3 = vld [vmem:[#allocation20 + $0x2e8] sm:$0xf]  ;;  %v12935_v4 = vld [vmem:[#allocation20 + $0x304] sm:$0xf]  ;;  %v12930_v23 = vld [vmem:[#allocation20 + $0x2d4] sm:$0xf0] }
 0x257   :  { %3246 = vmatpush.bf16.msrb.mxu2 %v9651_v36  ;;  %v9571_v36 = vor.u32 %v12850_v22, %v9570_v21  ;;  %v9890_v21 = vld [vmem:[#allocation20 + $0x2c8] sm:$0xf]  ;;  %v12856_v38 = vld [vmem:[#allocation20 + $0x8c] sm:$0xf]  ;;  %v9604_v39 = vld [vmem:[#allocation20 + $0x98] sm:$0xf0] }
 0x258   :  { %v2228_v63 = vadd.f32 %v2227_v31, %v2214_v30  ;;  %v12947_v31 = vld [vmem:[#allocation20 + $0x364] sm:$0xf]  ;;  %v9932_v30 = vld [vmem:[#allocation20 + $0x330] sm:$0xf0]  ;;  %v9607_v59 = vor.u32 %v12856_v38, %v9604_v39  ;;  %v9794_v38 = vld [vmem:[#allocation20 + $0x208] sm:$0xf] }
 0x259   :  { %v2187_v49 = vpop.f32.mrf.mxu2  ;;  %v2201_v29 = vpop.f32.mrf.mxu3  ;;  %3234 = vmatpush.bf16.msrb.mxu1 %v9999_v62  ;;  %v9967_v33 = vor.u32 %v12947_v31, %v9964_v32  ;;  %v9891_v32 = vor.u32 %v12930_v23, %v9890_v21  ;;  %v12910_v21 = vld [vmem:[#allocation20 + $0x234] sm:$0xf0]  ;;  %v12840_v23 = vld [vmem:[#allocation20 + $0xc] sm:$0xf] }
 0x25a   :  { %v2188_v28 = vadd.f32 %v2187_v49, %v1473_v10  ;;  %v9983_v10 = vor.u32 %v12951_v8, %v9980_v53  ;;  %v2345_v11 = vmax.f32 %v2228_v63, 0.0  ;;  %v9730_v49 = vld [vmem:[#allocation20 + $0x188] sm:$0xf]  ;;  %v12864_v8 = vld [vmem:[#allocation20 + $0xcc] sm:$0xf] }
 0x25b   :  { %3247 = vmatpush.bf16.msrb.mxu2 %v9635_v44  ;;  %v9731_v62 = vor.u32 %v12890_v50, %v9730_v49  ;;  %v9714_v63 = vld [vmem:[#allocation20 + $0x168] sm:$0xf]  ;;  %v9636_v53 = vld [vmem:[#allocation20 + $0xd8] sm:$0xf0]  ;;  %v12900_v49 = vld [vmem:[#allocation20 + $0x1ec] sm:$0xf] }
 0x25c   :  { %v2202_v55 = vadd.f32 %v2201_v29, %v2188_v28  ;;  %v12906_v39 = vld [vmem:[#allocation20 + $0x214] sm:$0xf0] }
 0x25d   :  { %3235 = vmatpush.bf16.msrb.mxu1 %v9983_v10  ;;  %v9919_v10 = vor.u32 %v12935_v4, %v9916_v5  ;;  %v12914_v4 = vld [vmem:[#allocation20 + $0x254] sm:$0xf0]  ;;  %v12844_v5 = vld [vmem:[#allocation20 + $0x2c] sm:$0xf] }
 0x25e   :  { %v2216_v0 = vadd.f32 %v2215_v27, %v2202_v55  ;;  %v12939_v27 = vld [vmem:[#allocation20 + $0x324] sm:$0xf]  ;;  %v2271_v55 = vpop.f32.mrf.mxu0 }
 0x25f   :  { %3248 = vmatpush.bf16.msrb.mxu2 %v9619_v17  ;;  %v12868_v17 = vld [vmem:[#allocation20 + $0xec] sm:$0xf] }
 0x260   :  { %v2230_v6 = vadd.f32 %v2229_v54, %v2216_v0  ;;  %v9935_v54 = vor.u32 %v12939_v27, %v9932_v30  ;;  %v12886_v0 = vld [vmem:[#allocation20 + $0x174] sm:$0xf0] }
 0x261   :  { %v2241_v13 = vpop.f32.mrf.mxu2  ;;  %v2255_v14 = vpop.f32.mrf.mxu3  ;;  %3236 = vmatpush.bf16.msrb.mxu1 %v9967_v33 }
 0x262   :  { %v2349_v12 = vmax.f32 %v2230_v6, 0.0  ;;  %v2242_v15 = vadd.f32 %v2241_v13, %v1474_v1  ;;  %v9715_v13 = vor.u32 %v12886_v0, %v9714_v63 }
 0x263   :  { %3249 = vmatpush.bf16.msrb.mxu2 %v9603_v2  ;;  %v9655_v2 = vor.u32 %v12868_v17, %v9652_v18  ;;  %v9842_v17 = vld [vmem:[#allocation20 + $0x268] sm:$0xf] }
 0x264   :  { %v14569_v25 = vpack.c.bf16 %v2349_v12, %v2345_v11  ;;  %v2256_v35 = vadd.f32 %v2255_v14, %v2242_v15  ;;  %v9907_v14 = vor.u32 %v12934_v7, %v9906_v3  ;;  %v9639_v15 = vor.u32 %v12864_v8, %v9636_v53  ;;  %v12892_v8 = vld [vmem:[#allocation20 + $0x1ac] sm:$0xf]  ;;  %v9748_v53 = vld [vmem:[#allocation20 + $0x1b8] sm:$0xf0] }
 0x265   :  { %3237 = vmatpush.bf16.msrb.mxu1 %v9951_v9  ;;  %v9666_v9 = vld [vmem:[#allocation20 + $0x108] sm:$0xf] }
 0x266   :  { %3156 = vmatmul.bf16.vlgmr.msrb.gmra.mxu3 %v14569_v25  ;;  %3198 = vmatmul.bf16.vlgmr.msra.gmra.mxu2 %v14565_v41  ;;  %v2270_v44 = vadd.f32 %v2269_v24, %v2256_v35  ;;  %v12860_v24 = vld [vmem:[#allocation20 + $0xac] sm:$0xf]  ;;  %v12878_v35 = vld [vmem:[#allocation20 + $0x134] sm:$0xf0] }
 0x267   :  { %3250 = vmatpush.bf16.msrb.mxu2 %v9587_v19  ;;  %3260 = vmatpush.bf16.msrb.mxu3 %v9779_v20  ;;  %v9698_v19 = vld [vmem:[#allocation20 + $0x148] sm:$0xf]  ;;  %v12882_v20 = vld [vmem:[#allocation20 + $0x154] sm:$0xf0]  ;;  %v9623_v33 = vor.u32 %v12860_v24, %v9620_v26  ;;  %v9540_v24 = vld [vmem:[#allocation20 + $0x18] sm:$0xf0] }
 0x268   :  { %v2284_v57 = vadd.f32 %v2283_v34, %v2270_v44  ;;  %v9699_v31 = vor.u32 %v12882_v20, %v9698_v19  ;;  %v9682_v34 = vld [vmem:[#allocation20 + $0x128] sm:$0xf]  ;;  %v12922_v44 = vld [vmem:[#allocation20 + $0x294] sm:$0xf0]  ;;  %v9751_v20 = vor.u32 %v12892_v8, %v9748_v53  ;;  %v12920_v8 = vld [vmem:[#allocation20 + $0x28c] sm:$0xf] }
 0x269   :  { %v2243_v51 = vpop.f32.mrf.mxu2  ;;  %v2257_v29 = vpop.f32.mrf.mxu3  ;;  %3238 = vmatpush.bf16.msrb.mxu1 %v9935_v54  ;;  %v9683_v58 = vor.u32 %v12878_v35, %v9682_v34  ;;  %v12918_v54 = vld [vmem:[#allocation20 + $0x274] sm:$0xf0]  ;;  %v9860_v53 = vld [vmem:[#allocation20 + $0x298] sm:$0xf0] }
 0x26a   :  { %v2244_v45 = vadd.f32 %v2243_v51, %v1474_v1  ;;  %v2285_v1 = vpop.f32.mrf.mxu1  ;;  %v2346_v11 = vmax.f32 %v2284_v57, 0.0  ;;  %v12874_v51 = vld [vmem:[#allocation20 + $0x114] sm:$0xf0]  ;;  %v9843_v0 = vor.u32 %v12918_v54, %v9842_v17  ;;  %v12928_v17 = vld [vmem:[#allocation20 + $0x2cc] sm:$0xf] }
 0x26b   :  { %3251 = vmatpush.bf16.msrb.mxu2 %v9571_v36  ;;  %3261 = vmatpush.bf16.msrb.mxu3 %v9763_v37  ;;  %v9874_v36 = vld [vmem:[#allocation20 + $0x2a8] sm:$0xf]  ;;  %v12926_v37 = vld [vmem:[#allocation20 + $0x2b4] sm:$0xf0]  ;;  %v9667_v27 = vor.u32 %v12874_v51, %v9666_v9  ;;  %v12884_v9 = vld [vmem:[#allocation20 + $0x16c] sm:$0xf] }
 0x26c   :  { %v2258_v28 = vadd.f32 %v2257_v29, %v2244_v45  ;;  %v9875_v42 = vor.u32 %v12926_v37, %v9874_v36  ;;  %v12852_v45 = vld [vmem:[#allocation20 + $0x6c] sm:$0xf]  ;;  %v9780_v29 = vld [vmem:[#allocation20 + $0x1f8] sm:$0xf0]  ;;  %v9543_v37 = vor.u32 %v12840_v23, %v9540_v24  ;;  %v9954_v23 = vld [vmem:[#allocation20 + $0x348] sm:$0xf] }
 0x26d   :  { %3239 = vmatpush.bf16.msrb.mxu1 %v9919_v10  ;;  %v9783_v18 = vor.u32 %v12900_v49, %v9780_v29  ;;  %v9716_v51 = vld [vmem:[#allocation20 + $0x178] sm:$0xf0]  ;;  %v12946_v24 = vld [vmem:[#allocation20 + $0x354] sm:$0xf0] }
 0x26e   :  { %v2272_v60 = vadd.f32 %v2271_v55, %v2258_v28  ;;  %v12848_v55 = vld [vmem:[#allocation20 + $0x4c] sm:$0xf]  ;;  %v9719_v29 = vor.u32 %v12884_v9, %v9716_v51  ;;  %v10036_v51 = vld [vmem:[#allocation20 + $0x3f8] sm:$0xf0] }
 0x26f   :  { %3252 = vmatpush.bf16.msrb.mxu2 %v9555_v43  ;;  %3262 = vmatpush.bf16.msrb.mxu3 %v9747_v46  ;;  %v9858_v43 = vld [vmem:[#allocation20 + $0x288] sm:$0xf]  ;;  %v9588_v46 = vld [vmem:[#allocation20 + $0x78] sm:$0xf0]  ;;  %v12964_v9 = vld [vmem:[#allocation20 + $0x3ec] sm:$0xf] }
 0x270   :  { %v2286_v6 = vadd.f32 %v2285_v1, %v2272_v60  ;;  %v9859_v16 = vor.u32 %v12922_v44, %v9858_v43  ;;  %v9591_v28 = vor.u32 %v12852_v45, %v9588_v46  ;;  %v12896_v60 = vld [vmem:[#allocation20 + $0x1cc] sm:$0xf]  ;;  %v9908_v44 = vld [vmem:[#allocation20 + $0x2f8] sm:$0xf0] }
 0x271   :  { %v12932_v43 = vld [vmem:[#allocation20 + $0x2ec] sm:$0xf] }
 0x272   :  { %v2350_v12 = vmax.f32 %v2286_v6, 0.0  ;;  %v9556_v6 = vld [vmem:[#allocation20 + $0x38] sm:$0xf0] }
 0x273   :  { %3253 = vmatpush.bf16.msrb.mxu2 %v9539_v56  ;;  %3263 = vmatpush.bf16.msrb.mxu3 %v9731_v62  ;;  %v9572_v56 = vld [vmem:[#allocation20 + $0x58] sm:$0xf0] }
 0x274   :  { %v14573_v22 = vpack.c.bf16 %v2350_v12, %v2346_v11  ;;  %v9764_v62 = vld [vmem:[#allocation20 + $0x1d8] sm:$0xf0]  ;;  %v9575_v1 = vor.u32 %v12848_v55, %v9572_v56 }
 0x275   :  { %v2325_v30 = vpop.f32.mrf.mxu0  ;;  %v2339_v57 = vpop.f32.mrf.mxu1  ;;  %v9767_v3 = vor.u32 %v12896_v60, %v9764_v62  ;;  %v12958_v60 = vld [vmem:[#allocation20 + $0x3b4] sm:$0xf0]  ;;  %v12876_v62 = vld [vmem:[#allocation20 + $0x12c] sm:$0xf] }
 0x276   :  { %3212 = vmatmul.bf16.vlgmr.msra.gmra.mxu3 %v14569_v25  ;;  %3254 = vmatmul.bf16.vlgmr.msrb.gmra.mxu2 %v14565_v41 }
 0x277   :  { %3302 = vmatpush.bf16.msra.mxu2 %v9655_v2  ;;  %3170 = vmatmul.bf16.vlgmr.msra.gmra.mxu0 %v14573_v22  ;;  %v9826_v2 = vld [vmem:[#allocation20 + $0x248] sm:$0xf] }
 0x278   :  { %3264 = vmatpush.bf16.msrb.mxu3 %v9715_v13  ;;  %3274 = vmatpush.bf16.msra.mxu0 %v9907_v14  ;;  %v9827_v13 = vor.u32 %v12914_v4, %v9826_v2  ;;  %v9559_v14 = vor.u32 %v12844_v5, %v9556_v6  ;;  %v9986_v4 = vld [vmem:[#allocation20 + $0x388] sm:$0xf]  ;;  %v12954_v5 = vld [vmem:[#allocation20 + $0x394] sm:$0xf0]  ;;  %v12872_v6 = vld [vmem:[#allocation20 + $0x10c] sm:$0xf] }
 0x27b   :  { %3303 = vmatpush.bf16.msra.mxu2 %v9639_v15  ;;  %v9810_v15 = vld [vmem:[#allocation20 + $0x228] sm:$0xf] }
 0x27c   :  { %3265 = vmatpush.bf16.msrb.mxu3 %v9699_v31  ;;  %3275 = vmatpush.bf16.msra.mxu0 %v9891_v32  ;;  %v12888_v31 = vld [vmem:[#allocation20 + $0x18c] sm:$0xf]  ;;  %v9732_v32 = vld [vmem:[#allocation20 + $0x198] sm:$0xf0]  ;;  %v9811_v36 = vor.u32 %v12910_v21, %v9810_v15 }
 0x27d   :  { %v2327_v26 = vpop.f32.mrf.mxu0  ;;  %v2341_v35 = vpop.f32.mrf.mxu1  ;;  %v12916_v15 = vld [vmem:[#allocation20 + $0x26c] sm:$0xf] }
 0x27f   :  { %3304 = vmatpush.bf16.msra.mxu2 %v9623_v33 }
 0x280   :  { %3266 = vmatpush.bf16.msrb.mxu3 %v9683_v58  ;;  %3276 = vmatpush.bf16.msra.mxu0 %v9875_v42  ;;  %v9735_v58 = vor.u32 %v12888_v31, %v9732_v32  ;;  %v10034_v42 = vld [vmem:[#allocation20 + $0x3e8] sm:$0xf]  ;;  %v9828_v31 = vld [vmem:[#allocation20 + $0x258] sm:$0xf0]  ;;  %v9955_v32 = vor.u32 %v12946_v24, %v9954_v23  ;;  %v12977_v23 = vld [vmem:[#allocation22 + $0x4c] sm:$0xf0] }
 0x281   :  { %v2297_v47 = vpop.f32.mrf.mxu2  ;;  %v2311_v48 = vpop.f32.mrf.mxu3  ;;  %v10266_v24 = vld [vmem:[#allocation22 + $0x1c0] sm:$0xf] }
 0x282   :  { %v2298_v50 = vadd.f32 %v2297_v47, %v1475_v40  ;;  %v9795_v47 = vor.u32 %v12906_v39, %v9794_v38 }
 0x283   :  { %3305 = vmatpush.bf16.msra.mxu2 %v9607_v59  ;;  %v12966_v59 = vld [vmem:[#allocation20 + $0x3f4] sm:$0xf0] }
 0x284   :  { %v2312_v63 = vadd.f32 %v2311_v48, %v2298_v50  ;;  %3267 = vmatpush.bf16.msrb.mxu3 %v9667_v27  ;;  %3277 = vmatpush.bf16.msra.mxu0 %v9859_v16  ;;  %v10035_v48 = vor.u32 %v12966_v59, %v10034_v42  ;;  %v9911_v50 = vor.u32 %v12932_v43, %v9908_v44  ;;  %v10018_v27 = vld [vmem:[#allocation20 + $0x3c8] sm:$0xf]  ;;  %v12880_v16 = vld [vmem:[#allocation20 + $0x14c] sm:$0xf]  ;;  %v9796_v59 = vld [vmem:[#allocation20 + $0x218] sm:$0xf0] }
 0x285   :  { %v12904_v42 = vld [vmem:[#allocation20 + $0x20c] sm:$0xf]  ;;  %v10039_v44 = vor.u32 %v12964_v9, %v10036_v51  ;;  %v12995_v9 = vld [vmem:[#allocation22 + $0xe4] sm:$0xf]  ;;  %v10156_v51 = vld [vmem:[#allocation22 + $0xf0] sm:$0xf0] }
 0x286   :  { %v2326_v10 = vadd.f32 %v2325_v30, %v2312_v63  ;;  %v12962_v30 = vld [vmem:[#allocation20 + $0x3d4] sm:$0xf0]  ;;  %v9684_v63 = vld [vmem:[#allocation20 + $0x138] sm:$0xf0] }
 0x287   :  { %3306 = vmatpush.bf16.msra.mxu2 %v9591_v28  ;;  %3268 = vmatmul.bf16.vlgmr.msrb.gmra.mxu3 %v14569_v25  ;;  %v9700_v28 = vld [vmem:[#allocation20 + $0x158] sm:$0xf0]  ;;  %v10019_v54 = vor.u32 %v12962_v30, %v10018_v27  ;;  %v12952_v27 = vld [vmem:[#allocation20 + $0x38c] sm:$0xf] }
 0x288   :  { %3316 = vmatpush.bf16.msra.mxu3 %v9783_v18  ;;  %3226 = vmatmul.bf16.vlgmr.msrb.gmra.mxu0 %v14573_v22  ;;  %v2340_v33 = vadd.f32 %v2339_v57, %v2326_v10  ;;  %v9892_v18 = vld [vmem:[#allocation20 + $0x2d8] sm:$0xf0]  ;;  %v9703_v55 = vor.u32 %v12880_v16, %v9700_v28  ;;  %v10002_v57 = vld [vmem:[#allocation20 + $0x3a8] sm:$0xf]  ;;  %v9987_v10 = vor.u32 %v12954_v5, %v9986_v4  ;;  %v12948_v28 = vld [vmem:[#allocation20 + $0x36c] sm:$0xf] }
 0x289   :  { %v2299_v7 = vpop.f32.mrf.mxu2  ;;  %v2313_v12 = vpop.f32.mrf.mxu3  ;;  %3278 = vmatpush.bf16.msra.mxu0 %v9843_v0  ;;  %v9895_v56 = vor.u32 %v12928_v17, %v9892_v18  ;;  %v12924_v0 = vld [vmem:[#allocation20 + $0x2ac] sm:$0xf]  ;;  %v10003_v2 = vor.u32 %v12958_v60, %v10002_v57  ;;  %v9988_v30 = vld [vmem:[#allocation20 + $0x398] sm:$0xf0] }
 0x28a   :  { %v2300_v11 = vadd.f32 %v2299_v7, %v1475_v40  ;;  %v2347_v45 = vmax.f32 %v2340_v33, 0.0  ;;  %v9668_v7 = vld [vmem:[#allocation20 + $0x118] sm:$0xf0]  ;;  %v9991_v16 = vor.u32 %v12952_v27, %v9988_v30  ;;  %v12940_v57 = vld [vmem:[#allocation20 + $0x32c] sm:$0xf] }
 0x28b   :  { %3307 = vmatpush.bf16.msra.mxu2 %v9575_v1  ;;  %v9876_v1 = vld [vmem:[#allocation20 + $0x2b8] sm:$0xf0]  ;;  %v10202_v30 = vld [vmem:[#allocation22 + $0x140] sm:$0xf] }
 0x28c   :  { %v2314_v19 = vadd.f32 %v2313_v12, %v2300_v11  ;;  %3317 = vmatpush.bf16.msra.mxu3 %v9767_v3  ;;  %v9879_v3 = vor.u32 %v12924_v0, %v9876_v1  ;;  %v9671_v11 = vor.u32 %v12872_v6, %v9668_v7  ;;  %v9863_v12 = vor.u32 %v12920_v8, %v9860_v53  ;;  %v9972_v17 = vld [vmem:[#allocation20 + $0x378] sm:$0xf0]  ;;  %v10138_v0 = vld [vmem:[#allocation22 + $0xc0] sm:$0xf]  ;;  %v12993_v1 = vld [vmem:[#allocation22 + $0xcc] sm:$0xf0] }
 0x28d   :  { %3279 = vmatpush.bf16.msra.mxu0 %v9827_v13  ;;  %v9970_v13 = vld [vmem:[#allocation20 + $0x368] sm:$0xf]  ;;  %v9975_v18 = vor.u32 %v12948_v28, %v9972_v17  ;;  %v9940_v60 = vld [vmem:[#allocation20 + $0x338] sm:$0xf0]  ;;  %v10122_v6 = vld [vmem:[#allocation22 + $0xa0] sm:$0xf] }
 0x28e   :  { %v2328_v34 = vadd.f32 %v2327_v26, %v2314_v19  ;;  %v9844_v19 = vld [vmem:[#allocation20 + $0x278] sm:$0xf0]  ;;  %v12912_v26 = vld [vmem:[#allocation20 + $0x24c] sm:$0xf]  ;;  %v12989_v7 = vld [vmem:[#allocation22 + $0xac] sm:$0xf0] }
 0x28f   :  { %3308 = vmatpush.bf16.msra.mxu2 %v9559_v14  ;;  %v12950_v14 = vld [vmem:[#allocation20 + $0x374] sm:$0xf0]  ;;  %v9847_v21 = vor.u32 %v12916_v15, %v9844_v19  ;;  %v9831_v33 = vor.u32 %v12912_v26, %v9828_v31  ;;  %v9924_v4 = vld [vmem:[#allocation20 + $0x318] sm:$0xf0]  ;;  %v10123_v8 = vor.u32 %v12989_v7, %v10122_v6  ;;  %v10106_v53 = vld [vmem:[#allocation22 + $0x80] sm:$0xf] }
 0x290   :  { %v2342_v40 = vadd.f32 %v2341_v35, %v2328_v34  ;;  %3318 = vmatpush.bf16.msra.mxu3 %v9751_v20  ;;  %v9971_v20 = vor.u32 %v12950_v14, %v9970_v13  ;;  %v9938_v34 = vld [vmem:[#allocation20 + $0x328] sm:$0xf]  ;;  %v12942_v35 = vld [vmem:[#allocation20 + $0x334] sm:$0xf0]  ;;  %v12981_v13 = vld [vmem:[#allocation22 + $0x6c] sm:$0xf0] }
 0x291   :  { %3280 = vmatpush.bf16.msra.mxu0 %v9811_v36  ;;  %v12908_v36 = vld [vmem:[#allocation20 + $0x22c] sm:$0xf]  ;;  %v9939_v38 = vor.u32 %v12942_v35, %v9938_v34  ;;  %v10282_v14 = vld [vmem:[#allocation22 + $0x1e0] sm:$0xf]  ;;  %v13029_v19 = vld [vmem:[#allocation22 + $0x1ec] sm:$0xf0] }
 0x292   :  { %v2351_v46 = vmax.f32 %v2342_v40, 0.0  ;;  %v9922_v40 = vld [vmem:[#allocation20 + $0x308] sm:$0xf]  ;;  %v13025_v31 = vld [vmem:[#allocation22 + $0x1cc] sm:$0xf0] }
 0x293   :  { %3309 = vmatpush.bf16.msra.mxu2 %v9543_v37  ;;  %v9812_v37 = vld [vmem:[#allocation20 + $0x238] sm:$0xf0]  ;;  %v12973_v34 = vld [vmem:[#allocation22 + $0x2c] sm:$0xf0]  ;;  %v10394_v28 = vld [vmem:[#allocation22 + $0x2c0] sm:$0xf] }
 0x294   :  { %3319 = vmatpush.bf16.msra.mxu3 %v9735_v58  ;;  %v14581_v49 = vpack.c.bf16 %v2351_v46, %v2347_v45  ;;  %v9815_v39 = vor.u32 %v12908_v36, %v9812_v37  ;;  %v12938_v58 = vld [vmem:[#allocation20 + $0x314] sm:$0xf0]  ;;  %v12960_v45 = vld [vmem:[#allocation20 + $0x3cc] sm:$0xf]  ;;  %v10020_v46 = vld [vmem:[#allocation20 + $0x3d8] sm:$0xf0] }
 0x295   :  { %3281 = vmatpush.bf16.msra.mxu0 %v9795_v47  ;;  %v9923_v43 = vor.u32 %v12938_v58, %v9922_v40  ;;  %v10023_v47 = vor.u32 %v12960_v45, %v10020_v46  ;;  %v13021_v36 = vld [vmem:[#allocation22 + $0x1ac] sm:$0xf0]  ;;  %v10234_v40 = vld [vmem:[#allocation22 + $0x180] sm:$0xf] }
 0x296   :  { %3184 = vmatmul.bf16.vlgmr.msra.gmra.mxu1 %v14581_v49  ;;  %3310 = vmatmul.bf16.vlgmr.msra.gmra.mxu2 %v14565_v41  ;;  %v9687_v41 = vor.u32 %v12876_v62, %v9684_v63  ;;  %v10154_v62 = vld [vmem:[#allocation22 + $0xe0] sm:$0xf]  ;;  %v12997_v63 = vld [vmem:[#allocation22 + $0xec] sm:$0xf0] }
 0x297   :  { %3288 = vmatpush.bf16.msra.mxu1 %v10035_v48  ;;  %v12956_v48 = vld [vmem:[#allocation20 + $0x3ac] sm:$0xf]  ;;  %v10410_v45 = vld [vmem:[#allocation22 + $0x2e0] sm:$0xf]  ;;  %v13057_v17 = vld [vmem:[#allocation22 + $0x2cc] sm:$0xf0] }
 0x298   :  { %3320 = vmatpush.bf16.msra.mxu3 %v9719_v29  ;;  %3282 = vmatmul.bf16.vlgmr.msra.gmra.mxu0 %v14573_v22  ;;  %v10004_v29 = vld [vmem:[#allocation20 + $0x3b8] sm:$0xf0]  ;;  %v10362_v6 = vld [vmem:[#allocation22 + $0x280] sm:$0xf] }
 0x299   :  { %3330 = vmatpush.bf16.msrb.mxu0 %v9911_v50  ;;  %v10007_v50 = vor.u32 %v12956_v48, %v10004_v29  ;;  %v12991_v48 = vld [vmem:[#allocation22 + $0xc4] sm:$0xf]  ;;  %v10140_v29 = vld [vmem:[#allocation22 + $0xd0] sm:$0xf0] }
 0x29a   :  { %v10143_v27 = vor.u32 %v12991_v48, %v10140_v29  ;;  %v10298_v48 = vld [vmem:[#allocation22 + $0x200] sm:$0xf]  ;;  %v13033_v29 = vld [vmem:[#allocation22 + $0x20c] sm:$0xf0] }
 0x29b   :  { %3289 = vmatpush.bf16.msra.mxu1 %v10019_v54  ;;  %v12944_v54 = vld [vmem:[#allocation20 + $0x34c] sm:$0xf] }
 0x29c   :  { %3321 = vmatpush.bf16.msra.mxu3 %v9703_v55  ;;  %v9956_v55 = vld [vmem:[#allocation20 + $0x358] sm:$0xf0] }
 0x29d   :  { %3331 = vmatpush.bf16.msrb.mxu0 %v9895_v56  ;;  %v9959_v56 = vor.u32 %v12944_v54, %v9956_v55  ;;  %v10395_v54 = vor.u32 %v13057_v17, %v10394_v28  ;;  %v12987_v55 = vld [vmem:[#allocation22 + $0xa4] sm:$0xf]  ;;  %v10220_v17 = vld [vmem:[#allocation22 + $0x170] sm:$0xf0] }
 0x29e   :  { %v13011_v28 = vld [vmem:[#allocation22 + $0x164] sm:$0xf] }
 0x29f   :  { %3290 = vmatpush.bf16.msra.mxu1 %v10003_v2  ;;  %v9943_v2 = vor.u32 %v12940_v57, %v9940_v60  ;;  %v10186_v60 = vld [vmem:[#allocation22 + $0x120] sm:$0xf] }
 0x2a0   :  { %3322 = vmatpush.bf16.msra.mxu3 %v9687_v41  ;;  %v10139_v41 = vor.u32 %v12993_v1, %v10138_v0  ;;  %v12983_v1 = vld [vmem:[#allocation22 + $0x84] sm:$0xf] }
 0x2a1   :  { %3332 = vmatpush.bf16.msrb.mxu0 %v9879_v3  ;;  %v12936_v3 = vld [vmem:[#allocation20 + $0x30c] sm:$0xf] }
 0x2a2   :  { %v9927_v5 = vor.u32 %v12936_v3, %v9924_v4  ;;  %v10170_v4 = vld [vmem:[#allocation22 + $0x100] sm:$0xf] }
 0x2a3   :  { %3291 = vmatpush.bf16.msra.mxu1 %v9987_v10  ;;  %v12985_v10 = vld [vmem:[#allocation22 + $0x8c] sm:$0xf0] }
 0x2a4   :  { %3323 = vmatpush.bf16.msra.mxu3 %v9671_v11  ;;  %v10107_v11 = vor.u32 %v12985_v10, %v10106_v53  ;;  %v12979_v53 = vld [vmem:[#allocation22 + $0x64] sm:$0xf]  ;;  %v10092_v10 = vld [vmem:[#allocation22 + $0x70] sm:$0xf0] }
 0x2a5   :  { %3333 = vmatpush.bf16.msrb.mxu0 %v9863_v12  ;;  %v10090_v12 = vld [vmem:[#allocation22 + $0x60] sm:$0xf] }
 0x2a6   :  { %3240 = vmatmul.bf16.vlgmr.msrb.gmra.mxu1 %v14581_v49  ;;  %v10091_v15 = vor.u32 %v12981_v13, %v10090_v12  ;;  %v10095_v12 = vor.u32 %v12979_v53, %v10092_v10  ;;  %v13027_v13 = vld [vmem:[#allocation22 + $0x1e4] sm:$0xf]  ;;  %v10188_v10 = vld [vmem:[#allocation22 + $0x130] sm:$0xf0] }
 0x2a7   :  { %3292 = vmatpush.bf16.msra.mxu1 %v9971_v20  ;;  %3324 = vmatmul.bf16.vlgmr.msra.gmra.mxu3 %v14569_v25  ;;  %v9799_v25 = vor.u32 %v12904_v42, %v9796_v59  ;;  %v10283_v20 = vor.u32 %v13029_v19, %v10282_v14  ;;  %v13017_v42 = vld [vmem:[#allocation22 + $0x18c] sm:$0xf0]  ;;  %v10284_v14 = vld [vmem:[#allocation22 + $0x1f0] sm:$0xf0]  ;;  %v10346_v19 = vld [vmem:[#allocation22 + $0x260] sm:$0xf] }
 0x2a8   :  { %v10235_v59 = vor.u32 %v13017_v42, %v10234_v40  ;;  %v10252_v40 = vld [vmem:[#allocation22 + $0x1b0] sm:$0xf0]  ;;  %v10314_v42 = vld [vmem:[#allocation22 + $0x220] sm:$0xf]  ;;  %v13003_v53 = vld [vmem:[#allocation22 + $0x124] sm:$0xf] }
 0x2a9   :  { %3334 = vmatpush.bf16.msrb.mxu0 %v9847_v21  ;;  %v10074_v21 = vld [vmem:[#allocation22 + $0x40] sm:$0xf]  ;;  %4162 = vmatpush.bf16.msrb.mxu3 %v10283_v20  ;;  %v13045_v20 = vld [vmem:[#allocation22 + $0x26c] sm:$0xf0] }
 0x2aa   :  { %v10075_v26 = vor.u32 %v12977_v23, %v10074_v21  ;;  %v10347_v21 = vor.u32 %v13045_v20, %v10346_v19  ;;  %v12975_v23 = vld [vmem:[#allocation22 + $0x44] sm:$0xf]  ;;  %v10490_v20 = vld [vmem:[#allocation22 + $0x380] sm:$0xf] }
 0x2ab   :  { %3293 = vmatpush.bf16.msra.mxu1 %v9955_v32  ;;  %v10267_v32 = vor.u32 %v13025_v31, %v10266_v24  ;;  %v10076_v24 = vld [vmem:[#allocation22 + $0x50] sm:$0xf0] }
 0x2ac   :  { %v10079_v31 = vor.u32 %v12975_v23, %v10076_v24 }
 0x2ad   :  { %3335 = vmatpush.bf16.msrb.mxu0 %v9831_v33  ;;  %4163 = vmatpush.bf16.msrb.mxu3 %v10267_v32  ;;  %v10058_v33 = vld [vmem:[#allocation22 + $0x20] sm:$0xf]  ;;  %v10268_v32 = vld [vmem:[#allocation22 + $0x1d0] sm:$0xf0] }
 0x2ae   :  { %v10059_v35 = vor.u32 %v12973_v34, %v10058_v33  ;;  %v10330_v34 = vld [vmem:[#allocation22 + $0x240] sm:$0xf] }
 0x2af   :  { %3294 = vmatpush.bf16.msra.mxu1 %v9939_v38  ;;  %v10042_v38 = vld [vmem:[#allocation22] sm:$0xf] }
 0x2b1   :  { %3336 = vmatpush.bf16.msrb.mxu0 %v9815_v39  ;;  %v12969_v39 = vld [vmem:[#allocation22 + $0xc] sm:$0xf0] }
 0x2b2   :  { %v10043_v58 = vor.u32 %v12969_v39, %v10042_v38  ;;  %v13019_v38 = vld [vmem:[#allocation22 + $0x1a4] sm:$0xf] }
 0x2b3   :  { %3295 = vmatpush.bf16.msra.mxu1 %v9923_v43  ;;  %v10159_v43 = vor.u32 %v12995_v9, %v10156_v51  ;;  %v12967_v51 = vld [vmem:[#allocation22 + $0x4] sm:$0xf] }
 0x2b5   :  { %3337 = vmatpush.bf16.msrb.mxu0 %v9799_v25  ;;  %v10218_v25 = vld [vmem:[#allocation22 + $0x160] sm:$0xf] }
 0x2b6   :  { %3296 = vmatmul.bf16.vlgmr.msra.gmra.mxu1 %v14581_v49 }
 0x2b7   :  { %3344 = vmatpush.bf16.msrb.mxu1 %v10039_v44  ;;  %v13013_v44 = vld [vmem:[#allocation22 + $0x16c] sm:$0xf0] }
 0x2b8   :  { %3338 = vmatmul.bf16.vlgmr.msrb.gmra.mxu0 %v14573_v22  ;;  %v10155_v22 = vor.u32 %v12997_v63, %v10154_v62  ;;  %v10219_v46 = vor.u32 %v13013_v44, %v10218_v25  ;;  %v13005_v62 = vld [vmem:[#allocation22 + $0x12c] sm:$0xf0]  ;;  %v10378_v63 = vld [vmem:[#allocation22 + $0x2a0] sm:$0xf]  ;;  %v13015_v25 = vld [vmem:[#allocation22 + $0x184] sm:$0xf] }
 0x2b9   :  { %v10187_v0 = vor.u32 %v13005_v62, %v10186_v60  ;;  %v10522_v62 = vld [vmem:[#allocation22 + $0x3c0] sm:$0xf] }
 0x2ba   :  { %4148 = vmatpush.bf16.msrb.mxu2 %v10155_v22  ;;  %v13053_v22 = vld [vmem:[#allocation22 + $0x2ac] sm:$0xf0] }
 0x2bb   :  { %3345 = vmatpush.bf16.msrb.mxu1 %v10023_v47  ;;  %v13061_v47 = vld [vmem:[#allocation22 + $0x2ec] sm:$0xf0] }
 0x2be   :  { %4149 = vmatpush.bf16.msrb.mxu2 %v10139_v41  ;;  %v10379_v41 = vor.u32 %v13053_v22, %v10378_v63  ;;  %v13089_v63 = vld [vmem:[#allocation22 + $0x3cc] sm:$0xf0]  ;;  %v13007_v22 = vld [vmem:[#allocation22 + $0x144] sm:$0xf] }
 0x2bf   :  { %3346 = vmatpush.bf16.msrb.mxu1 %v10007_v50  ;;  %v10411_v50 = vor.u32 %v13061_v47, %v10410_v45  ;;  %v10236_v45 = vld [vmem:[#allocation22 + $0x190] sm:$0xf0] }
 0x2c0   :  { %v10239_v47 = vor.u32 %v13015_v25, %v10236_v45  ;;  %v10458_v25 = vld [vmem:[#allocation22 + $0x340] sm:$0xf] }
 0x2c1   :  { %4176 = vmatpush.bf16.msra.mxu0 %v10411_v50  ;;  %v10538_v50 = vld [vmem:[#allocation22 + $0x3e0] sm:$0xf] }
 0x2c2   :  { %4150 = vmatpush.bf16.msrb.mxu2 %v10123_v8  ;;  %v13049_v8 = vld [vmem:[#allocation22 + $0x28c] sm:$0xf0] }
 0x2c3   :  { %3347 = vmatpush.bf16.msrb.mxu1 %v9991_v16  ;;  %v13009_v16 = vld [vmem:[#allocation22 + $0x14c] sm:$0xf0] }
 0x2c5   :  { %4177 = vmatpush.bf16.msra.mxu0 %v10395_v54  ;;  %v10223_v54 = vor.u32 %v13011_v28, %v10220_v17 }
 0x2c6   :  { %4151 = vmatpush.bf16.msrb.mxu2 %v10107_v11  ;;  %v10363_v11 = vor.u32 %v13049_v8, %v10362_v6  ;;  %v13085_v6 = vld [vmem:[#allocation22 + $0x3ac] sm:$0xf0] }
 0x2c7   :  { %3348 = vmatpush.bf16.msrb.mxu1 %v9975_v18  ;;  %v10203_v18 = vor.u32 %v13009_v16, %v10202_v30  ;;  %v10299_v30 = vor.u32 %v13033_v29, %v10298_v48  ;;  %v13093_v16 = vld [vmem:[#allocation22 + $0x3ec] sm:$0xf0]  ;;  %v13039_v48 = vld [vmem:[#allocation22 + $0x244] sm:$0xf]  ;;  %v10332_v29 = vld [vmem:[#allocation22 + $0x250] sm:$0xf0] }
 0x2c9   :  { %4178 = vmatpush.bf16.msra.mxu0 %v10379_v41 }
 0x2ca   :  { %4152 = vmatpush.bf16.msrb.mxu2 %v10091_v15  ;;  %v10287_v15 = vor.u32 %v13027_v13, %v10284_v14  ;;  %v10380_v13 = vld [vmem:[#allocation22 + $0x2b0] sm:$0xf0] }
 0x2cb   :  { %3349 = vmatpush.bf16.msrb.mxu1 %v9959_v56  ;;  %v10124_v56 = vld [vmem:[#allocation22 + $0xb0] sm:$0xf0] }
 0x2cc   :  { %v10127_v57 = vor.u32 %v12987_v55, %v10124_v56  ;;  %v13059_v55 = vld [vmem:[#allocation22 + $0x2e4] sm:$0xf]  ;;  %v10412_v56 = vld [vmem:[#allocation22 + $0x2f0] sm:$0xf0] }
 0x2cd   :  { %4179 = vmatpush.bf16.msra.mxu0 %v10363_v11  ;;  %v10415_v60 = vor.u32 %v13059_v55, %v10412_v56  ;;  %v13051_v11 = vld [vmem:[#allocation22 + $0x2a4] sm:$0xf]  ;;  %v14600_v14 = vld [vmem:[%s14910_s14] sm:$0xf] }
 0x2ce   :  { %4153 = vmatpush.bf16.msrb.mxu2 %v10075_v26  ;;  %v13023_v26 = vld [vmem:[#allocation22 + $0x1c4] sm:$0xf]  ;;  %v10383_v19 = vor.u32 %v13051_v11, %v10380_v13  ;;  %v10146_v11 = vld [vmem:[#allocation22 + $0xc8] sm:$0xf] }
 0x2cf   :  { %3350 = vmatpush.bf16.msrb.mxu1 %v9943_v2  ;;  %v10108_v2 = vld [vmem:[#allocation22 + $0x90] sm:$0xf0]  ;;  %v10271_v33 = vor.u32 %v13023_v26, %v10268_v32  ;;  %v12999_v26 = vld [vmem:[#allocation22 + $0x104] sm:$0xf] }
 0x2d0   :  { %v10111_v3 = vor.u32 %v12983_v1, %v10108_v2  ;;  %v10204_v1 = vld [vmem:[#allocation22 + $0x150] sm:$0xf0]  ;;  %v13055_v2 = vld [vmem:[#allocation22 + $0x2c4] sm:$0xf] }
 0x2d1   :  { %4180 = vmatpush.bf16.msra.mxu0 %v10347_v21  ;;  %v10207_v41 = vor.u32 %v13007_v22, %v10204_v1  ;;  %v13081_v21 = vld [vmem:[#allocation22 + $0x38c] sm:$0xf0]  ;;  %v13047_v32 = vld [vmem:[#allocation22 + $0x284] sm:$0xf]  ;;  %v2487_v1 = vperm.slane %v14600_v14, 1 }
 0x2d2   :  { %4154 = vmatpush.bf16.msrb.mxu2 %v10059_v35  ;;  %v10491_v24 = vor.u32 %v13081_v21, %v10490_v20  ;;  %v13035_v56 = vld [vmem:[#allocation22 + $0x224] sm:$0xf] }
 0x2d3   :  { %3351 = vmatpush.bf16.msrb.mxu1 %v9927_v5  ;;  %v13001_v5 = vld [vmem:[#allocation22 + $0x10c] sm:$0xf0] }
 0x2d4   :  { %v10171_v7 = vor.u32 %v13001_v5, %v10170_v4  ;;  %v10506_v5 = vld [vmem:[#allocation22 + $0x3a0] sm:$0xf] }
 0x2d5   :  { %v10507_v8 = vor.u32 %v13085_v6, %v10506_v5 }
 0x2d6   :  { %3352 = vmatmul.bf16.vlgmr.msrb.gmra.mxu1 %v14581_v49  ;;  %v10250_v49 = vld [vmem:[#allocation22 + $0x1a0] sm:$0xf]  ;;  %4155 = vmatpush.bf16.msrb.mxu2 %v10043_v58  ;;  %v10255_v58 = vor.u32 %v13019_v38, %v10252_v40  ;;  %v13043_v40 = vld [vmem:[#allocation22 + $0x264] sm:$0xf] }
 0x2d7   :  { %v10251_v37 = vor.u32 %v13021_v36, %v10250_v49  ;;  %v13041_v49 = vld [vmem:[#allocation22 + $0x24c] sm:$0xf0]  ;;  %v12971_v36 = vld [vmem:[#allocation22 + $0x24] sm:$0xf] }
 0x2d8   :  { %v10331_v35 = vor.u32 %v13041_v49, %v10330_v34  ;;  %v10364_v49 = vld [vmem:[#allocation22 + $0x290] sm:$0xf0] }
 0x2d9   :  { %4164 = vmatpush.bf16.msrb.mxu3 %v10251_v37  ;;  %v10060_v37 = vld [vmem:[#allocation22 + $0x30] sm:$0xf0] }
 0x2da   :  { %4204 = vmatpush.bf16.msra.mxu2 %v10159_v43  ;;  %v10063_v39 = vor.u32 %v12971_v36, %v10060_v37  ;;  %4181 = vmatpush.bf16.msra.mxu0 %v10331_v35  ;;  %v10044_v43 = vld [vmem:[#allocation22 + $0x10] sm:$0xf0]  ;;  %v10367_v35 = vor.u32 %v13047_v32, %v10364_v49  ;;  %v10474_v36 = vld [vmem:[#allocation22 + $0x360] sm:$0xf]  ;;  %v13077_v37 = vld [vmem:[#allocation22 + $0x36c] sm:$0xf0] }
 0x2db   :  { %v10047_v44 = vor.u32 %v12967_v51, %v10044_v43  ;;  %v12990_v32 = vld [vmem:[#allocation22 + $0xb4] sm:$0xf0] }
 0x2dd   :  { %4165 = vmatpush.bf16.msrb.mxu3 %v10235_v59  ;;  %v13037_v59 = vld [vmem:[#allocation22 + $0x22c] sm:$0xf0] }
 0x2de   :  { %4205 = vmatpush.bf16.msra.mxu2 %v10143_v27  ;;  %v10315_v9 = vor.u32 %v13037_v59, %v10314_v42 }
 0x2e0   :  { %4182 = vmatpush.bf16.msra.mxu0 %v10315_v9 }
 0x2e1   :  { %4166 = vmatpush.bf16.msrb.mxu3 %v10219_v46  ;;  %v14591_v46 = vpop.f32.mrf.mxu2 }
 0x2e2   :  { %4206 = vmatpush.bf16.msra.mxu2 %v10127_v57 }
 0x2e4   :  { %4183 = vmatpush.bf16.msra.mxu0 %v10299_v30 }
 0x2e5   :  { %4167 = vmatpush.bf16.msrb.mxu3 %v10203_v18  ;;  %v10539_v18 = vor.u32 %v13093_v16, %v10538_v50  ;;  %v10335_v16 = vor.u32 %v13039_v48, %v10332_v29  ;;  %v10098_v29 = vld [vmem:[#allocation22 + $0x68] sm:$0xf] }
 0x2e6   :  { %4207 = vmatpush.bf16.msra.mxu2 %v10111_v3  ;;  %v10396_v3 = vld [vmem:[#allocation22 + $0x2d0] sm:$0xf0] }
 0x2e7   :  { %4190 = vmatpush.bf16.msra.mxu1 %v10539_v18  ;;  %v10399_v4 = vor.u32 %v13055_v2, %v10396_v3  ;;  %v10442_v18 = vld [vmem:[#allocation22 + $0x320] sm:$0xf]  ;;  %v13065_v3 = vld [vmem:[#allocation22 + $0x30c] sm:$0xf0] }
 0x2e8   :  { %4232 = vmatpush.bf16.msrb.mxu0 %v10415_v60  ;;  %v10316_v60 = vld [vmem:[#allocation22 + $0x230] sm:$0xf0] }
 0x2e9   :  { %4168 = vmatpush.bf16.msrb.mxu3 %v10187_v0  ;;  %v14593_v27 = vpop.f32.mrf.mxu3  ;;  %v10523_v0 = vor.u32 %v13089_v63, %v10522_v62  ;;  %v10162_v63 = vld [vmem:[#allocation22 + $0xe8] sm:$0xf]  ;;  %v10319_v22 = vor.u32 %v13035_v56, %v10316_v60 }
 0x2ea   :  { %4208 = vmatpush.bf16.msra.mxu2 %v10095_v12  ;;  %v10191_v12 = vor.u32 %v13003_v53, %v10188_v10  ;;  %v13091_v53 = vld [vmem:[#allocation22 + $0x3e4] sm:$0xf] }
 0x2eb   :  { %4191 = vmatpush.bf16.msra.mxu1 %v10523_v0  ;;  %v12998_v0 = vld [vmem:[#allocation22 + $0xf4] sm:$0xf0] }
 0x2ec   :  { %4233 = vmatpush.bf16.msrb.mxu0 %v10399_v4  ;;  %v10163_v5 = vor.u32 %v12998_v0, %v10162_v63  ;;  %v12978_v63 = vld [vmem:[#allocation22 + $0x54] sm:$0xf0]  ;;  %v10274_v0 = vld [vmem:[#allocation22 + $0x1c8] sm:$0xf] }
 0x2ed   :  { %4169 = vmatpush.bf16.msrb.mxu3 %v10171_v7  ;;  %v3145_v7 = vpop.f32.mrf.mxu2 }
 0x2ee   :  { %4209 = vmatpush.bf16.msra.mxu2 %v10079_v31  ;;  %v10172_v31 = vld [vmem:[#allocation22 + $0x110] sm:$0xf0] }
 0x2ef   :  { %4192 = vmatpush.bf16.msra.mxu1 %v10507_v8  ;;  %v10175_v34 = vor.u32 %v12999_v26, %v10172_v31  ;;  %v10300_v8 = vld [vmem:[#allocation22 + $0x210] sm:$0xf0]  ;;  %v10130_v26 = vld [vmem:[#allocation22 + $0xa8] sm:$0xf] }
 0x2f0   :  { %4234 = vmatpush.bf16.msrb.mxu0 %v10383_v19 }
 0x2f1   :  { %4218 = vmatpush.bf16.msra.mxu3 %v10287_v15  ;;  %v3159_v15 = vpop.f32.mrf.mxu3 }
 0x2f2   :  { %4210 = vmatpush.bf16.msra.mxu2 %v10063_v39  ;;  %v10475_v39 = vor.u32 %v13077_v37, %v10474_v36  ;;  %v10131_v37 = vor.u32 %v12990_v32, %v10130_v26  ;;  %v10050_v32 = vld [vmem:[#allocation22 + $0x8] sm:$0xf] }
 0x2f3   :  { %4193 = vmatpush.bf16.msra.mxu1 %v10491_v24 }
 0x2f4   :  { %v14595_v57 = vpop.f32.mrf.mxu0  ;;  %4235 = vmatpush.bf16.msrb.mxu0 %v10367_v35 }
 0x2f5   :  { %4219 = vmatpush.bf16.msra.mxu3 %v10271_v33  ;;  %v2486_v33 = vperm.slane %v14600_v14, 0  ;;  %v3199_v9 = vpop.f32.mrf.mxu2 }
 0x2f6   :  { %4211 = vmatpush.bf16.msra.mxu2 %v10047_v44  ;;  %v13073_v44 = vld [vmem:[#allocation22 + $0x34c] sm:$0xf0]  ;;  %v3200_v31 = vadd.f32 %v3199_v9, %v2487_v1 }
 0x2f7   :  { %v3144_v42 = vadd.f32 %v14591_v46, %v2486_v33  ;;  %v3146_v51 = vadd.f32 %v3145_v7, %v2486_v33  ;;  %4194 = vmatpush.bf16.msra.mxu1 %v10475_v39  ;;  %v13031_v7 = vld [vmem:[#allocation22 + $0x204] sm:$0xf] }
 0x2f8   :  { %v10303_v13 = vor.u32 %v13031_v7, %v10300_v8  ;;  %v13087_v33 = vld [vmem:[#allocation22 + $0x3c4] sm:$0xf]  ;;  %v10066_v7 = vld [vmem:[#allocation22 + $0x28] sm:$0xf]  ;;  %v12974_v8 = vld [vmem:[#allocation22 + $0x34] sm:$0xf0] }
 0x2f9   :  { %4220 = vmatpush.bf16.msra.mxu3 %v10255_v58  ;;  %v10348_v58 = vld [vmem:[#allocation22 + $0x270] sm:$0xf0]  ;;  %v3158_v43 = vadd.f32 %v14593_v27, %v3144_v42  ;;  %v3213_v45 = vpop.f32.mrf.mxu3  ;;  %v3160_v50 = vadd.f32 %v3159_v15, %v3146_v51  ;;  %v13083_v42 = vld [vmem:[#allocation22 + $0x3a4] sm:$0xf]  ;;  %v10067_v26 = vor.u32 %v12974_v8, %v10066_v7  ;;  %v13054_v7 = vld [vmem:[#allocation22 + $0x2b4] sm:$0xf0] }
 0x2fa   :  { %v10351_v59 = vor.u32 %v13043_v40, %v10348_v58  ;;  %v10540_v15 = vld [vmem:[#allocation22 + $0x3f0] sm:$0xf0]  ;;  %v3214_v36 = vadd.f32 %v3213_v45, %v3200_v31  ;;  %v12986_v58 = vld [vmem:[#allocation22 + $0x94] sm:$0xf0]  ;;  %v10290_v45 = vld [vmem:[#allocation22 + $0x1e8] sm:$0xf] }
 0x2fb   :  { %v3172_v30 = vadd.f32 %v14595_v57, %v3158_v43  ;;  %v10543_v20 = vor.u32 %v13091_v53, %v10540_v15  ;;  %v10258_v53 = vld [vmem:[#allocation22 + $0x1a8] sm:$0xf]  ;;  %v10460_v15 = vld [vmem:[#allocation22 + $0x350] sm:$0xf0]  ;;  %v12984_v8 = vld [vmem:[#allocation22 + $0x8c] sm:$0xf] }
 0x2fc   :  { %v3173_v23 = vpop.f32.mrf.mxu0  ;;  %4236 = vmatpush.bf16.msrb.mxu0 %v10351_v59  ;;  %v10508_v59 = vld [vmem:[#allocation22 + $0x3b0] sm:$0xf0] }
 0x2fd   :  { %4221 = vmatpush.bf16.msra.mxu3 %v10239_v47  ;;  %v10459_v47 = vor.u32 %v13073_v44, %v10458_v25  ;;  %v3174_v17 = vadd.f32 %v3173_v23, %v3160_v50  ;;  %v3201_v4 = vpop.f32.mrf.mxu2  ;;  %v10511_v43 = vor.u32 %v13083_v42, %v10508_v59  ;;  %v12982_v50 = vld [vmem:[#allocation22 + $0x74] sm:$0xf0] }
 0x2fe   :  { %v3202_v35 = vadd.f32 %v3201_v4, %v2487_v1  ;;  %v10099_v56 = vor.u32 %v12982_v50, %v10098_v29  ;;  %v13026_v1 = vld [vmem:[#allocation22 + $0x1d4] sm:$0xf0]  ;;  %v10418_v29 = vld [vmem:[#allocation22 + $0x2e8] sm:$0xf]  ;;  %v13063_v50 = vld [vmem:[#allocation22 + $0x304] sm:$0xf] }
 0x2ff   :  { %4195 = vmatpush.bf16.msra.mxu1 %v10459_v47 }
 0x300   :  { %4237 = vmatpush.bf16.msrb.mxu0 %v10335_v16  ;;  %v13030_v16 = vld [vmem:[#allocation22 + $0x1f4] sm:$0xf0] }
 0x301   :  { %4222 = vmatpush.bf16.msra.mxu3 %v10223_v54  ;;  %v13069_v54 = vld [vmem:[#allocation22 + $0x32c] sm:$0xf0]  ;;  %v3215_v19 = vpop.f32.mrf.mxu3  ;;  %v10291_v60 = vor.u32 %v13030_v16, %v10290_v45  ;;  %v10428_v45 = vld [vmem:[#allocation22 + $0x310] sm:$0xf0]  ;;  %v12992_v16 = vld [vmem:[#allocation22 + $0xcc] sm:$0xf] }
 0x302   :  { %v10443_v27 = vor.u32 %v13069_v54, %v10442_v18  ;;  %v3216_v39 = vadd.f32 %v3215_v19, %v3202_v35  ;;  %v2488_v54 = vperm.slane %v14600_v14, 2 }
 0x304   :  { %4196 = vmatpush.bf16.msra.mxu1 %v10443_v27  ;;  %4238 = vmatpush.bf16.msrb.mxu0 %v10319_v22 }
 0x305   :  { %4223 = vmatpush.bf16.msra.mxu3 %v10207_v41  ;;  %v3227_v28 = vpop.f32.mrf.mxu0  ;;  %v10426_v41 = vld [vmem:[#allocation22 + $0x300] sm:$0xf]  ;;  %v3255_v51 = vpop.f32.mrf.mxu2 }
 0x306   :  { %v10427_v6 = vor.u32 %v13065_v3, %v10426_v41  ;;  %v3228_v40 = vadd.f32 %v3227_v28, %v3214_v36  ;;  %v10492_v28 = vld [vmem:[#allocation22 + $0x390] sm:$0xf0]  ;;  %v13018_v36 = vld [vmem:[#allocation22 + $0x194] sm:$0xf0] }
 0x308   :  { %4197 = vmatpush.bf16.msra.mxu1 %v10427_v6  ;;  %4239 = vmatpush.bf16.msrb.mxu0 %v10303_v13  ;;  %v10275_v6 = vor.u32 %v13026_v1, %v10274_v0  ;;  %v13071_v13 = vld [vmem:[#allocation22 + $0x344] sm:$0xf]  ;;  %v13058_v0 = vld [vmem:[#allocation22 + $0x2d4] sm:$0xf0]  ;;  %v12988_v1 = vld [vmem:[#allocation22 + $0xac] sm:$0xf] }
 0x309   :  { %4224 = vmatpush.bf16.msra.mxu3 %v10191_v12  ;;  %v12994_v12 = vld [vmem:[#allocation22 + $0xd4] sm:$0xf0] }
 0x30a   :  { %v10147_v24 = vor.u32 %v12994_v12, %v10146_v11  ;;  %v3269_v44 = vpop.f32.mrf.mxu3  ;;  %v3256_v11 = vadd.f32 %v3255_v51, %v2488_v54  ;;  %v13022_v12 = vld [vmem:[#allocation22 + $0x1b4] sm:$0xf0] }
 0x30b   :  { %v10259_v31 = vor.u32 %v13022_v12, %v10258_v53  ;;  %v10116_v53 = vld [vmem:[#allocation22 + $0x98] sm:$0xf0] }
 0x30c   :  { %4246 = vmatpush.bf16.msrb.mxu1 %v10543_v20  ;;  %v10463_v20 = vor.u32 %v13071_v13, %v10460_v15 }
 0x30d   :  { %4225 = vmatpush.bf16.msra.mxu3 %v10175_v34  ;;  %v3229_v21 = vpop.f32.mrf.mxu0  ;;  %v10524_v34 = vld [vmem:[#allocation22 + $0x3d0] sm:$0xf0]  ;;  %v3257_v3 = vpop.f32.mrf.mxu2 }
 0x30e   :  { %v10527_v49 = vor.u32 %v13087_v33, %v10524_v34  ;;  %v3230_v25 = vadd.f32 %v3229_v21, %v3216_v39  ;;  %v3258_v21 = vadd.f32 %v3257_v3, %v2488_v54  ;;  %v12970_v33 = vld [vmem:[#allocation22 + $0x14] sm:$0xf0]  ;;  %v10242_v34 = vld [vmem:[#allocation22 + $0x188] sm:$0xf]  ;;  %v12996_v39 = vld [vmem:[#allocation22 + $0xec] sm:$0xf] }
 0x310   :  { %4247 = vmatpush.bf16.msrb.mxu1 %v10527_v49 }
 0x312   :  { %v3271_v19 = vpop.f32.mrf.mxu3 }
 0x313   :  { %v3185_v38 = vpop.f32.mrf.mxu1  ;;  %v3272_v49 = vadd.f32 %v3271_v19, %v3258_v21  ;;  %v10119_v19 = vor.u32 %v12984_v8, %v10116_v53  ;;  %v13002_v21 = vld [vmem:[#allocation22 + $0x114] sm:$0xf0] }
 0x314   :  { %v3186_v46 = vadd.f32 %v3185_v38, %v3172_v30  ;;  %v10114_v38 = vld [vmem:[#allocation22 + $0x88] sm:$0xf]  ;;  %4248 = vmatpush.bf16.msrb.mxu1 %v10511_v43  ;;  %v10051_v43 = vor.u32 %v12970_v33, %v10050_v32  ;;  %v13028_v33 = vld [vmem:[#allocation22 + $0x1ec] sm:$0xf] }
 0x315   :  { %v10115_v48 = vor.u32 %v12986_v58, %v10114_v38  ;;  %v10444_v38 = vld [vmem:[#allocation22 + $0x330] sm:$0xf0] }
 0x316   :  { %v3358_v2 = vmax.f32 %v3186_v46, 0.0  ;;  %v3283_v46 = vpop.f32.mrf.mxu0 }
 0x31b   :  { %v3187_v55 = vpop.f32.mrf.mxu1 }
 0x31c   :  { %v3188_v62 = vadd.f32 %v3187_v55, %v3174_v17  ;;  %v13079_v17 = vld [vmem:[#allocation22 + $0x384] sm:$0xf] }
 0x31d   :  { %v10495_v18 = vor.u32 %v13079_v17, %v10492_v28  ;;  %v10148_v17 = vld [vmem:[#allocation22 + $0xd8] sm:$0xf0]  ;;  %v10431_v28 = vor.u32 %v13063_v50, %v10428_v45  ;;  %v12972_v50 = vld [vmem:[#allocation22 + $0x2c] sm:$0xf] }
 0x31e   :  { %v3362_v57 = vmax.f32 %v3188_v62, 0.0  ;;  %v10082_v62 = vld [vmem:[#allocation22 + $0x48] sm:$0xf]  ;;  %v10068_v45 = vld [vmem:[#allocation22 + $0x38] sm:$0xf0] }
 0x31f   :  { %4249 = vmatpush.bf16.msrb.mxu1 %v10495_v18 }
 0x320   :  { %v14607_v10 = vpack.c.bf16 %v3362_v57, %v3358_v2  ;;  %v13075_v2 = vld [vmem:[#allocation22 + $0x364] sm:$0xf]  ;;  %v10476_v57 = vld [vmem:[#allocation22 + $0x370] sm:$0xf0] }
 0x321   :  { %v10479_v41 = vor.u32 %v13075_v2, %v10476_v57  ;;  %v10132_v2 = vld [vmem:[#allocation22 + $0xb8] sm:$0xf0] }
 0x322   :  { %4156 = vmatmul.bf16.vlgmr.msrb.gmra.mxu2 %v14607_v10  ;;  %v10135_v3 = vor.u32 %v12988_v1, %v10132_v2  ;;  %v12968_v1 = vld [vmem:[#allocation22 + $0xc] sm:$0xf]  ;;  %v10052_v2 = vld [vmem:[#allocation22 + $0x18] sm:$0xf0] }
 0x323   :  { %4260 = vmatpush.bf16.msrb.mxu2 %v10163_v5  ;;  %v3241_v23 = vpop.f32.mrf.mxu1  ;;  %v10083_v5 = vor.u32 %v12978_v63, %v10082_v62  ;;  %4250 = vmatpush.bf16.msrb.mxu1 %v10479_v41  ;;  %v13010_v62 = vld [vmem:[#allocation22 + $0x154] sm:$0xf0]  ;;  %v10402_v63 = vld [vmem:[#allocation22 + $0x2c8] sm:$0xf]  ;;  %v10055_v53 = vor.u32 %v12968_v1, %v10052_v2  ;;  %v13048_v1 = vld [vmem:[#allocation22 + $0x28c] sm:$0xf] }
 0x324   :  { %v3242_v9 = vadd.f32 %v3241_v23, %v3228_v40  ;;  %v3270_v23 = vadd.f32 %v3269_v44, %v3256_v11  ;;  %v10164_v40 = vld [vmem:[#allocation22 + $0xf8] sm:$0xf0]  ;;  %v13014_v44 = vld [vmem:[#allocation22 + $0x174] sm:$0xf0]  ;;  %v10403_v41 = vor.u32 %v13058_v0, %v10402_v63  ;;  %v3311_v11 = vpop.f32.mrf.mxu2 }
 0x325   :  { %v10372_v2 = vld [vmem:[#allocation22 + $0x298] sm:$0xf0] }
 0x326   :  { %v3359_v55 = vmax.f32 %v3242_v9, 0.0  ;;  %v3284_v35 = vadd.f32 %v3283_v46, %v3270_v23  ;;  %v10226_v9 = vld [vmem:[#allocation22 + $0x168] sm:$0xf] }
 0x327   :  { %4261 = vmatpush.bf16.msrb.mxu2 %v10147_v24  ;;  %v3285_v24 = vpop.f32.mrf.mxu0  ;;  %4251 = vmatpush.bf16.msrb.mxu1 %v10463_v20  ;;  %v10227_v54 = vor.u32 %v13014_v44, %v10226_v9  ;;  %v10178_v20 = vld [vmem:[#allocation22 + $0x108] sm:$0xf] }
 0x328   :  { %v3286_v42 = vadd.f32 %v3285_v24, %v3272_v49  ;;  %v10370_v23 = vld [vmem:[#allocation22 + $0x288] sm:$0xf]  ;;  %v13050_v24 = vld [vmem:[#allocation22 + $0x294] sm:$0xf0]  ;;  %v10179_v49 = vor.u32 %v13002_v21, %v10178_v20 }
 0x329   :  { %v10546_v20 = vld [vmem:[#allocation22 + $0x3e8] sm:$0xf]  ;;  %v13094_v21 = vld [vmem:[#allocation22 + $0x3f4] sm:$0xf0] }
 0x32a   :  { %v3325_v13 = vpop.f32.mrf.mxu3 }
 0x32b   :  { %4262 = vmatpush.bf16.msrb.mxu2 %v10131_v37  ;;  %v3243_v47 = vpop.f32.mrf.mxu1  ;;  %v13067_v37 = vld [vmem:[#allocation22 + $0x324] sm:$0xf] }
 0x32c   :  { %v3244_v30 = vadd.f32 %v3243_v47, %v3230_v25  ;;  %v10447_v58 = vor.u32 %v13067_v37, %v10444_v38  ;;  %v10243_v25 = vor.u32 %v13018_v36, %v10242_v34  ;;  %v10292_v34 = vld [vmem:[#allocation22 + $0x1f8] sm:$0xf0]  ;;  %v10371_v36 = vor.u32 %v13050_v24, %v10370_v23  ;;  %v10354_v38 = vld [vmem:[#allocation22 + $0x268] sm:$0xf]  ;;  %v13012_v23 = vld [vmem:[#allocation22 + $0x16c] sm:$0xf] }
 0x32d   :  { %v10228_v24 = vld [vmem:[#allocation22 + $0x178] sm:$0xf0] }
 0x32e   :  { %v3363_v27 = vmax.f32 %v3244_v30, 0.0  ;;  %4252 = vmatpush.bf16.msrb.mxu1 %v10447_v58  ;;  %v13062_v30 = vld [vmem:[#allocation22 + $0x2f4] sm:$0xf0]  ;;  %v12976_v58 = vld [vmem:[#allocation22 + $0x4c] sm:$0xf] }
 0x32f   :  { %4263 = vmatpush.bf16.msrb.mxu2 %v10115_v48  ;;  %v10167_v48 = vor.u32 %v12996_v39, %v10164_v40  ;;  %v10295_v39 = vor.u32 %v13028_v33, %v10292_v34  ;;  %v13046_v40 = vld [vmem:[#allocation22 + $0x274] sm:$0xf0]  ;;  %v10650_v34 = vld [vmem:[#allocation26 + $0xc0] sm:$0xf] }
 0x330   :  { %v14611_v22 = vpack.c.bf16 %v3363_v27, %v3359_v55  ;;  %v10419_v27 = vor.u32 %v13062_v30, %v10418_v29  ;;  %v10355_v9 = vor.u32 %v13046_v40, %v10354_v38  ;;  %v13042_v29 = vld [vmem:[#allocation22 + $0x254] sm:$0xf0]  ;;  %v10231_v38 = vor.u32 %v13012_v23, %v10228_v24  ;;  %v10530_v40 = vld [vmem:[#allocation22 + $0x3c8] sm:$0xf] }
 0x331   :  { %v10652_v23 = vld [vmem:[#allocation26 + $0xd0] sm:$0xf0] }
 0x332   :  { %4170 = vmatmul.bf16.vlgmr.msrb.gmra.mxu3 %v14611_v22  ;;  %4212 = vmatmul.bf16.vlgmr.msra.gmra.mxu2 %v14607_v10  ;;  %v3327_v30 = vpop.f32.mrf.mxu3 }
 0x333   :  { %4264 = vmatpush.bf16.msrb.mxu2 %v10099_v56  ;;  %4274 = vmatpush.bf16.msrb.mxu3 %v10291_v60  ;;  %v3297_v4 = vpop.f32.mrf.mxu1  ;;  %v10151_v56 = vor.u32 %v12992_v16, %v10148_v17  ;;  %v10210_v60 = vld [vmem:[#allocation22 + $0x148] sm:$0xf]  ;;  %v13020_v16 = vld [vmem:[#allocation22 + $0x1ac] sm:$0xf]  ;;  %v10260_v17 = vld [vmem:[#allocation22 + $0x1b8] sm:$0xf0] }
 0x334   :  { %v3298_v59 = vadd.f32 %v3297_v4, %v3284_v35  ;;  %4253 = vmatpush.bf16.msrb.mxu1 %v10431_v28  ;;  %v10211_v57 = vor.u32 %v13010_v62, %v10210_v60  ;;  %v10194_v4 = vld [vmem:[#allocation22 + $0x128] sm:$0xf]  ;;  %v2489_v35 = vperm.slane %v14600_v14, 3  ;;  %v13038_v60 = vld [vmem:[#allocation22 + $0x234] sm:$0xf0]  ;;  %v10263_v0 = vor.u32 %v13020_v16, %v10260_v17 }
 0x335   :  { %v3339_v32 = vpop.f32.mrf.mxu0  ;;  %v10196_v16 = vld [vmem:[#allocation22 + $0x138] sm:$0xf0]  ;;  %v13052_v17 = vld [vmem:[#allocation22 + $0x2ac] sm:$0xf] }
 0x336   :  { %v3360_v46 = vmax.f32 %v3298_v59, 0.0  ;;  %v13024_v59 = vld [vmem:[#allocation22 + $0x1cc] sm:$0xf]  ;;  %v3312_v14 = vadd.f32 %v3311_v11, %v2489_v35  ;;  %v10306_v11 = vld [vmem:[#allocation22 + $0x208] sm:$0xf] }
 0x337   :  { %4265 = vmatpush.bf16.msrb.mxu2 %v10083_v5  ;;  %4275 = vmatpush.bf16.msrb.mxu3 %v10275_v6  ;;  %v13006_v5 = vld [vmem:[#allocation22 + $0x134] sm:$0xf0]  ;;  %v10386_v6 = vld [vmem:[#allocation22 + $0x2a8] sm:$0xf] }
 0x338   :  { %v10195_v12 = vor.u32 %v13006_v5, %v10194_v4  ;;  %v10387_v15 = vor.u32 %v13054_v7, %v10386_v6  ;;  %v13253_v4 = vld [vmem:[#allocation26 + $0xec] sm:$0xf0] }
 0x33b   :  { %4266 = vmatpush.bf16.msrb.mxu2 %v10067_v26  ;;  %4276 = vmatpush.bf16.msrb.mxu3 %v10259_v31  ;;  %v3299_v51 = vpop.f32.mrf.mxu1  ;;  %v12980_v26 = vld [vmem:[#allocation22 + $0x6c] sm:$0xf]  ;;  %v10100_v31 = vld [vmem:[#allocation22 + $0x78] sm:$0xf0] }
 0x33c   :  { %v3300_v47 = vadd.f32 %v3299_v51, %v3286_v42  ;;  %v10103_v37 = vor.u32 %v12980_v26, %v10100_v31  ;;  %v10084_v42 = vld [vmem:[#allocation22 + $0x58] sm:$0xf0]  ;;  %v13060_v26 = vld [vmem:[#allocation22 + $0x2ec] sm:$0xf] }
 0x33d   :  { %v10276_v51 = vld [vmem:[#allocation22 + $0x1d8] sm:$0xf0]  ;;  %v10087_v44 = vor.u32 %v12976_v58, %v10084_v42  ;;  %v13090_v58 = vld [vmem:[#allocation22 + $0x3d4] sm:$0xf0]  ;;  %v13008_v42 = vld [vmem:[#allocation22 + $0x14c] sm:$0xf] }
 0x33e   :  { %v3364_v18 = vmax.f32 %v3300_v47, 0.0  ;;  %v10338_v47 = vld [vmem:[#allocation22 + $0x248] sm:$0xf]  ;;  %v10420_v31 = vld [vmem:[#allocation22 + $0x2f8] sm:$0xf0] }
 0x33f   :  { %4267 = vmatpush.bf16.msrb.mxu2 %v10051_v43  ;;  %4277 = vmatpush.bf16.msrb.mxu3 %v10243_v25  ;;  %v3313_v43 = vpop.f32.mrf.mxu2 }
 0x340   :  { %v14615_v55 = vpack.c.bf16 %v3364_v18, %v3360_v46  ;;  %v3314_v28 = vadd.f32 %v3313_v43, %v2489_v35  ;;  %v3326_v46 = vadd.f32 %v3325_v13, %v3312_v14  ;;  %v3341_v18 = vpop.f32.mrf.mxu0  ;;  %v13056_v43 = vld [vmem:[#allocation22 + $0x2cc] sm:$0xf] }
 0x342   :  { %4184 = vmatmul.bf16.vlgmr.msra.gmra.mxu0 %v14615_v55  ;;  %4226 = vmatmul.bf16.vlgmr.msra.gmra.mxu3 %v14611_v22  ;;  %v3328_v62 = vadd.f32 %v3327_v30, %v3314_v28  ;;  %v3340_v63 = vadd.f32 %v3339_v32, %v3326_v46  ;;  %v10388_v28 = vld [vmem:[#allocation22 + $0x2b8] sm:$0xf0]  ;;  %v13241_v46 = vld [vmem:[#allocation26 + $0x8c] sm:$0xf0] }
 0x343   :  { %4316 = vmatpush.bf16.msra.mxu2 %v10167_v48  ;;  %4278 = vmatpush.bf16.msrb.mxu3 %v10227_v54  ;;  %v10279_v48 = vor.u32 %v13024_v59, %v10276_v51  ;;  %v10339_v54 = vor.u32 %v13042_v29, %v10338_v47  ;;  %v10212_v51 = vld [vmem:[#allocation22 + $0x158] sm:$0xf0]  ;;  %v10531_v47 = vor.u32 %v13090_v58, %v10530_v40  ;;  %v10514_v29 = vld [vmem:[#allocation22 + $0x3a8] sm:$0xf]  ;;  %v10636_v40 = vld [vmem:[#allocation26 + $0xb0] sm:$0xf0] }
 0x344   :  { %4268 = vmatmul.bf16.vlgmr.msrb.gmra.mxu2 %v14607_v10  ;;  %4288 = vmatpush.bf16.msra.mxu0 %v10419_v27  ;;  %v10071_v27 = vor.u32 %v12972_v50, %v10068_v45  ;;  %v3342_v5 = vadd.f32 %v3341_v18, %v3328_v62  ;;  %v10215_v14 = vor.u32 %v13008_v42, %v10212_v51  ;;  %v13086_v50 = vld [vmem:[#allocation22 + $0x3b4] sm:$0xf0]  ;;  %v13004_v45 = vld [vmem:[#allocation22 + $0x12c] sm:$0xf] }
 0x345   :  { %v10515_v18 = vor.u32 %v13086_v50, %v10514_v29  ;;  %v13000_v62 = vld [vmem:[#allocation22 + $0x10c] sm:$0xf]  ;;  %v13070_v51 = vld [vmem:[#allocation22 + $0x334] sm:$0xf0] }
 0x346   :  { %v10620_v29 = vld [vmem:[#allocation26 + $0x90] sm:$0xf0] }
 0x347   :  { %4317 = vmatpush.bf16.msra.mxu2 %v10151_v56  ;;  %4279 = vmatpush.bf16.msrb.mxu3 %v10211_v57  ;;  %v10322_v56 = vld [vmem:[#allocation22 + $0x228] sm:$0xf]  ;;  %v13016_v57 = vld [vmem:[#allocation22 + $0x18c] sm:$0xf] }
 0x348   :  { %4289 = vmatpush.bf16.msra.mxu0 %v10403_v41  ;;  %v10244_v41 = vld [vmem:[#allocation22 + $0x198] sm:$0xf0]  ;;  %v10323_v8 = vor.u32 %v13038_v60, %v10322_v56  ;;  %v10391_v56 = vor.u32 %v13052_v17, %v10388_v28  ;;  %v13082_v60 = vld [vmem:[#allocation22 + $0x394] sm:$0xf0] }
 0x34b   :  { %4318 = vmatpush.bf16.msra.mxu2 %v10135_v3  ;;  %4280 = vmatpush.bf16.msrb.mxu3 %v10195_v12  ;;  %v10666_v3 = vld [vmem:[#allocation26 + $0xe0] sm:$0xf]  ;;  %v13034_v12 = vld [vmem:[#allocation22 + $0x214] sm:$0xf0] }
 0x34c   :  { %4290 = vmatpush.bf16.msra.mxu0 %v10387_v15  ;;  %v10247_v15 = vor.u32 %v13016_v57, %v10244_v41  ;;  %v10307_v35 = vor.u32 %v13034_v12, %v10306_v11  ;;  %v10602_v57 = vld [vmem:[#allocation26 + $0x60] sm:$0xf]  ;;  %v13237_v41 = vld [vmem:[#allocation26 + $0x6c] sm:$0xf0] }
 0x34d   :  { %v10603_v11 = vor.u32 %v13237_v41, %v10602_v57  ;;  %v10532_v57 = vld [vmem:[#allocation22 + $0x3d8] sm:$0xf0] }
 0x34f   :  { %4319 = vmatpush.bf16.msra.mxu2 %v10119_v19  ;;  %4281 = vmatpush.bf16.msrb.mxu3 %v10179_v49  ;;  %v10667_v19 = vor.u32 %v13253_v4, %v10666_v3  ;;  %v13249_v49 = vld [vmem:[#allocation26 + $0xcc] sm:$0xf0]  ;;  %v13251_v3 = vld [vmem:[#allocation26 + $0xe4] sm:$0xf]  ;;  %v10668_v4 = vld [vmem:[#allocation26 + $0xf0] sm:$0xf0] }
 0x350   :  { %4291 = vmatpush.bf16.msra.mxu0 %v10371_v36  ;;  %v10547_v36 = vor.u32 %v13094_v21, %v10546_v20  ;;  %v10651_v59 = vor.u32 %v13249_v49, %v10650_v34  ;;  %v10671_v12 = vor.u32 %v13251_v3, %v10668_v4  ;;  %v13233_v20 = vld [vmem:[#allocation26 + $0x4c] sm:$0xf0]  ;;  %v13247_v21 = vld [vmem:[#allocation26 + $0xc4] sm:$0xf]  ;;  %v13040_v49 = vld [vmem:[#allocation22 + $0x24c] sm:$0xf] }
 0x351   :  { %v10655_v34 = vor.u32 %v13247_v21, %v10652_v23  ;;  %v13231_v3 = vld [vmem:[#allocation26 + $0x44] sm:$0xf]  ;;  %v10588_v4 = vld [vmem:[#allocation26 + $0x50] sm:$0xf0] }
 0x352   :  { %4240 = vmatmul.bf16.vlgmr.msrb.gmra.mxu0 %v14615_v55  ;;  %4282 = vmatmul.bf16.vlgmr.msrb.gmra.mxu3 %v14611_v22 }
 0x353   :  { %v3353_v25 = vpop.f32.mrf.mxu1  ;;  %4320 = vmatpush.bf16.msra.mxu2 %v10103_v37  ;;  %4330 = vmatpush.bf16.msra.mxu3 %v10295_v39  ;;  %v10423_v39 = vor.u32 %v13060_v26, %v10420_v31  ;;  %v10466_v31 = vld [vmem:[#allocation22 + $0x348] sm:$0xf] }
 0x354   :  { %4292 = vmatpush.bf16.msra.mxu0 %v10355_v9  ;;  %v3354_v6 = vadd.f32 %v3353_v25, %v3340_v63  ;;  %v10404_v25 = vld [vmem:[#allocation22 + $0x2d8] sm:$0xf0]  ;;  %v10634_v9 = vld [vmem:[#allocation26 + $0xa0] sm:$0xf] }
 0x355   :  { %v10180_v63 = vld [vmem:[#allocation22 + $0x118] sm:$0xf0] }
 0x356   :  { %v3361_v32 = vmax.f32 %v3354_v6, 0.0  ;;  %v10183_v6 = vor.u32 %v13000_v62, %v10180_v63  ;;  %v13254_v62 = vld [vmem:[#allocation26 + $0xf4] sm:$0xf0] }
 0x357   :  { %4321 = vmatpush.bf16.msra.mxu2 %v10087_v44  ;;  %4331 = vmatpush.bf16.msra.mxu3 %v10279_v48  ;;  %v13245_v44 = vld [vmem:[#allocation26 + $0xac] sm:$0xf0]  ;;  %v10407_v48 = vor.u32 %v13056_v43, %v10404_v25 }
 0x358   :  { %4293 = vmatpush.bf16.msra.mxu0 %v10339_v54  ;;  %v10635_v30 = vor.u32 %v13245_v44, %v10634_v9  ;;  %v10498_v54 = vld [vmem:[#allocation22 + $0x388] sm:$0xf]  ;;  %v13036_v9 = vld [vmem:[#allocation22 + $0x22c] sm:$0xf]  ;;  %v10324_v44 = vld [vmem:[#allocation22 + $0x238] sm:$0xf0] }
 0x35b   :  { %v3355_v7 = vpop.f32.mrf.mxu1  ;;  %4322 = vmatpush.bf16.msra.mxu2 %v10071_v27  ;;  %4332 = vmatpush.bf16.msra.mxu3 %v10263_v0  ;;  %v10199_v27 = vor.u32 %v13004_v45, %v10196_v16  ;;  %v10327_v45 = vor.u32 %v13036_v9, %v10324_v44  ;;  %v13032_v16 = vld [vmem:[#allocation22 + $0x20c] sm:$0xf]  ;;  %v13234_v9 = vld [vmem:[#allocation26 + $0x54] sm:$0xf0] }
 0x35c   :  { %v3356_v13 = vadd.f32 %v3355_v7, %v3342_v5  ;;  %4294 = vmatpush.bf16.msra.mxu0 %v10323_v8  ;;  %v10499_v5 = vor.u32 %v13082_v60, %v10498_v54  ;;  %v10375_v7 = vor.u32 %v13048_v1, %v10372_v2  ;;  %v10482_v8 = vld [vmem:[#allocation22 + $0x368] sm:$0xf]  ;;  %v10674_v60 = vld [vmem:[#allocation26 + $0xe8] sm:$0xf] }
 0x35d   :  { %v13235_v54 = vld [vmem:[#allocation26 + $0x64] sm:$0xf]  ;;  %v13088_v2 = vld [vmem:[#allocation22 + $0x3cc] sm:$0xf]  ;;  %v10675_v41 = vor.u32 %v13254_v62, %v10674_v60  ;;  %v13121_v60 = vld [vmem:[#allocation25 + $0xcc] sm:$0xf0] }
 0x35e   :  { %v3365_v33 = vmax.f32 %v3356_v13, 0.0  ;;  %v13044_v13 = vld [vmem:[#allocation22 + $0x26c] sm:$0xf] }
 0x35f   :  { %4323 = vmatpush.bf16.msra.mxu2 %v10055_v53  ;;  %4333 = vmatpush.bf16.msra.mxu3 %v10247_v15  ;;  %v13078_v53 = vld [vmem:[#allocation22 + $0x374] sm:$0xf0]  ;;  %v10356_v15 = vld [vmem:[#allocation22 + $0x278] sm:$0xf0] }
 0x360   :  { %v14623_v37 = vpack.c.bf16 %v3365_v33, %v3361_v32  ;;  %4295 = vmatpush.bf16.msra.mxu0 %v10307_v35  ;;  %v10483_v24 = vor.u32 %v13078_v53, %v10482_v8  ;;  %v10359_v26 = vor.u32 %v13044_v13, %v10356_v15  ;;  %v13074_v32 = vld [vmem:[#allocation22 + $0x354] sm:$0xf0]  ;;  %v10340_v35 = vld [vmem:[#allocation22 + $0x258] sm:$0xf0]  ;;  %v10591_v8 = vor.u32 %v13231_v3, %v10588_v4  ;;  %v13084_v53 = vld [vmem:[#allocation22 + $0x3ac] sm:$0xf] }
 0x361   :  { %v10467_v58 = vor.u32 %v13074_v32, %v10466_v31  ;;  %v10343_v42 = vor.u32 %v13040_v49, %v10340_v35  ;;  %v13227_v13 = vld [vmem:[#allocation26 + $0x24] sm:$0xf]  ;;  %v10572_v15 = vld [vmem:[#allocation26 + $0x30] sm:$0xf0]  ;;  %v13242_v49 = vld [vmem:[#allocation26 + $0x94] sm:$0xf0] }
 0x362   :  { %4198 = vmatmul.bf16.vlgmr.msra.gmra.mxu1 %v14623_v37  ;;  %4324 = vmatmul.bf16.vlgmr.msra.gmra.mxu2 %v14607_v10  ;;  %v10618_v10 = vld [vmem:[#allocation26 + $0x80] sm:$0xf]  ;;  %v10575_v23 = vor.u32 %v13227_v13, %v10572_v15  ;;  %v13223_v32 = vld [vmem:[#allocation26 + $0x4] sm:$0xf]  ;;  %v13117_v3 = vld [vmem:[#allocation25 + $0xac] sm:$0xf0] }
 0x363   :  { %4704 = vmatpush.bf16.msrb.mxu2 %v10667_v19  ;;  %4302 = vmatpush.bf16.msra.mxu1 %v10547_v36  ;;  %v10619_v0 = vor.u32 %v13241_v46, %v10618_v10  ;;  %v10586_v19 = vld [vmem:[#allocation26 + $0x40] sm:$0xf]  ;;  %v10308_v10 = vld [vmem:[#allocation22 + $0x218] sm:$0xf0]  ;;  %v13092_v46 = vld [vmem:[#allocation22 + $0x3ec] sm:$0xf] }
 0x364   :  { %4334 = vmatpush.bf16.msra.mxu3 %v10231_v38  ;;  %4344 = vmatpush.bf16.msrb.mxu0 %v10423_v39  ;;  %v10587_v33 = vor.u32 %v13233_v20, %v10586_v19  ;;  %v10570_v36 = vld [vmem:[#allocation26 + $0x20] sm:$0xf]  ;;  %v13229_v38 = vld [vmem:[#allocation26 + $0x2c] sm:$0xf0]  ;;  %v13243_v39 = vld [vmem:[#allocation26 + $0xa4] sm:$0xf]  ;;  %v10311_v63 = vor.u32 %v13032_v16, %v10308_v10 }
 0x365   :  { %4296 = vmatmul.bf16.vlgmr.msra.gmra.mxu0 %v14615_v55  ;;  %v10571_v43 = vor.u32 %v13229_v38, %v10570_v36  ;;  %v10639_v25 = vor.u32 %v13243_v39, %v10636_v40  ;;  %v10642_v19 = vld [vmem:[#allocation26 + $0xa8] sm:$0xf]  ;;  %v13246_v20 = vld [vmem:[#allocation26 + $0xb4] sm:$0xf0]  ;;  %v13240_v13 = vld [vmem:[#allocation26 + $0x8c] sm:$0xf] }
 0x366   :  { %v10643_v31 = vor.u32 %v13246_v20, %v10642_v19  ;;  %v13076_v38 = vld [vmem:[#allocation22 + $0x36c] sm:$0xf]  ;;  %v10628_v15 = vld [vmem:[#allocation26 + $0x98] sm:$0xf0]  ;;  %v10730_v19 = vld [vmem:[#allocation25 + $0x60] sm:$0xf] }
 0x367   :  { %4705 = vmatpush.bf16.msrb.mxu2 %v10651_v59  ;;  %4303 = vmatpush.bf16.msra.mxu1 %v10531_v47  ;;  %v10450_v59 = vld [vmem:[#allocation22 + $0x328] sm:$0xf]  ;;  %v10554_v47 = vld [vmem:[#allocation26] sm:$0xf]  ;;  %v10610_v40 = vld [vmem:[#allocation26 + $0x68] sm:$0xf] }
 0x368   :  { %4335 = vmatpush.bf16.msra.mxu3 %v10215_v14  ;;  %4345 = vmatpush.bf16.msrb.mxu0 %v10407_v48  ;;  %v13225_v14 = vld [vmem:[#allocation26 + $0xc] sm:$0xf0]  ;;  %v13239_v48 = vld [vmem:[#allocation26 + $0x84] sm:$0xf]  ;;  %v10451_v50 = vor.u32 %v13070_v51, %v10450_v59  ;;  %v13072_v59 = vld [vmem:[#allocation22 + $0x34c] sm:$0xf] }
 0x369   :  { %v10555_v17 = vor.u32 %v13225_v14, %v10554_v47  ;;  %v10623_v28 = vor.u32 %v13239_v48, %v10620_v29  ;;  %v10468_v51 = vld [vmem:[#allocation22 + $0x358] sm:$0xf0]  ;;  %v13068_v47 = vld [vmem:[#allocation22 + $0x32c] sm:$0xf]  ;;  %v13109_v20 = vld [vmem:[#allocation25 + $0x6c] sm:$0xf0] }
 0x36a   :  { %v10471_v44 = vor.u32 %v13072_v59, %v10468_v51  ;;  %v10452_v14 = vld [vmem:[#allocation22 + $0x338] sm:$0xf0]  ;;  %v10578_v29 = vld [vmem:[#allocation26 + $0x28] sm:$0xf]  ;;  %v10890_v59 = vld [vmem:[#allocation25 + $0x1a0] sm:$0xf] }
 0x36b   :  { %4706 = vmatpush.bf16.msrb.mxu2 %v10635_v30  ;;  %4304 = vmatpush.bf16.msra.mxu1 %v10515_v18  ;;  %v13066_v30 = vld [vmem:[#allocation22 + $0x314] sm:$0xf0]  ;;  %v10548_v18 = vld [vmem:[#allocation22 + $0x3f8] sm:$0xf0] }
 0x36c   :  { %4336 = vmatpush.bf16.msra.mxu3 %v10199_v27  ;;  %4346 = vmatpush.bf16.msrb.mxu0 %v10391_v56  ;;  %v10604_v27 = vld [vmem:[#allocation26 + $0x70] sm:$0xf0] }
 0x36d   :  { %v10607_v1 = vor.u32 %v13235_v54, %v10604_v27  ;;  %v10676_v54 = vld [vmem:[#allocation26 + $0xf8] sm:$0xf0]  ;;  %v13226_v27 = vld [vmem:[#allocation26 + $0x14] sm:$0xf0] }
 0x36f   :  { %4707 = vmatpush.bf16.msrb.mxu2 %v10619_v0  ;;  %4305 = vmatpush.bf16.msra.mxu1 %v10499_v5  ;;  %v10551_v0 = vor.u32 %v13092_v46, %v10548_v18  ;;  %v10658_v5 = vld [vmem:[#allocation26 + $0xc8] sm:$0xf]  ;;  %v13252_v18 = vld [vmem:[#allocation26 + $0xec] sm:$0xf] }
 0x370   :  { %4337 = vmatpush.bf16.msra.mxu3 %v10183_v6  ;;  %4347 = vmatpush.bf16.msrb.mxu0 %v10375_v7  ;;  %v13250_v6 = vld [vmem:[#allocation26 + $0xd4] sm:$0xf0]  ;;  %v10535_v7 = vor.u32 %v13088_v2, %v10532_v57  ;;  %v10562_v46 = vld [vmem:[#allocation26 + $0x8] sm:$0xf]  ;;  %v13248_v2 = vld [vmem:[#allocation26 + $0xcc] sm:$0xf] }
 0x371   :  { %v10660_v57 = vld [vmem:[#allocation26 + $0xd8] sm:$0xf0] }
 0x372   :  { %4254 = vmatmul.bf16.vlgmr.msrb.gmra.mxu1 %v14623_v37 }
 0x373   :  { %4708 = vmatpush.bf16.msrb.mxu2 %v10603_v11  ;;  %4306 = vmatpush.bf16.msra.mxu1 %v10483_v24  ;;  %v10516_v11 = vld [vmem:[#allocation22 + $0x3b8] sm:$0xf0]  ;;  %v13080_v24 = vld [vmem:[#allocation22 + $0x38c] sm:$0xf] }
 0x374   :  { %4718 = vmatpush.bf16.msrb.mxu3 %v10671_v12  ;;  %4348 = vmatpush.bf16.msrb.mxu0 %v10359_v26  ;;  %v10659_v12 = vor.u32 %v13250_v6, %v10658_v5  ;;  %v10519_v21 = vor.u32 %v13084_v53, %v10516_v11  ;;  %v10500_v26 = vld [vmem:[#allocation22 + $0x398] sm:$0xf0]  ;;  %v10746_v5 = vld [vmem:[#allocation25 + $0x80] sm:$0xf]  ;;  %v13113_v6 = vld [vmem:[#allocation25 + $0x8c] sm:$0xf0] }
 0x375   :  { %4338 = vmatmul.bf16.vlgmr.msra.gmra.mxu3 %v14611_v22  ;;  %v10434_v22 = vld [vmem:[#allocation22 + $0x308] sm:$0xf]  ;;  %v10503_v35 = vor.u32 %v13080_v24, %v10500_v26  ;;  %v10644_v53 = vld [vmem:[#allocation26 + $0xb8] sm:$0xf0]  ;;  %v10747_v11 = vor.u32 %v13113_v6, %v10746_v5  ;;  %v13157_v24 = vld [vmem:[#allocation25 + $0x1ec] sm:$0xf0] }
 0x376   :  { %v10435_v56 = vor.u32 %v13066_v30, %v10434_v22  ;;  %v13125_v22 = vld [vmem:[#allocation25 + $0xec] sm:$0xf0]  ;;  %v10455_v30 = vor.u32 %v13068_v47, %v10452_v14  ;;  %v10714_v26 = vld [vmem:[#allocation25 + $0x40] sm:$0xf] }
 0x377   :  { %4709 = vmatpush.bf16.msrb.mxu2 %v10587_v33  ;;  %4307 = vmatpush.bf16.msra.mxu1 %v10467_v58  ;;  %v10556_v33 = vld [vmem:[#allocation26 + $0x10] sm:$0xf0]  ;;  %v13238_v58 = vld [vmem:[#allocation26 + $0x74] sm:$0xf0]  ;;  %v10874_v14 = vld [vmem:[#allocation25 + $0x180] sm:$0xf] }
 0x378   :  { %4719 = vmatpush.bf16.msrb.mxu3 %v10655_v34  ;;  %4349 = vmatpush.bf16.msrb.mxu0 %v10343_v42  ;;  %v10626_v34 = vld [vmem:[#allocation26 + $0x88] sm:$0xf]  ;;  %v10559_v36 = vor.u32 %v13223_v32, %v10556_v33  ;;  %v10631_v32 = vor.u32 %v13240_v13, %v10628_v15  ;;  %v11018_v13 = vld [vmem:[#allocation25 + $0x2a0] sm:$0xf] }
 0x379   :  { %v10627_v39 = vor.u32 %v13242_v49, %v10626_v34  ;;  %v10906_v34 = vld [vmem:[#allocation25 + $0x1c0] sm:$0xf]  ;;  %v13153_v49 = vld [vmem:[#allocation25 + $0x1cc] sm:$0xf0] }
 0x37b   :  { %4710 = vmatpush.bf16.msrb.mxu2 %v10571_v43  ;;  %4308 = vmatpush.bf16.msra.mxu1 %v10451_v50  ;;  %v10611_v43 = vor.u32 %v13238_v58, %v10610_v40  ;;  %v13230_v50 = vld [vmem:[#allocation26 + $0x34] sm:$0xf0]  ;;  %v10596_v40 = vld [vmem:[#allocation26 + $0x58] sm:$0xf0]  ;;  %v10698_v58 = vld [vmem:[#allocation25 + $0x20] sm:$0xf] }
 0x37c   :  { %4720 = vmatpush.bf16.msrb.mxu3 %v10639_v25  ;;  %4350 = vmatpush.bf16.msrb.mxu0 %v10327_v45  ;;  %v10594_v25 = vld [vmem:[#allocation26 + $0x48] sm:$0xf]  ;;  %v10794_v45 = vld [vmem:[#allocation25 + $0xe0] sm:$0xf]  ;;  %v10579_v10 = vor.u32 %v13230_v50, %v10578_v29  ;;  %v13228_v29 = vld [vmem:[#allocation26 + $0x2c] sm:$0xf] }
 0x37d   :  { %v10595_v48 = vor.u32 %v13234_v9, %v10594_v25  ;;  %v10795_v16 = vor.u32 %v13125_v22, %v10794_v45  ;;  %v10682_v25 = vld [vmem:[#allocation25] sm:$0xf]  ;;  %v13097_v9 = vld [vmem:[#allocation25 + $0xc] sm:$0xf0]  ;;  %v10580_v50 = vld [vmem:[#allocation26 + $0x38] sm:$0xf0] }
 0x37e   :  { %v10683_v45 = vor.u32 %v13097_v9, %v10682_v25  ;;  %v10908_v25 = vld [vmem:[#allocation25 + $0x1d0] sm:$0xf0] }
 0x37f   :  { %4711 = vmatpush.bf16.msrb.mxu2 %v10555_v17  ;;  %4309 = vmatpush.bf16.msra.mxu1 %v10435_v56  ;;  %v13064_v17 = vld [vmem:[#allocation22 + $0x30c] sm:$0xf]  ;;  %v10778_v56 = vld [vmem:[#allocation25 + $0xc0] sm:$0xf] }
 0x380   :  { %4721 = vmatpush.bf16.msrb.mxu3 %v10623_v28  ;;  %4351 = vmatpush.bf16.msrb.mxu0 %v10311_v63  ;;  %v10436_v28 = vld [vmem:[#allocation22 + $0x318] sm:$0xf0]  ;;  %v10779_v63 = vor.u32 %v13121_v60, %v10778_v56  ;;  %v13189_v60 = vld [vmem:[#allocation25 + $0x2ec] sm:$0xf0] }
 0x381   :  { %v10439_v62 = vor.u32 %v13064_v17, %v10436_v28  ;;  %v10583_v17 = vor.u32 %v13228_v29, %v10580_v50  ;;  %v10700_v29 = vld [vmem:[#allocation25 + $0x30] sm:$0xf0]  ;;  %v13147_v50 = vld [vmem:[#allocation25 + $0x1a4] sm:$0xf] }
 0x382   :  { %4712 = vmatmul.bf16.vlgmr.msrb.gmra.mxu2 %v14495_v61  ;;  %4310 = vmatmul.bf16.vlgmr.msra.gmra.mxu1 %v14623_v37 }
 0x383   :  { %4358 = vmatpush.bf16.msrb.mxu1 %v10551_v0  ;;  %4352 = vmatmul.bf16.vlgmr.msrb.gmra.mxu0 %v14615_v55  ;;  %v10484_v55 = vld [vmem:[#allocation22 + $0x378] sm:$0xf0]  ;;  %v10679_v0 = vor.u32 %v13252_v18, %v10676_v54  ;;  %v10858_v18 = vld [vmem:[#allocation25 + $0x160] sm:$0xf]  ;;  %v13141_v54 = vld [vmem:[#allocation25 + $0x16c] sm:$0xf0] }
 0x384   :  { %4722 = vmatpush.bf16.msrb.mxu3 %v10607_v1  ;;  %4732 = vmatpush.bf16.msra.mxu0 %v10675_v41  ;;  %v10487_v42 = vor.u32 %v13076_v38, %v10484_v55  ;;  %v10563_v1 = vor.u32 %v13226_v27, %v10562_v46  ;;  %v10762_v41 = vld [vmem:[#allocation25 + $0xa0] sm:$0xf]  ;;  %v10907_v38 = vor.u32 %v13153_v49, %v10906_v34  ;;  %v10564_v46 = vld [vmem:[#allocation26 + $0x18] sm:$0xf0]  ;;  %v13177_v34 = vld [vmem:[#allocation25 + $0x28c] sm:$0xf0] }
 0x385   :  { %5400 = vmatpush.bf16.msra.mxu2 %v10795_v16  ;;  %v10763_v4 = vor.u32 %v13117_v3, %v10762_v41  ;;  %v10796_v16 = vld [vmem:[#allocation25 + $0xf0] sm:$0xf0]  ;;  %v11050_v27 = vld [vmem:[#allocation25 + $0x2e0] sm:$0xf]  ;;  %v10859_v56 = vor.u32 %v13141_v54, %v10858_v18  ;;  %v13137_v41 = vld [vmem:[#allocation25 + $0x14c] sm:$0xf0] }
 0x386   :  { %v11034_v3 = vld [vmem:[#allocation25 + $0x2c0] sm:$0xf]  ;;  %v13107_v49 = vld [vmem:[#allocation25 + $0x64] sm:$0xf] }
 0x387   :  { %4359 = vmatpush.bf16.msrb.mxu1 %v10535_v7  ;;  %v10663_v7 = vor.u32 %v13248_v2, %v10660_v57  ;;  %v10842_v57 = vld [vmem:[#allocation25 + $0x140] sm:$0xf]  ;;  %v13143_v18 = vld [vmem:[#allocation25 + $0x184] sm:$0xf] }
 0x388   :  { %4723 = vmatpush.bf16.msrb.mxu3 %v10591_v8  ;;  %4733 = vmatpush.bf16.msra.mxu0 %v10659_v12  ;;  %v13244_v8 = vld [vmem:[#allocation26 + $0xac] sm:$0xf]  ;;  %v10843_v5 = vor.u32 %v13137_v41, %v10842_v57  ;;  %v13221_v57 = vld [vmem:[#allocation25 + $0x3ec] sm:$0xf0]  ;;  %v13139_v41 = vld [vmem:[#allocation25 + $0x164] sm:$0xf] }
 0x389   :  { %5401 = vmatpush.bf16.msra.mxu2 %v10779_v63  ;;  %v10647_v12 = vor.u32 %v13244_v8, %v10644_v53  ;;  %v10780_v63 = vld [vmem:[#allocation25 + $0xd0] sm:$0xf0] }
 0x38a   :  { %v10764_v8 = vld [vmem:[#allocation25 + $0xb0] sm:$0xf0] }
 0x38b   :  { %4360 = vmatpush.bf16.msrb.mxu1 %v10519_v21  ;;  %v10922_v21 = vld [vmem:[#allocation25 + $0x1e0] sm:$0xf] }
 0x38c   :  { %4724 = vmatpush.bf16.msrb.mxu3 %v10575_v23  ;;  %4734 = vmatpush.bf16.msra.mxu0 %v10643_v31  ;;  %v10731_v23 = vor.u32 %v13109_v20, %v10730_v19  ;;  %v13105_v31 = vld [vmem:[#allocation25 + $0x4c] sm:$0xf0]  ;;  %v10923_v33 = vor.u32 %v13157_v24, %v10922_v21  ;;  %v13111_v20 = vld [vmem:[#allocation25 + $0x84] sm:$0xf]  ;;  %v10748_v21 = vld [vmem:[#allocation25 + $0x90] sm:$0xf0] }
 0x38d   :  { %5402 = vmatpush.bf16.msra.mxu2 %v10763_v4  ;;  %v13185_v4 = vld [vmem:[#allocation25 + $0x2cc] sm:$0xf0]  ;;  %v10751_v24 = vor.u32 %v13111_v20, %v10748_v21  ;;  %v13183_v20 = vld [vmem:[#allocation25 + $0x2c4] sm:$0xf] }
 0x38e   :  { %v11035_v6 = vor.u32 %v13185_v4, %v11034_v3  ;;  %v13181_v19 = vld [vmem:[#allocation25 + $0x2ac] sm:$0xf0]  ;;  %v10860_v3 = vld [vmem:[#allocation25 + $0x170] sm:$0xf0] }
 0x38f   :  { %4361 = vmatpush.bf16.msrb.mxu1 %v10503_v35  ;;  %v10612_v35 = vld [vmem:[#allocation26 + $0x78] sm:$0xf0] }
 0x390   :  { %4725 = vmatpush.bf16.msrb.mxu3 %v10559_v36  ;;  %4735 = vmatpush.bf16.msra.mxu0 %v10627_v39  ;;  %v10715_v36 = vor.u32 %v13105_v31, %v10714_v26  ;;  %v13232_v39 = vld [vmem:[#allocation26 + $0x4c] sm:$0xf]  ;;  %v10810_v26 = vld [vmem:[#allocation25 + $0x100] sm:$0xf]  ;;  %v13129_v31 = vld [vmem:[#allocation25 + $0x10c] sm:$0xf0] }
 0x391   :  { %5403 = vmatpush.bf16.msra.mxu2 %v10747_v11  ;;  %v10826_v11 = vld [vmem:[#allocation25 + $0x120] sm:$0xf] }
 0x393   :  { %4362 = vmatpush.bf16.msrb.mxu1 %v10487_v42  ;;  %4726 = vmatmul.bf16.vlgmr.msrb.gmra.mxu3 %v14495_v61  ;;  %v13101_v42 = vld [vmem:[#allocation25 + $0x2c] sm:$0xf0] }
 0x394   :  { %4736 = vmatpush.bf16.msra.mxu0 %v10611_v43  ;;  %5414 = vmatpush.bf16.msra.mxu3 %v10923_v33  ;;  %v10699_v51 = vor.u32 %v13101_v42, %v10698_v58  ;;  %v13149_v43 = vld [vmem:[#allocation25 + $0x1ac] sm:$0xf0]  ;;  %v10811_v33 = vor.u32 %v13129_v31, %v10810_v26  ;;  %v13103_v42 = vld [vmem:[#allocation25 + $0x44] sm:$0xf]  ;;  %v14643_v26 = vld [vmem:[#allocation23] sm:$0xf] }
 0x395   :  { %5404 = vmatpush.bf16.msra.mxu2 %v10731_v23  ;;  %v10891_v47 = vor.u32 %v13149_v43, %v10890_v59  ;;  %v11019_v23 = vor.u32 %v13181_v19, %v11018_v13  ;;  %v10716_v59 = vld [vmem:[#allocation25 + $0x50] sm:$0xf0]  ;;  %v13151_v43 = vld [vmem:[#allocation25 + $0x1c4] sm:$0xf] }
 0x396   :  { %v10911_v9 = vor.u32 %v13151_v43, %v10908_v25  ;;  %v10844_v19 = vld [vmem:[#allocation25 + $0x150] sm:$0xf0]  ;;  %v13175_v25 = vld [vmem:[#allocation25 + $0x284] sm:$0xf] }
 0x397   :  { %4363 = vmatpush.bf16.msrb.mxu1 %v10471_v44  ;;  %v10599_v44 = vor.u32 %v13232_v39, %v10596_v40  ;;  %v10986_v39 = vld [vmem:[#allocation25 + $0x260] sm:$0xf]  ;;  %v13173_v40 = vld [vmem:[#allocation25 + $0x26c] sm:$0xf0]  ;;  %v10812_v43 = vld [vmem:[#allocation25 + $0x110] sm:$0xf0] }
 0x398   :  { %4737 = vmatpush.bf16.msra.mxu0 %v10595_v48  ;;  %5415 = vmatpush.bf16.msra.mxu3 %v10907_v38  ;;  %v13145_v48 = vld [vmem:[#allocation25 + $0x18c] sm:$0xf0]  ;;  %v10924_v38 = vld [vmem:[#allocation25 + $0x1f0] sm:$0xf0]  ;;  %v10987_v58 = vor.u32 %v13173_v40, %v10986_v39  ;;  %v3500_v39 = vperm.slane %v14643_v26, 0 }
 0x399   :  { %5405 = vmatpush.bf16.msra.mxu2 %v10715_v36  ;;  %v10875_v22 = vor.u32 %v13145_v48, %v10874_v14  ;;  %v13099_v48 = vld [vmem:[#allocation25 + $0x24] sm:$0xf] }
 0x39b   :  { %4364 = vmatpush.bf16.msrb.mxu1 %v10455_v30  ;;  %v13123_v30 = vld [vmem:[#allocation25 + $0xe4] sm:$0xf] }
 0x39c   :  { %4738 = vmatpush.bf16.msra.mxu0 %v10579_v10  ;;  %5416 = vmatpush.bf16.msra.mxu3 %v10891_v47  ;;  %v10799_v28 = vor.u32 %v13123_v30, %v10796_v16  ;;  %v13224_v10 = vld [vmem:[#allocation26 + $0xc] sm:$0xf]  ;;  %v13169_v47 = vld [vmem:[#allocation25 + $0x24c] sm:$0xf0]  ;;  %v10954_v16 = vld [vmem:[#allocation25 + $0x220] sm:$0xf] }
 0x39d   :  { %5406 = vmatpush.bf16.msra.mxu2 %v10699_v51  ;;  %v10719_v51 = vor.u32 %v13103_v42, %v10716_v59  ;;  %v13209_v42 = vld [vmem:[#allocation25 + $0x38c] sm:$0xf0] }
 0x39f   :  { %4365 = vmatpush.bf16.msrb.mxu1 %v10439_v62  ;;  %v13119_v62 = vld [vmem:[#allocation25 + $0xc4] sm:$0xf] }
 0x3a0   :  { %4739 = vmatpush.bf16.msra.mxu0 %v10563_v1  ;;  %5417 = vmatpush.bf16.msra.mxu3 %v10875_v22  ;;  %v11051_v1 = vor.u32 %v13189_v60, %v11050_v27  ;;  %v10783_v2 = vor.u32 %v13119_v62, %v10780_v63  ;;  %v10892_v22 = vld [vmem:[#allocation25 + $0x1b0] sm:$0xf0]  ;;  %v10938_v63 = vld [vmem:[#allocation25 + $0x200] sm:$0xf] }
 0x3a1   :  { %5407 = vmatpush.bf16.msra.mxu2 %v10683_v45  ;;  %v10703_v45 = vor.u32 %v13099_v48, %v10700_v29  ;;  %v10895_v30 = vor.u32 %v13147_v50, %v10892_v22  ;;  %v11114_v48 = vld [vmem:[#allocation25 + $0x360] sm:$0xf]  ;;  %v13205_v29 = vld [vmem:[#allocation25 + $0x36c] sm:$0xf0]  ;;  %v13171_v22 = vld [vmem:[#allocation25 + $0x264] sm:$0xf] }
 0x3a2   :  { %4366 = vmatmul.bf16.vlgmr.msrb.gmra.mxu1 %v14623_v37  ;;  %v13236_v37 = vld [vmem:[#allocation26 + $0x6c] sm:$0xf] }
 0x3a3   :  { %4746 = vmatpush.bf16.msra.mxu1 %v10679_v0  ;;  %4740 = vmatmul.bf16.vlgmr.msra.gmra.mxu0 %v14495_v61  ;;  %v10615_v55 = vor.u32 %v13236_v37, %v10612_v35  ;;  %v10567_v0 = vor.u32 %v13224_v10, %v10564_v46  ;;  %v10732_v37 = vld [vmem:[#allocation25 + $0x70] sm:$0xf0]  ;;  %v13095_v10 = vld [vmem:[#allocation25 + $0x4] sm:$0xf] }
 0x3a4   :  { %5418 = vmatpush.bf16.msra.mxu3 %v10859_v56  ;;  %5428 = vmatpush.bf16.msrb.mxu0 %v11051_v1  ;;  %v10735_v36 = vor.u32 %v13107_v49, %v10732_v37  ;;  %v10684_v46 = vld [vmem:[#allocation25 + $0x10] sm:$0xf0]  ;;  %v11178_v1 = vld [vmem:[#allocation25 + $0x3e0] sm:$0xf]  ;;  %v13131_v49 = vld [vmem:[#allocation25 + $0x124] sm:$0xf] }
 0x3a5   :  { %5456 = vmatpush.bf16.msrb.mxu2 %v10799_v28  ;;  %v14637_v54 = vpop.f32.mrf.mxu2  ;;  %v10687_v27 = vor.u32 %v13095_v10, %v10684_v46  ;;  %v10876_v56 = vld [vmem:[#allocation25 + $0x190] sm:$0xf0] }
 0x3a6   :  { %v10879_v60 = vor.u32 %v13143_v18, %v10876_v56  ;;  %v10828_v37 = vld [vmem:[#allocation25 + $0x130] sm:$0xf0]  ;;  %v4158_v50 = vadd.f32 %v14637_v54, %v3500_v39  ;;  %v11098_v18 = vld [vmem:[#allocation25 + $0x340] sm:$0xf]  ;;  %v13167_v54 = vld [vmem:[#allocation25 + $0x244] sm:$0xf] }
 0x3a7   :  { %4747 = vmatpush.bf16.msra.mxu1 %v10663_v7  ;;  %v13115_v7 = vld [vmem:[#allocation25 + $0xa4] sm:$0xf] }
 0x3a8   :  { %v10767_v53 = vor.u32 %v13115_v7, %v10764_v8  ;;  %5419 = vmatpush.bf16.msra.mxu3 %v10843_v5  ;;  %5429 = vmatpush.bf16.msrb.mxu0 %v11035_v6  ;;  %v11179_v5 = vor.u32 %v13221_v57, %v11178_v1  ;;  %v10863_v6 = vor.u32 %v13139_v41, %v10860_v3  ;;  %v13187_v7 = vld [vmem:[#allocation25 + $0x2e4] sm:$0xf]  ;;  %v11052_v8 = vld [vmem:[#allocation25 + $0x2f0] sm:$0xf0] }
 0x3a9   :  { %5457 = vmatpush.bf16.msrb.mxu2 %v10783_v2 }
 0x3ab   :  { %4748 = vmatpush.bf16.msra.mxu1 %v10647_v12  ;;  %v13133_v12 = vld [vmem:[#allocation25 + $0x12c] sm:$0xf0] }
 0x3ac   :  { %v10827_v15 = vor.u32 %v13133_v12, %v10826_v11  ;;  %5430 = vmatpush.bf16.msrb.mxu0 %v11019_v23  ;;  %v11162_v11 = vld [vmem:[#allocation25 + $0x3c0] sm:$0xf]  ;;  %v13217_v12 = vld [vmem:[#allocation25 + $0x3cc] sm:$0xf0]  ;;  %v11036_v23 = vld [vmem:[#allocation25 + $0x2d0] sm:$0xf0] }
 0x3ad   :  { %5458 = vmatpush.bf16.msrb.mxu2 %v10767_v53  ;;  %v11055_v53 = vor.u32 %v13187_v7, %v11052_v8  ;;  %v11163_v13 = vor.u32 %v13217_v12, %v11162_v11  ;;  %v4159_v31 = vpop.f32.mrf.mxu2  ;;  %v13126_v8 = vld [vmem:[#allocation25 + $0xf4] sm:$0xf0]  ;;  %v13163_v11 = vld [vmem:[#allocation25 + $0x224] sm:$0xf]  ;;  %v10956_v12 = vld [vmem:[#allocation25 + $0x230] sm:$0xf0] }
 0x3ae   :  { %5420 = vmatpush.bf16.msra.mxu3 %v10827_v15  ;;  %v13135_v15 = vld [vmem:[#allocation25 + $0x144] sm:$0xf] }
 0x3af   :  { %4749 = vmatpush.bf16.msra.mxu1 %v10631_v32  ;;  %v11002_v32 = vld [vmem:[#allocation25 + $0x280] sm:$0xf]  ;;  %v10847_v21 = vor.u32 %v13135_v15, %v10844_v19 }
 0x3b0   :  { %v11003_v35 = vor.u32 %v13177_v34, %v11002_v32  ;;  %v11146_v32 = vld [vmem:[#allocation25 + $0x3a0] sm:$0xf] }
 0x3b1   :  { %5459 = vmatpush.bf16.msrb.mxu2 %v10751_v24  ;;  %v11039_v24 = vor.u32 %v13183_v20, %v11036_v23  ;;  %v10786_v20 = vld [vmem:[#allocation25 + $0xc8] sm:$0xf] }
 0x3b2   :  { %5421 = vmatpush.bf16.msra.mxu3 %v10811_v33  ;;  %5431 = vmatpush.bf16.msrb.mxu0 %v11003_v35  ;;  %v13213_v33 = vld [vmem:[#allocation25 + $0x3ac] sm:$0xf0]  ;;  %v13179_v35 = vld [vmem:[#allocation25 + $0x2a4] sm:$0xf] }
 0x3b3   :  { %4750 = vmatpush.bf16.msra.mxu1 %v10615_v55  ;;  %v11147_v34 = vor.u32 %v13213_v33, %v11146_v32  ;;  %v13193_v32 = vld [vmem:[#allocation25 + $0x30c] sm:$0xf0] }
 0x3b5   :  { %5460 = vmatpush.bf16.msrb.mxu2 %v10735_v36  ;;  %v14639_v62 = vpop.f32.mrf.mxu3 }
 0x3b6   :  { %5432 = vmatpush.bf16.msrb.mxu0 %v10987_v58  ;;  %v11130_v58 = vld [vmem:[#allocation25 + $0x380] sm:$0xf]  ;;  %v4172_v10 = vadd.f32 %v14639_v62, %v4158_v50  ;;  %v13197_v62 = vld [vmem:[#allocation25 + $0x32c] sm:$0xf0] }
 0x3b7   :  { %4751 = vmatpush.bf16.msra.mxu1 %v10599_v44  ;;  %v10970_v44 = vld [vmem:[#allocation25 + $0x240] sm:$0xf]  ;;  %v11131_v59 = vor.u32 %v13209_v42, %v11130_v58  ;;  %v10770_v42 = vld [vmem:[#allocation25 + $0xa8] sm:$0xf] }
 0x3b8   :  { %v10971_v14 = vor.u32 %v13169_v47, %v10970_v44  ;;  %v11004_v44 = vld [vmem:[#allocation25 + $0x290] sm:$0xf0] }
 0x3b9   :  { %5461 = vmatpush.bf16.msrb.mxu2 %v10719_v51  ;;  %v13127_v51 = vld [vmem:[#allocation25 + $0x104] sm:$0xf]  ;;  %v11007_v47 = vor.u32 %v13175_v25, %v11004_v44  ;;  %v11164_v25 = vld [vmem:[#allocation25 + $0x3d0] sm:$0xf0] }
 0x3ba   :  { %5433 = vmatpush.bf16.msrb.mxu0 %v10971_v14 }
 0x3bb   :  { %4752 = vmatpush.bf16.msra.mxu1 %v10583_v17  ;;  %v13165_v17 = vld [vmem:[#allocation25 + $0x22c] sm:$0xf0] }
 0x3bc   :  { %v10955_v28 = vor.u32 %v13165_v17, %v10954_v16  ;;  %v4213_v16 = vpop.f32.mrf.mxu2 }
 0x3bd   :  { %5462 = vmatpush.bf16.msrb.mxu2 %v10703_v45  ;;  %v4173_v36 = vpop.f32.mrf.mxu3  ;;  %v11115_v45 = vor.u32 %v13205_v29, %v11114_v48  ;;  %v10754_v48 = vld [vmem:[#allocation25 + $0x88] sm:$0xf] }
 0x3be   :  { %5434 = vmatpush.bf16.msrb.mxu0 %v10955_v28  ;;  %v4160_v28 = vadd.f32 %v4159_v31, %v3500_v39  ;;  %v11066_v31 = vld [vmem:[#allocation25 + $0x300] sm:$0xf] }
 0x3bf   :  { %4753 = vmatpush.bf16.msra.mxu1 %v10567_v0  ;;  %v13161_v0 = vld [vmem:[#allocation25 + $0x20c] sm:$0xf0]  ;;  %v14641_v4 = vpop.f32.mrf.mxu0 }
 0x3c0   :  { %v10939_v2 = vor.u32 %v13161_v0, %v10938_v63  ;;  %v4174_v56 = vadd.f32 %v4173_v36, %v4160_v28  ;;  %v10972_v0 = vld [vmem:[#allocation25 + $0x250] sm:$0xf0] }
 0x3c1   :  { %5463 = vmatpush.bf16.msrb.mxu2 %v10687_v27  ;;  %v13201_v27 = vld [vmem:[#allocation25 + $0x34c] sm:$0xf0] }
 0x3c2   :  { %4754 = vmatmul.bf16.vlgmr.msra.gmra.mxu1 %v14495_v61  ;;  %v13155_v61 = vld [vmem:[#allocation25 + $0x1e4] sm:$0xf]  ;;  %5435 = vmatpush.bf16.msrb.mxu0 %v10939_v2  ;;  %v11099_v63 = vor.u32 %v13201_v27, %v11098_v18  ;;  %v10975_v2 = vor.u32 %v13167_v54, %v10972_v0  ;;  %v13158_v0 = vld [vmem:[#allocation25 + $0x1f4] sm:$0xf0] }
 0x3c3   :  { %v10927_v55 = vor.u32 %v13155_v61, %v10924_v38  ;;  %5442 = vmatpush.bf16.msrb.mxu1 %v11179_v5  ;;  %v10831_v61 = vor.u32 %v13131_v49, %v10828_v37  ;;  %v11020_v38 = vld [vmem:[#allocation25 + $0x2b0] sm:$0xf0]  ;;  %v10802_v5 = vld [vmem:[#allocation25 + $0xe8] sm:$0xf]  ;;  %v13159_v49 = vld [vmem:[#allocation25 + $0x204] sm:$0xf] }
 0x3c4   :  { %v10803_v23 = vor.u32 %v13126_v8, %v10802_v5  ;;  %v10940_v37 = vld [vmem:[#allocation25 + $0x210] sm:$0xf0]  ;;  %v10722_v8 = vld [vmem:[#allocation25 + $0x48] sm:$0xf] }
 0x3c5   :  { %5470 = vmatpush.bf16.msrb.mxu3 %v10927_v55  ;;  %v11023_v55 = vor.u32 %v13179_v35, %v11020_v38  ;;  %v4227_v46 = vpop.f32.mrf.mxu3  ;;  %v13219_v35 = vld [vmem:[#allocation25 + $0x3e4] sm:$0xf]  ;;  %v11180_v38 = vld [vmem:[#allocation25 + $0x3f0] sm:$0xf0] }
 0x3c6   :  { %5484 = vmatpush.bf16.msra.mxu0 %v11055_v53 }
 0x3c7   :  { %5443 = vmatpush.bf16.msrb.mxu1 %v11163_v13  ;;  %v4187_v40 = vpop.f32.mrf.mxu0  ;;  %v3501_v13 = vperm.slane %v14643_v26, 1 }
 0x3c8   :  { %v4188_v57 = vadd.f32 %v4187_v40, %v4174_v56 }
 0x3c9   :  { %5471 = vmatpush.bf16.msrb.mxu3 %v10911_v9  ;;  %v10815_v9 = vor.u32 %v13127_v51, %v10812_v43  ;;  %v13118_v51 = vld [vmem:[#allocation25 + $0xb4] sm:$0xf0]  ;;  %v13215_v43 = vld [vmem:[#allocation25 + $0x3c4] sm:$0xf] }
 0x3ca   :  { %5485 = vmatpush.bf16.msra.mxu0 %v11039_v24  ;;  %v13122_v24 = vld [vmem:[#allocation25 + $0xd4] sm:$0xf0] }
 0x3cb   :  { %5444 = vmatpush.bf16.msrb.mxu1 %v11147_v34  ;;  %v11067_v34 = vor.u32 %v13193_v32, %v11066_v31  ;;  %v10787_v58 = vor.u32 %v13122_v24, %v10786_v20  ;;  %v10706_v31 = vld [vmem:[#allocation25 + $0x28] sm:$0xf]  ;;  %v13102_v32 = vld [vmem:[#allocation25 + $0x34] sm:$0xf0] }
 0x3cd   :  { %5472 = vmatpush.bf16.msrb.mxu3 %v10895_v30  ;;  %v10988_v30 = vld [vmem:[#allocation25 + $0x270] sm:$0xf0]  ;;  %v4229_v36 = vpop.f32.mrf.mxu3 }
 0x3ce   :  { %5486 = vmatpush.bf16.msra.mxu0 %v11023_v55  ;;  %v10991_v17 = vor.u32 %v13171_v22, %v10988_v30  ;;  %v11183_v55 = vor.u32 %v13219_v35, %v11180_v38  ;;  %v13211_v22 = vld [vmem:[#allocation25 + $0x3a4] sm:$0xf]  ;;  %v11148_v30 = vld [vmem:[#allocation25 + $0x3b0] sm:$0xf0] }
 0x3cf   :  { %5445 = vmatpush.bf16.msrb.mxu1 %v11131_v59  ;;  %v4241_v1 = vpop.f32.mrf.mxu0  ;;  %v4214_v59 = vadd.f32 %v4213_v16, %v3501_v13  ;;  %v11151_v28 = vor.u32 %v13211_v22, %v11148_v30  ;;  %v13199_v35 = vld [vmem:[#allocation25 + $0x344] sm:$0xf] }
 0x3d1   :  { %5473 = vmatpush.bf16.msrb.mxu3 %v10879_v60  ;;  %v4186_v60 = vadd.f32 %v14641_v4, %v4172_v10  ;;  %v10959_v4 = vor.u32 %v13163_v11, %v10956_v12  ;;  %v10914_v11 = vld [vmem:[#allocation25 + $0x1c8] sm:$0xf] }
 0x3d2   :  { %5487 = vmatpush.bf16.msra.mxu0 %v11007_v47  ;;  %v4228_v47 = vadd.f32 %v4227_v46, %v4214_v59  ;;  %v10930_v46 = vld [vmem:[#allocation25 + $0x1e8] sm:$0xf] }
 0x3d3   :  { %5446 = vmatpush.bf16.msrb.mxu1 %v11115_v45  ;;  %v13114_v45 = vld [vmem:[#allocation25 + $0x94] sm:$0xf0]  ;;  %v10690_v59 = vld [vmem:[#allocation25 + $0x8] sm:$0xf] }
 0x3d4   :  { %v4242_v50 = vadd.f32 %v4241_v1, %v4228_v47  ;;  %v10755_v56 = vor.u32 %v13114_v45, %v10754_v48  ;;  %v11132_v1 = vld [vmem:[#allocation25 + $0x390] sm:$0xf0]  ;;  %v13195_v47 = vld [vmem:[#allocation25 + $0x324] sm:$0xf]  ;;  %v13124_v48 = vld [vmem:[#allocation25 + $0xec] sm:$0xf] }
 0x3d5   :  { %5474 = vmatpush.bf16.msrb.mxu3 %v10863_v6  ;;  %v11082_v6 = vld [vmem:[#allocation25 + $0x320] sm:$0xf]  ;;  %v4283_v18 = vpop.f32.mrf.mxu3 }
 0x3d6   :  { %5488 = vmatpush.bf16.msra.mxu0 %v10991_v17  ;;  %v11083_v53 = vor.u32 %v13197_v62, %v11082_v6 }
 0x3d7   :  { %5447 = vmatpush.bf16.msrb.mxu1 %v11099_v63  ;;  %v4243_v39 = vpop.f32.mrf.mxu0  ;;  %v13110_v63 = vld [vmem:[#allocation25 + $0x74] sm:$0xf0] }
 0x3d9   :  { %5475 = vmatpush.bf16.msrb.mxu3 %v10847_v21  ;;  %v4215_v21 = vpop.f32.mrf.mxu2 }
 0x3da   :  { %5489 = vmatpush.bf16.msra.mxu0 %v10975_v2  ;;  %v4216_v44 = vadd.f32 %v4215_v21, %v3501_v13  ;;  %v13207_v2 = vld [vmem:[#allocation25 + $0x384] sm:$0xf] }
 0x3db   :  { %5448 = vmatpush.bf16.msrb.mxu1 %v11083_v53  ;;  %v13106_v53 = vld [vmem:[#allocation25 + $0x54] sm:$0xf0]  ;;  %v13203_v13 = vld [vmem:[#allocation25 + $0x364] sm:$0xf] }
 0x3dc   :  { %v4230_v29 = vadd.f32 %v4229_v36, %v4216_v44  ;;  %v11100_v36 = vld [vmem:[#allocation25 + $0x350] sm:$0xf0]  ;;  %v13146_v44 = vld [vmem:[#allocation25 + $0x194] sm:$0xf0] }
 0x3dd   :  { %5476 = vmatpush.bf16.msrb.mxu3 %v10831_v61  ;;  %v10943_v61 = vor.u32 %v13159_v49, %v10940_v37  ;;  %v13150_v37 = vld [vmem:[#allocation25 + $0x1b4] sm:$0xf0]  ;;  %v11103_v38 = vor.u32 %v13199_v35, %v11100_v36 }
 0x3de   :  { %5490 = vmatpush.bf16.msra.mxu0 %v10959_v4  ;;  %v4244_v16 = vadd.f32 %v4243_v39, %v4230_v29  ;;  %v13154_v4 = vld [vmem:[#allocation25 + $0x1d4] sm:$0xf0]  ;;  %v10804_v29 = vld [vmem:[#allocation25 + $0xf8] sm:$0xf0] }
 0x3df   :  { %v4199_v14 = vpop.f32.mrf.mxu1  ;;  %5449 = vmatpush.bf16.msrb.mxu1 %v11067_v34  ;;  %v10915_v24 = vor.u32 %v13154_v4, %v10914_v11  ;;  %v10898_v34 = vld [vmem:[#allocation25 + $0x1a8] sm:$0xf]  ;;  %v13116_v11 = vld [vmem:[#allocation25 + $0xac] sm:$0xf]  ;;  %v10772_v4 = vld [vmem:[#allocation25 + $0xb8] sm:$0xf0] }
 0x3e0   :  { %v4200_v41 = vadd.f32 %v4199_v14, %v4186_v60  ;;  %v10771_v14 = vor.u32 %v13118_v51, %v10770_v42  ;;  %v10738_v60 = vld [vmem:[#allocation25 + $0x68] sm:$0xf]  ;;  %v10899_v42 = vor.u32 %v13150_v37, %v10898_v34  ;;  %v13098_v51 = vld [vmem:[#allocation25 + $0x14] sm:$0xf0] }
 0x3e1   :  { %5477 = vmatpush.bf16.msrb.mxu3 %v10815_v9  ;;  %v11167_v9 = vor.u32 %v13215_v43, %v11164_v25  ;;  %v4269_v17 = vpop.f32.mrf.mxu2  ;;  %v10739_v62 = vor.u32 %v13110_v63, %v10738_v60  ;;  %v10882_v43 = vld [vmem:[#allocation25 + $0x188] sm:$0xf]  ;;  %v13191_v60 = vld [vmem:[#allocation25 + $0x304] sm:$0xf]  ;;  %v11068_v63 = vld [vmem:[#allocation25 + $0x310] sm:$0xf0] }
 0x3e2   :  { %v4372_v15 = vmax.f32 %v4200_v41, 0.0  ;;  %5491 = vmatpush.bf16.msra.mxu0 %v10943_v61  ;;  %v11135_v41 = vor.u32 %v13207_v2, %v11132_v1  ;;  %v4285_v61 = vpop.f32.mrf.mxu3  ;;  %v11071_v2 = vor.u32 %v13191_v60, %v11068_v63  ;;  %v10708_v60 = vld [vmem:[#allocation25 + $0x38] sm:$0xf0] }
 0x3e3   :  { %5498 = vmatpush.bf16.msra.mxu1 %v11183_v55 }
 0x3e7   :  { %v4201_v3 = vpop.f32.mrf.mxu1  ;;  %5499 = vmatpush.bf16.msra.mxu1 %v11167_v9 }
 0x3e8   :  { %v4202_v7 = vadd.f32 %v4201_v3, %v4188_v57  ;;  %v4297_v57 = vpop.f32.mrf.mxu0  ;;  %v3502_v3 = vperm.slane %v14643_v26, 2 }
 0x3e9   :  { %v4271_v20 = vpop.f32.mrf.mxu2 }
 0x3ea   :  { %v4376_v19 = vmax.f32 %v4202_v7, 0.0  ;;  %v10931_v7 = vor.u32 %v13158_v0, %v10930_v46  ;;  %v4270_v49 = vadd.f32 %v4269_v17, %v3502_v3  ;;  %v4272_v55 = vadd.f32 %v4271_v20, %v3502_v3  ;;  %v13190_v46 = vld [vmem:[#allocation25 + $0x2f4] sm:$0xf0]  ;;  %v10788_v0 = vld [vmem:[#allocation25 + $0xd8] sm:$0xf0] }
 0x3eb   :  { %5500 = vmatpush.bf16.msra.mxu1 %v11151_v28  ;;  %v10691_v17 = vor.u32 %v13098_v51, %v10690_v59  ;;  %v10883_v28 = vor.u32 %v13146_v44, %v10882_v43  ;;  %v10834_v20 = vld [vmem:[#allocation25 + $0x128] sm:$0xf]  ;;  %v13156_v59 = vld [vmem:[#allocation25 + $0x1ec] sm:$0xf]  ;;  %v10932_v51 = vld [vmem:[#allocation25 + $0x1f8] sm:$0xf0] }
 0x3ec   :  { %v14650_v33 = vpack.c.bf16 %v4376_v19, %v4372_v15  ;;  %v11116_v15 = vld [vmem:[#allocation25 + $0x370] sm:$0xf0]  ;;  %v4284_v39 = vadd.f32 %v4283_v18, %v4270_v49  ;;  %v4286_v25 = vadd.f32 %v4285_v61, %v4272_v55  ;;  %v10818_v61 = vld [vmem:[#allocation25 + $0x108] sm:$0xf] }
 0x3ed   :  { %v11119_v19 = vor.u32 %v13203_v13, %v11116_v15  ;;  %v11010_v55 = vld [vmem:[#allocation25 + $0x288] sm:$0xf] }
 0x3ee   :  { %5408 = vmatmul.bf16.vlgmr.msra.gmra.mxu2 %v14650_v33  ;;  %v4298_v9 = vadd.f32 %v4297_v57, %v4284_v39  ;;  %v13178_v39 = vld [vmem:[#allocation25 + $0x294] sm:$0xf0] }
 0x3ef   :  { %5512 = vmatpush.bf16.msra.mxu2 %v10803_v23  ;;  %v4255_v40 = vpop.f32.mrf.mxu1  ;;  %5501 = vmatpush.bf16.msra.mxu1 %v11135_v41  ;;  %v10723_v23 = vor.u32 %v13106_v53, %v10722_v8  ;;  %v11042_v8 = vld [vmem:[#allocation25 + $0x2c8] sm:$0xf]  ;;  %v13186_v53 = vld [vmem:[#allocation25 + $0x2d4] sm:$0xf0] }
 0x3f0   :  { %v4256_v10 = vadd.f32 %v4255_v40, %v4242_v50  ;;  %v4299_v40 = vpop.f32.mrf.mxu0  ;;  %v11043_v15 = vor.u32 %v13186_v53, %v11042_v8  ;;  %v13096_v53 = vld [vmem:[#allocation25 + $0xc] sm:$0xf] }
 0x3f1   :  { %v4300_v45 = vadd.f32 %v4299_v40, %v4286_v25  ;;  %v4325_v34 = vpop.f32.mrf.mxu2  ;;  %v13108_v40 = vld [vmem:[#allocation25 + $0x6c] sm:$0xf]  ;;  %v3503_v25 = vperm.slane %v14643_v26, 3 }
 0x3f2   :  { %v4373_v5 = vmax.f32 %v4256_v10, 0.0  ;;  %v13142_v10 = vld [vmem:[#allocation25 + $0x174] sm:$0xf0] }
 0x3f3   :  { %5513 = vmatpush.bf16.msra.mxu2 %v10787_v58  ;;  %5502 = vmatpush.bf16.msra.mxu1 %v11119_v19  ;;  %v10707_v58 = vor.u32 %v13102_v32, %v10706_v31  ;;  %v10775_v19 = vor.u32 %v13116_v11, %v10772_v4  ;;  %v13112_v31 = vld [vmem:[#allocation25 + $0x8c] sm:$0xf]  ;;  %v10756_v32 = vld [vmem:[#allocation25 + $0x98] sm:$0xf0]  ;;  %v4326_v26 = vadd.f32 %v4325_v34, %v3503_v25  ;;  %v13162_v34 = vld [vmem:[#allocation25 + $0x214] sm:$0xf0] }
 0x3f4   :  { %v10759_v36 = vor.u32 %v13112_v31, %v10756_v32  ;;  %v10692_v11 = vld [vmem:[#allocation25 + $0x18] sm:$0xf0]  ;;  %v13144_v4 = vld [vmem:[#allocation25 + $0x18c] sm:$0xf]  ;;  %v10946_v32 = vld [vmem:[#allocation25 + $0x208] sm:$0xf] }
 0x3f5   :  { %v10695_v31 = vor.u32 %v13096_v53, %v10692_v11  ;;  %v11012_v53 = vld [vmem:[#allocation25 + $0x298] sm:$0xf0]  ;;  %v11242_v11 = vld [vmem:[#allocation28 + $0x60] sm:$0xf] }
 0x3f7   :  { %5514 = vmatpush.bf16.msra.mxu2 %v10771_v14  ;;  %v4257_v27 = vpop.f32.mrf.mxu1  ;;  %5503 = vmatpush.bf16.msra.mxu1 %v11103_v38  ;;  %v11084_v14 = vld [vmem:[#allocation25 + $0x330] sm:$0xf0]  ;;  %v13130_v38 = vld [vmem:[#allocation25 + $0x114] sm:$0xf0] }
 0x3f8   :  { %v4258_v54 = vadd.f32 %v4257_v27, %v4244_v16  ;;  %v11087_v50 = vor.u32 %v13195_v47, %v11084_v14  ;;  %v10866_v16 = vld [vmem:[#allocation25 + $0x168] sm:$0xf]  ;;  %v10807_v27 = vor.u32 %v13124_v48, %v10804_v29  ;;  %v4339_v37 = vpop.f32.mrf.mxu3  ;;  %v10819_v43 = vor.u32 %v13130_v38, %v10818_v61  ;;  %v13174_v48 = vld [vmem:[#allocation25 + $0x274] sm:$0xf0]  ;;  %v13104_v29 = vld [vmem:[#allocation25 + $0x4c] sm:$0xf] }
 0x3f9   :  { %v10867_v41 = vor.u32 %v13142_v10, %v10866_v16  ;;  %v10994_v47 = vld [vmem:[#allocation25 + $0x268] sm:$0xf]  ;;  %v10935_v14 = vor.u32 %v13156_v59, %v10932_v51  ;;  %v13222_v61 = vld [vmem:[#allocation25 + $0x3f4] sm:$0xf0]  ;;  %v13140_v38 = vld [vmem:[#allocation25 + $0x16c] sm:$0xf] }
 0x3fa   :  { %v4377_v6 = vmax.f32 %v4258_v54, 0.0  ;;  %v13120_v54 = vld [vmem:[#allocation25 + $0xcc] sm:$0xf]  ;;  %v10978_v10 = vld [vmem:[#allocation25 + $0x248] sm:$0xf] }
 0x3fb   :  { %5515 = vmatpush.bf16.msra.mxu2 %v10755_v56  ;;  %v11058_v56 = vld [vmem:[#allocation25 + $0x2e8] sm:$0xf]  ;;  %5504 = vmatpush.bf16.msra.mxu1 %v11087_v50  ;;  %v10724_v50 = vld [vmem:[#allocation25 + $0x58] sm:$0xf0]  ;;  %v11290_v59 = vld [vmem:[#allocation28 + $0xc0] sm:$0xf] }
 0x3fc   :  { %v14654_v12 = vpack.c.bf16 %v4377_v6, %v4373_v5  ;;  %v11059_v5 = vor.u32 %v13190_v46, %v11058_v56  ;;  %v10791_v6 = vor.u32 %v13120_v54, %v10788_v0  ;;  %v10727_v16 = vor.u32 %v13104_v29, %v10724_v50  ;;  %v13100_v56 = vld [vmem:[#allocation25 + $0x2c] sm:$0xf]  ;;  %v10900_v54 = vld [vmem:[#allocation25 + $0x1b8] sm:$0xf0]  ;;  %v13281_v51 = vld [vmem:[#allocation28 + $0xcc] sm:$0xf0] }
 0x3fd   :  { %v13148_v46 = vld [vmem:[#allocation25 + $0x1ac] sm:$0xf]  ;;  %v11291_v50 = vor.u32 %v13281_v51, %v11290_v59  ;;  %v10980_v51 = vld [vmem:[#allocation25 + $0x258] sm:$0xf0] }
 0x3fe   :  { %5422 = vmatmul.bf16.vlgmr.msra.gmra.mxu3 %v14654_v12  ;;  %5464 = vmatmul.bf16.vlgmr.msrb.gmra.mxu2 %v14650_v33  ;;  %v10903_v8 = vor.u32 %v13148_v46, %v10900_v54  ;;  %v13136_v29 = vld [vmem:[#allocation25 + $0x14c] sm:$0xf]  ;;  %v11028_v54 = vld [vmem:[#allocation25 + $0x2b8] sm:$0xf0] }
 0x3ff   :  { %5516 = vmatpush.bf16.msra.mxu2 %v10739_v62  ;;  %5526 = vmatpush.bf16.msra.mxu3 %v10931_v7  ;;  %v4311_v21 = vpop.f32.mrf.mxu1  ;;  %v10850_v62 = vld [vmem:[#allocation25 + $0x148] sm:$0xf]  ;;  %v13138_v7 = vld [vmem:[#allocation25 + $0x154] sm:$0xf0]  ;;  %v13180_v46 = vld [vmem:[#allocation25 + $0x2ac] sm:$0xf] }
 0x400   :  { %v4312_v22 = vadd.f32 %v4311_v21, %v4298_v9  ;;  %5505 = vmatpush.bf16.msra.mxu1 %v11071_v2  ;;  %v10851_v13 = vor.u32 %v13138_v7, %v10850_v62  ;;  %v13134_v21 = vld [vmem:[#allocation25 + $0x134] sm:$0xf0]  ;;  %v11011_v9 = vor.u32 %v13178_v39, %v11010_v55  ;;  %v4341_v63 = vpop.f32.mrf.mxu3  ;;  %v4340_v2 = vadd.f32 %v4339_v37, %v4326_v26  ;;  %v10868_v55 = vld [vmem:[#allocation25 + $0x178] sm:$0xf0]  ;;  %v13188_v39 = vld [vmem:[#allocation25 + $0x2ec] sm:$0xf] }
 0x401   :  { %v10835_v49 = vor.u32 %v13134_v21, %v10834_v20  ;;  %v13168_v59 = vld [vmem:[#allocation25 + $0x24c] sm:$0xf] }
 0x402   :  { %v4374_v1 = vmax.f32 %v4312_v22, 0.0  ;;  %v10916_v22 = vld [vmem:[#allocation25 + $0x1d8] sm:$0xf0] }
 0x403   :  { %5517 = vmatpush.bf16.msra.mxu2 %v10723_v23  ;;  %5527 = vmatpush.bf16.msra.mxu3 %v10915_v24  ;;  %v11026_v23 = vld [vmem:[#allocation25 + $0x2a8] sm:$0xf]  ;;  %v13182_v24 = vld [vmem:[#allocation25 + $0x2b4] sm:$0xf0] }
 0x404   :  { %v11027_v35 = vor.u32 %v13182_v24, %v11026_v23 }
 0x407   :  { %5518 = vmatpush.bf16.msra.mxu2 %v10707_v58  ;;  %5528 = vmatpush.bf16.msra.mxu3 %v10899_v42  ;;  %v4313_v30 = vpop.f32.mrf.mxu1  ;;  %v10740_v58 = vld [vmem:[#allocation25 + $0x78] sm:$0xf0]  ;;  %v4353_v42 = vpop.f32.mrf.mxu0 }
 0x408   :  { %v4314_v18 = vadd.f32 %v4313_v30, %v4300_v45  ;;  %v10743_v44 = vor.u32 %v13108_v40, %v10740_v58  ;;  %v13152_v45 = vld [vmem:[#allocation25 + $0x1cc] sm:$0xf]  ;;  %v4327_v30 = vpop.f32.mrf.mxu2  ;;  %v4354_v7 = vadd.f32 %v4353_v42, %v4340_v2  ;;  %v11060_v40 = vld [vmem:[#allocation25 + $0x2f8] sm:$0xf0] }
 0x409   :  { %v4328_v0 = vadd.f32 %v4327_v30, %v3503_v25  ;;  %v11044_v30 = vld [vmem:[#allocation25 + $0x2d8] sm:$0xf0] }
 0x40a   :  { %v4378_v57 = vmax.f32 %v4314_v18, 0.0  ;;  %v10919_v18 = vor.u32 %v13152_v45, %v10916_v22  ;;  %v10852_v45 = vld [vmem:[#allocation25 + $0x158] sm:$0xf0]  ;;  %v13184_v22 = vld [vmem:[#allocation25 + $0x2cc] sm:$0xf] }
 0x40b   :  { %5519 = vmatpush.bf16.msra.mxu2 %v10691_v17  ;;  %5529 = vmatpush.bf16.msra.mxu3 %v10883_v28  ;;  %v10995_v28 = vor.u32 %v13174_v48, %v10994_v47  ;;  %v4342_v62 = vadd.f32 %v4341_v63, %v4328_v0  ;;  %v11063_v47 = vor.u32 %v13188_v39, %v11060_v40  ;;  %v13218_v48 = vld [vmem:[#allocation25 + $0x3d4] sm:$0xf0]  ;;  %v10836_v63 = vld [vmem:[#allocation25 + $0x138] sm:$0xf0]  ;;  %v13273_v0 = vld [vmem:[#allocation28 + $0x8c] sm:$0xf0] }
 0x40c   :  { %v14658_v3 = vpack.c.bf16 %v4378_v57, %v4374_v1  ;;  %v11047_v26 = vor.u32 %v13184_v22, %v11044_v30  ;;  %v11106_v39 = vld [vmem:[#allocation25 + $0x348] sm:$0xf]  ;;  %v13202_v40 = vld [vmem:[#allocation25 + $0x354] sm:$0xf0]  ;;  %v13164_v30 = vld [vmem:[#allocation25 + $0x22c] sm:$0xf] }
 0x40e   :  { %5436 = vmatmul.bf16.vlgmr.msrb.gmra.mxu0 %v14658_v3  ;;  %5478 = vmatmul.bf16.vlgmr.msrb.gmra.mxu3 %v14654_v12 }
 0x40f   :  { %5568 = vmatpush.bf16.msrb.mxu2 %v10807_v27  ;;  %5530 = vmatpush.bf16.msra.mxu3 %v10867_v41  ;;  %v13170_v27 = vld [vmem:[#allocation25 + $0x254] sm:$0xf0]  ;;  %v4355_v1 = vpop.f32.mrf.mxu0  ;;  %v10711_v41 = vor.u32 %v13100_v56, %v10708_v60  ;;  %v13132_v56 = vld [vmem:[#allocation25 + $0x12c] sm:$0xf] }
 0x410   :  { %5520 = vmatmul.bf16.vlgmr.msra.gmra.mxu2 %v14650_v33  ;;  %5540 = vmatpush.bf16.msrb.mxu0 %v11059_v5  ;;  %v10979_v57 = vor.u32 %v13170_v27, %v10978_v10  ;;  %v10962_v5 = vld [vmem:[#allocation25 + $0x228] sm:$0xf]  ;;  %v4356_v20 = vadd.f32 %v4355_v1, %v4342_v62  ;;  %v10855_v10 = vor.u32 %v13136_v29, %v10852_v45  ;;  %v13214_v27 = vld [vmem:[#allocation25 + $0x3b4] sm:$0xf0]  ;;  %v10820_v62 = vld [vmem:[#allocation25 + $0x118] sm:$0xf0] }
 0x411   :  { %v11138_v1 = vld [vmem:[#allocation25 + $0x388] sm:$0xf] }
 0x412   :  { %v11090_v29 = vld [vmem:[#allocation25 + $0x328] sm:$0xf] }
 0x413   :  { %5569 = vmatpush.bf16.msrb.mxu2 %v10791_v6  ;;  %5531 = vmatpush.bf16.msra.mxu3 %v10851_v13  ;;  %v13166_v6 = vld [vmem:[#allocation25 + $0x234] sm:$0xf0]  ;;  %v10884_v13 = vld [vmem:[#allocation25 + $0x198] sm:$0xf0] }
 0x414   :  { %5541 = vmatpush.bf16.msrb.mxu0 %v11043_v15  ;;  %v11306_v15 = vld [vmem:[#allocation28 + $0xe0] sm:$0xf]  ;;  %v10963_v24 = vor.u32 %v13166_v6, %v10962_v5  ;;  %v10887_v37 = vor.u32 %v13144_v4, %v10884_v13  ;;  %v13210_v5 = vld [vmem:[#allocation25 + $0x394] sm:$0xf0]  ;;  %v13128_v6 = vld [vmem:[#allocation25 + $0x10c] sm:$0xf] }
 0x415   :  { %v13269_v4 = vld [vmem:[#allocation28 + $0x6c] sm:$0xf0]  ;;  %v13283_v13 = vld [vmem:[#allocation28 + $0xe4] sm:$0xf] }
 0x417   :  { %5570 = vmatpush.bf16.msrb.mxu2 %v10775_v19  ;;  %5532 = vmatpush.bf16.msra.mxu3 %v10835_v49  ;;  %v13285_v19 = vld [vmem:[#allocation28 + $0xec] sm:$0xf0] }
 0x418   :  { %5542 = vmatpush.bf16.msrb.mxu0 %v11027_v35  ;;  %v11307_v35 = vor.u32 %v13285_v19, %v11306_v15  ;;  %v11308_v15 = vld [vmem:[#allocation28 + $0xf0] sm:$0xf0]  ;;  %v11139_v19 = vor.u32 %v13210_v5, %v11138_v1  ;;  %v11188_v1 = vld [vmem:[#allocation25 + $0x3f8] sm:$0xf0] }
 0x419   :  { %v11244_v5 = vld [vmem:[#allocation28 + $0x70] sm:$0xf0] }
 0x41b   :  { %5571 = vmatpush.bf16.msrb.mxu2 %v10759_v36  ;;  %5533 = vmatpush.bf16.msra.mxu3 %v10819_v43  ;;  %v11186_v36 = vld [vmem:[#allocation25 + $0x3e8] sm:$0xf]  ;;  %v10947_v43 = vor.u32 %v13162_v34, %v10946_v32  ;;  %v11311_v32 = vor.u32 %v13283_v13, %v11308_v15  ;;  %v13172_v34 = vld [vmem:[#allocation25 + $0x26c] sm:$0xf] }
 0x41c   :  { %5543 = vmatpush.bf16.msrb.mxu0 %v11011_v9  ;;  %v11187_v25 = vor.u32 %v13222_v61, %v11186_v36  ;;  %v13279_v36 = vld [vmem:[#allocation28 + $0xc4] sm:$0xf]  ;;  %v11292_v61 = vld [vmem:[#allocation28 + $0xd0] sm:$0xf0]  ;;  %v13216_v15 = vld [vmem:[#allocation25 + $0x3cc] sm:$0xf] }
 0x41e   :  { %5492 = vmatmul.bf16.vlgmr.msra.gmra.mxu0 %v14658_v3  ;;  %5534 = vmatmul.bf16.vlgmr.msra.gmra.mxu3 %v14654_v12 }
 0x41f   :  { %v4367_v17 = vpop.f32.mrf.mxu1  ;;  %5572 = vmatpush.bf16.msrb.mxu2 %v10743_v44  ;;  %5582 = vmatpush.bf16.msrb.mxu3 %v10935_v14  ;;  %v10871_v44 = vor.u32 %v13140_v38, %v10868_v55  ;;  %v11170_v14 = vld [vmem:[#allocation25 + $0x3c8] sm:$0xf] }
 0x420   :  { %5544 = vmatpush.bf16.msrb.mxu0 %v10995_v28  ;;  %v4368_v21 = vadd.f32 %v4367_v17, %v4354_v7  ;;  %v11274_v17 = vld [vmem:[#allocation28 + $0xa0] sm:$0xf]  ;;  %v13277_v28 = vld [vmem:[#allocation28 + $0xac] sm:$0xf0] }
 0x421   :  { %v11275_v60 = vor.u32 %v13277_v28, %v11274_v17  ;;  %v10964_v17 = vld [vmem:[#allocation25 + $0x238] sm:$0xf0]  ;;  %v11194_v28 = vld [vmem:[#allocation28] sm:$0xf] }
 0x422   :  { %v4375_v58 = vmax.f32 %v4368_v21, 0.0 }
 0x423   :  { %5573 = vmatpush.bf16.msrb.mxu2 %v10727_v16  ;;  %5583 = vmatpush.bf16.msrb.mxu3 %v10919_v18  ;;  %v11171_v16 = vor.u32 %v13218_v48, %v11170_v14  ;;  %v11154_v18 = vld [vmem:[#allocation25 + $0x3a8] sm:$0xf]  ;;  %v11107_v14 = vor.u32 %v13202_v40, %v11106_v39  ;;  %v10983_v48 = vor.u32 %v13168_v59, %v10980_v51  ;;  %v13259_v40 = vld [vmem:[#allocation28 + $0x24] sm:$0xf]  ;;  %v13278_v59 = vld [vmem:[#allocation28 + $0xb4] sm:$0xf0] }
 0x424   :  { %5545 = vmatpush.bf16.msrb.mxu0 %v10979_v57  ;;  %v11155_v2 = vor.u32 %v13214_v27, %v11154_v18  ;;  %v10839_v57 = vor.u32 %v13132_v56, %v10836_v63  ;;  %v11434_v27 = vld [vmem:[#allocation29 + $0xe0] sm:$0xf]  ;;  %v13317_v56 = vld [vmem:[#allocation29 + $0xec] sm:$0xf0]  ;;  %v13194_v63 = vld [vmem:[#allocation25 + $0x314] sm:$0xf0] }
 0x425   :  { %v11386_v51 = vld [vmem:[#allocation29 + $0x80] sm:$0xf] }
 0x427   :  { %v4369_v23 = vpop.f32.mrf.mxu1  ;;  %5574 = vmatpush.bf16.msrb.mxu2 %v10711_v41  ;;  %5584 = vmatpush.bf16.msrb.mxu3 %v10903_v8  ;;  %v11031_v41 = vor.u32 %v13180_v46, %v11028_v54  ;;  %v13176_v8 = vld [vmem:[#allocation25 + $0x28c] sm:$0xf] }
 0x428   :  { %v4370_v49 = vadd.f32 %v4369_v23, %v4356_v20  ;;  %5546 = vmatpush.bf16.msrb.mxu0 %v10963_v24  ;;  %v10823_v20 = vor.u32 %v13128_v6, %v10820_v62  ;;  %v11015_v21 = vor.u32 %v13176_v8, %v11012_v53  ;;  %v11122_v23 = vld [vmem:[#allocation25 + $0x368] sm:$0xf]  ;;  %v13206_v24 = vld [vmem:[#allocation25 + $0x374] sm:$0xf0]  ;;  %v13160_v46 = vld [vmem:[#allocation25 + $0x20c] sm:$0xf] }
 0x429   :  { %v11123_v38 = vor.u32 %v13206_v24, %v11122_v23  ;;  %v11314_v6 = vld [vmem:[#allocation28 + $0xe8] sm:$0xf]  ;;  %v11418_v8 = vld [vmem:[#allocation29 + $0xc0] sm:$0xf]  ;;  %v13313_v53 = vld [vmem:[#allocation29 + $0xcc] sm:$0xf0] }
 0x42a   :  { %v4379_v42 = vmax.f32 %v4370_v49, 0.0  ;;  %v10996_v49 = vld [vmem:[#allocation25 + $0x278] sm:$0xf0]  ;;  %v13263_v23 = vld [vmem:[#allocation28 + $0x44] sm:$0xf] }
 0x42b   :  { %5575 = vmatpush.bf16.msrb.mxu2 %v10695_v31  ;;  %5585 = vmatpush.bf16.msrb.mxu3 %v10887_v37  ;;  %v11243_v31 = vor.u32 %v13269_v4, %v11242_v11  ;;  %v11226_v37 = vld [vmem:[#allocation28 + $0x40] sm:$0xf]  ;;  %v10999_v55 = vor.u32 %v13172_v34, %v10996_v49  ;;  %v11228_v24 = vld [vmem:[#allocation28 + $0x50] sm:$0xf0]  ;;  %v13309_v49 = vld [vmem:[#allocation29 + $0xac] sm:$0xf0] }
 0x42c   :  { %v14666_v9 = vpack.c.bf16 %v4379_v42, %v4375_v58  ;;  %5547 = vmatpush.bf16.msrb.mxu0 %v10947_v43  ;;  %v11295_v42 = vor.u32 %v13279_v36, %v11292_v61  ;;  %v11210_v43 = vld [vmem:[#allocation28 + $0x20] sm:$0xf]  ;;  %v11231_v36 = vor.u32 %v13263_v23, %v11228_v24  ;;  %v13212_v61 = vld [vmem:[#allocation25 + $0x3ac] sm:$0xf]  ;;  %v11218_v24 = vld [vmem:[#allocation28 + $0x28] sm:$0xf] }
 0x42d   :  { %v11402_v34 = vld [vmem:[#allocation29 + $0xa0] sm:$0xf] }
 0x42e   :  { %5450 = vmatmul.bf16.vlgmr.msrb.gmra.mxu1 %v14666_v9  ;;  %5576 = vmatmul.bf16.vlgmr.msrb.gmra.mxu2 %v14650_v33  ;;  %v11258_v33 = vld [vmem:[#allocation28 + $0x80] sm:$0xf]  ;;  %v11403_v39 = vor.u32 %v13309_v49, %v11402_v34  ;;  %v13289_v49 = vld [vmem:[#allocation29 + $0xc] sm:$0xf0] }
 0x42f   :  { %5816 = vmatpush.bf16.msra.mxu2 %v11307_v35  ;;  %5554 = vmatpush.bf16.msrb.mxu1 %v11187_v25  ;;  %v11259_v7 = vor.u32 %v13273_v0, %v11258_v33  ;;  %v13265_v35 = vld [vmem:[#allocation28 + $0x4c] sm:$0xf0]  ;;  %v10948_v0 = vld [vmem:[#allocation25 + $0x218] sm:$0xf0]  ;;  %v11322_v34 = vld [vmem:[#allocation29] sm:$0xf] }
 0x430   :  { %5586 = vmatpush.bf16.msrb.mxu3 %v10871_v44  ;;  %5596 = vmatpush.bf16.msra.mxu0 %v11063_v47  ;;  %v11227_v58 = vor.u32 %v13265_v35, %v11226_v37  ;;  %v13261_v25 = vld [vmem:[#allocation28 + $0x2c] sm:$0xf0]  ;;  %v13275_v44 = vld [vmem:[#allocation28 + $0xa4] sm:$0xf]  ;;  %v11276_v47 = vld [vmem:[#allocation28 + $0xb0] sm:$0xf0]  ;;  %v10951_v11 = vor.u32 %v13160_v46, %v10948_v0 }
 0x431   :  { %5548 = vmatmul.bf16.vlgmr.msrb.gmra.mxu0 %v14658_v3  ;;  %v11211_v45 = vor.u32 %v13261_v25, %v11210_v43  ;;  %v11279_v22 = vor.u32 %v13275_v44, %v11276_v47  ;;  %v14673_v35 = vld [vmem:[#allocation2] sm:$0xff]  ;;  %v13208_v47 = vld [vmem:[#allocation25 + $0x38c] sm:$0xf]  ;;  %v13270_v46 = vld [vmem:[#allocation28 + $0x74] sm:$0xf0] }
 0x432   :  { %v13305_v43 = vld [vmem:[#allocation29 + $0x8c] sm:$0xf0] }
 0x433   :  { %5817 = vmatpush.bf16.msra.mxu2 %v11291_v50  ;;  %5555 = vmatpush.bf16.msrb.mxu1 %v11171_v16  ;;  %v13198_v50 = vld [vmem:[#allocation25 + $0x334] sm:$0xf0]  ;;  %v13257_v16 = vld [vmem:[#allocation28 + $0xc] sm:$0xf0] }
 0x434   :  { %5587 = vmatpush.bf16.msrb.mxu3 %v10855_v10  ;;  %5597 = vmatpush.bf16.msra.mxu0 %v11047_v26  ;;  %v13271_v10 = vld [vmem:[#allocation28 + $0x84] sm:$0xf]  ;;  %v11260_v26 = vld [vmem:[#allocation28 + $0x90] sm:$0xf0]  ;;  %v11091_v18 = vor.u32 %v13198_v50, %v11090_v29  ;;  %v11195_v54 = vor.u32 %v13257_v16, %v11194_v28  ;;  %v11387_v29 = vor.u32 %v13305_v43, %v11386_v51  ;;  %v13301_v28 = vld [vmem:[#allocation29 + $0x6c] sm:$0xf0] }
 0x435   :  { %v11263_v33 = vor.u32 %v13271_v10, %v11260_v26  ;;  %v13255_v50 = vld [vmem:[#allocation28 + $0x4] sm:$0xf]  ;;  %v11436_v10 = vld [vmem:[#allocation29 + $0xf0] sm:$0xf0]  ;;  %v11202_v51 = vld [vmem:[#allocation28 + $0x8] sm:$0xf] }
 0x436   :  { %v13315_v16 = vld [vmem:[#allocation29 + $0xe4] sm:$0xf]  ;;  %v13258_v43 = vld [vmem:[#allocation28 + $0x14] sm:$0xf0] }
 0x437   :  { %5818 = vmatpush.bf16.msra.mxu2 %v11275_v60  ;;  %5556 = vmatpush.bf16.msrb.mxu1 %v11155_v2  ;;  %v11074_v60 = vld [vmem:[#allocation25 + $0x308] sm:$0xf]  ;;  %v13220_v2 = vld [vmem:[#allocation25 + $0x3ec] sm:$0xf] }
 0x438   :  { %5588 = vmatpush.bf16.msrb.mxu3 %v10839_v57  ;;  %5598 = vmatpush.bf16.msra.mxu0 %v11031_v41  ;;  %v11435_v57 = vor.u32 %v13317_v56, %v11434_v27  ;;  %v13267_v41 = vld [vmem:[#allocation28 + $0x64] sm:$0xf]  ;;  %v11075_v62 = vor.u32 %v13194_v63, %v11074_v60  ;;  %v11191_v4 = vor.u32 %v13220_v2, %v11188_v1  ;;  %v11124_v27 = vld [vmem:[#allocation25 + $0x378] sm:$0xf0]  ;;  %v11250_v60 = vld [vmem:[#allocation28 + $0x68] sm:$0xf] }
 0x439   :  { %v11247_v13 = vor.u32 %v13267_v41, %v11244_v5  ;;  %v11439_v63 = vor.u32 %v13315_v16, %v11436_v10  ;;  %v13311_v2 = vld [vmem:[#allocation29 + $0xc4] sm:$0xf]  ;;  %v11420_v1 = vld [vmem:[#allocation29 + $0xd0] sm:$0xf0]  ;;  %v11108_v41 = vld [vmem:[#allocation25 + $0x358] sm:$0xf0]  ;;  %v11251_v5 = vor.u32 %v13270_v46, %v11250_v60 }
 0x43a   :  { %v11426_v16 = vld [vmem:[#allocation29 + $0xc8] sm:$0xf]  ;;  %v13314_v10 = vld [vmem:[#allocation29 + $0xd4] sm:$0xf0]  ;;  %v11340_v46 = vld [vmem:[#allocation29 + $0x30] sm:$0xf0] }
 0x43b   :  { %5819 = vmatpush.bf16.msra.mxu2 %v11259_v7  ;;  %5557 = vmatpush.bf16.msrb.mxu1 %v11139_v19  ;;  %v13286_v7 = vld [vmem:[#allocation28 + $0xf4] sm:$0xf0]  ;;  %v11172_v19 = vld [vmem:[#allocation25 + $0x3d8] sm:$0xf0]  ;;  %v11427_v60 = vor.u32 %v13314_v10, %v11426_v16  ;;  %v13304_v10 = vld [vmem:[#allocation29 + $0x8c] sm:$0xf] }
 0x43c   :  { %5589 = vmatpush.bf16.msrb.mxu3 %v10823_v20  ;;  %5599 = vmatpush.bf16.msra.mxu0 %v11015_v21  ;;  %v11315_v20 = vor.u32 %v13286_v7, %v11314_v6  ;;  %v11419_v21 = vor.u32 %v13313_v53, %v11418_v8  ;;  %v11175_v37 = vor.u32 %v13216_v15, %v11172_v19  ;;  %v13266_v8 = vld [vmem:[#allocation28 + $0x54] sm:$0xf0]  ;;  %v11338_v53 = vld [vmem:[#allocation29 + $0x20] sm:$0xf]  ;;  %v11404_v15 = vld [vmem:[#allocation29 + $0xb0] sm:$0xf0] }
 0x43d   :  { %v11423_v7 = vor.u32 %v13311_v2, %v11420_v1  ;;  %v13196_v19 = vld [vmem:[#allocation25 + $0x32c] sm:$0xf]  ;;  %v11268_v1 = vld [vmem:[#allocation28 + $0x98] sm:$0xf0] }
 0x43e   :  { %5506 = vmatmul.bf16.vlgmr.msra.gmra.mxu1 %v14666_v9  ;;  %v13272_v2 = vld [vmem:[#allocation28 + $0x8c] sm:$0xf] }
 0x43f   :  { %5820 = vmatpush.bf16.msra.mxu2 %v11243_v31  ;;  %5558 = vmatpush.bf16.msrb.mxu1 %v11123_v38  ;;  %v11298_v31 = vld [vmem:[#allocation28 + $0xc8] sm:$0xf]  ;;  %v11156_v38 = vld [vmem:[#allocation25 + $0x3b8] sm:$0xf0] }
 0x440   :  { %5830 = vmatpush.bf16.msra.mxu3 %v11311_v32  ;;  %5600 = vmatpush.bf16.msra.mxu0 %v10999_v55  ;;  %v13282_v32 = vld [vmem:[#allocation28 + $0xd4] sm:$0xf0]  ;;  %v11159_v25 = vor.u32 %v13212_v61, %v11156_v38  ;;  %v11388_v61 = vld [vmem:[#allocation29 + $0x90] sm:$0xf0]  ;;  %v13192_v38 = vld [vmem:[#allocation25 + $0x30c] sm:$0xf] }
 0x441   :  { %5590 = vmatmul.bf16.vlgmr.msrb.gmra.mxu3 %v14654_v12  ;;  %v10967_v12 = vor.u32 %v13164_v30, %v10964_v17  ;;  %v11299_v55 = vor.u32 %v13282_v32, %v11298_v31  ;;  %v13274_v30 = vld [vmem:[#allocation28 + $0x94] sm:$0xf0]  ;;  %v11370_v17 = vld [vmem:[#allocation29 + $0x60] sm:$0xf] }
 0x442   :  { %v13262_v32 = vld [vmem:[#allocation28 + $0x34] sm:$0xf0] }
 0x443   :  { %5821 = vmatpush.bf16.msra.mxu2 %v11227_v58  ;;  %5559 = vmatpush.bf16.msrb.mxu1 %v11107_v14  ;;  %v11212_v58 = vld [vmem:[#allocation28 + $0x30] sm:$0xf0]  ;;  %v11140_v14 = vld [vmem:[#allocation25 + $0x398] sm:$0xf0] }
 0x444   :  { %5831 = vmatpush.bf16.msra.mxu3 %v11295_v42  ;;  %5601 = vmatpush.bf16.msra.mxu0 %v10983_v48  ;;  %v11282_v42 = vld [vmem:[#allocation28 + $0xa8] sm:$0xf]  ;;  %v11215_v44 = vor.u32 %v13259_v40, %v11212_v58  ;;  %v11323_v40 = vor.u32 %v13289_v49, %v11322_v34  ;;  %v13284_v58 = vld [vmem:[#allocation28 + $0xec] sm:$0xf]  ;;  %v13298_v34 = vld [vmem:[#allocation29 + $0x54] sm:$0xf0] }
 0x445   :  { %v11283_v48 = vor.u32 %v13278_v59, %v11282_v42  ;;  %v11316_v42 = vld [vmem:[#allocation28 + $0xf8] sm:$0xf0] }
 0x447   :  { %5822 = vmatpush.bf16.msra.mxu2 %v11211_v45  ;;  %5560 = vmatpush.bf16.msrb.mxu1 %v11091_v18  ;;  %v11196_v45 = vld [vmem:[#allocation28 + $0x10] sm:$0xf0]  ;;  %v13204_v18 = vld [vmem:[#allocation25 + $0x36c] sm:$0xf] }
 0x448   :  { %5832 = vmatpush.bf16.msra.mxu3 %v11279_v22  ;;  %5602 = vmatpush.bf16.msra.mxu0 %v10967_v12  ;;  %v11266_v22 = vld [vmem:[#allocation28 + $0x88] sm:$0xf]  ;;  %v11199_v26 = vor.u32 %v13255_v50, %v11196_v45  ;;  %v11371_v12 = vor.u32 %v13301_v28, %v11370_v17  ;;  %v11127_v0 = vor.u32 %v13204_v18, %v11124_v27  ;;  %v13280_v45 = vld [vmem:[#allocation28 + $0xcc] sm:$0xf]  ;;  %v13295_v28 = vld [vmem:[#allocation29 + $0x44] sm:$0xf]  ;;  %v14680_v18 = vpop.f32.mrf.mxu2 }
 0x449   :  { %v11267_v56 = vor.u32 %v13274_v30, %v11266_v22  ;;  %v11203_v50 = vor.u32 %v13258_v43, %v11202_v51  ;;  %v11300_v22 = vld [vmem:[#allocation28 + $0xd8] sm:$0xf0]  ;;  %v13276_v27 = vld [vmem:[#allocation28 + $0xac] sm:$0xf] }
 0x44a   :  { %v13316_v43 = vld [vmem:[#allocation29 + $0xec] sm:$0xf] }
 0x44b   :  { %5823 = vmatpush.bf16.msra.mxu2 %v11195_v54  ;;  %5561 = vmatpush.bf16.msrb.mxu1 %v11075_v62  ;;  %v11354_v54 = vld [vmem:[#allocation29 + $0x40] sm:$0xf]  ;;  %v11234_v62 = vld [vmem:[#allocation28 + $0x48] sm:$0xf] }
 0x44c   :  { %5833 = vmatpush.bf16.msra.mxu3 %v11263_v33  ;;  %5603 = vmatpush.bf16.msra.mxu0 %v10951_v11  ;;  %v13297_v33 = vld [vmem:[#allocation29 + $0x4c] sm:$0xf0] }
 0x44d   :  { %v11355_v6 = vor.u32 %v13297_v33, %v11354_v54  ;;  %v13293_v11 = vld [vmem:[#allocation29 + $0x2c] sm:$0xf0]  ;;  %v11410_v54 = vld [vmem:[#allocation29 + $0xa8] sm:$0xf]  ;;  %v13310_v33 = vld [vmem:[#allocation29 + $0xb4] sm:$0xf0] }
 0x44e   :  { %5824 = vmatmul.bf16.vlgmr.msra.gmra.mxu2 %v14673_v35  ;;  %5562 = vmatmul.bf16.vlgmr.msrb.gmra.mxu1 %v14666_v9  ;;  %v11339_v23 = vor.u32 %v13293_v11, %v11338_v53  ;;  %v13268_v53 = vld [vmem:[#allocation28 + $0x6c] sm:$0xf]  ;;  %v11252_v11 = vld [vmem:[#allocation28 + $0x78] sm:$0xf0] }
 0x44f   :  { %6072 = vmatpush.bf16.msrb.mxu2 %v11435_v57  ;;  %5610 = vmatpush.bf16.msra.mxu1 %v11191_v4  ;;  %v13200_v57 = vld [vmem:[#allocation25 + $0x34c] sm:$0xf] }
 0x450   :  { %5834 = vmatpush.bf16.msra.mxu3 %v11247_v13  ;;  %5844 = vmatpush.bf16.msrb.mxu0 %v11315_v20  ;;  %v11111_v4 = vor.u32 %v13200_v57, %v11108_v41  ;;  %v13307_v13 = vld [vmem:[#allocation29 + $0xa4] sm:$0xf]  ;;  %v11092_v20 = vld [vmem:[#allocation25 + $0x338] sm:$0xf0]  ;;  %v11411_v41 = vor.u32 %v13310_v33, %v11410_v54  ;;  %v13296_v33 = vld [vmem:[#allocation29 + $0x4c] sm:$0xf] }
 0x451   :  { %5604 = vmatmul.bf16.vlgmr.msra.gmra.mxu0 %v14658_v3  ;;  %v11143_v3 = vor.u32 %v13208_v47, %v11140_v14  ;;  %v11407_v31 = vor.u32 %v13307_v13, %v11404_v15  ;;  %v11372_v47 = vld [vmem:[#allocation29 + $0x70] sm:$0xf0]  ;;  %v11442_v14 = vld [vmem:[#allocation29 + $0xe8] sm:$0xf]  ;;  %v14686_v15 = vpop.f32.mrf.mxu2 }
 0x453   :  { %6073 = vmatpush.bf16.msrb.mxu2 %v11419_v21  ;;  %5611 = vmatpush.bf16.msra.mxu1 %v11175_v37  ;;  %v11235_v21 = vor.u32 %v13266_v8, %v11234_v62  ;;  %v11095_v37 = vor.u32 %v13196_v19, %v11092_v20  ;;  %v11394_v62 = vld [vmem:[#allocation29 + $0x88] sm:$0xf]  ;;  %v11271_v8 = vor.u32 %v13272_v2, %v11268_v1  ;;  %v13302_v20 = vld [vmem:[#allocation29 + $0x74] sm:$0xf0] }
 0x454   :  { %5835 = vmatpush.bf16.msra.mxu3 %v11231_v36  ;;  %5845 = vmatpush.bf16.msrb.mxu0 %v11299_v55  ;;  %v13303_v36 = vld [vmem:[#allocation29 + $0x84] sm:$0xf]  ;;  %v11076_v55 = vld [vmem:[#allocation25 + $0x318] sm:$0xf0]  ;;  %v11378_v19 = vld [vmem:[#allocation29 + $0x68] sm:$0xf] }
 0x455   :  { %v11391_v59 = vor.u32 %v13303_v36, %v11388_v61  ;;  %v11220_v36 = vld [vmem:[#allocation28 + $0x38] sm:$0xf0] }
 0x457   :  { %6074 = vmatpush.bf16.msrb.mxu2 %v11403_v39  ;;  %5612 = vmatpush.bf16.msra.mxu1 %v11159_v25  ;;  %v11219_v39 = vor.u32 %v13262_v32, %v11218_v24  ;;  %v13299_v25 = vld [vmem:[#allocation29 + $0x64] sm:$0xf]  ;;  %v11236_v24 = vld [vmem:[#allocation28 + $0x58] sm:$0xf0]  ;;  %v11362_v32 = vld [vmem:[#allocation29 + $0x48] sm:$0xf] }
 0x458   :  { %5836 = vmatpush.bf16.msra.mxu3 %v11215_v44  ;;  %5846 = vmatpush.bf16.msrb.mxu0 %v11283_v48  ;;  %v11079_v44 = vor.u32 %v13192_v38, %v11076_v55  ;;  %v13318_v48 = vld [vmem:[#allocation29 + $0xf4] sm:$0xf0]  ;;  %v11375_v30 = vor.u32 %v13299_v25, %v11372_v47  ;;  %v11363_v61 = vor.u32 %v13298_v34, %v11362_v32  ;;  %v11444_v25 = vld [vmem:[#allocation29 + $0xf8] sm:$0xf0]  ;;  %v13341_v32 = vld [vmem:[#allocation31 + $0xac] sm:$0xf0] }
 0x459   :  { %v11443_v17 = vor.u32 %v13318_v48, %v11442_v14  ;;  %v13290_v47 = vld [vmem:[#allocation29 + $0x14] sm:$0xf0]  ;;  %v11447_v48 = vor.u32 %v13316_v43, %v11444_v25 }
 0x45b   :  { %6075 = vmatpush.bf16.msrb.mxu2 %v11387_v29  ;;  %5613 = vmatpush.bf16.msra.mxu1 %v11143_v3  ;;  %v11319_v29 = vor.u32 %v13284_v58, %v11316_v42  ;;  %v11356_v3 = vld [vmem:[#allocation29 + $0x50] sm:$0xf0]  ;;  %v13256_v42 = vld [vmem:[#allocation28 + $0xc] sm:$0xf] }
 0x45c   :  { %5837 = vmatpush.bf16.msra.mxu3 %v11199_v26  ;;  %5847 = vmatpush.bf16.msrb.mxu0 %v11267_v56  ;;  %v11303_v26 = vor.u32 %v13280_v45, %v11300_v22  ;;  %v11284_v56 = vld [vmem:[#allocation28 + $0xb8] sm:$0xf0] }
 0x45d   :  { %v11428_v45 = vld [vmem:[#allocation29 + $0xd8] sm:$0xf0] }
 0x45f   :  { %6076 = vmatpush.bf16.msrb.mxu2 %v11371_v12  ;;  %5614 = vmatpush.bf16.msra.mxu1 %v11127_v0  ;;  %v11359_v12 = vor.u32 %v13295_v28, %v11356_v3  ;;  %v11287_v0 = vor.u32 %v13276_v27, %v11284_v56  ;;  %v13308_v28 = vld [vmem:[#allocation29 + $0xac] sm:$0xf]  ;;  %v11412_v3 = vld [vmem:[#allocation29 + $0xb8] sm:$0xf0] }
 0x460   :  { %6086 = vmatpush.bf16.msrb.mxu3 %v11439_v63  ;;  %5848 = vmatpush.bf16.msrb.mxu0 %v11251_v5  ;;  %v13291_v63 = vld [vmem:[#allocation29 + $0x24] sm:$0xf]  ;;  %v11415_v16 = vor.u32 %v13308_v28, %v11412_v3  ;;  %v13325_v28 = vld [vmem:[#allocation31 + $0x2c] sm:$0xf0]  ;;  %v11658_v3 = vld [vmem:[#allocation31 + $0x1a0] sm:$0xf] }
 0x461   :  { %5838 = vmatmul.bf16.vlgmr.msra.gmra.mxu3 %v14673_v35  ;;  %v11343_v57 = vor.u32 %v13291_v63, %v11340_v46  ;;  %v13287_v5 = vld [vmem:[#allocation29 + $0x4] sm:$0xf] }
 0x463   :  { %6077 = vmatpush.bf16.msrb.mxu2 %v11355_v6  ;;  %5615 = vmatpush.bf16.msra.mxu1 %v11111_v4  ;;  %v11324_v6 = vld [vmem:[#allocation29 + $0x10] sm:$0xf0] }
 0x464   :  { %6087 = vmatpush.bf16.msrb.mxu3 %v11423_v7  ;;  %5849 = vmatpush.bf16.msrb.mxu0 %v11235_v21  ;;  %v13306_v7 = vld [vmem:[#allocation29 + $0x94] sm:$0xf0]  ;;  %v11327_v4 = vor.u32 %v13287_v5, %v11324_v6  ;;  %v11255_v21 = vor.u32 %v13268_v53, %v11252_v11  ;;  %v11348_v5 = vld [vmem:[#allocation29 + $0x38] sm:$0xf0]  ;;  %v13349_v11 = vld [vmem:[#allocation31 + $0xec] sm:$0xf0] }
 0x465   :  { %v11395_v13 = vor.u32 %v13306_v7, %v11394_v62  ;;  %v13288_v62 = vld [vmem:[#allocation29 + $0xc] sm:$0xf]  ;;  %v11332_v7 = vld [vmem:[#allocation29 + $0x18] sm:$0xf0] }
 0x467   :  { %6078 = vmatpush.bf16.msrb.mxu2 %v11339_v23  ;;  %5616 = vmatpush.bf16.msra.mxu1 %v11095_v37  ;;  %v13264_v23 = vld [vmem:[#allocation28 + $0x4c] sm:$0xf] }
 0x468   :  { %6088 = vmatpush.bf16.msrb.mxu3 %v11407_v31  ;;  %5850 = vmatpush.bf16.msrb.mxu0 %v11219_v39  ;;  %v11379_v31 = vor.u32 %v13302_v20, %v11378_v19  ;;  %v11239_v49 = vor.u32 %v13264_v23, %v11236_v24  ;;  %v13260_v37 = vld [vmem:[#allocation28 + $0x2c] sm:$0xf]  ;;  %v11346_v39 = vld [vmem:[#allocation29 + $0x28] sm:$0xf]  ;;  %v11546_v19 = vld [vmem:[#allocation31 + $0xc0] sm:$0xf] }
 0x469   :  { %v11223_v58 = vor.u32 %v13260_v37, %v11220_v36  ;;  %v13345_v20 = vld [vmem:[#allocation31 + $0xcc] sm:$0xf0]  ;;  %v11514_v37 = vld [vmem:[#allocation31 + $0x80] sm:$0xf] }
 0x46a   :  { %v13337_v36 = vld [vmem:[#allocation31 + $0x8c] sm:$0xf0] }
 0x46b   :  { %6079 = vmatpush.bf16.msrb.mxu2 %v11323_v40  ;;  %5617 = vmatpush.bf16.msra.mxu1 %v11079_v44  ;;  %v13294_v40 = vld [vmem:[#allocation29 + $0x34] sm:$0xf0]  ;;  %v11330_v44 = vld [vmem:[#allocation29 + $0x8] sm:$0xf] }
 0x46c   :  { %6089 = vmatpush.bf16.msrb.mxu3 %v11391_v59  ;;  %5851 = vmatpush.bf16.msrb.mxu0 %v11203_v50  ;;  %v11204_v59 = vld [vmem:[#allocation28 + $0x18] sm:$0xf0]  ;;  %v11347_v51 = vor.u32 %v13294_v40, %v11346_v39  ;;  %v13312_v50 = vld [vmem:[#allocation29 + $0xcc] sm:$0xf]  ;;  %v11498_v40 = vld [vmem:[#allocation31 + $0x60] sm:$0xf] }
 0x46d   :  { %v11207_v14 = vor.u32 %v13256_v42, %v11204_v59  ;;  %v4755_v42 = vpop.f32.mrf.mxu1 }
 0x46e   :  { %6080 = vmatmul.bf16.vlgmr.msrb.gmra.mxu2 %v14501_v52  ;;  %5618 = vmatmul.bf16.vlgmr.msra.gmra.mxu1 %v14666_v9  ;;  %v14684_v9 = vpop.f32.mrf.mxu3 }
 0x46f   :  { %5858 = vmatpush.bf16.msrb.mxu1 %v11319_v29  ;;  %5852 = vmatmul.bf16.vlgmr.msrb.gmra.mxu0 %v14673_v35  ;;  %v11331_v29 = vor.u32 %v13290_v47, %v11330_v44  ;;  %v11482_v44 = vld [vmem:[#allocation31 + $0x40] sm:$0xf]  ;;  %v13329_v47 = vld [vmem:[#allocation31 + $0x4c] sm:$0xf0] }
 0x470   :  { %6090 = vmatpush.bf16.msrb.mxu3 %v11375_v30  ;;  %6100 = vmatpush.bf16.msra.mxu0 %v11443_v17  ;;  %v11431_v17 = vor.u32 %v13312_v50, %v11428_v45  ;;  %v13377_v50 = vld [vmem:[#allocation31 + $0x1cc] sm:$0xf0] }
 0x471   :  { %v14691_v55 = vpop.f32.mrf.mxu2 }
 0x473   :  { %5859 = vmatpush.bf16.msrb.mxu1 %v11303_v26  ;;  %v11396_v26 = vld [vmem:[#allocation29 + $0x98] sm:$0xf0] }
 0x474   :  { %6091 = vmatpush.bf16.msrb.mxu3 %v11359_v12  ;;  %6101 = vmatpush.bf16.msra.mxu0 %v11427_v60  ;;  %v11399_v56 = vor.u32 %v13304_v10, %v11396_v26  ;;  %v13300_v12 = vld [vmem:[#allocation29 + $0x6c] sm:$0xf]  ;;  %v11380_v60 = vld [vmem:[#allocation29 + $0x78] sm:$0xf0]  ;;  %v13373_v26 = vld [vmem:[#allocation31 + $0x1ac] sm:$0xf0] }
 0x475   :  { %v11383_v46 = vor.u32 %v13300_v12, %v11380_v60  ;;  %v13413_v12 = vld [vmem:[#allocation31 + $0x2ec] sm:$0xf0]  ;;  %v11659_v60 = vor.u32 %v13373_v26, %v11658_v3  ;;  %v13335_v26 = vld [vmem:[#allocation31 + $0x84] sm:$0xf] }
 0x476   :  { %v14689_v38 = vpop.f32.mrf.mxu3  ;;  %v13357_v3 = vld [vmem:[#allocation31 + $0x12c] sm:$0xf0] }
 0x477   :  { %5860 = vmatpush.bf16.msrb.mxu1 %v11287_v0  ;;  %v11364_v0 = vld [vmem:[#allocation29 + $0x58] sm:$0xf0] }
 0x478   :  { %6092 = vmatpush.bf16.msrb.mxu3 %v11343_v57  ;;  %6102 = vmatpush.bf16.msra.mxu0 %v11411_v41  ;;  %v11367_v1 = vor.u32 %v13296_v33, %v11364_v0  ;;  %v14704_v57 = vpop.f32.mrf.mxu0  ;;  %v13292_v41 = vld [vmem:[#allocation29 + $0x2c] sm:$0xf]  ;;  %v11450_v33 = vld [vmem:[#allocation31] sm:$0xf]  ;;  %v13321_v0 = vld [vmem:[#allocation31 + $0xc] sm:$0xf0] }
 0x479   :  { %v14695_v30 = vpop.f32.mrf.mxu2  ;;  %v11351_v6 = vor.u32 %v13292_v41, %v11348_v5  ;;  %v11451_v41 = vor.u32 %v13321_v0, %v11450_v33  ;;  %v13369_v5 = vld [vmem:[#allocation31 + $0x18c] sm:$0xf0]  ;;  %v11578_v0 = vld [vmem:[#allocation31 + $0x100] sm:$0xf] }
 0x47b   :  { %5861 = vmatpush.bf16.msrb.mxu1 %v11271_v8  ;;  %v11335_v8 = vor.u32 %v13288_v62, %v11332_v7  ;;  %v11564_v62 = vld [vmem:[#allocation31 + $0xf0] sm:$0xf0] }
 0x47c   :  { %6093 = vmatpush.bf16.msrb.mxu3 %v11327_v4  ;;  %6103 = vmatpush.bf16.msra.mxu0 %v11395_v13 }
 0x47f   :  { %5862 = vmatpush.bf16.msrb.mxu1 %v11255_v21  ;;  %6094 = vmatmul.bf16.vlgmr.msrb.gmra.mxu3 %v14501_v52  ;;  %v11547_v21 = vor.u32 %v13345_v20, %v11546_v19  ;;  %v11626_v19 = vld [vmem:[#allocation31 + $0x160] sm:$0xf]  ;;  %v13365_v20 = vld [vmem:[#allocation31 + $0x16c] sm:$0xf0] }
 0x480   :  { %6104 = vmatpush.bf16.msra.mxu0 %v11379_v31  ;;  %v14706_v53 = vpop.f32.mrf.mxu0  ;;  %v11530_v31 = vld [vmem:[#allocation31 + $0xa0] sm:$0xf] }
 0x481   :  { %v14693_v22 = vpop.f32.mrf.mxu3  ;;  %v5465_v63 = vpop.f32.mrf.mxu2  ;;  %v11531_v34 = vor.u32 %v13341_v32, %v11530_v31  ;;  %v11627_v32 = vor.u32 %v13365_v20, %v11626_v19 }
 0x482   :  { %v5466_v54 = vadd.f32 %v5465_v63, %v14684_v9  ;;  %v11562_v9 = vld [vmem:[#allocation31 + $0xe0] sm:$0xf] }
 0x483   :  { %5863 = vmatpush.bf16.msrb.mxu1 %v11239_v49  ;;  %v11563_v13 = vor.u32 %v13349_v11, %v11562_v9  ;;  %v11802_v9 = vld [vmem:[#allocation31 + $0x2c0] sm:$0xf]  ;;  %v13409_v11 = vld [vmem:[#allocation31 + $0x2cc] sm:$0xf0] }
 0x484   :  { %6105 = vmatpush.bf16.msra.mxu0 %v11363_v61  ;;  %v11515_v61 = vor.u32 %v13337_v36, %v11514_v37  ;;  %v11786_v37 = vld [vmem:[#allocation31 + $0x2a0] sm:$0xf]  ;;  %v13405_v36 = vld [vmem:[#allocation31 + $0x2ac] sm:$0xf0] }
 0x485   :  { %6944 = vmatpush.bf16.msra.mxu2 %v11563_v13  ;;  %v11803_v13 = vor.u32 %v13409_v11, %v11802_v9  ;;  %v11738_v9 = vld [vmem:[#allocation31 + $0x240] sm:$0xf] }
 0x487   :  { %5864 = vmatpush.bf16.msrb.mxu1 %v11223_v58  ;;  %v11690_v58 = vld [vmem:[#allocation31 + $0x1e0] sm:$0xf] }
 0x488   :  { %6106 = vmatpush.bf16.msra.mxu0 %v11347_v51  ;;  %v13381_v51 = vld [vmem:[#allocation31 + $0x1ec] sm:$0xf0] }
 0x489   :  { %v14699_v27 = vpop.f32.mrf.mxu3  ;;  %v14708_v4 = vpop.f32.mrf.mxu2  ;;  %6945 = vmatpush.bf16.msra.mxu2 %v11547_v21  ;;  %v11691_v25 = vor.u32 %v13381_v51, %v11690_v58  ;;  %v13343_v21 = vld [vmem:[#allocation31 + $0xc4] sm:$0xf]  ;;  %v11610_v51 = vld [vmem:[#allocation31 + $0x140] sm:$0xf] }
 0x48b   :  { %5865 = vmatpush.bf16.msrb.mxu1 %v11207_v14  ;;  %v14713_v24 = vpop.f32.mrf.mxu0  ;;  %6958 = vmatpush.bf16.msra.mxu3 %v11691_v25  ;;  %v11674_v14 = vld [vmem:[#allocation31 + $0x1c0] sm:$0xf]  ;;  %v13361_v25 = vld [vmem:[#allocation31 + $0x14c] sm:$0xf0] }
 0x48c   :  { %6107 = vmatpush.bf16.msra.mxu0 %v11331_v29  ;;  %v11483_v29 = vor.u32 %v13329_v47, %v11482_v44  ;;  %v11675_v45 = vor.u32 %v13377_v50, %v11674_v14  ;;  %v13339_v44 = vld [vmem:[#allocation31 + $0xa4] sm:$0xf]  ;;  %v11532_v47 = vld [vmem:[#allocation31 + $0xb0] sm:$0xf0]  ;;  %v11770_v50 = vld [vmem:[#allocation31 + $0x280] sm:$0xf] }
 0x48d   :  { %6946 = vmatpush.bf16.msra.mxu2 %v11531_v34  ;;  %v11548_v34 = vld [vmem:[#allocation31 + $0xd0] sm:$0xf0] }
 0x48e   :  { %5866 = vmatmul.bf16.vlgmr.msrb.gmra.mxu1 %v14673_v35 }
 0x48f   :  { %6114 = vmatpush.bf16.msra.mxu1 %v11447_v48  ;;  %6108 = vmatmul.bf16.vlgmr.msra.gmra.mxu0 %v14501_v52 }
 0x490   :  { %6959 = vmatpush.bf16.msra.mxu3 %v11675_v45  ;;  %v13401_v45 = vld [vmem:[#allocation31 + $0x28c] sm:$0xf0] }
 0x491   :  { %v5479_v35 = vpop.f32.mrf.mxu3  ;;  %6947 = vmatpush.bf16.msra.mxu2 %v11515_v61 }
 0x492   :  { %v14702_v2 = vadd.f32 %v5479_v35, %v5466_v54  ;;  %v11642_v35 = vld [vmem:[#allocation31 + $0x180] sm:$0xf] }
 0x493   :  { %6115 = vmatpush.bf16.msra.mxu1 %v11431_v17  ;;  %v14715_v49 = vpop.f32.mrf.mxu2  ;;  %v14719_v43 = vpop.f32.mrf.mxu0  ;;  %v11466_v17 = vld [vmem:[#allocation31 + $0x20] sm:$0xf]  ;;  %v11643_v7 = vor.u32 %v13369_v5, %v11642_v35  ;;  %v13353_v35 = vld [vmem:[#allocation31 + $0x10c] sm:$0xf0]  ;;  %v13331_v5 = vld [vmem:[#allocation31 + $0x64] sm:$0xf] }
 0x494   :  { %v11467_v10 = vor.u32 %v13325_v28, %v11466_v17  ;;  %6960 = vmatpush.bf16.msra.mxu3 %v11659_v60  ;;  %v11771_v17 = vor.u32 %v13401_v45, %v11770_v50  ;;  %v11594_v28 = vld [vmem:[#allocation31 + $0x120] sm:$0xf]  ;;  %v13385_v45 = vld [vmem:[#allocation31 + $0x20c] sm:$0xf0] }
 0x495   :  { %v11754_v60 = vld [vmem:[#allocation31 + $0x260] sm:$0xf] }
 0x496   :  { %v11706_v50 = vld [vmem:[#allocation31 + $0x200] sm:$0xf] }
 0x497   :  { %6116 = vmatpush.bf16.msra.mxu1 %v11415_v16 }
 0x498   :  { %6961 = vmatpush.bf16.msra.mxu3 %v11643_v7  ;;  %v13379_v7 = vld [vmem:[#allocation31 + $0x1e4] sm:$0xf] }
 0x499   :  { %v14711_v23 = vpop.f32.mrf.mxu3 }
 0x49b   :  { %6117 = vmatpush.bf16.msra.mxu1 %v11399_v56  ;;  %v14721_v48 = vpop.f32.mrf.mxu2  ;;  %v11818_v56 = vld [vmem:[#allocation31 + $0x2e0] sm:$0xf]  ;;  %v14727_v54 = vpop.f32.mrf.mxu0 }
 0x49c   :  { %v11819_v63 = vor.u32 %v13413_v12, %v11818_v56  ;;  %6962 = vmatpush.bf16.msra.mxu3 %v11627_v32  ;;  %v11516_v56 = vld [vmem:[#allocation31 + $0x90] sm:$0xf0] }
 0x49d   :  { %v11519_v12 = vor.u32 %v13335_v26, %v11516_v56  ;;  %v11484_v32 = vld [vmem:[#allocation31 + $0x50] sm:$0xf0]  ;;  %v13445_v26 = vld [vmem:[#allocation31 + $0x3ec] sm:$0xf0]  ;;  %v13411_v56 = vld [vmem:[#allocation31 + $0x2e4] sm:$0xf] }
 0x49e   :  { %6972 = vmatpush.bf16.msrb.mxu0 %v11819_v63  ;;  %v13397_v63 = vld [vmem:[#allocation31 + $0x26c] sm:$0xf0] }
 0x49f   :  { %6118 = vmatpush.bf16.msra.mxu1 %v11383_v46  ;;  %v14725_v46 = vpop.f32.mrf.mxu1  ;;  %v11755_v33 = vor.u32 %v13397_v63, %v11754_v60  ;;  %v11820_v60 = vld [vmem:[#allocation31 + $0x2f0] sm:$0xf0] }
 0x4a1   :  { %v14717_v39 = vpop.f32.mrf.mxu3 }
 0x4a2   :  { %6973 = vmatpush.bf16.msrb.mxu0 %v11803_v13  ;;  %v13393_v13 = vld [vmem:[#allocation31 + $0x24c] sm:$0xf0] }
 0x4a3   :  { %6119 = vmatpush.bf16.msra.mxu1 %v11367_v1  ;;  %v14733_v14 = vpop.f32.mrf.mxu0  ;;  %v11739_v20 = vor.u32 %v13393_v13, %v11738_v9  ;;  %v13407_v13 = vld [vmem:[#allocation31 + $0x2c4] sm:$0xf] }
 0x4a7   :  { %6120 = vmatpush.bf16.msra.mxu1 %v11351_v6  ;;  %v13347_v6 = vld [vmem:[#allocation31 + $0xe4] sm:$0xf] }
 0x4a9   :  { %v14723_v16 = vpop.f32.mrf.mxu3 }
 0x4ab   :  { %6121 = vmatpush.bf16.msra.mxu1 %v11335_v8  ;;  %v11567_v8 = vor.u32 %v13347_v6, %v11564_v62  ;;  %v11500_v6 = vld [vmem:[#allocation31 + $0x70] sm:$0xf0] }
 0x4ac   :  { %v11503_v62 = vor.u32 %v13331_v5, %v11500_v6 }
 0x4ae   :  { %6122 = vmatmul.bf16.vlgmr.msra.gmra.mxu1 %v14501_v52  ;;  %v13333_v52 = vld [vmem:[#allocation31 + $0x6c] sm:$0xf0]  ;;  %v14737_v19 = vpop.f32.mrf.mxu0 }
 0x4af   :  { %v11499_v59 = vor.u32 %v13333_v52, %v11498_v40  ;;  %v11551_v40 = vor.u32 %v13343_v21, %v11548_v34  ;;  %v11787_v52 = vor.u32 %v13405_v36, %v11786_v37  ;;  %v13375_v34 = vld [vmem:[#allocation31 + $0x1c4] sm:$0xf]  ;;  %v11676_v36 = vld [vmem:[#allocation31 + $0x1d0] sm:$0xf0] }
 0x4b1   :  { %6948 = vmatpush.bf16.msra.mxu2 %v11499_v59  ;;  %v5577_v1 = vpop.f32.mrf.mxu2  ;;  %v14731_v59 = vpop.f32.mrf.mxu1  ;;  %6974 = vmatpush.bf16.msrb.mxu0 %v11787_v52  ;;  %v11679_v52 = vor.u32 %v13375_v34, %v11676_v36  ;;  %v11628_v34 = vld [vmem:[#allocation31 + $0x170] sm:$0xf0]  ;;  %v11914_v36 = vld [vmem:[#allocation31 + $0x3a0] sm:$0xf] }
 0x4b2   :  { %v5578_v31 = vadd.f32 %v5577_v1, %v4755_v42  ;;  %v11611_v42 = vor.u32 %v13361_v25, %v11610_v51  ;;  %v13323_v25 = vld [vmem:[#allocation31 + $0x24] sm:$0xf] }
 0x4b4   :  { %6963 = vmatpush.bf16.msra.mxu3 %v11611_v42  ;;  %v11468_v42 = vld [vmem:[#allocation31 + $0x30] sm:$0xf0] }
 0x4b5   :  { %6949 = vmatpush.bf16.msra.mxu2 %v11483_v29  ;;  %v11535_v29 = vor.u32 %v13339_v44, %v11532_v47  ;;  %6975 = vmatpush.bf16.msrb.mxu0 %v11771_v17  ;;  %v13371_v44 = vld [vmem:[#allocation31 + $0x1a4] sm:$0xf]  ;;  %v11471_v47 = vor.u32 %v13323_v25, %v11468_v42 }
 0x4b6   :  { %v14745_v5 = vpop.f32.mrf.mxu0 }
 0x4b9   :  { %6950 = vmatpush.bf16.msra.mxu2 %v11467_v10  ;;  %v11595_v10 = vor.u32 %v13357_v3, %v11594_v28  ;;  %v14735_v1 = vpop.f32.mrf.mxu1  ;;  %6976 = vmatpush.bf16.msrb.mxu0 %v11755_v33  ;;  %v14739_v21 = vpop.f32.mrf.mxu2  ;;  %v11707_v3 = vor.u32 %v13385_v45, %v11706_v50  ;;  %v11823_v33 = vor.u32 %v13411_v56, %v11820_v60  ;;  %v13399_v56 = vld [vmem:[#allocation31 + $0x284] sm:$0xf] }
 0x4bb   :  { %6964 = vmatpush.bf16.msra.mxu3 %v11595_v10  ;;  %v11946_v10 = vld [vmem:[#allocation31 + $0x3e0] sm:$0xf] }
 0x4bd   :  { %6951 = vmatpush.bf16.msra.mxu2 %v11451_v41  ;;  %v11579_v41 = vor.u32 %v13353_v35, %v11578_v0  ;;  %6977 = vmatpush.bf16.msrb.mxu0 %v11739_v20  ;;  %v13319_v0 = vld [vmem:[#allocation31 + $0x4] sm:$0xf]  ;;  %v11452_v35 = vld [vmem:[#allocation31 + $0x10] sm:$0xf0] }
 0x4be   :  { %v11455_v6 = vor.u32 %v13319_v0, %v11452_v35  ;;  %v11804_v20 = vld [vmem:[#allocation31 + $0x2d0] sm:$0xf0]  ;;  %v5410_v35 = vadd.f32 %v14691_v55, %v14680_v18 }
 0x4bf   :  { %6965 = vmatpush.bf16.msra.mxu3 %v11579_v41  ;;  %v13367_v41 = vld [vmem:[#allocation31 + $0x184] sm:$0xf]  ;;  %v11596_v0 = vld [vmem:[#allocation31 + $0x130] sm:$0xf0] }
 0x4c1   :  { %7000 = vmatpush.bf16.msrb.mxu2 %v11567_v8  ;;  %v11692_v8 = vld [vmem:[#allocation31 + $0x1f0] sm:$0xf0]  ;;  %v14741_v17 = vpop.f32.mrf.mxu1 }
 0x4c2   :  { %v11695_v11 = vor.u32 %v13379_v7, %v11692_v8  ;;  %v11930_v7 = vld [vmem:[#allocation31 + $0x3c0] sm:$0xf]  ;;  %v13441_v8 = vld [vmem:[#allocation31 + $0x3cc] sm:$0xf0] }
 0x4c4   :  { %v5591_v61 = vpop.f32.mrf.mxu3  ;;  %7014 = vmatpush.bf16.msrb.mxu3 %v11695_v11  ;;  %v11931_v11 = vor.u32 %v13441_v8, %v11930_v7  ;;  %v13395_v8 = vld [vmem:[#allocation31 + $0x264] sm:$0xf] }
 0x4c5   :  { %v14729_v58 = vadd.f32 %v5591_v61, %v5578_v31  ;;  %7001 = vmatpush.bf16.msrb.mxu2 %v11551_v40  ;;  %v13327_v31 = vld [vmem:[#allocation31 + $0x44] sm:$0xf]  ;;  %v11722_v61 = vld [vmem:[#allocation31 + $0x220] sm:$0xf]  ;;  %v13389_v40 = vld [vmem:[#allocation31 + $0x22c] sm:$0xf0] }
 0x4c6   :  { %v11487_v37 = vor.u32 %v13327_v31, %v11484_v32  ;;  %v11723_v51 = vor.u32 %v13389_v40, %v11722_v61  ;;  %v11807_v31 = vor.u32 %v13407_v13, %v11804_v20  ;;  %v13363_v32 = vld [vmem:[#allocation31 + $0x164] sm:$0xf]  ;;  %v13437_v61 = vld [vmem:[#allocation31 + $0x3ac] sm:$0xf0] }
 0x4c7   :  { %v11915_v40 = vor.u32 %v13437_v61, %v11914_v36  ;;  %v13351_v20 = vld [vmem:[#allocation31 + $0x104] sm:$0xf]  ;;  %v13425_v36 = vld [vmem:[#allocation31 + $0x34c] sm:$0xf0] }
 0x4c8   :  { %7015 = vmatpush.bf16.msrb.mxu3 %v11679_v52  ;;  %6978 = vmatpush.bf16.msrb.mxu0 %v11723_v51  ;;  %v13403_v52 = vld [vmem:[#allocation31 + $0x2a4] sm:$0xf]  ;;  %v11788_v51 = vld [vmem:[#allocation31 + $0x2b0] sm:$0xf0] }
 0x4c9   :  { %7002 = vmatpush.bf16.msrb.mxu2 %v11535_v29  ;;  %v11660_v29 = vld [vmem:[#allocation31 + $0x1b0] sm:$0xf0]  ;;  %v11791_v25 = vor.u32 %v13403_v52, %v11788_v51  ;;  %v14747_v42 = vpop.f32.mrf.mxu1 }
 0x4ca   :  { %v11663_v28 = vor.u32 %v13371_v44, %v11660_v29  ;;  %v13359_v44 = vld [vmem:[#allocation31 + $0x144] sm:$0xf] }
 0x4cc   :  { %7016 = vmatpush.bf16.msrb.mxu3 %v11663_v28  ;;  %6979 = vmatpush.bf16.msrb.mxu0 %v11707_v3  ;;  %v14749_v29 = vpop.f32.mrf.mxu3  ;;  %v11898_v28 = vld [vmem:[#allocation31 + $0x380] sm:$0xf]  ;;  %v13433_v3 = vld [vmem:[#allocation31 + $0x38c] sm:$0xf0] }
 0x4cd   :  { %7003 = vmatpush.bf16.msrb.mxu2 %v11519_v12  ;;  %v11947_v12 = vor.u32 %v13445_v26, %v11946_v10  ;;  %v11899_v26 = vor.u32 %v13433_v3, %v11898_v28  ;;  %v13421_v28 = vld [vmem:[#allocation31 + $0x32c] sm:$0xf0] }
 0x4ce   :  { %v14751_v50 = vpop.f32.mrf.mxu0 }
 0x4cf   :  { %6986 = vmatpush.bf16.msrb.mxu1 %v11947_v12  ;;  %v11772_v12 = vld [vmem:[#allocation31 + $0x290] sm:$0xf0] }
 0x4d0   :  { %7028 = vmatpush.bf16.msra.mxu0 %v11823_v33  ;;  %v11775_v60 = vor.u32 %v13399_v56, %v11772_v12  ;;  %v13355_v33 = vld [vmem:[#allocation31 + $0x124] sm:$0xf] }
 0x4d1   :  { %7004 = vmatpush.bf16.msrb.mxu2 %v11503_v62  ;;  %v14743_v63 = vpop.f32.mrf.mxu2  ;;  %v11644_v62 = vld [vmem:[#allocation31 + $0x190] sm:$0xf0]  ;;  %v14761_v61 = vpop.f32.mrf.mxu1  ;;  %v13387_v12 = vld [vmem:[#allocation31 + $0x224] sm:$0xf] }
 0x4d2   :  { %v11647_v9 = vor.u32 %v13367_v41, %v11644_v62  ;;  %v11599_v41 = vor.u32 %v13355_v33, %v11596_v0  ;;  %v13429_v62 = vld [vmem:[#allocation31 + $0x36c] sm:$0xf0] }
 0x4d3   :  { %6987 = vmatpush.bf16.msrb.mxu1 %v11931_v11  ;;  %v11756_v11 = vld [vmem:[#allocation31 + $0x270] sm:$0xf0] }
 0x4d4   :  { %7017 = vmatpush.bf16.msrb.mxu3 %v11647_v9  ;;  %7029 = vmatpush.bf16.msra.mxu0 %v11807_v31  ;;  %v5424_v9 = vadd.f32 %v14693_v22, %v5410_v35  ;;  %v11759_v13 = vor.u32 %v13395_v8, %v11756_v11  ;;  %v11580_v31 = vld [vmem:[#allocation31 + $0x110] sm:$0xf0] }
 0x4d5   :  { %7005 = vmatpush.bf16.msrb.mxu2 %v11487_v37  ;;  %v11631_v37 = vor.u32 %v13363_v32, %v11628_v34  ;;  %v5412_v32 = vadd.f32 %v14695_v30, %v14686_v15  ;;  %v11583_v55 = vor.u32 %v13351_v20, %v11580_v31  ;;  %v13391_v15 = vld [vmem:[#allocation31 + $0x244] sm:$0xf]  ;;  %v11740_v30 = vld [vmem:[#allocation31 + $0x250] sm:$0xf0]  ;;  %v11570_v31 = vld [vmem:[#allocation31 + $0xe8] sm:$0xf] }
 0x4d6   :  { %v5438_v34 = vadd.f32 %v14713_v24, %v5424_v9  ;;  %v14770_v24 = vld [vmem:[%s14917_s21] sm:$0xf]  ;;  %v13383_v9 = vld [vmem:[#allocation31 + $0x204] sm:$0xf]  ;;  %v11708_v11 = vld [vmem:[#allocation31 + $0x210] sm:$0xf0] }
 0x4d7   :  { %6988 = vmatpush.bf16.msrb.mxu1 %v11915_v40  ;;  %v5426_v52 = vadd.f32 %v14699_v27, %v5412_v32  ;;  %v11850_v27 = vld [vmem:[#allocation31 + $0x320] sm:$0xf]  ;;  %v11711_v32 = vor.u32 %v13383_v9, %v11708_v11 }
 0x4d8   :  { %7018 = vmatpush.bf16.msrb.mxu3 %v11631_v37  ;;  %7030 = vmatpush.bf16.msra.mxu0 %v11791_v25  ;;  %v11866_v37 = vld [vmem:[#allocation31 + $0x340] sm:$0xf]  ;;  %v5452_v51 = vadd.f32 %v14731_v59, %v5438_v34  ;;  %v14765_v25 = vpop.f32.mrf.mxu0  ;;  %v11851_v56 = vor.u32 %v13421_v28, %v11850_v27  ;;  %v11948_v34 = vld [vmem:[#allocation31 + $0x3f0] sm:$0xf0] }
 0x4d9   :  { %7006 = vmatpush.bf16.msrb.mxu2 %v11471_v47  ;;  %v11612_v47 = vld [vmem:[#allocation31 + $0x150] sm:$0xf0]  ;;  %v5827_v10 = vpop.f32.mrf.mxu2  ;;  %v11867_v22 = vor.u32 %v13425_v36, %v11866_v37 }
 0x4da   :  { %v11615_v45 = vor.u32 %v13359_v44, %v11612_v47  ;;  %v11743_v44 = vor.u32 %v13391_v15, %v11740_v30  ;;  %v5440_v47 = vadd.f32 %v14719_v43, %v5426_v52  ;;  %v13417_v43 = vld [vmem:[#allocation31 + $0x30c] sm:$0xf0]  ;;  %v11932_v52 = vld [vmem:[#allocation31 + $0x3d0] sm:$0xf0]  ;;  %v11554_v30 = vld [vmem:[#allocation31 + $0xc8] sm:$0xf] }
 0x4db   :  { %6989 = vmatpush.bf16.msrb.mxu1 %v11899_v26  ;;  %v6138_v26 = vperm.slane %v14770_v24, 0 }
 0x4dc   :  { %7019 = vmatpush.bf16.msrb.mxu3 %v11615_v45  ;;  %7031 = vmatpush.bf16.msra.mxu0 %v11775_v60  ;;  %v5872_v45 = vadd.f32 %v14743_v63, %v5452_v51  ;;  %v5454_v59 = vadd.f32 %v14735_v1, %v5440_v47  ;;  %v11724_v60 = vld [vmem:[#allocation31 + $0x230] sm:$0xf0]  ;;  %v14778_v1 = vpop.f32.mrf.mxu1  ;;  %v5468_v51 = vadd.f32 %v14708_v4, %v14689_v38 }
 0x4dd   :  { %7007 = vmatpush.bf16.msrb.mxu2 %v11455_v6  ;;  %v11882_v6 = vld [vmem:[#allocation31 + $0x360] sm:$0xf]  ;;  %v11727_v0 = vor.u32 %v13387_v12, %v11724_v60 }
 0x4de   :  { %v11883_v7 = vor.u32 %v13429_v62, %v11882_v6  ;;  %v5876_v33 = vadd.f32 %v5827_v10, %v5454_v59  ;;  %v13350_v10 = vld [vmem:[#allocation31 + $0xf4] sm:$0xf0]  ;;  %v5482_v27 = vadd.f32 %v14711_v23, %v5468_v51  ;;  %v13435_v59 = vld [vmem:[#allocation31 + $0x3a4] sm:$0xf] }
 0x4e0   :  { %7020 = vmatpush.bf16.msrb.mxu3 %v11599_v41  ;;  %6990 = vmatpush.bf16.msrb.mxu1 %v11883_v7  ;;  %v11834_v41 = vld [vmem:[#allocation31 + $0x300] sm:$0xf]  ;;  %v5496_v12 = vadd.f32 %v14733_v14, %v5482_v27  ;;  %v13330_v27 = vld [vmem:[#allocation31 + $0x54] sm:$0xf0] }
 0x4e1   :  { %7032 = vmatpush.bf16.msra.mxu0 %v11759_v13  ;;  %v11835_v8 = vor.u32 %v13417_v43, %v11834_v41  ;;  %v13443_v13 = vld [vmem:[#allocation31 + $0x3e4] sm:$0xf]  ;;  %v6139_v43 = vperm.slane %v14770_v24, 1 }
 0x4e4   :  { %v14759_v18 = vpop.f32.mrf.mxu3  ;;  %7021 = vmatpush.bf16.msrb.mxu3 %v11583_v55  ;;  %6991 = vmatpush.bf16.msrb.mxu1 %v11867_v22  ;;  %v11951_v55 = vor.u32 %v13443_v13, %v11948_v34  ;;  %v11571_v22 = vor.u32 %v13350_v10, %v11570_v31  ;;  %v13427_v13 = vld [vmem:[#allocation31 + $0x364] sm:$0xf] }
 0x4e5   :  { %7033 = vmatpush.bf16.msra.mxu0 %v11743_v44  ;;  %v13346_v44 = vld [vmem:[#allocation31 + $0xd4] sm:$0xf0] }
 0x4e6   :  { %v11555_v38 = vor.u32 %v13346_v44, %v11554_v30 }
 0x4e8   :  { %6992 = vmatpush.bf16.msrb.mxu1 %v11851_v56 }
 0x4e9   :  { %7034 = vmatpush.bf16.msra.mxu0 %v11727_v0  ;;  %v5510_v0 = vadd.f32 %v14747_v42, %v5496_v12 }
 0x4eb   :  { %v14789_v56 = vpop.f32.mrf.mxu1 }
 0x4ec   :  { %v5841_v6 = vpop.f32.mrf.mxu3  ;;  %v14776_v63 = vpop.f32.mrf.mxu0  ;;  %6993 = vmatpush.bf16.msrb.mxu1 %v11835_v8  ;;  %v13338_v8 = vld [vmem:[#allocation31 + $0x94] sm:$0xf0] }
 0x4ed   :  { %7035 = vmatpush.bf16.msra.mxu0 %v11711_v32  ;;  %v5877_v11 = vadd.f32 %v5841_v6, %v5510_v0 }
 0x4f0   :  { %7042 = vmatpush.bf16.msra.mxu1 %v11951_v55 }
 0x4f1   :  { %v6081_v40 = vpop.f32.mrf.mxu2 }
 0x4f2   :  { %v6128_v3 = vadd.f32 %v6081_v40, %v5872_v45  ;;  %v13439_v40 = vld [vmem:[#allocation31 + $0x3c4] sm:$0xf]  ;;  %v5494_v45 = vadd.f32 %v14727_v54, %v14702_v2  ;;  %v13342_v2 = vld [vmem:[#allocation31 + $0xb4] sm:$0xf0]  ;;  %v5522_v54 = vadd.f32 %v14715_v49, %v14704_v57 }
 0x4f3   :  { %v11935_v47 = vor.u32 %v13439_v40, %v11932_v52  ;;  %v11868_v52 = vld [vmem:[#allocation31 + $0x350] sm:$0xf0] }
 0x4f4   :  { %v6146_v62 = vadd.f32 %v6138_v26, %v6128_v3  ;;  %v11916_v3 = vld [vmem:[#allocation31 + $0x3b0] sm:$0xf0]  ;;  %v5855_v60 = vpop.f32.mrf.mxu0  ;;  %v5536_v9 = vadd.f32 %v14717_v39, %v5522_v54  ;;  %v13334_v39 = vld [vmem:[#allocation31 + $0x74] sm:$0xf0] }
 0x4f5   :  { %7043 = vmatpush.bf16.msra.mxu1 %v11935_v47  ;;  %v11919_v4 = vor.u32 %v13435_v59, %v11916_v3  ;;  %v13326_v54 = vld [vmem:[#allocation31 + $0x34] sm:$0xf0] }
 0x4f6   :  { %v6154_v37 = vmax.f32 %v6146_v62, 0.0  ;;  %v5550_v57 = vadd.f32 %v14737_v19, %v5536_v9  ;;  %v13382_v19 = vld [vmem:[#allocation31 + $0x1f4] sm:$0xf0]  ;;  %v11826_v9 = vld [vmem:[#allocation31 + $0x2e8] sm:$0xf] }
 0x4f8   :  { %v5564_v6 = vadd.f32 %v14761_v61, %v5550_v57 }
 0x4f9   :  { %v6083_v35 = vpop.f32.mrf.mxu2  ;;  %7044 = vmatpush.bf16.msra.mxu1 %v11919_v4  ;;  %v11852_v4 = vld [vmem:[#allocation31 + $0x330] sm:$0xf0] }
 0x4fa   :  { %v6132_v7 = vadd.f32 %v6083_v35, %v5876_v33  ;;  %v11538_v33 = vld [vmem:[#allocation31 + $0xa8] sm:$0xf]  ;;  %v13431_v35 = vld [vmem:[#allocation31 + $0x384] sm:$0xf]  ;;  %v5874_v51 = vadd.f32 %v14776_v63, %v5564_v6 }
 0x4fb   :  { %v11539_v62 = vor.u32 %v13342_v2, %v11538_v33  ;;  %v13419_v63 = vld [vmem:[#allocation31 + $0x324] sm:$0xf]  ;;  %v11810_v6 = vld [vmem:[#allocation31 + $0x2c8] sm:$0xf] }
 0x4fc   :  { %v6150_v20 = vadd.f32 %v6138_v26, %v6132_v7  ;;  %v5508_v26 = vadd.f32 %v14741_v17, %v5494_v45  ;;  %v11900_v17 = vld [vmem:[#allocation31 + $0x390] sm:$0xf0]  ;;  %v11522_v7 = vld [vmem:[#allocation31 + $0x88] sm:$0xf]  ;;  %v11855_v0 = vor.u32 %v13419_v63, %v11852_v4  ;;  %v13402_v63 = vld [vmem:[#allocation31 + $0x294] sm:$0xf0] }
 0x4fd   :  { %v11903_v14 = vor.u32 %v13431_v35, %v11900_v17  ;;  %v11523_v42 = vor.u32 %v13338_v8, %v11522_v7  ;;  %v11490_v45 = vld [vmem:[#allocation31 + $0x48] sm:$0xf]  ;;  %v13415_v7 = vld [vmem:[#allocation31 + $0x304] sm:$0xf]  ;;  %v11836_v8 = vld [vmem:[#allocation31 + $0x310] sm:$0xf0] }
 0x4fe   :  { %v6158_v36 = vmax.f32 %v6150_v20, 0.0  ;;  %v5873_v23 = vadd.f32 %v14759_v18, %v5508_v26  ;;  %v5524_v18 = vadd.f32 %v14721_v48, %v14706_v53  ;;  %v11884_v20 = vld [vmem:[#allocation31 + $0x370] sm:$0xf0]  ;;  %v11698_v48 = vld [vmem:[#allocation31 + $0x1e8] sm:$0xf]  ;;  %v11491_v33 = vor.u32 %v13330_v27, %v11490_v45 }
 0x4ff   :  { %7045 = vmatpush.bf16.msra.mxu1 %v11903_v14  ;;  %v11887_v32 = vor.u32 %v13427_v13, %v11884_v20  ;;  %v11699_v47 = vor.u32 %v13382_v19, %v11698_v48  ;;  %v11682_v26 = vld [vmem:[#allocation31 + $0x1c8] sm:$0xf]  ;;  %v13370_v13 = vld [vmem:[#allocation31 + $0x194] sm:$0xf0]  ;;  %v11839_v20 = vor.u32 %v13415_v7, %v11836_v8 }
 0x500   :  { %v14782_v15 = vpack.c.bf16 %v6158_v36, %v6154_v37  ;;  %v5538_v34 = vadd.f32 %v14723_v16, %v5524_v18  ;;  %v11506_v37 = vld [vmem:[#allocation31 + $0x68] sm:$0xf]  ;;  %v14803_v36 = vpop.f32.mrf.mxu1  ;;  %v13398_v7 = vld [vmem:[#allocation31 + $0x274] sm:$0xf0] }
 0x501   :  { %v11507_v16 = vor.u32 %v13334_v39, %v11506_v37  ;;  %v11458_v18 = vld [vmem:[#allocation31 + $0x8] sm:$0xf] }
 0x502   :  { %v6095_v28 = vpop.f32.mrf.mxu3  ;;  %6952 = vmatmul.bf16.vlgmr.msra.gmra.mxu2 %v14782_v15  ;;  %v5552_v40 = vadd.f32 %v14745_v5, %v5538_v34  ;;  %v6140_v5 = vperm.slane %v14770_v24, 2  ;;  %v11572_v34 = vld [vmem:[#allocation31 + $0xf8] sm:$0xf0] }
 0x503   :  { %7056 = vmatpush.bf16.msra.mxu2 %v11571_v22  ;;  %v6129_v41 = vadd.f32 %v6095_v28, %v5873_v23  ;;  %v13423_v22 = vld [vmem:[#allocation31 + $0x344] sm:$0xf]  ;;  %7046 = vmatpush.bf16.msra.mxu1 %v11887_v32  ;;  %v13348_v32 = vld [vmem:[#allocation31 + $0xec] sm:$0xf] }
 0x504   :  { %v11871_v61 = vor.u32 %v13423_v22, %v11868_v52  ;;  %v5566_v28 = vadd.f32 %v14778_v1, %v5552_v40  ;;  %v11474_v1 = vld [vmem:[#allocation31 + $0x28] sm:$0xf]  ;;  %v11575_v19 = vor.u32 %v13348_v32, %v11572_v34  ;;  %v13366_v22 = vld [vmem:[#allocation31 + $0x174] sm:$0xf0]  ;;  %v13344_v52 = vld [vmem:[#allocation31 + $0xcc] sm:$0xf] }
 0x505   :  { %v6147_v31 = vadd.f32 %v6139_v43, %v6129_v41  ;;  %v11475_v14 = vor.u32 %v13326_v54, %v11474_v1  ;;  %v11634_v40 = vld [vmem:[#allocation31 + $0x168] sm:$0xf]  ;;  %v13336_v1 = vld [vmem:[#allocation31 + $0x8c] sm:$0xf]  ;;  %v11524_v54 = vld [vmem:[#allocation31 + $0x98] sm:$0xf0] }
 0x506   :  { %v5878_v12 = vadd.f32 %v5855_v60, %v5566_v28  ;;  %v11635_v45 = vor.u32 %v13366_v22, %v11634_v40  ;;  %v13362_v28 = vld [vmem:[#allocation31 + $0x154] sm:$0xf0]  ;;  %v13328_v32 = vld [vmem:[#allocation31 + $0x4c] sm:$0xf] }
 0x507   :  { %7057 = vmatpush.bf16.msra.mxu2 %v11555_v38  ;;  %v6155_v30 = vmax.f32 %v6147_v31, 0.0  ;;  %v13378_v38 = vld [vmem:[#allocation31 + $0x1d4] sm:$0xf0]  ;;  %7047 = vmatpush.bf16.msra.mxu1 %v11871_v61  ;;  %v11618_v61 = vld [vmem:[#allocation31 + $0x148] sm:$0xf] }
 0x508   :  { %v11683_v23 = vor.u32 %v13378_v38, %v11682_v26  ;;  %v11778_v38 = vld [vmem:[#allocation31 + $0x288] sm:$0xf]  ;;  %v11619_v4 = vor.u32 %v13362_v28, %v11618_v61  ;;  %v13386_v28 = vld [vmem:[#allocation31 + $0x214] sm:$0xf0] }
 0x509   :  { %v11714_v61 = vld [vmem:[#allocation31 + $0x208] sm:$0xf] }
 0x50a   :  { %v6097_v49 = vpop.f32.mrf.mxu3 }
 0x50b   :  { %v6133_v10 = vadd.f32 %v6097_v49, %v5877_v11  ;;  %7058 = vmatpush.bf16.msra.mxu2 %v11539_v62  ;;  %v14813_v35 = vpop.f32.mrf.mxu1  ;;  %v13374_v62 = vld [vmem:[#allocation31 + $0x1b4] sm:$0xf0]  ;;  %7048 = vmatpush.bf16.msra.mxu1 %v11855_v0  ;;  %v5606_v0 = vadd.f32 %v14751_v50, %v14729_v58 }
 0x50c   :  { %v6109_v55 = vpop.f32.mrf.mxu0  ;;  %v13414_v11 = vld [vmem:[#allocation31 + $0x2f4] sm:$0xf0] }
 0x50d   :  { %v6151_v53 = vadd.f32 %v6139_v43, %v6133_v10  ;;  %v6130_v3 = vadd.f32 %v6109_v55, %v5874_v51  ;;  %v11666_v43 = vld [vmem:[#allocation31 + $0x1a8] sm:$0xf]  ;;  %v13322_v49 = vld [vmem:[#allocation31 + $0x14] sm:$0xf0]  ;;  %v11827_v55 = vor.u32 %v13414_v11, %v11826_v9  ;;  %v11556_v51 = vld [vmem:[#allocation31 + $0xd8] sm:$0xf0]  ;;  %v5620_v8 = vadd.f32 %v14789_v56, %v5606_v0 }
 0x50e   :  { %v11667_v57 = vor.u32 %v13374_v62, %v11666_v43  ;;  %v11459_v39 = vor.u32 %v13322_v49, %v11458_v18  ;;  %v11559_v27 = vor.u32 %v13344_v52, %v11556_v51  ;;  %v11762_v62 = vld [vmem:[#allocation31 + $0x268] sm:$0xf]  ;;  %v13354_v9 = vld [vmem:[#allocation31 + $0x114] sm:$0xf0]  ;;  %v13332_v11 = vld [vmem:[#allocation31 + $0x6c] sm:$0xf] }
 0x50f   :  { %v6159_v44 = vmax.f32 %v6151_v53, 0.0  ;;  %7059 = vmatpush.bf16.msra.mxu2 %v11523_v42  ;;  %v6148_v17 = vadd.f32 %v6140_v5, %v6130_v3  ;;  %v11650_v42 = vld [vmem:[#allocation31 + $0x188] sm:$0xf]  ;;  %v13410_v53 = vld [vmem:[#allocation31 + $0x2d4] sm:$0xf0]  ;;  %7049 = vmatpush.bf16.msra.mxu1 %v11839_v20  ;;  %v5875_v58 = vadd.f32 %v14813_v35, %v5620_v8  ;;  %v11763_v50 = vor.u32 %v13398_v7, %v11762_v62 }
 0x510   :  { %v11651_v48 = vor.u32 %v13370_v13, %v11650_v42  ;;  %v13340_v3 = vld [vmem:[#allocation31 + $0xac] sm:$0xf]  ;;  %v11508_v18 = vld [vmem:[#allocation31 + $0x78] sm:$0xf0]  ;;  %v11746_v42 = vld [vmem:[#allocation31 + $0x248] sm:$0xf] }
 0x511   :  { %v14808_v59 = vpack.c.bf16 %v6159_v44, %v6155_v30  ;;  %v6156_v31 = vmax.f32 %v6148_v17, 0.0  ;;  %v11811_v30 = vor.u32 %v13410_v53, %v11810_v6  ;;  %v11779_v17 = vor.u32 %v13402_v63, %v11778_v38  ;;  %v13394_v56 = vld [vmem:[#allocation31 + $0x254] sm:$0xf0]  ;;  %v11492_v35 = vld [vmem:[#allocation31 + $0x58] sm:$0xf0] }
 0x512   :  { %7008 = vmatmul.bf16.vlgmr.msrb.gmra.mxu2 %v14782_v15  ;;  %v6141_v20 = vperm.slane %v14770_v24, 3  ;;  %v11684_v6 = vld [vmem:[#allocation31 + $0x1d8] sm:$0xf0]  ;;  %v11730_v53 = vld [vmem:[#allocation31 + $0x228] sm:$0xf]  ;;  %v11495_v40 = vor.u32 %v13328_v32, %v11492_v35 }
 0x513   :  { %6966 = vmatmul.bf16.vlgmr.msra.gmra.mxu3 %v14808_v59  ;;  %7060 = vmatpush.bf16.msra.mxu2 %v11507_v16  ;;  %v5869_v44 = vpop.f32.mrf.mxu1  ;;  %v11794_v16 = vld [vmem:[#allocation31 + $0x2a8] sm:$0xf]  ;;  %v13324_v52 = vld [vmem:[#allocation31 + $0x2c] sm:$0xf]  ;;  %v11476_v51 = vld [vmem:[#allocation31 + $0x38] sm:$0xf0] }
 0x514   :  { %7070 = vmatpush.bf16.msra.mxu3 %v11699_v47  ;;  %v6111_v2 = vpop.f32.mrf.mxu0  ;;  %v13406_v47 = vld [vmem:[#allocation31 + $0x2b4] sm:$0xf0]  ;;  %v13412_v38 = vld [vmem:[#allocation31 + $0x2ec] sm:$0xf]  ;;  %v11828_v63 = vld [vmem:[#allocation31 + $0x2f8] sm:$0xf0] }
 0x515   :  { %v6134_v41 = vadd.f32 %v6111_v2, %v5878_v12  ;;  %v11795_v26 = vor.u32 %v13406_v47, %v11794_v16  ;;  %v5580_v2 = vadd.f32 %v14739_v21, %v14725_v46  ;;  %v11586_v46 = vld [vmem:[#allocation31 + $0x108] sm:$0xf]  ;;  %v11668_v47 = vld [vmem:[#allocation31 + $0x1b8] sm:$0xf0]  ;;  %v13408_v7 = vld [vmem:[#allocation31 + $0x2cc] sm:$0xf] }
 0x516   :  { %v11652_v0 = vld [vmem:[#allocation31 + $0x198] sm:$0xf0]  ;;  %v13356_v35 = vld [vmem:[#allocation31 + $0x12c] sm:$0xf] }
 0x517   :  { %v6152_v60 = vadd.f32 %v6140_v5, %v6134_v41  ;;  %7061 = vmatpush.bf16.msra.mxu2 %v11491_v33  ;;  %v11540_v5 = vld [vmem:[#allocation31 + $0xb8] sm:$0xf0]  ;;  %v11602_v33 = vld [vmem:[#allocation31 + $0x128] sm:$0xf]  ;;  %v5594_v41 = vadd.f32 %v14749_v29, %v5580_v2  ;;  %v13380_v29 = vld [vmem:[#allocation31 + $0x1ec] sm:$0xf] }
 0x518   :  { %7071 = vmatpush.bf16.msra.mxu3 %v11683_v23  ;;  %v11543_v12 = vor.u32 %v13340_v3, %v11540_v5  ;;  %v13358_v23 = vld [vmem:[#allocation31 + $0x134] sm:$0xf0]  ;;  %v11460_v2 = vld [vmem:[#allocation31 + $0x18] sm:$0xf0] }
 0x519   :  { %v6160_v10 = vmax.f32 %v6152_v60, 0.0  ;;  %v11603_v60 = vor.u32 %v13358_v23, %v11602_v33  ;;  %v5608_v21 = vadd.f32 %v14765_v25, %v5594_v41  ;;  %v11511_v25 = vor.u32 %v13332_v11, %v11508_v18  ;;  %v13320_v33 = vld [vmem:[#allocation31 + $0xc] sm:$0xf]  ;;  %v11938_v41 = vld [vmem:[#allocation31 + $0x3c8] sm:$0xf] }
 0x51a   :  { %v11463_v62 = vor.u32 %v13320_v33, %v11460_v2  ;;  %v11812_v8 = vld [vmem:[#allocation31 + $0x2d8] sm:$0xf0]  ;;  %v11922_v11 = vld [vmem:[#allocation31 + $0x3a8] sm:$0xf]  ;;  %v13438_v18 = vld [vmem:[#allocation31 + $0x3b4] sm:$0xf0] }
 0x51b   :  { %v14815_v37 = vpack.c.bf16 %v6160_v10, %v6156_v31  ;;  %7062 = vmatpush.bf16.msra.mxu2 %v11475_v14  ;;  %v11527_v14 = vor.u32 %v13336_v1, %v11524_v54  ;;  %v5622_v49 = vadd.f32 %v14803_v36, %v5608_v21  ;;  %v11587_v31 = vor.u32 %v13354_v9, %v11586_v46  ;;  %v13368_v54 = vld [vmem:[#allocation31 + $0x18c] sm:$0xf]  ;;  %v11636_v21 = vld [vmem:[#allocation31 + $0x178] sm:$0xf0] }
 0x51c   :  { %7072 = vmatpush.bf16.msra.mxu3 %v11667_v57  ;;  %v11700_v57 = vld [vmem:[#allocation31 + $0x1f8] sm:$0xf0]  ;;  %v11715_v1 = vor.u32 %v13386_v28, %v11714_v61  ;;  %v13364_v46 = vld [vmem:[#allocation31 + $0x16c] sm:$0xf]  ;;  %v11815_v9 = vor.u32 %v13408_v7, %v11812_v8 }
 0x51d   :  { %6980 = vmatmul.bf16.vlgmr.msrb.gmra.mxu0 %v14815_v37  ;;  %v11703_v10 = vor.u32 %v13380_v29, %v11700_v57  ;;  %v5879_v34 = vadd.f32 %v5869_v44, %v5622_v49  ;;  %v11639_v29 = vor.u32 %v13364_v46, %v11636_v21  ;;  %v11923_v57 = vor.u32 %v13438_v18, %v11922_v11  ;;  %v13360_v49 = vld [vmem:[#allocation31 + $0x14c] sm:$0xf]  ;;  %v11732_v28 = vld [vmem:[#allocation31 + $0x238] sm:$0xf0]  ;;  %v12074_v18 = vld [vmem:[#allocation32 + $0xe0] sm:$0xf] }
 0x51e   :  { %7084 = vmatpush.bf16.msrb.mxu0 %v11827_v55  ;;  %v11747_v55 = vor.u32 %v13394_v56, %v11746_v42  ;;  %v11620_v42 = vld [vmem:[#allocation31 + $0x158] sm:$0xf0]  ;;  %v13388_v61 = vld [vmem:[#allocation31 + $0x22c] sm:$0xf] }
 0x51f   :  { %7063 = vmatpush.bf16.msra.mxu2 %v11459_v39  ;;  %v13376_v39 = vld [vmem:[#allocation31 + $0x1cc] sm:$0xf]  ;;  %v11956_v33 = vld [vmem:[#allocation31 + $0x3f8] sm:$0xf0] }
 0x520   :  { %7073 = vmatpush.bf16.msra.mxu3 %v11651_v48  ;;  %v13390_v48 = vld [vmem:[#allocation31 + $0x234] sm:$0xf0]  ;;  %v11687_v22 = vor.u32 %v13376_v39, %v11684_v6  ;;  %v11890_v39 = vld [vmem:[#allocation31 + $0x368] sm:$0xf]  ;;  %v13432_v7 = vld [vmem:[#allocation31 + $0x38c] sm:$0xf] }
 0x521   :  { %v11731_v44 = vor.u32 %v13390_v48, %v11730_v53  ;;  %v13430_v6 = vld [vmem:[#allocation31 + $0x374] sm:$0xf0]  ;;  %v11764_v53 = vld [vmem:[#allocation31 + $0x278] sm:$0xf0] }
 0x522   :  { %7085 = vmatpush.bf16.msrb.mxu0 %v11811_v30  ;;  %7064 = vmatmul.bf16.vlgmr.msra.gmra.mxu2 %v14782_v15  ;;  %v13372_v30 = vld [vmem:[#allocation31 + $0x1ac] sm:$0xf]  ;;  %v11908_v8 = vld [vmem:[#allocation31 + $0x398] sm:$0xf0] }
 0x523   :  { %7112 = vmatpush.bf16.msrb.mxu2 %v11575_v19  ;;  %7022 = vmatmul.bf16.vlgmr.msrb.gmra.mxu3 %v14808_v59  ;;  %v11892_v46 = vld [vmem:[#allocation31 + $0x378] sm:$0xf0] }
 0x524   :  { %7074 = vmatpush.bf16.msra.mxu3 %v11635_v45  ;;  %v11954_v45 = vld [vmem:[#allocation31 + $0x3e8] sm:$0xf]  ;;  %v11876_v11 = vld [vmem:[#allocation31 + $0x358] sm:$0xf0] }
 0x526   :  { %7086 = vmatpush.bf16.msrb.mxu0 %v11795_v26  ;;  %v11479_v26 = vor.u32 %v13324_v52, %v11476_v51  ;;  %v13426_v52 = vld [vmem:[#allocation31 + $0x354] sm:$0xf0]  ;;  %v13392_v51 = vld [vmem:[#allocation31 + $0x24c] sm:$0xf] }
 0x527   :  { %7113 = vmatpush.bf16.msrb.mxu2 %v11559_v27  ;;  %v13446_v27 = vld [vmem:[#allocation31 + $0x3f4] sm:$0xf0] }
 0x528   :  { %7075 = vmatpush.bf16.msra.mxu3 %v11619_v4  ;;  %v11671_v4 = vor.u32 %v13372_v30, %v11668_v47  ;;  %v11748_v30 = vld [vmem:[#allocation31 + $0x258] sm:$0xf0] }
 0x529   :  { %v11751_v47 = vor.u32 %v13392_v51, %v11748_v30  ;;  %v13505_v51 = vld [vmem:[#allocation32 + $0x1cc] sm:$0xf0] }
 0x52a   :  { %7087 = vmatpush.bf16.msrb.mxu0 %v11779_v17  ;;  %v11831_v17 = vor.u32 %v13412_v38, %v11828_v63  ;;  %v13418_v38 = vld [vmem:[#allocation31 + $0x314] sm:$0xf0]  ;;  %v13384_v63 = vld [vmem:[#allocation31 + $0x20c] sm:$0xf] }
 0x52b   :  { %v6123_v43 = vpop.f32.mrf.mxu1  ;;  %7114 = vmatpush.bf16.msrb.mxu2 %v11543_v12  ;;  %v11955_v12 = vor.u32 %v13446_v27, %v11954_v45  ;;  %v11858_v45 = vld [vmem:[#allocation31 + $0x328] sm:$0xf]  ;;  %v13422_v27 = vld [vmem:[#allocation31 + $0x334] sm:$0xf0] }
 0x52c   :  { %v6131_v13 = vadd.f32 %v6123_v43, %v5875_v58  ;;  %7076 = vmatpush.bf16.msra.mxu3 %v11603_v60  ;;  %v13442_v43 = vld [vmem:[#allocation31 + $0x3d4] sm:$0xf0]  ;;  %v11655_v60 = vor.u32 %v13368_v54, %v11652_v0  ;;  %v13404_v58 = vld [vmem:[#allocation31 + $0x2ac] sm:$0xf] }
 0x52d   :  { %7036 = vmatmul.bf16.vlgmr.msra.gmra.mxu0 %v14815_v37  ;;  %v13440_v0 = vld [vmem:[#allocation31 + $0x3cc] sm:$0xf] }
 0x52e   :  { %7088 = vmatpush.bf16.msrb.mxu0 %v11763_v50  ;;  %v6149_v19 = vadd.f32 %v6141_v20, %v6131_v13  ;;  %v11796_v50 = vld [vmem:[#allocation31 + $0x2b8] sm:$0xf0]  ;;  %v11906_v13 = vld [vmem:[#allocation31 + $0x388] sm:$0xf] }
 0x52f   :  { %7115 = vmatpush.bf16.msrb.mxu2 %v11527_v14  ;;  %v11939_v14 = vor.u32 %v13442_v43, %v11938_v41  ;;  %v11799_v56 = vor.u32 %v13404_v58, %v11796_v50  ;;  %v13436_v43 = vld [vmem:[#allocation31 + $0x3ac] sm:$0xf]  ;;  %v13477_v58 = vld [vmem:[#allocation32 + $0xec] sm:$0xf0] }
 0x530   :  { %7077 = vmatpush.bf16.msra.mxu3 %v11587_v31  ;;  %v6157_v3 = vmax.f32 %v6149_v19, 0.0  ;;  %v13400_v31 = vld [vmem:[#allocation31 + $0x28c] sm:$0xf] }
 0x531   :  { %v13352_v19 = vld [vmem:[#allocation31 + $0x10c] sm:$0xf] }
 0x532   :  { %7089 = vmatpush.bf16.msrb.mxu0 %v11747_v55 }
 0x533   :  { %v6125_v36 = vpop.f32.mrf.mxu1  ;;  %7116 = vmatpush.bf16.msrb.mxu2 %v11511_v25  ;;  %7078 = vmatmul.bf16.vlgmr.msra.gmra.mxu3 %v14808_v59  ;;  %v11780_v25 = vld [vmem:[#allocation31 + $0x298] sm:$0xf0] }
 0x534   :  { %v6135_v24 = vadd.f32 %v6125_v36, %v5879_v34  ;;  %7126 = vmatpush.bf16.msrb.mxu3 %v11703_v10  ;;  %v11623_v10 = vor.u32 %v13360_v49, %v11620_v42  ;;  %v11604_v34 = vld [vmem:[#allocation31 + $0x138] sm:$0xf0]  ;;  %v11783_v55 = vor.u32 %v13400_v31, %v11780_v25  ;;  %v13396_v36 = vld [vmem:[#allocation31 + $0x26c] sm:$0xf]  ;;  %v12042_v25 = vld [vmem:[#allocation32 + $0xa0] sm:$0xf] }
 0x535   :  { %v11607_v48 = vor.u32 %v13356_v35, %v11604_v34  ;;  %v11860_v49 = vld [vmem:[#allocation31 + $0x338] sm:$0xf0]  ;;  %v13416_v42 = vld [vmem:[#allocation31 + $0x30c] sm:$0xf]  ;;  %v12026_v34 = vld [vmem:[#allocation32 + $0x80] sm:$0xf] }
 0x536   :  { %v6153_v16 = vadd.f32 %v6141_v20, %v6135_v24  ;;  %7090 = vmatpush.bf16.msrb.mxu0 %v11731_v44  ;;  %v13434_v20 = vld [vmem:[#allocation31 + $0x394] sm:$0xf0]  ;;  %v11588_v24 = vld [vmem:[#allocation31 + $0x118] sm:$0xf0] }
 0x537   :  { %7117 = vmatpush.bf16.msrb.mxu2 %v11495_v40  ;;  %v11907_v32 = vor.u32 %v13434_v20, %v11906_v13  ;;  %v11767_v40 = vor.u32 %v13396_v36, %v11764_v53  ;;  %v12058_v13 = vld [vmem:[#allocation32 + $0xc0] sm:$0xf]  ;;  %v13473_v20 = vld [vmem:[#allocation32 + $0xcc] sm:$0xf0] }
 0x538   :  { %v6161_v5 = vmax.f32 %v6153_v16, 0.0  ;;  %7127 = vmatpush.bf16.msrb.mxu3 %v11687_v22  ;;  %v11874_v22 = vld [vmem:[#allocation31 + $0x348] sm:$0xf]  ;;  %v11591_v16 = vor.u32 %v13352_v19, %v11588_v24  ;;  %v12059_v31 = vor.u32 %v13473_v20, %v12058_v13  ;;  %v13461_v36 = vld [vmem:[#allocation32 + $0x6c] sm:$0xf0] }
 0x539   :  { %v11875_v44 = vor.u32 %v13426_v52, %v11874_v22  ;;  %v12202_v53 = vld [vmem:[#allocation32 + $0x1e0] sm:$0xf]  ;;  %v13481_v20 = vld [vmem:[#allocation32 + $0x10c] sm:$0xf0] }
 0x53a   :  { %v14832_v23 = vpack.c.bf16 %v6161_v5, %v6157_v3  ;;  %7091 = vmatpush.bf16.msrb.mxu0 %v11715_v1  ;;  %v11859_v3 = vor.u32 %v13422_v27, %v11858_v45  ;;  %v11735_v5 = vor.u32 %v13388_v61, %v11732_v28  ;;  %v11994_v24 = vld [vmem:[#allocation32 + $0x40] sm:$0xf]  ;;  %v13501_v45 = vld [vmem:[#allocation32 + $0x1ac] sm:$0xf0] }
 0x53b   :  { %7118 = vmatpush.bf16.msrb.mxu2 %v11479_v26  ;;  %v11842_v26 = vld [vmem:[#allocation31 + $0x308] sm:$0xf]  ;;  %v12186_v22 = vld [vmem:[#allocation32 + $0x1c0] sm:$0xf]  ;;  %v13449_v28 = vld [vmem:[#allocation32 + $0xc] sm:$0xf0] }
 0x53c   :  { %6994 = vmatmul.bf16.vlgmr.msrb.gmra.mxu1 %v14832_v23  ;;  %7128 = vmatpush.bf16.msrb.mxu3 %v11671_v4  ;;  %v11716_v4 = vld [vmem:[#allocation31 + $0x218] sm:$0xf0]  ;;  %v11843_v2 = vor.u32 %v13418_v38, %v11842_v26  ;;  %v12187_v30 = vor.u32 %v13505_v51, %v12186_v22  ;;  %v11962_v61 = vld [vmem:[#allocation32] sm:$0xf]  ;;  %v13497_v26 = vld [vmem:[#allocation32 + $0x18c] sm:$0xf0] }
 0x53d   :  { %7098 = vmatpush.bf16.msrb.mxu1 %v11955_v12  ;;  %7092 = vmatmul.bf16.vlgmr.msrb.gmra.mxu0 %v14815_v37  ;;  %v13444_v12 = vld [vmem:[#allocation31 + $0x3ec] sm:$0xf]  ;;  %v11719_v1 = vor.u32 %v13384_v63, %v11716_v4  ;;  %v13475_v38 = vld [vmem:[#allocation32 + $0xe4] sm:$0xf]  ;;  %v12076_v4 = vld [vmem:[#allocation32 + $0xf0] sm:$0xf0] }
 0x53e   :  { %7140 = vmatpush.bf16.msra.mxu0 %v11831_v17  ;;  %v11959_v54 = vor.u32 %v13444_v12, %v11956_v33  ;;  %v11940_v17 = vld [vmem:[#allocation31 + $0x3d8] sm:$0xf0]  ;;  %v12079_v12 = vor.u32 %v13475_v38, %v12076_v4  ;;  %v12138_v33 = vld [vmem:[#allocation32 + $0x160] sm:$0xf]  ;;  %v13447_v38 = vld [vmem:[#allocation32 + $0x4] sm:$0xf] }
 0x53f   :  { %7119 = vmatpush.bf16.msrb.mxu2 %v11463_v62  ;;  %v11943_v41 = vor.u32 %v13440_v0, %v11940_v17  ;;  %v11924_v62 = vld [vmem:[#allocation31 + $0x3b8] sm:$0xf0]  ;;  %v13541_v0 = vld [vmem:[#allocation32 + $0x2ec] sm:$0xf0]  ;;  %v13471_v17 = vld [vmem:[#allocation32 + $0xc4] sm:$0xf] }
 0x540   :  { %7129 = vmatpush.bf16.msrb.mxu3 %v11655_v60  ;;  %v11911_v60 = vor.u32 %v13432_v7, %v11908_v8  ;;  %v13489_v7 = vld [vmem:[#allocation32 + $0x14c] sm:$0xf0]  ;;  %v12314_v8 = vld [vmem:[#allocation32 + $0x2c0] sm:$0xf] }
 0x541   :  { %7099 = vmatpush.bf16.msrb.mxu1 %v11939_v14  ;;  %v13428_v14 = vld [vmem:[#allocation31 + $0x36c] sm:$0xf]  ;;  %v12090_v13 = vld [vmem:[#allocation32 + $0x100] sm:$0xf] }
 0x542   :  { %7141 = vmatpush.bf16.msra.mxu0 %v11815_v9  ;;  %7120 = vmatmul.bf16.vlgmr.msrb.gmra.mxu2 %v14782_v15  ;;  %v11891_v15 = vor.u32 %v13430_v6, %v11890_v39  ;;  %v11895_v21 = vor.u32 %v13428_v14, %v11892_v46  ;;  %v13424_v9 = vld [vmem:[#allocation31 + $0x34c] sm:$0xf]  ;;  %v12010_v6 = vld [vmem:[#allocation32 + $0x60] sm:$0xf]  ;;  %v13537_v14 = vld [vmem:[#allocation32 + $0x2cc] sm:$0xf0] }
 0x543   :  { %v11879_v50 = vor.u32 %v13424_v9, %v11876_v11  ;;  %v13467_v46 = vld [vmem:[#allocation32 + $0xa4] sm:$0xf]  ;;  %v12315_v9 = vor.u32 %v13537_v14, %v12314_v8 }
 0x544   :  { %7130 = vmatpush.bf16.msrb.mxu3 %v11639_v29  ;;  %v12075_v29 = vor.u32 %v13477_v58, %v12074_v18  ;;  %v12106_v18 = vld [vmem:[#allocation32 + $0x120] sm:$0xf]  ;;  %v13485_v58 = vld [vmem:[#allocation32 + $0x12c] sm:$0xf0]  ;;  %v13539_v14 = vld [vmem:[#allocation32 + $0x2e4] sm:$0xf] }
 0x545   :  { %7100 = vmatpush.bf16.msrb.mxu1 %v11923_v57  ;;  %v13420_v57 = vld [vmem:[#allocation31 + $0x32c] sm:$0xf] }
 0x546   :  { %7142 = vmatpush.bf16.msra.mxu0 %v11799_v56  ;;  %7958 = vmatpush.bf16.msra.mxu2 %v12075_v29  ;;  %v11844_v56 = vld [vmem:[#allocation31 + $0x318] sm:$0xf0]  ;;  %v12107_v29 = vor.u32 %v13485_v58, %v12106_v18  ;;  %v13569_v18 = vld [vmem:[#allocation32 + $0x3cc] sm:$0xf0] }
 0x548   :  { %7131 = vmatpush.bf16.msrb.mxu3 %v11623_v10  ;;  %v13469_v10 = vld [vmem:[#allocation32 + $0xac] sm:$0xf0] }
 0x549   :  { %7101 = vmatpush.bf16.msrb.mxu1 %v11907_v32  ;;  %v11847_v32 = vor.u32 %v13416_v42, %v11844_v56  ;;  %v12043_v35 = vor.u32 %v13469_v10, %v12042_v25  ;;  %v12091_v25 = vor.u32 %v13481_v20, %v12090_v13  ;;  %v13529_v10 = vld [vmem:[#allocation32 + $0x28c] sm:$0xf0]  ;;  %v12426_v20 = vld [vmem:[#allocation32 + $0x3a0] sm:$0xf] }
 0x54a   :  { %7143 = vmatpush.bf16.msra.mxu0 %v11783_v55  ;;  %7959 = vmatpush.bf16.msra.mxu2 %v12059_v31  ;;  %v13465_v55 = vld [vmem:[#allocation32 + $0x8c] sm:$0xf0]  ;;  %v12282_v31 = vld [vmem:[#allocation32 + $0x280] sm:$0xf] }
 0x54b   :  { %v12027_v39 = vor.u32 %v13465_v55, %v12026_v34  ;;  %v12283_v34 = vor.u32 %v13529_v10, %v12282_v31  ;;  %v13565_v31 = vld [vmem:[#allocation32 + $0x3ac] sm:$0xf0]  ;;  %v13483_v10 = vld [vmem:[#allocation32 + $0x124] sm:$0xf] }
 0x54c   :  { %7050 = vmatmul.bf16.vlgmr.msra.gmra.mxu1 %v14832_v23  ;;  %7132 = vmatpush.bf16.msrb.mxu3 %v11607_v48  ;;  %v12011_v48 = vor.u32 %v13461_v36, %v12010_v6  ;;  %v12204_v6 = vld [vmem:[#allocation32 + $0x1f0] sm:$0xf0] }
 0x54d   :  { %7102 = vmatpush.bf16.msrb.mxu1 %v11891_v15  ;;  %v13509_v15 = vld [vmem:[#allocation32 + $0x1ec] sm:$0xf0] }
 0x54e   :  { %7144 = vmatpush.bf16.msra.mxu0 %v11767_v40  ;;  %7960 = vmatpush.bf16.msra.mxu2 %v12043_v35  ;;  %v12203_v19 = vor.u32 %v13509_v15, %v12202_v53  ;;  %v13457_v40 = vld [vmem:[#allocation32 + $0x4c] sm:$0xf0]  ;;  %v12012_v35 = vld [vmem:[#allocation32 + $0x70] sm:$0xf0]  ;;  %v12266_v53 = vld [vmem:[#allocation32 + $0x260] sm:$0xf] }
 0x54f   :  { %v11995_v52 = vor.u32 %v13457_v40, %v11994_v24  ;;  %v11996_v24 = vld [vmem:[#allocation32 + $0x50] sm:$0xf0]  ;;  %v13503_v40 = vld [vmem:[#allocation32 + $0x1c4] sm:$0xf] }
 0x550   :  { %7133 = vmatpush.bf16.msrb.mxu3 %v11591_v16  ;;  %v11978_v16 = vld [vmem:[#allocation32 + $0x20] sm:$0xf] }
 0x551   :  { %7103 = vmatpush.bf16.msrb.mxu1 %v11875_v44  ;;  %v12170_v44 = vld [vmem:[#allocation32 + $0x1a0] sm:$0xf] }
 0x552   :  { %7145 = vmatpush.bf16.msra.mxu0 %v11751_v47  ;;  %7961 = vmatpush.bf16.msra.mxu2 %v12027_v39  ;;  %v12171_v27 = vor.u32 %v13501_v45, %v12170_v44  ;;  %v13507_v39 = vld [vmem:[#allocation32 + $0x1e4] sm:$0xf] }
 0x553   :  { %7134 = vmatmul.bf16.vlgmr.msrb.gmra.mxu3 %v14808_v59  ;;  %v11927_v59 = vor.u32 %v13436_v43, %v11924_v62  ;;  %v12207_v36 = vor.u32 %v13507_v39, %v12204_v6  ;;  %v13451_v44 = vld [vmem:[#allocation32 + $0x24] sm:$0xf] }
 0x554   :  { %7972 = vmatpush.bf16.msra.mxu3 %v12203_v19  ;;  %v13455_v19 = vld [vmem:[#allocation32 + $0x44] sm:$0xf] }
 0x555   :  { %7104 = vmatpush.bf16.msrb.mxu1 %v11859_v3  ;;  %v12154_v3 = vld [vmem:[#allocation32 + $0x180] sm:$0xf]  ;;  %v11999_v22 = vor.u32 %v13455_v19, %v11996_v24  ;;  %v13499_v45 = vld [vmem:[#allocation32 + $0x1a4] sm:$0xf] }
 0x556   :  { %7146 = vmatpush.bf16.msra.mxu0 %v11735_v5  ;;  %7962 = vmatpush.bf16.msra.mxu2 %v12011_v48  ;;  %v11963_v5 = vor.u32 %v13449_v28, %v11962_v61  ;;  %v12155_v63 = vor.u32 %v13497_v26, %v12154_v3  ;;  %v13525_v48 = vld [vmem:[#allocation32 + $0x26c] sm:$0xf0]  ;;  %v12172_v61 = vld [vmem:[#allocation32 + $0x1b0] sm:$0xf0]  ;;  %v12234_v3 = vld [vmem:[#allocation32 + $0x220] sm:$0xf] }
 0x557   :  { %v12267_v15 = vor.u32 %v13525_v48, %v12266_v53  ;;  %v12175_v28 = vor.u32 %v13499_v45, %v12172_v61  ;;  %v12410_v53 = vld [vmem:[#allocation32 + $0x380] sm:$0xf]  ;;  %v13561_v48 = vld [vmem:[#allocation32 + $0x38c] sm:$0xf0]  ;;  %v13479_v24 = vld [vmem:[#allocation32 + $0x104] sm:$0xf] }
 0x558   :  { %7973 = vmatpush.bf16.msra.mxu3 %v12187_v30  ;;  %v12250_v30 = vld [vmem:[#allocation32 + $0x240] sm:$0xf]  ;;  %v12411_v19 = vor.u32 %v13561_v48, %v12410_v53  ;;  %v12268_v61 = vld [vmem:[#allocation32 + $0x270] sm:$0xf0]  ;;  %v12050_v53 = vld [vmem:[#allocation32 + $0xa8] sm:$0xf] }
 0x559   :  { %7105 = vmatpush.bf16.msrb.mxu1 %v11843_v2  ;;  %v13493_v2 = vld [vmem:[#allocation32 + $0x16c] sm:$0xf0] }
 0x55a   :  { %7147 = vmatpush.bf16.msra.mxu0 %v11719_v1  ;;  %7963 = vmatpush.bf16.msra.mxu2 %v11995_v52  ;;  %v12330_v1 = vld [vmem:[#allocation32 + $0x2e0] sm:$0xf]  ;;  %v12188_v52 = vld [vmem:[#allocation32 + $0x1d0] sm:$0xf0] }
 0x55b   :  { %v12331_v43 = vor.u32 %v13541_v0, %v12330_v1  ;;  %v12191_v51 = vor.u32 %v13503_v40, %v12188_v52  ;;  %v13513_v0 = vld [vmem:[#allocation32 + $0x20c] sm:$0xf0]  ;;  %v12092_v40 = vld [vmem:[#allocation32 + $0x110] sm:$0xf0] }
 0x55c   :  { %7106 = vmatmul.bf16.vlgmr.msrb.gmra.mxu1 %v14832_v23  ;;  %7974 = vmatpush.bf16.msra.mxu3 %v12171_v27  ;;  %v12095_v52 = vor.u32 %v13479_v24, %v12092_v40  ;;  %v13567_v24 = vld [vmem:[#allocation32 + $0x3c4] sm:$0xf]  ;;  %v12444_v40 = vld [vmem:[#allocation32 + $0x3d0] sm:$0xf0] }
 0x55d   :  { %7154 = vmatpush.bf16.msra.mxu1 %v11959_v54  ;;  %7148 = vmatmul.bf16.vlgmr.msra.gmra.mxu0 %v14815_v37  ;;  %v11863_v37 = vor.u32 %v13420_v57, %v11860_v49  ;;  %v12139_v54 = vor.u32 %v13493_v2, %v12138_v33  ;;  %v13533_v57 = vld [vmem:[#allocation32 + $0x2ac] sm:$0xf0]  ;;  %v13463_v49 = vld [vmem:[#allocation32 + $0x84] sm:$0xf]  ;;  %v12156_v2 = vld [vmem:[#allocation32 + $0x190] sm:$0xf0] }
 0x55e   :  { %7986 = vmatpush.bf16.msrb.mxu0 %v12331_v43  ;;  %v13495_v33 = vld [vmem:[#allocation32 + $0x184] sm:$0xf] }
 0x55f   :  { %v12159_v1 = vor.u32 %v13495_v33, %v12156_v2 }
 0x560   :  { %7975 = vmatpush.bf16.msra.mxu3 %v12155_v63  ;;  %v11964_v63 = vld [vmem:[#allocation32 + $0x10] sm:$0xf0] }
 0x561   :  { %7155 = vmatpush.bf16.msra.mxu1 %v11943_v41  ;;  %v12060_v41 = vld [vmem:[#allocation32 + $0xd0] sm:$0xf0] }
 0x562   :  { %v12063_v62 = vor.u32 %v13471_v17, %v12060_v41  ;;  %7987 = vmatpush.bf16.msrb.mxu0 %v12315_v9  ;;  %v12458_v17 = vld [vmem:[#allocation32 + $0x3e0] sm:$0xf] }
 0x564   :  { %7976 = vmatpush.bf16.msra.mxu3 %v12139_v54  ;;  %v12218_v54 = vld [vmem:[#allocation32 + $0x200] sm:$0xf] }
 0x565   :  { %7156 = vmatpush.bf16.msra.mxu1 %v11927_v59  ;;  %v12122_v59 = vld [vmem:[#allocation32 + $0x140] sm:$0xf]  ;;  %v12219_v43 = vor.u32 %v13513_v0, %v12218_v54  ;;  %v13519_v54 = vld [vmem:[#allocation32 + $0x244] sm:$0xf] }
 0x569   :  { %7157 = vmatpush.bf16.msra.mxu1 %v11911_v60  ;;  %v12123_v60 = vor.u32 %v13489_v7, %v12122_v59  ;;  %v13491_v59 = vld [vmem:[#allocation32 + $0x164] sm:$0xf]  ;;  %v12140_v7 = vld [vmem:[#allocation32 + $0x170] sm:$0xf0] }
 0x56b   :  { %7977 = vmatpush.bf16.msra.mxu3 %v12123_v60  ;;  %v12143_v60 = vor.u32 %v13491_v59, %v12140_v7  ;;  %v12082_v7 = vld [vmem:[#allocation32 + $0xe8] sm:$0xf] }
 0x56d   :  { %7158 = vmatpush.bf16.msra.mxu1 %v11895_v21  ;;  %v12044_v21 = vld [vmem:[#allocation32 + $0xb0] sm:$0xf0] }
 0x56e   :  { %v12047_v11 = vor.u32 %v13467_v46, %v12044_v21  ;;  %v12332_v46 = vld [vmem:[#allocation32 + $0x2f0] sm:$0xf0] }
 0x56f   :  { %7978 = vmatpush.bf16.msra.mxu3 %v12107_v29  ;;  %v12335_v9 = vor.u32 %v13539_v14, %v12332_v46  ;;  %v12124_v29 = vld [vmem:[#allocation32 + $0x150] sm:$0xf0]  ;;  %v13478_v14 = vld [vmem:[#allocation32 + $0xf4] sm:$0xf0] }
 0x571   :  { %7159 = vmatpush.bf16.msra.mxu1 %v11879_v50  ;;  %v12298_v50 = vld [vmem:[#allocation32 + $0x2a0] sm:$0xf] }
 0x572   :  { %v12299_v42 = vor.u32 %v13533_v57, %v12298_v50  ;;  %v13487_v50 = vld [vmem:[#allocation32 + $0x144] sm:$0xf] }
 0x573   :  { %7979 = vmatpush.bf16.msra.mxu3 %v12091_v25  ;;  %v13535_v57 = vld [vmem:[#allocation32 + $0x2c4] sm:$0xf]  ;;  %v12427_v25 = vor.u32 %v13565_v31, %v12426_v20 }
 0x574   :  { %7988 = vmatpush.bf16.msrb.mxu0 %v12299_v42 }
 0x575   :  { %7160 = vmatpush.bf16.msra.mxu1 %v11863_v37  ;;  %v12028_v37 = vld [vmem:[#allocation32 + $0x90] sm:$0xf0] }
 0x576   :  { %v12031_v56 = vor.u32 %v13463_v49, %v12028_v37  ;;  %v12127_v49 = vor.u32 %v13487_v50, %v12124_v29  ;;  %v12316_v37 = vld [vmem:[#allocation32 + $0x2d0] sm:$0xf0]  ;;  %v12066_v29 = vld [vmem:[#allocation32 + $0xc8] sm:$0xf] }
 0x577   :  { %8028 = vmatpush.bf16.msrb.mxu3 %v12207_v36  ;;  %v12319_v42 = vor.u32 %v13535_v57, %v12316_v37  ;;  %v13474_v37 = vld [vmem:[#allocation32 + $0xd4] sm:$0xf0] }
 0x578   :  { %7989 = vmatpush.bf16.msrb.mxu0 %v12283_v34 }
 0x579   :  { %7161 = vmatpush.bf16.msra.mxu1 %v11847_v32  ;;  %v13459_v32 = vld [vmem:[#allocation32 + $0x64] sm:$0xf] }
 0x57a   :  { %v12015_v55 = vor.u32 %v13459_v32, %v12012_v35  ;;  %v12108_v32 = vld [vmem:[#allocation32 + $0x130] sm:$0xf0]  ;;  %v13531_v35 = vld [vmem:[#allocation32 + $0x2a4] sm:$0xf] }
 0x57b   :  { %8029 = vmatpush.bf16.msrb.mxu3 %v12191_v51  ;;  %v12111_v34 = vor.u32 %v13483_v10, %v12108_v32  ;;  %v12284_v51 = vld [vmem:[#allocation32 + $0x290] sm:$0xf0]  ;;  %v13571_v32 = vld [vmem:[#allocation32 + $0x3e4] sm:$0xf] }
 0x57c   :  { %7162 = vmatmul.bf16.vlgmr.msra.gmra.mxu1 %v14832_v23  ;;  %v13453_v23 = vld [vmem:[#allocation32 + $0x2c] sm:$0xf0]  ;;  %7990 = vmatpush.bf16.msrb.mxu0 %v12267_v15  ;;  %v12220_v10 = vld [vmem:[#allocation32 + $0x210] sm:$0xf0] }
 0x57d   :  { %v11979_v47 = vor.u32 %v13453_v23, %v11978_v16  ;;  %v13521_v16 = vld [vmem:[#allocation32 + $0x24c] sm:$0xf0] }
 0x57e   :  { %v12251_v23 = vor.u32 %v13521_v16, %v12250_v30 }
 0x57f   :  { %7964 = vmatpush.bf16.msra.mxu2 %v11979_v47  ;;  %v11980_v47 = vld [vmem:[#allocation32 + $0x30] sm:$0xf0]  ;;  %8030 = vmatpush.bf16.msrb.mxu3 %v12175_v28 }
 0x580   :  { %v11983_v27 = vor.u32 %v13451_v44, %v11980_v47  ;;  %7991 = vmatpush.bf16.msrb.mxu0 %v12251_v23  ;;  %v12394_v23 = vld [vmem:[#allocation32 + $0x360] sm:$0xf]  ;;  %v13557_v44 = vld [vmem:[#allocation32 + $0x36c] sm:$0xf0] }
 0x581   :  { %v12395_v45 = vor.u32 %v13557_v44, %v12394_v23 }
 0x583   :  { %7965 = vmatpush.bf16.msra.mxu2 %v11963_v5  ;;  %v13517_v5 = vld [vmem:[#allocation32 + $0x22c] sm:$0xf0]  ;;  %8031 = vmatpush.bf16.msrb.mxu3 %v12159_v1 }
 0x584   :  { %v12235_v26 = vor.u32 %v13517_v5, %v12234_v3 }
 0x585   :  { %v14842_v4 = vpop.f32.mrf.mxu2 }
 0x586   :  { %7992 = vmatpush.bf16.msrb.mxu0 %v12235_v26 }
 0x587   :  { %8014 = vmatpush.bf16.msrb.mxu2 %v12079_v12  ;;  %v11967_v12 = vor.u32 %v13447_v38, %v11964_v63  ;;  %8032 = vmatpush.bf16.msrb.mxu3 %v12143_v60  ;;  %v12378_v38 = vld [vmem:[#allocation32 + $0x340] sm:$0xf]  ;;  %v13553_v63 = vld [vmem:[#allocation32 + $0x34c] sm:$0xf0] }
 0x588   :  { %v12379_v1 = vor.u32 %v13553_v63, %v12378_v38  ;;  %v13549_v60 = vld [vmem:[#allocation32 + $0x32c] sm:$0xf0]  ;;  %v12018_v63 = vld [vmem:[#allocation32 + $0x68] sm:$0xf] }
 0x58a   :  { %7993 = vmatpush.bf16.msrb.mxu0 %v12219_v43 }
 0x58b   :  { %8015 = vmatpush.bf16.msrb.mxu2 %v12063_v62  ;;  %v13573_v62 = vld [vmem:[#allocation32 + $0x3ec] sm:$0xf0]  ;;  %8033 = vmatpush.bf16.msrb.mxu3 %v12127_v49  ;;  %v12083_v49 = vor.u32 %v13478_v14, %v12082_v7  ;;  %v12194_v14 = vld [vmem:[#allocation32 + $0x1c8] sm:$0xf] }
 0x58c   :  { %v12459_v8 = vor.u32 %v13573_v62, %v12458_v17 }
 0x58d   :  { %v6955_v13 = vpop.f32.mrf.mxu2 }
 0x58e   :  { %8000 = vmatpush.bf16.msrb.mxu1 %v12459_v8  ;;  %8042 = vmatpush.bf16.msra.mxu0 %v12335_v9  ;;  %v12362_v8 = vld [vmem:[#allocation32 + $0x320] sm:$0xf]  ;;  %v12236_v9 = vld [vmem:[#allocation32 + $0x230] sm:$0xf0] }
 0x58f   :  { %8016 = vmatpush.bf16.msrb.mxu2 %v12047_v11  ;;  %v12442_v11 = vld [vmem:[#allocation32 + $0x3c0] sm:$0xf]  ;;  %8034 = vmatpush.bf16.msrb.mxu3 %v12111_v34  ;;  %v12363_v46 = vor.u32 %v13549_v60, %v12362_v8  ;;  %v12460_v34 = vld [vmem:[#allocation32 + $0x3f0] sm:$0xf0]  ;;  %v12002_v60 = vld [vmem:[#allocation32 + $0x48] sm:$0xf] }
 0x590   :  { %v12443_v58 = vor.u32 %v13569_v18, %v12442_v11 }
 0x592   :  { %8001 = vmatpush.bf16.msrb.mxu1 %v12443_v58  ;;  %8043 = vmatpush.bf16.msra.mxu0 %v12319_v42  ;;  %v12346_v42 = vld [vmem:[#allocation32 + $0x300] sm:$0xf] }
 0x593   :  { %8017 = vmatpush.bf16.msrb.mxu2 %v12031_v56  ;;  %v14849_v56 = vld [vmem:[%s14919_s23] sm:$0xf]  ;;  %8035 = vmatpush.bf16.msrb.mxu3 %v12095_v52 }
 0x594   :  { %v6296_v36 = vperm.slane %v14849_v56, 0  ;;  %v6297_v18 = vperm.slane %v14849_v56, 1 }
 0x595   :  { %v7009_v28 = vpop.f32.mrf.mxu2 }
 0x596   :  { %v14844_v41 = vpop.f32.mrf.mxu3  ;;  %8002 = vmatpush.bf16.msrb.mxu1 %v12427_v25  ;;  %v6954_v47 = vadd.f32 %v14842_v4, %v6296_v36  ;;  %v6956_v5 = vadd.f32 %v6955_v13, %v6296_v36  ;;  %v12252_v4 = vld [vmem:[#allocation32 + $0x250] sm:$0xf0]  ;;  %v13545_v13 = vld [vmem:[#allocation32 + $0x30c] sm:$0xf0]  ;;  %v13511_v25 = vld [vmem:[#allocation32 + $0x204] sm:$0xf]  ;;  %v12067_v36 = vor.u32 %v13474_v37, %v12066_v29  ;;  %v7010_v48 = vadd.f32 %v7009_v28, %v6297_v18 }
 0x597   :  { %8018 = vmatpush.bf16.msrb.mxu2 %v12015_v55  ;;  %v12300_v55 = vld [vmem:[#allocation32 + $0x2b0] sm:$0xf0]  ;;  %v12255_v0 = vor.u32 %v13519_v54, %v12252_v4  ;;  %v12347_v31 = vor.u32 %v13545_v13, %v12346_v42  ;;  %v13510_v54 = vld [vmem:[#allocation32 + $0x1f4] sm:$0xf0]  ;;  %v13559_v4 = vld [vmem:[#allocation32 + $0x384] sm:$0xf] }
 0x598   :  { %v12303_v6 = vor.u32 %v13531_v35, %v12300_v55  ;;  %v6968_v26 = vadd.f32 %v14844_v41, %v6954_v47  ;;  %v12223_v35 = vor.u32 %v13511_v25, %v12220_v10  ;;  %v13466_v47 = vld [vmem:[#allocation32 + $0x94] sm:$0xf0]  ;;  %v12178_v42 = vld [vmem:[#allocation32 + $0x1a8] sm:$0xf]  ;;  %v13551_v25 = vld [vmem:[#allocation32 + $0x344] sm:$0xf] }
 0x599   :  { %v13454_v37 = vld [vmem:[#allocation32 + $0x34] sm:$0xf0]  ;;  %v12380_v10 = vld [vmem:[#allocation32 + $0x350] sm:$0xf0] }
 0x59a   :  { %v6981_v21 = vpop.f32.mrf.mxu0  ;;  %8044 = vmatpush.bf16.msra.mxu0 %v12303_v6  ;;  %8003 = vmatpush.bf16.msrb.mxu1 %v12411_v19  ;;  %v13470_v19 = vld [vmem:[#allocation32 + $0xb4] sm:$0xf0] }
 0x59b   :  { %8019 = vmatpush.bf16.msrb.mxu2 %v11999_v22  ;;  %v13527_v22 = vld [vmem:[#allocation32 + $0x284] sm:$0xf] }
 0x59c   :  { %v12287_v30 = vor.u32 %v13527_v22, %v12284_v51  ;;  %v12447_v22 = vor.u32 %v13567_v24, %v12444_v40  ;;  %v13498_v24 = vld [vmem:[#allocation32 + $0x194] sm:$0xf0]  ;;  %v13547_v40 = vld [vmem:[#allocation32 + $0x324] sm:$0xf] }
 0x59d   :  { %v7011_v57 = vpop.f32.mrf.mxu2 }
 0x59e   :  { %v6969_v39 = vpop.f32.mrf.mxu3  ;;  %8045 = vmatpush.bf16.msra.mxu0 %v12287_v30  ;;  %8004 = vmatpush.bf16.msrb.mxu1 %v12395_v45  ;;  %v7012_v52 = vadd.f32 %v7011_v57, %v6297_v18  ;;  %v12051_v30 = vor.u32 %v13470_v19, %v12050_v53  ;;  %v13563_v45 = vld [vmem:[#allocation32 + $0x3a4] sm:$0xf]  ;;  %v6298_v18 = vperm.slane %v14849_v56, 2  ;;  %v11970_v53 = vld [vmem:[#allocation32 + $0x8] sm:$0xf] }
 0x59f   :  { %8020 = vmatpush.bf16.msrb.mxu2 %v11983_v27  ;;  %v13523_v27 = vld [vmem:[#allocation32 + $0x264] sm:$0xf]  ;;  %v6970_v33 = vadd.f32 %v6969_v39, %v6956_v5  ;;  %v12463_v39 = vor.u32 %v13571_v32, %v12460_v34 }
 0x5a0   :  { %v12271_v3 = vor.u32 %v13523_v27, %v12268_v61  ;;  %v12428_v27 = vld [vmem:[#allocation32 + $0x3b0] sm:$0xf0] }
 0x5a1   :  { %v12431_v28 = vor.u32 %v13563_v45, %v12428_v27 }
 0x5a2   :  { %v6983_v15 = vpop.f32.mrf.mxu0  ;;  %8046 = vmatpush.bf16.msra.mxu0 %v12271_v3  ;;  %8005 = vmatpush.bf16.msrb.mxu1 %v12379_v1 }
 0x5a3   :  { %8021 = vmatpush.bf16.msrb.mxu2 %v11967_v12  ;;  %v6982_v12 = vadd.f32 %v6981_v21, %v6968_v26  ;;  %v6984_v17 = vadd.f32 %v6983_v15, %v6970_v33  ;;  %v13515_v21 = vld [vmem:[#allocation32 + $0x224] sm:$0xf]  ;;  %v12210_v33 = vld [vmem:[#allocation32 + $0x1e8] sm:$0xf] }
 0x5a4   :  { %v12239_v11 = vor.u32 %v13515_v21, %v12236_v9  ;;  %v12211_v8 = vor.u32 %v13510_v54, %v12210_v33  ;;  %v13506_v21 = vld [vmem:[#allocation32 + $0x1d4] sm:$0xf0]  ;;  %v13555_v9 = vld [vmem:[#allocation32 + $0x364] sm:$0xf] }
 0x5a5   :  { %v7065_v61 = vpop.f32.mrf.mxu2  ;;  %v12195_v57 = vor.u32 %v13506_v21, %v12194_v14  ;;  %v13542_v33 = vld [vmem:[#allocation32 + $0x2f4] sm:$0xf0]  ;;  %v13468_v14 = vld [vmem:[#allocation32 + $0xac] sm:$0xf]  ;;  %v12052_v21 = vld [vmem:[#allocation32 + $0xb8] sm:$0xf0] }
 0x5a6   :  { %v7023_v2 = vpop.f32.mrf.mxu3  ;;  %8047 = vmatpush.bf16.msra.mxu0 %v12255_v0  ;;  %8006 = vmatpush.bf16.msrb.mxu1 %v12363_v46  ;;  %v12412_v0 = vld [vmem:[#allocation32 + $0x390] sm:$0xf0]  ;;  %v7066_v32 = vadd.f32 %v7065_v61, %v6298_v18  ;;  %v12146_v61 = vld [vmem:[#allocation32 + $0x168] sm:$0xf] }
 0x5a7   :  { %v7024_v51 = vadd.f32 %v7023_v2, %v7010_v48  ;;  %v13450_v48 = vld [vmem:[#allocation32 + $0x14] sm:$0xf0] }
 0x5aa   :  { %v7037_v43 = vpop.f32.mrf.mxu0  ;;  %8048 = vmatpush.bf16.msra.mxu0 %v12239_v11  ;;  %8007 = vmatpush.bf16.msrb.mxu1 %v12347_v31  ;;  %v12396_v11 = vld [vmem:[#allocation32 + $0x370] sm:$0xf0]  ;;  %v13502_v31 = vld [vmem:[#allocation32 + $0x1b4] sm:$0xf0] }
 0x5ab   :  { %v7038_v23 = vadd.f32 %v7037_v43, %v7024_v51 }
 0x5ae   :  { %v7025_v55 = vpop.f32.mrf.mxu3  ;;  %8049 = vmatpush.bf16.msra.mxu0 %v12223_v35  ;;  %8056 = vmatpush.bf16.msra.mxu1 %v12463_v39  ;;  %v12383_v35 = vor.u32 %v13551_v25, %v12380_v10  ;;  %v12098_v10 = vld [vmem:[#allocation32 + $0x108] sm:$0xf] }
 0x5af   :  { %v7026_v44 = vadd.f32 %v7025_v55, %v7012_v52 }
 0x5b2   :  { %v7039_v15 = vpop.f32.mrf.mxu0  ;;  %8057 = vmatpush.bf16.msra.mxu1 %v12447_v22  ;;  %v12364_v22 = vld [vmem:[#allocation32 + $0x330] sm:$0xf0] }
 0x5b3   :  { %v7040_v3 = vadd.f32 %v7039_v15, %v7026_v44  ;;  %v12162_v15 = vld [vmem:[#allocation32 + $0x188] sm:$0xf]  ;;  %v11971_v44 = vor.u32 %v13450_v48, %v11970_v53  ;;  %v12212_v53 = vld [vmem:[#allocation32 + $0x1f8] sm:$0xf0] }
 0x5b4   :  { %v12163_v27 = vor.u32 %v13498_v24, %v12162_v15 }
 0x5b6   :  { %v7079_v2 = vpop.f32.mrf.mxu3  ;;  %8058 = vmatpush.bf16.msra.mxu1 %v12431_v28  ;;  %v13494_v28 = vld [vmem:[#allocation32 + $0x174] sm:$0xf0] }
 0x5b7   :  { %v7080_v39 = vadd.f32 %v7079_v2, %v7066_v32  ;;  %v13472_v2 = vld [vmem:[#allocation32 + $0xcc] sm:$0xf]  ;;  %v13482_v32 = vld [vmem:[#allocation32 + $0x114] sm:$0xf0] }
 0x5b8   :  { %v12099_v15 = vor.u32 %v13482_v32, %v12098_v10  ;;  %v13540_v10 = vld [vmem:[#allocation32 + $0x2ec] sm:$0xf]  ;;  %v12340_v32 = vld [vmem:[#allocation32 + $0x2f8] sm:$0xf0] }
 0x5b9   :  { %v6995_v16 = vpop.f32.mrf.mxu1 }
 0x5ba   :  { %v6996_v62 = vadd.f32 %v6995_v16, %v6982_v12  ;;  %v12034_v16 = vld [vmem:[#allocation32 + $0x88] sm:$0xf]  ;;  %v13462_v12 = vld [vmem:[#allocation32 + $0x74] sm:$0xf0]  ;;  %v7093_v43 = vpop.f32.mrf.mxu0 }
 0x5bb   :  { %v12035_v38 = vor.u32 %v13466_v47, %v12034_v16  ;;  %v12019_v7 = vor.u32 %v13462_v12, %v12018_v63  ;;  %v7094_v52 = vadd.f32 %v7093_v43, %v7080_v39  ;;  %v12084_v16 = vld [vmem:[#allocation32 + $0xf8] sm:$0xf0]  ;;  %v12348_v63 = vld [vmem:[#allocation32 + $0x310] sm:$0xf0]  ;;  %v13460_v39 = vld [vmem:[#allocation32 + $0x6c] sm:$0xf] }
 0x5bc   :  { %v7168_v58 = vmax.f32 %v6996_v62, 0.0 }
 0x5be   :  { %v7081_v55 = vpop.f32.mrf.mxu3 }
 0x5c1   :  { %v6997_v59 = vpop.f32.mrf.mxu1 }
 0x5c2   :  { %v6998_v41 = vadd.f32 %v6997_v59, %v6984_v17  ;;  %v12415_v17 = vor.u32 %v13559_v4, %v12412_v0  ;;  %v7095_v19 = vpop.f32.mrf.mxu0 }
 0x5c4   :  { %v7172_v50 = vmax.f32 %v6998_v41, 0.0  ;;  %v13458_v41 = vld [vmem:[#allocation32 + $0x54] sm:$0xf0]  ;;  %8059 = vmatpush.bf16.msra.mxu1 %v12415_v17  ;;  %v12147_v17 = vor.u32 %v13494_v28, %v12146_v61  ;;  %v12258_v61 = vld [vmem:[#allocation32 + $0x248] sm:$0xf] }
 0x5c5   :  { %v12003_v29 = vor.u32 %v13458_v41, %v12002_v60  ;;  %v13538_v41 = vld [vmem:[#allocation32 + $0x2d4] sm:$0xf0] }
 0x5c6   :  { %v14855_v20 = vpack.c.bf16 %v7172_v50, %v7168_v58  ;;  %v12399_v58 = vor.u32 %v13555_v9, %v12396_v11  ;;  %v7067_v50 = vpop.f32.mrf.mxu2 }
 0x5c7   :  { %v7068_v34 = vadd.f32 %v7067_v50, %v6298_v18  ;;  %v12055_v18 = vor.u32 %v13468_v14, %v12052_v21  ;;  %v13486_v50 = vld [vmem:[#allocation32 + $0x134] sm:$0xf0]  ;;  %v13496_v14 = vld [vmem:[#allocation32 + $0x18c] sm:$0xf]  ;;  %v12164_v21 = vld [vmem:[#allocation32 + $0x198] sm:$0xf0] }
 0x5c8   :  { %7966 = vmatmul.bf16.vlgmr.msra.gmra.mxu2 %v14855_v20  ;;  %8060 = vmatpush.bf16.msra.mxu1 %v12399_v58  ;;  %v12114_v58 = vld [vmem:[#allocation32 + $0x128] sm:$0xf] }
 0x5c9   :  { %8070 = vmatpush.bf16.msra.mxu2 %v12083_v49  ;;  %v7051_v6 = vpop.f32.mrf.mxu1  ;;  %v11986_v49 = vld [vmem:[#allocation32 + $0x28] sm:$0xf]  ;;  %v7082_v51 = vadd.f32 %v7081_v55, %v7068_v34  ;;  %v13530_v55 = vld [vmem:[#allocation32 + $0x294] sm:$0xf0] }
 0x5ca   :  { %v7052_v5 = vadd.f32 %v7051_v6, %v7038_v23  ;;  %v11987_v6 = vor.u32 %v13454_v37, %v11986_v49  ;;  %v12367_v23 = vor.u32 %v13547_v40, %v12364_v22  ;;  %v13464_v49 = vld [vmem:[#allocation32 + $0x8c] sm:$0xf]  ;;  %v12036_v37 = vld [vmem:[#allocation32 + $0x98] sm:$0xf0]  ;;  %v12274_v40 = vld [vmem:[#allocation32 + $0x268] sm:$0xf] }
 0x5cb   :  { %v7096_v47 = vadd.f32 %v7095_v19, %v7082_v51  ;;  %v12039_v25 = vor.u32 %v13464_v49, %v12036_v37  ;;  %v13456_v51 = vld [vmem:[#allocation32 + $0x4c] sm:$0xf]  ;;  %v13514_v49 = vld [vmem:[#allocation32 + $0x214] sm:$0xf0]  ;;  %v12466_v37 = vld [vmem:[#allocation32 + $0x3e8] sm:$0xf] }
 0x5cc   :  { %v7169_v62 = vmax.f32 %v7052_v5, 0.0  ;;  %8061 = vmatpush.bf16.msra.mxu1 %v12383_v35  ;;  %v12290_v35 = vld [vmem:[#allocation32 + $0x288] sm:$0xf] }
 0x5cd   :  { %8071 = vmatpush.bf16.msra.mxu2 %v12067_v36  ;;  %v12179_v36 = vor.u32 %v13502_v31, %v12178_v42  ;;  %v12291_v19 = vor.u32 %v13530_v55, %v12290_v35 }
 0x5ce   :  { %v7121_v42 = vpop.f32.mrf.mxu2 }
 0x5d0   :  { %8062 = vmatpush.bf16.msra.mxu1 %v12367_v23  ;;  %v13504_v23 = vld [vmem:[#allocation32 + $0x1cc] sm:$0xf] }
 0x5d1   :  { %8072 = vmatpush.bf16.msra.mxu2 %v12051_v30  ;;  %v7053_v26 = vpop.f32.mrf.mxu1  ;;  %v13476_v30 = vld [vmem:[#allocation32 + $0xec] sm:$0xf] }
 0x5d2   :  { %v7054_v1 = vadd.f32 %v7053_v26, %v7040_v3  ;;  %v12087_v5 = vor.u32 %v13476_v30, %v12084_v16  ;;  %v12338_v26 = vld [vmem:[#allocation32 + $0x2e8] sm:$0xf]  ;;  %v12004_v30 = vld [vmem:[#allocation32 + $0x58] sm:$0xf0]  ;;  %v6299_v16 = vperm.slane %v14849_v56, 3 }
 0x5d3   :  { %v12339_v43 = vor.u32 %v13542_v33, %v12338_v26  ;;  %v13452_v26 = vld [vmem:[#allocation32 + $0x2c] sm:$0xf]  ;;  %v12180_v56 = vld [vmem:[#allocation32 + $0x1b8] sm:$0xf0] }
 0x5d4   :  { %v7173_v59 = vmax.f32 %v7054_v1, 0.0  ;;  %v12068_v1 = vld [vmem:[#allocation32 + $0xd8] sm:$0xf0] }
 0x5d5   :  { %8073 = vmatpush.bf16.msra.mxu2 %v12035_v38  ;;  %v13543_v38 = vld [vmem:[#allocation32 + $0x304] sm:$0xf] }
 0x5d6   :  { %v14858_v46 = vpack.c.bf16 %v7173_v59, %v7169_v62  ;;  %v12351_v54 = vor.u32 %v13543_v38, %v12348_v63  ;;  %v12071_v62 = vor.u32 %v13472_v2, %v12068_v1  ;;  %v12130_v59 = vld [vmem:[#allocation32 + $0x148] sm:$0xf]  ;;  %v7135_v34 = vpop.f32.mrf.mxu3  ;;  %v11988_v38 = vld [vmem:[#allocation32 + $0x38] sm:$0xf0]  ;;  %v7122_v63 = vadd.f32 %v7121_v42, %v6299_v16 }
 0x5d8   :  { %7980 = vmatmul.bf16.vlgmr.msra.gmra.mxu3 %v14858_v46  ;;  %8022 = vmatmul.bf16.vlgmr.msrb.gmra.mxu2 %v14855_v20  ;;  %v7136_v1 = vadd.f32 %v7135_v34, %v7122_v63  ;;  %v13528_v63 = vld [vmem:[#allocation32 + $0x28c] sm:$0xf] }
 0x5d9   :  { %8074 = vmatpush.bf16.msra.mxu2 %v12019_v7  ;;  %8084 = vmatpush.bf16.msra.mxu3 %v12211_v8  ;;  %v7107_v13 = vpop.f32.mrf.mxu1  ;;  %v13490_v7 = vld [vmem:[#allocation32 + $0x154] sm:$0xf0]  ;;  %v12322_v8 = vld [vmem:[#allocation32 + $0x2c8] sm:$0xf] }
 0x5da   :  { %v7108_v45 = vadd.f32 %v7107_v13, %v7094_v52  ;;  %8063 = vmatpush.bf16.msra.mxu1 %v12351_v54  ;;  %v12131_v9 = vor.u32 %v13490_v7, %v12130_v59  ;;  %v12323_v11 = vor.u32 %v13538_v41, %v12322_v8  ;;  %v12115_v13 = vor.u32 %v13486_v50, %v12114_v58  ;;  %v7149_v48 = vpop.f32.mrf.mxu0  ;;  %v13526_v52 = vld [vmem:[#allocation32 + $0x274] sm:$0xf0]  ;;  %v13448_v59 = vld [vmem:[#allocation32 + $0xc] sm:$0xf]  ;;  %v11972_v7 = vld [vmem:[#allocation32 + $0x18] sm:$0xf0] }
 0x5db   :  { %v7150_v8 = vadd.f32 %v7149_v48, %v7136_v1  ;;  %v11975_v58 = vor.u32 %v13448_v59, %v11972_v7  ;;  %v12343_v48 = vor.u32 %v13540_v10, %v12340_v32  ;;  %v12402_v1 = vld [vmem:[#allocation32 + $0x368] sm:$0xf]  ;;  %v13554_v59 = vld [vmem:[#allocation32 + $0x354] sm:$0xf0]  ;;  %v13520_v7 = vld [vmem:[#allocation32 + $0x24c] sm:$0xf] }
 0x5dc   :  { %v7170_v4 = vmax.f32 %v7108_v45, 0.0  ;;  %v12275_v45 = vor.u32 %v13526_v52, %v12274_v40  ;;  %v13536_v40 = vld [vmem:[#allocation32 + $0x2cc] sm:$0xf]  ;;  %v12452_v32 = vld [vmem:[#allocation32 + $0x3d8] sm:$0xf0] }
 0x5dd   :  { %8075 = vmatpush.bf16.msra.mxu2 %v12003_v29  ;;  %8085 = vmatpush.bf16.msra.mxu3 %v12195_v57  ;;  %v12306_v29 = vld [vmem:[#allocation32 + $0x2a8] sm:$0xf]  ;;  %v13534_v57 = vld [vmem:[#allocation32 + $0x2b4] sm:$0xf0]  ;;  %v13568_v10 = vld [vmem:[#allocation32 + $0x3cc] sm:$0xf] }
 0x5de   :  { %v12307_v31 = vor.u32 %v13534_v57, %v12306_v29  ;;  %v7137_v2 = vpop.f32.mrf.mxu3  ;;  %v12167_v29 = vor.u32 %v13496_v14, %v12164_v21  ;;  %v12226_v57 = vld [vmem:[#allocation32 + $0x208] sm:$0xf] }
 0x5df   :  { %v12227_v55 = vor.u32 %v13514_v49, %v12226_v57  ;;  %v12370_v21 = vld [vmem:[#allocation32 + $0x328] sm:$0xf]  ;;  %v13546_v57 = vld [vmem:[#allocation32 + $0x314] sm:$0xf0]  ;;  %v13512_v49 = vld [vmem:[#allocation32 + $0x20c] sm:$0xf] }
 0x5e1   :  { %8076 = vmatpush.bf16.msra.mxu2 %v11987_v6  ;;  %8086 = vmatpush.bf16.msra.mxu3 %v12179_v36  ;;  %v7109_v3 = vpop.f32.mrf.mxu1  ;;  %v12020_v6 = vld [vmem:[#allocation32 + $0x78] sm:$0xf0]  ;;  %v13508_v36 = vld [vmem:[#allocation32 + $0x1ec] sm:$0xf] }
 0x5e2   :  { %v7110_v12 = vadd.f32 %v7109_v3, %v7096_v47  ;;  %v12023_v24 = vor.u32 %v13460_v39, %v12020_v6  ;;  %v12215_v22 = vor.u32 %v13508_v36, %v12212_v53  ;;  %v7123_v47 = vpop.f32.mrf.mxu2  ;;  %v12450_v36 = vld [vmem:[#allocation32 + $0x3c8] sm:$0xf] }
 0x5e3   :  { %v7124_v33 = vadd.f32 %v7123_v47, %v6299_v16  ;;  %v12116_v47 = vld [vmem:[#allocation32 + $0x138] sm:$0xf0] }
 0x5e4   :  { %v7174_v0 = vmax.f32 %v7110_v12, 0.0  ;;  %v13500_v12 = vld [vmem:[#allocation32 + $0x1ac] sm:$0xf] }
 0x5e5   :  { %8077 = vmatpush.bf16.msra.mxu2 %v11971_v44  ;;  %8087 = vmatpush.bf16.msra.mxu3 %v12163_v27  ;;  %v12196_v44 = vld [vmem:[#allocation32 + $0x1d8] sm:$0xf0]  ;;  %v12007_v27 = vor.u32 %v13456_v51, %v12004_v30  ;;  %v7138_v41 = vadd.f32 %v7137_v2, %v7124_v33  ;;  %v12434_v30 = vld [vmem:[#allocation32 + $0x3a8] sm:$0xf] }
 0x5e6   :  { %v14863_v60 = vpack.c.bf16 %v7174_v0, %v7170_v4  ;;  %v12199_v3 = vor.u32 %v13504_v23, %v12196_v44  ;;  %v11991_v4 = vor.u32 %v13452_v26, %v11988_v38  ;;  %v12242_v0 = vld [vmem:[#allocation32 + $0x228] sm:$0xf]  ;;  %v13566_v23 = vld [vmem:[#allocation32 + $0x3b4] sm:$0xf0]  ;;  %v13484_v44 = vld [vmem:[#allocation32 + $0x12c] sm:$0xf] }
 0x5e7   :  { %v13480_v26 = vld [vmem:[#allocation32 + $0x10c] sm:$0xf]  ;;  %v12100_v38 = vld [vmem:[#allocation32 + $0x118] sm:$0xf0] }
 0x5e8   :  { %8036 = vmatmul.bf16.vlgmr.msrb.gmra.mxu3 %v14858_v46  ;;  %8078 = vmatmul.bf16.vlgmr.msra.gmra.mxu2 %v14855_v20  ;;  %v12103_v33 = vor.u32 %v13480_v26, %v12100_v38  ;;  %v13576_v26 = vld [vmem:[#allocation34 + $0x8] sm:$0xff] }
 0x5e9   :  { %8126 = vmatpush.bf16.msrb.mxu2 %v12087_v5  ;;  %7994 = vmatmul.bf16.vlgmr.msrb.gmra.mxu0 %v14863_v60  ;;  %v13522_v5 = vld [vmem:[#allocation32 + $0x254] sm:$0xf0]  ;;  %v13588_v38 = vld [vmem:[#allocation34 + $0x68] sm:$0xff] }
 0x5ea   :  { %8088 = vmatpush.bf16.msra.mxu3 %v12147_v17  ;;  %8098 = vmatpush.bf16.msrb.mxu0 %v12339_v43  ;;  %v12259_v54 = vor.u32 %v13522_v5, %v12258_v61  ;;  %v13518_v17 = vld [vmem:[#allocation32 + $0x234] sm:$0xf0]  ;;  %v7151_v43 = vpop.f32.mrf.mxu0  ;;  %v12119_v61 = vor.u32 %v13484_v44, %v12116_v47 }
 0x5eb   :  { %v13562_v5 = vld [vmem:[#allocation32 + $0x394] sm:$0xf0] }
 0x5ec   :  { %v13582_v47 = vld [vmem:[#allocation34 + $0x38] sm:$0xff] }
 0x5ed   :  { %8127 = vmatpush.bf16.msrb.mxu2 %v12071_v62  ;;  %v12183_v62 = vor.u32 %v13500_v12, %v12180_v56  ;;  %v12292_v12 = vld [vmem:[#allocation32 + $0x298] sm:$0xf0] }
 0x5ee   :  { %8089 = vmatpush.bf16.msra.mxu3 %v12131_v9  ;;  %8099 = vmatpush.bf16.msrb.mxu0 %v12323_v11  ;;  %v12243_v9 = vor.u32 %v13518_v17, %v12242_v0  ;;  %v7152_v11 = vadd.f32 %v7151_v43, %v7138_v41  ;;  %v12295_v2 = vor.u32 %v13528_v63, %v12292_v12  ;;  %v12276_v0 = vld [vmem:[#allocation32 + $0x278] sm:$0xf0]  ;;  %v13587_v63 = vld [vmem:[#allocation34 + $0x60] sm:$0xff] }
 0x5f1   :  { %8128 = vmatpush.bf16.msrb.mxu2 %v12055_v18 }
 0x5f2   :  { %8090 = vmatpush.bf16.msra.mxu3 %v12115_v13  ;;  %8100 = vmatpush.bf16.msrb.mxu0 %v12307_v31  ;;  %v13574_v13 = vld [vmem:[#allocation32 + $0x3f4] sm:$0xf0]  ;;  %v13492_v31 = vld [vmem:[#allocation32 + $0x16c] sm:$0xf] }
 0x5f3   :  { %v12467_v39 = vor.u32 %v13574_v13, %v12466_v37  ;;  %v12228_v37 = vld [vmem:[#allocation32 + $0x218] sm:$0xf0] }
 0x5f4   :  { %v12468_v13 = vld [vmem:[#allocation32 + $0x3f8] sm:$0xf0] }
 0x5f5   :  { %8129 = vmatpush.bf16.msrb.mxu2 %v12039_v25  ;;  %v12148_v25 = vld [vmem:[#allocation32 + $0x178] sm:$0xf0] }
 0x5f6   :  { %8091 = vmatpush.bf16.msra.mxu3 %v12099_v15  ;;  %8101 = vmatpush.bf16.msrb.mxu0 %v12291_v19  ;;  %v12151_v6 = vor.u32 %v13492_v31, %v12148_v25  ;;  %v13570_v15 = vld [vmem:[#allocation32 + $0x3d4] sm:$0xf0]  ;;  %v13488_v19 = vld [vmem:[#allocation32 + $0x14c] sm:$0xf]  ;;  %v12231_v31 = vor.u32 %v13512_v49, %v12228_v37 }
 0x5f7   :  { %v12451_v52 = vor.u32 %v13570_v15, %v12450_v36  ;;  %v12420_v36 = vld [vmem:[#allocation32 + $0x398] sm:$0xf0]  ;;  %v13556_v15 = vld [vmem:[#allocation32 + $0x36c] sm:$0xf] }
 0x5f9   :  { %8130 = vmatpush.bf16.msrb.mxu2 %v12023_v24  ;;  %v7163_v28 = vpop.f32.mrf.mxu1  ;;  %8092 = vmatmul.bf16.vlgmr.msra.gmra.mxu3 %v14858_v46  ;;  %v12132_v24 = vld [vmem:[#allocation32 + $0x158] sm:$0xf0] }
 0x5fa   :  { %8140 = vmatpush.bf16.msrb.mxu3 %v12215_v22  ;;  %8050 = vmatmul.bf16.vlgmr.msra.gmra.mxu0 %v14863_v60  ;;  %v7164_v18 = vadd.f32 %v7163_v28, %v7150_v8  ;;  %v12324_v22 = vld [vmem:[#allocation32 + $0x2d8] sm:$0xf0]  ;;  %v12135_v51 = vor.u32 %v13488_v19, %v12132_v24  ;;  %v12418_v28 = vld [vmem:[#allocation32 + $0x388] sm:$0xf] }
 0x5fb   :  { %8102 = vmatpush.bf16.msrb.mxu0 %v12275_v45  ;;  %v12327_v16 = vor.u32 %v13536_v40, %v12324_v22  ;;  %v13532_v45 = vld [vmem:[#allocation32 + $0x2ac] sm:$0xf]  ;;  %v12419_v56 = vor.u32 %v13562_v5, %v12418_v28  ;;  %v12260_v8 = vld [vmem:[#allocation32 + $0x258] sm:$0xf0]  ;;  %v13589_v5 = vld [vmem:[#allocation34 + $0x70] sm:$0xff] }
 0x5fc   :  { %v7171_v35 = vmax.f32 %v7164_v18, 0.0  ;;  %v12263_v14 = vor.u32 %v13520_v7, %v12260_v8  ;;  %v12244_v18 = vld [vmem:[#allocation32 + $0x238] sm:$0xf0]  ;;  %v13552_v40 = vld [vmem:[#allocation32 + $0x34c] sm:$0xf]  ;;  %v13583_v7 = vld [vmem:[#allocation34 + $0x40] sm:$0xff] }
 0x5fd   :  { %8131 = vmatpush.bf16.msrb.mxu2 %v12007_v27  ;;  %v12308_v27 = vld [vmem:[#allocation32 + $0x2b8] sm:$0xf0]  ;;  %v13595_v8 = vld [vmem:[#allocation34 + $0xa0] sm:$0xff] }
 0x5fe   :  { %8141 = vmatpush.bf16.msrb.mxu3 %v12199_v3  ;;  %v12311_v3 = vor.u32 %v13532_v45, %v12308_v27  ;;  %v12404_v19 = vld [vmem:[#allocation32 + $0x378] sm:$0xf0]  ;;  %v13581_v45 = vld [vmem:[#allocation34 + $0x30] sm:$0xff]  ;;  %v13580_v27 = vld [vmem:[#allocation34 + $0x28] sm:$0xff] }
 0x5ff   :  { %8103 = vmatpush.bf16.msrb.mxu0 %v12259_v54  ;;  %v13558_v54 = vld [vmem:[#allocation32 + $0x374] sm:$0xf0]  ;;  %v12407_v24 = vor.u32 %v13556_v15, %v12404_v19  ;;  %v12388_v22 = vld [vmem:[#allocation32 + $0x358] sm:$0xf0]  ;;  %v13605_v15 = vld [vmem:[#allocation34 + $0xf0] sm:$0xff] }
 0x600   :  { %v12403_v17 = vor.u32 %v13558_v54, %v12402_v1  ;;  %v13590_v28 = vld [vmem:[#allocation34 + $0x78] sm:$0xff]  ;;  %v13585_v54 = vld [vmem:[#allocation34 + $0x50] sm:$0xff] }
 0x601   :  { %8132 = vmatpush.bf16.msrb.mxu2 %v11991_v4  ;;  %v7165_v50 = vpop.f32.mrf.mxu1  ;;  %v13524_v4 = vld [vmem:[#allocation32 + $0x26c] sm:$0xf] }
 0x602   :  { %8142 = vmatpush.bf16.msrb.mxu3 %v12183_v62  ;;  %v7166_v42 = vadd.f32 %v7165_v50, %v7152_v11  ;;  %v12279_v43 = vor.u32 %v13524_v4, %v12276_v0  ;;  %v12386_v62 = vld [vmem:[#allocation32 + $0x348] sm:$0xf]  ;;  %v13516_v11 = vld [vmem:[#allocation32 + $0x22c] sm:$0xf]  ;;  %v13597_v4 = vld [vmem:[#allocation34 + $0xb0] sm:$0xff] }
 0x603   :  { %8104 = vmatpush.bf16.msrb.mxu0 %v12243_v9  ;;  %v12387_v41 = vor.u32 %v13554_v59, %v12386_v62  ;;  %v13550_v9 = vld [vmem:[#allocation32 + $0x334] sm:$0xf0]  ;;  %v12247_v50 = vor.u32 %v13516_v11, %v12244_v18  ;;  %v13584_v0 = vld [vmem:[#allocation34 + $0x48] sm:$0xff]  ;;  %v14884_v62 = vld [vmem:[%s14921_s25] sm:$0xf] }
 0x604   :  { %v7175_v34 = vmax.f32 %v7166_v42, 0.0  ;;  %v13572_v42 = vld [vmem:[#allocation32 + $0x3ec] sm:$0xf] }
 0x605   :  { %8133 = vmatpush.bf16.msrb.mxu2 %v11975_v58  ;;  %v12371_v58 = vor.u32 %v13550_v9, %v12370_v21  ;;  %v12471_v25 = vor.u32 %v13572_v42, %v12468_v13  ;;  %v13594_v21 = vld [vmem:[#allocation34 + $0x98] sm:$0xff] }
 0x606   :  { %8143 = vmatpush.bf16.msrb.mxu3 %v12167_v29  ;;  %v14871_v53 = vpack.c.bf16 %v7175_v34, %v7171_v35  ;;  %v12354_v29 = vld [vmem:[#allocation32 + $0x308] sm:$0xf]  ;;  %v12455_v35 = vor.u32 %v13568_v10, %v12452_v32  ;;  %v13564_v34 = vld [vmem:[#allocation32 + $0x3ac] sm:$0xf] }
 0x607   :  { %8105 = vmatpush.bf16.msrb.mxu0 %v12227_v55  ;;  %v12436_v55 = vld [vmem:[#allocation32 + $0x3b8] sm:$0xf0] }
 0x608   :  { %8134 = vmatmul.bf16.vlgmr.msrb.gmra.mxu2 %v14855_v20  ;;  %8008 = vmatmul.bf16.vlgmr.msrb.gmra.mxu1 %v14871_v53  ;;  %v12435_v20 = vor.u32 %v13566_v23, %v12434_v30  ;;  %v12372_v30 = vld [vmem:[#allocation32 + $0x338] sm:$0xf0]  ;;  %v13544_v23 = vld [vmem:[#allocation32 + $0x30c] sm:$0xf] }
 0x609   :  { %8112 = vmatpush.bf16.msrb.mxu1 %v12467_v39  ;;  %v12439_v39 = vor.u32 %v13564_v34, %v12436_v55  ;;  %8454 = vmatpush.bf16.msra.mxu2 %v13582_v47  ;;  %v13591_v34 = vld [vmem:[#allocation34 + $0x80] sm:$0xff]  ;;  %v13606_v55 = vld [vmem:[#allocation34 + $0xf8] sm:$0xff] }
 0x60a   :  { %8144 = vmatpush.bf16.msrb.mxu3 %v12151_v6  ;;  %8106 = vmatmul.bf16.vlgmr.msrb.gmra.mxu0 %v14863_v60  ;;  %v13560_v6 = vld [vmem:[#allocation32 + $0x38c] sm:$0xf] }
 0x60b   :  { %8154 = vmatpush.bf16.msra.mxu0 %v12343_v48  ;;  %v12423_v48 = vor.u32 %v13560_v6, %v12420_v36  ;;  %v7311_v6 = vperm.slane %v14884_v62, 1 }
 0x60d   :  { %8113 = vmatpush.bf16.msrb.mxu1 %v12451_v52  ;;  %v12391_v52 = vor.u32 %v13552_v40, %v12388_v22  ;;  %8455 = vmatpush.bf16.msra.mxu2 %v13581_v45  ;;  %v13604_v22 = vld [vmem:[#allocation34 + $0xe8] sm:$0xff] }
 0x60e   :  { %8145 = vmatpush.bf16.msrb.mxu3 %v12135_v51  ;;  %v13548_v51 = vld [vmem:[#allocation32 + $0x32c] sm:$0xf] }
 0x60f   :  { %8155 = vmatpush.bf16.msra.mxu0 %v12327_v16  ;;  %v12375_v16 = vor.u32 %v13548_v51, %v12372_v30 }
 0x611   :  { %8114 = vmatpush.bf16.msrb.mxu1 %v12435_v20  ;;  %8456 = vmatpush.bf16.msra.mxu2 %v13580_v27  ;;  %v13579_v20 = vld [vmem:[#allocation34 + $0x20] sm:$0xff] }
 0x612   :  { %8146 = vmatpush.bf16.msrb.mxu3 %v12119_v61  ;;  %v13578_v61 = vld [vmem:[#allocation34 + $0x18] sm:$0xff] }
 0x613   :  { %8156 = vmatpush.bf16.msra.mxu0 %v12311_v3  ;;  %v13577_v3 = vld [vmem:[#allocation34 + $0x10] sm:$0xff] }
 0x615   :  { %8115 = vmatpush.bf16.msrb.mxu1 %v12419_v56  ;;  %8457 = vmatpush.bf16.msra.mxu2 %v13579_v20  ;;  %v13586_v56 = vld [vmem:[#allocation34 + $0x58] sm:$0xff] }
 0x616   :  { %8147 = vmatpush.bf16.msrb.mxu3 %v12103_v33  ;;  %v13598_v33 = vld [vmem:[#allocation34 + $0xb8] sm:$0xff] }
 0x617   :  { %8157 = vmatpush.bf16.msra.mxu0 %v12295_v2 }
 0x618   :  { %8064 = vmatmul.bf16.vlgmr.msra.gmra.mxu1 %v14871_v53 }
 0x619   :  { %8148 = vmatmul.bf16.vlgmr.msrb.gmra.mxu3 %v14858_v46  ;;  %8116 = vmatpush.bf16.msrb.mxu1 %v12403_v17  ;;  %v12355_v46 = vor.u32 %v13546_v57, %v12354_v29  ;;  %v13596_v17 = vld [vmem:[#allocation34 + $0xa8] sm:$0xff]  ;;  %v13593_v29 = vld [vmem:[#allocation34 + $0x90] sm:$0xff] }
 0x61a   :  { %8458 = vmatpush.bf16.msra.mxu2 %v13578_v61  ;;  %8468 = vmatpush.bf16.msra.mxu3 %v13590_v28 }
 0x61b   :  { %8158 = vmatpush.bf16.msra.mxu0 %v12279_v43 }
 0x61d   :  { %8117 = vmatpush.bf16.msrb.mxu1 %v12387_v41 }
 0x61e   :  { %8459 = vmatpush.bf16.msra.mxu2 %v13577_v3  ;;  %8469 = vmatpush.bf16.msra.mxu3 %v13589_v5  ;;  %v13602_v5 = vld [vmem:[#allocation34 + $0xd8] sm:$0xff] }
 0x61f   :  { %8159 = vmatpush.bf16.msra.mxu0 %v12263_v14  ;;  %v7310_v14 = vperm.slane %v14884_v62, 0 }
 0x621   :  { %8118 = vmatpush.bf16.msrb.mxu1 %v12371_v58 }
 0x622   :  { %8460 = vmatpush.bf16.msra.mxu2 %v13576_v26  ;;  %8470 = vmatpush.bf16.msra.mxu3 %v13588_v38  ;;  %v7312_v26 = vperm.slane %v14884_v62, 2 }
 0x623   :  { %8160 = vmatpush.bf16.msra.mxu0 %v12247_v50 }
 0x625   :  { %8119 = vmatpush.bf16.msrb.mxu1 %v12355_v46 }
 0x626   :  { %8471 = vmatpush.bf16.msra.mxu3 %v13587_v63 }
 0x627   :  { %8161 = vmatpush.bf16.msra.mxu0 %v12231_v31  ;;  %v13592_v31 = vld [vmem:[#allocation34 + $0x88] sm:$0xff] }
 0x628   :  { %8120 = vmatmul.bf16.vlgmr.msrb.gmra.mxu1 %v14871_v53 }
 0x629   :  { %8168 = vmatpush.bf16.msra.mxu1 %v12471_v25 }
 0x62a   :  { %8162 = vmatmul.bf16.vlgmr.msra.gmra.mxu0 %v14863_v60  ;;  %v12356_v60 = vld [vmem:[#allocation32 + $0x318] sm:$0xf0]  ;;  %8472 = vmatpush.bf16.msra.mxu3 %v13586_v56 }
 0x62b   :  { %v12359_v44 = vor.u32 %v13544_v23, %v12356_v60  ;;  %8482 = vmatpush.bf16.msrb.mxu0 %v13598_v33  ;;  %v13603_v23 = vld [vmem:[#allocation34 + $0xe0] sm:$0xff] }
 0x62d   :  { %8169 = vmatpush.bf16.msra.mxu1 %v12455_v35 }
 0x62e   :  { %8473 = vmatpush.bf16.msra.mxu3 %v13585_v54  ;;  %v13600_v54 = vld [vmem:[#allocation34 + $0xc8] sm:$0xff] }
 0x62f   :  { %8483 = vmatpush.bf16.msrb.mxu0 %v13597_v4 }
 0x631   :  { %8170 = vmatpush.bf16.msra.mxu1 %v12439_v39 }
 0x632   :  { %8474 = vmatpush.bf16.msra.mxu3 %v13584_v0 }
 0x633   :  { %8484 = vmatpush.bf16.msrb.mxu0 %v13596_v17 }
 0x635   :  { %8171 = vmatpush.bf16.msra.mxu1 %v12423_v48 }
 0x636   :  { %8475 = vmatpush.bf16.msra.mxu3 %v13583_v7  ;;  %v13599_v7 = vld [vmem:[#allocation34 + $0xc0] sm:$0xff] }
 0x637   :  { %8485 = vmatpush.bf16.msrb.mxu0 %v13595_v8 }
 0x639   :  { %8172 = vmatpush.bf16.msra.mxu1 %v12407_v24 }
 0x63b   :  { %8486 = vmatpush.bf16.msrb.mxu0 %v13594_v21 }
 0x63d   :  { %8173 = vmatpush.bf16.msra.mxu1 %v12391_v52 }
 0x63f   :  { %8487 = vmatpush.bf16.msrb.mxu0 %v13593_v29 }
 0x641   :  { %8174 = vmatpush.bf16.msra.mxu1 %v12375_v16 }
 0x643   :  { %8488 = vmatpush.bf16.msrb.mxu0 %v13592_v31 }
 0x645   :  { %8175 = vmatpush.bf16.msra.mxu1 %v12359_v44 }
 0x647   :  { %8489 = vmatpush.bf16.msrb.mxu0 %v13591_v34 }
 0x648   :  { %8176 = vmatmul.bf16.vlgmr.msra.gmra.mxu1 %v14871_v53  ;;  %v13575_v53 = vld [vmem:[#allocation34] sm:$0xff] }
 0x649   :  { %8461 = vmatpush.bf16.msra.mxu2 %v13575_v53  ;;  %8496 = vmatpush.bf16.msrb.mxu1 %v13606_v55  ;;  %v13601_v53 = vld [vmem:[#allocation34 + $0xd0] sm:$0xff] }
 0x64b   :  { %v7967_v12 = vpop.f32.mrf.mxu2 }
 0x64c   :  { %v7968_v11 = vadd.f32 %v7967_v12, %v7310_v14 }
 0x64d   :  { %8497 = vmatpush.bf16.msrb.mxu1 %v13605_v15 }
 0x651   :  { %8498 = vmatpush.bf16.msrb.mxu1 %v13604_v22 }
 0x653   :  { %v7969_v43 = vpop.f32.mrf.mxu2 }
 0x654   :  { %v7970_v58 = vadd.f32 %v7969_v43, %v7310_v14 }
 0x655   :  { %8499 = vmatpush.bf16.msrb.mxu1 %v13603_v23 }
 0x659   :  { %8500 = vmatpush.bf16.msrb.mxu1 %v13602_v5 }
 0x65b   :  { %v7981_v2 = vpop.f32.mrf.mxu3  ;;  %v8023_v18 = vpop.f32.mrf.mxu2 }
 0x65c   :  { %v7982_v50 = vadd.f32 %v7981_v2, %v7968_v11  ;;  %v8024_v40 = vadd.f32 %v8023_v18, %v7311_v6 }
 0x65d   :  { %8501 = vmatpush.bf16.msrb.mxu1 %v13601_v53 }
 0x661   :  { %8502 = vmatpush.bf16.msrb.mxu1 %v13600_v54 }
 0x663   :  { %v7983_v59 = vpop.f32.mrf.mxu3  ;;  %v8025_v39 = vpop.f32.mrf.mxu2 }
 0x664   :  { %v7984_v49 = vadd.f32 %v7983_v59, %v7970_v58  ;;  %v8026_v52 = vadd.f32 %v8025_v39, %v7311_v6 }
 0x665   :  { %8503 = vmatpush.bf16.msrb.mxu1 %v13599_v7 }
 0x666   :  { %v7995_v1 = vpop.f32.mrf.mxu0 }
 0x667   :  { %v7996_v37 = vadd.f32 %v7995_v1, %v7982_v50  ;;  %v7313_v50 = vperm.slane %v14884_v62, 3  ;;  %v13637_v62 = vld [vmem:[%s14953_s16] ss:$0 sm:$0xff] }
 0x66b   :  { %v8037_v57 = vpop.f32.mrf.mxu3  ;;  %v8079_v60 = vpop.f32.mrf.mxu2 }
 0x66c   :  { %v8038_v51 = vadd.f32 %v8037_v57, %v8024_v40  ;;  %v8080_v56 = vadd.f32 %v8079_v60, %v7312_v26 }
 0x66e   :  { %v7997_v41 = vpop.f32.mrf.mxu0 }
 0x66f   :  { %v7998_v13 = vadd.f32 %v7997_v41, %v7984_v49 }
 0x673   :  { %v8039_v48 = vpop.f32.mrf.mxu3  ;;  %v8081_v63 = vpop.f32.mrf.mxu2 }
 0x674   :  { %v8040_v30 = vadd.f32 %v8039_v48, %v8026_v52  ;;  %v8082_v2 = vadd.f32 %v8081_v63, %v7312_v26 }
 0x677   :  { %v8051_v42 = vpop.f32.mrf.mxu0 }
 0x678   :  { %v8052_v16 = vadd.f32 %v8051_v42, %v8038_v51 }
 0x67c   :  { %v8093_v45 = vpop.f32.mrf.mxu3 }
 0x67d   :  { %v8094_v1 = vadd.f32 %v8093_v45, %v8080_v56 }
 0x67f   :  { %v8053_v19 = vpop.f32.mrf.mxu0 }
 0x680   :  { %v8054_v44 = vadd.f32 %v8053_v19, %v8040_v30 }
 0x684   :  { %v8095_v33 = vpop.f32.mrf.mxu3 }
 0x685   :  { %v8009_v9 = vpop.f32.mrf.mxu1  ;;  %v8096_v0 = vadd.f32 %v8095_v33, %v8082_v2 }
 0x686   :  { %v8010_v46 = vadd.f32 %v8009_v9, %v7996_v37 }
 0x687   :  { %v8107_v61 = vpop.f32.mrf.mxu0 }
 0x688   :  { %v8182_v32 = vmax.f32 %v8010_v46, 0.0  ;;  %v8108_v17 = vadd.f32 %v8107_v61, %v8094_v1 }
 0x68b   :  { %v8135_v11 = vpop.f32.mrf.mxu2 }
 0x68c   :  { %v8136_v49 = vadd.f32 %v8135_v11, %v7313_v50 }
 0x68d   :  { %v8011_v25 = vpop.f32.mrf.mxu1 }
 0x68e   :  { %v8012_v10 = vadd.f32 %v8011_v25, %v7998_v13 }
 0x68f   :  { %v8109_v4 = vpop.f32.mrf.mxu0 }
 0x690   :  { %v8186_v35 = vmax.f32 %v8012_v10, 0.0  ;;  %v8110_v43 = vadd.f32 %v8109_v4, %v8096_v0 }
 0x692   :  { %v8190_v36 = vpack.c.bf16 %v8186_v35, %v8182_v32 }
 0x693   :  { %v8137_v29 = vpop.f32.mrf.mxu2 }
 0x694   :  { %8462 = vmatmul.bf16.vlgmr.msra.gmra.mxu2 %v8190_v36  ;;  %v8138_v42 = vadd.f32 %v8137_v29, %v7313_v50 }
 0x695   :  { %v8065_v24 = vpop.f32.mrf.mxu1 }
 0x696   :  { %v8066_v47 = vadd.f32 %v8065_v24, %v8052_v16 }
 0x698   :  { %v8183_v28 = vmax.f32 %v8066_v47, 0.0 }
 0x69c   :  { %v8149_v18 = vpop.f32.mrf.mxu3 }
 0x69d   :  { %v8067_v27 = vpop.f32.mrf.mxu1  ;;  %v8150_v13 = vadd.f32 %v8149_v18, %v8136_v49 }
 0x69e   :  { %v8068_v20 = vadd.f32 %v8067_v27, %v8054_v44 }
 0x6a0   :  { %v8187_v3 = vmax.f32 %v8068_v20, 0.0 }
 0x6a2   :  { %v8191_v38 = vpack.c.bf16 %v8187_v3, %v8183_v28 }
 0x6a4   :  { %8476 = vmatmul.bf16.vlgmr.msra.gmra.mxu3 %v8191_v38  ;;  %v8151_v37 = vpop.f32.mrf.mxu3 }
 0x6a5   :  { %v8121_v12 = vpop.f32.mrf.mxu1  ;;  %v8152_v31 = vadd.f32 %v8151_v37, %v8138_v42 }
 0x6a6   :  { %v8122_v59 = vadd.f32 %v8121_v12, %v8108_v17 }
 0x6a7   :  { %v8163_v58 = vpop.f32.mrf.mxu0 }
 0x6a8   :  { %v8184_v14 = vmax.f32 %v8122_v59, 0.0  ;;  %v8164_v25 = vadd.f32 %v8163_v58, %v8150_v13 }
 0x6ad   :  { %v8123_v8 = vpop.f32.mrf.mxu1 }
 0x6ae   :  { %v8124_v41 = vadd.f32 %v8123_v8, %v8110_v43 }
 0x6af   :  { %v8165_v46 = vpop.f32.mrf.mxu0 }
 0x6b0   :  { %v8188_v21 = vmax.f32 %v8124_v41, 0.0  ;;  %v8166_v10 = vadd.f32 %v8165_v46, %v8152_v31 }
 0x6b2   :  { %v8192_v9 = vpack.c.bf16 %v8188_v21, %v8184_v14 }
 0x6b4   :  { %8490 = vmatmul.bf16.vlgmr.msrb.gmra.mxu0 %v8192_v9 }
 0x6c5   :  { %v8177_v57 = vpop.f32.mrf.mxu1 }
 0x6c6   :  { %v8178_v32 = vadd.f32 %v8177_v57, %v8164_v25 }
 0x6c8   :  { %v8185_v55 = vmax.f32 %v8178_v32, 0.0 }
 0x6cd   :  { %v8179_v35 = vpop.f32.mrf.mxu1 }
 0x6ce   :  { %v8180_v34 = vadd.f32 %v8179_v35, %v8166_v10 }
 0x6d0   :  { %v8189_v39 = vmax.f32 %v8180_v34, 0.0 }
 0x6d2   :  { %v8193_v6 = vpack.c.bf16 %v8189_v39, %v8185_v55 }
 0x6d4   :  { %8504 = vmatmul.bf16.vlgmr.msrb.gmra.mxu1 %v8193_v6 }
 0x717   :  { %v8463_v36 = vpop.f32.mrf.mxu2 }
 0x718   :  { %v8464_v19 = vadd.f32 %v13637_v62, %v8463_v36 }
 0x71f   :  { %v8465_v22 = vpop.f32.mrf.mxu2 }
 0x720   :  { %v8466_v16 = vadd.f32 %v13637_v62, %v8465_v22 }
 0x727   :  { %v8477_v48 = vpop.f32.mrf.mxu3 }
 0x728   :  { %v8478_v24 = vadd.f32 %v8477_v48, %v8464_v19 }
 0x72f   :  { %v8479_v30 = vpop.f32.mrf.mxu3 }
 0x730   :  { %v8480_v44 = vadd.f32 %v8479_v30, %v8466_v16 }
 0x731   :  { %v8491_v15 = vpop.f32.mrf.mxu0 }
 0x732   :  { %v8492_v40 = vadd.f32 %v8491_v15, %v8478_v24 }
 0x739   :  { %v8493_v60 = vpop.f32.mrf.mxu0 }
 0x73a   :  { %v8494_v47 = vadd.f32 %v8493_v60, %v8480_v44 }
 0x751   :  { %v8505_v52 = vpop.f32.mrf.mxu1 }
 0x752   :  { %v8506_v51 = vadd.f32 %v8505_v52, %v8492_v40 }
 0x754   :  { %v12600_v23 = vmul.f32 -1.442695, %v8506_v51 }
 0x756   :  { %13638 = vpow2.f32 %v12600_v23 }
 0x759   :  { %v8507_v45 = vpop.f32.mrf.mxu1 }
 0x75a   :  { %v8508_v27 = vadd.f32 %v8507_v45, %v8494_v47 }
 0x75c   :  { %v13639_v20 = vpop.eup %13638  ;;  %v12601_v61 = vmul.f32 -1.442695, %v8508_v27 }
 0x75d   :  { %v8516_v28 = vadd.f32 1.0, %v13639_v20 }
 0x75e   :  { %13640 = vpow2.f32 %v12601_v61 }
 0x75f   :  { %13642 = vrcp.f32 %v8516_v28  ;;  %v8529_v63 = vand.u32 2147483648, %v8516_v28  ;;  %v8527_v56 = vand.u32 2147483647, %v8516_v28  ;;  %vm8523_vm2 = vweird.f32 %v8516_v28 }
 0x761   :  { %v8530_v1 = vor.u32 1.1754944e-38, %v8529_v63  ;;  %vm8528_vm4 = vcmp.eq.f32.partialorder %v8527_v56, 8.507059e+37 }
 0x764   :  { %v13641_v3 = vpop.eup %13640 }
 0x765   :  { %v13643_v5 = vpop.eup %13642  ;;  %v8517_v26 = vadd.f32 1.0, %v13641_v3 }
 0x766   :  { %v8519_v38 = vmul.f32 %v13643_v5, %v8516_v28  ;;  %vm8524_vm1 = vweird.f32 %v13643_v5 }
 0x767   :  { %13644 = vrcp.f32 %v8517_v26  ;;  %vm8525_vm3 = vmor %vm8523_vm2, %vm8524_vm1  ;;  %v8544_v43 = vand.u32 2147483648, %v8517_v26  ;;  %v8542_v7 = vand.u32 2147483647, %v8517_v26  ;;  %vm8538_vm6 = vweird.f32 %v8517_v26 }
 0x768   :  { %v8520_v53 = vsub.f32 1.0, %v8519_v38 }
 0x769   :  { %v8545_v41 = vor.u32 1.1754944e-38, %v8544_v43  ;;  %vm8543_vm8 = vcmp.eq.f32.partialorder %v8542_v7, 8.507059e+37 }
 0x76a   :  { %v8521_v12 = vmul.f32 %v13643_v5, %v8520_v53 }
 0x76c   :  { %v8522_v33 = vadd.f32 %v13643_v5, %v8521_v12 }
 0x76d   :  { %v13645_v2 = vpop.eup %13644 }
 0x76e   :  { %v8534_v54 = vmul.f32 %v13645_v2, %v8517_v26  ;;  %v8526_v4 = vsel %vm8525_vm3, %v13643_v5, %v8522_v33  ;;  %vm8539_vm5 = vweird.f32 %v13645_v2 }
 0x76f   :  { %v8531_v0 = vsel %vm8528_vm4, %v8530_v1, %v8526_v4  ;;  %vm8540_vm7 = vmor %vm8538_vm6, %vm8539_vm5 }
 0x770   :  { %v8535_v17 = vsub.f32 1.0, %v8534_v54  ;;  %8548 = vst [vmem:[#allocation35] sm:$0xff] %v8531_v0 }
 0x772   :  { %v8536_v59 = vmul.f32 %v13645_v2, %v8535_v17 }
 0x774   :  { %v8537_v8 = vadd.f32 %v13645_v2, %v8536_v59 }
 0x776   :  { %v8541_v14 = vsel %vm8540_vm7, %v13645_v2, %v8537_v8 }
 0x777   :  { %v8546_v21 = vsel %vm8543_vm8, %v8545_v41, %v8541_v14 }
 0x778   :  { %8549 = vst [vmem:[#allocation35 + $0x8] sm:$0xff] %v8546_v21 }
 0x779   :  { %8562 = dma.vmem_to_hbm [thread:$0]  %s8555_s3, 256, %s8557_s6, [#allocation4], %s14225_s18, %s14225_s18, %s14226_s29  }
 0x77a   :  { %14197 = dma.done.wait [#allocation4], 256  }
 0x77b   :  { %14198 = vsyncadd [#allocation4], 4294967040 }
 0x77c   :  { %8567 = vsyncpa [#allocation3], 1 }
 0x77d   :  { %8568 = vsyncpa [#allocation6], 1 }
 0x77e   :  { %8569 = vsyncpa [#allocation9], 1 }
 0x77f   :  { %8570 = vsyncpa [#allocation12], 1 }
 0x780   :  { %8571 = vsyncpa [#allocation15], 1 }
 0x781   :  { %8572 = vsyncpa [#allocation18], 1 }
 0x782   :  { %8573 = vsyncpa [#allocation21], 1 }
 0x783   :  { %8574 = vsyncpa [#allocation24], 1 }
 0x784   :  { %8575 = vsyncpa [#allocation27], 1 }
 0x785   :  { %8576 = vsyncpa [#allocation30], 1 }
 0x786   :  { %8577 = vsyncpa [#allocation33], 1 }
 0x787   :  { %8578 = vsyncpa [#allocation4], 1 }

</bundles_post_ra>
